<compile_context>
chip_gen: v5e
topology: v5e:2x2
jax: 0.10.0
libtpu: 0.0.40
codegen_flags: <defaults>
</compile_context>

<pallas_src>
import jax
import jax.numpy as jnp
from jax.experimental import pallas as pl
from jax.experimental.pallas import tpu as pltpu


K_WIN = 5
PAD = (K_WIN - 1) // 2


# ---------------------------------------------------------------------------
# Fused 3-layer CNN kernel: (conv1d 'same' + ReLU) x 3, all in one pallas_call
# ---------------------------------------------------------------------------
def _shift_cat(x, L, K):
    # x: (L + K - 1, C) -> im2col slab (L, K*C); one MXU push per layer.
    return jnp.concatenate([x[k:k + L, :] for k in range(K)], axis=1)


def _fused_cnn_kernel(x_ref, w1_ref, b1_ref, w2_ref, b2_ref, w3_ref, b3_ref,
                      o_ref):
    # x_ref : (B, L + 2*PAD, Cin)  bf16
    # wN_ref: (K * C_in_N, C_out_N) bf16    bN_ref: (1, C_out_N) f32
    # o_ref : (B, L, Cout) f32
    B = x_ref.shape[0]
    L = o_ref.shape[1]
    K = K_WIN

    def conv_relu(x_pad, w_ref, b_ref):
        x_cat = _shift_cat(x_pad, L, K)                       # (L, K*C) bf16
        acc = jnp.dot(x_cat, w_ref[...],
                      preferred_element_type=jnp.float32)     # f32 accumulate
        return jnp.maximum(acc + b_ref[...], 0.0)             # (L, Cout) f32

    def repad(h):
        # re-apply zero 'same' padding for the next layer, as a bf16 operand
        hb = h.astype(jnp.bfloat16)
        z = jnp.zeros((PAD, hb.shape[1]), jnp.bfloat16)
        return jnp.concatenate([z, hb, z], axis=0)

    for b in range(B):  # B is tiny & static -> unrolled; intermediates stay on-chip
        h1 = conv_relu(x_ref[b], w1_ref, b1_ref)               # (L, H1)
        h2 = conv_relu(repad(h1), w2_ref, b2_ref)              # (L, H2)
        h3 = conv_relu(repad(h2), w3_ref, b3_ref)              # (L, Cout)
        o_ref[b] = h3.astype(o_ref.dtype)


def fused_cnn(x, cp):
    # x: (B, L, Cin) f32   cp: dict with wN (K, Cin_N, Cout_N), bN (1, Cout_N)
    B, L, Cin = x.shape
    K = cp["w1"].shape[0]
    H1 = cp["w1"].shape[2]
    H2 = cp["w2"].shape[2]
    Cout = cp["w3"].shape[2]

    x_pad = jnp.pad(x, ((0, 0), (PAD, PAD), (0, 0))).astype(jnp.bfloat16)
    Lpad = L + 2 * PAD

    # (K, Cin, Cout) -> (K*Cin, Cout) im2col weight slabs, bf16 operands
    w1f = cp["w1"].reshape(K * Cin, H1).astype(jnp.bfloat16)
    w2f = cp["w2"].reshape(K * H1, H2).astype(jnp.bfloat16)
    w3f = cp["w3"].reshape(K * H2, Cout).astype(jnp.bfloat16)
    b1r = cp["b1"].reshape(1, H1).astype(jnp.float32)
    b2r = cp["b2"].reshape(1, H2).astype(jnp.float32)
    b3r = cp["b3"].reshape(1, Cout).astype(jnp.float32)

    return pl.pallas_call(
        _fused_cnn_kernel,
        out_shape=jax.ShapeDtypeStruct((B, L, Cout), jnp.float32),
        grid=(1,),
        in_specs=[
            pl.BlockSpec((B, Lpad, Cin), lambda i: (0, 0, 0)),
            pl.BlockSpec((K * Cin, H1), lambda i: (0, 0)),
            pl.BlockSpec((1, H1), lambda i: (0, 0)),
            pl.BlockSpec((K * H1, H2), lambda i: (0, 0)),
            pl.BlockSpec((1, H2), lambda i: (0, 0)),
            pl.BlockSpec((K * H2, Cout), lambda i: (0, 0)),
            pl.BlockSpec((1, Cout), lambda i: (0, 0)),
        ],
        out_specs=pl.BlockSpec((B, L, Cout), lambda i: (0, 0, 0)),
        compiler_params=pltpu.CompilerParams(
            dimension_semantics=("arbitrary",)),
    )(x_pad, w1f, b1r, w2f, b2r, w3f, b3r)


# ---------------------------------------------------------------------------
# Parameter init (deterministic, synthetic)
# ---------------------------------------------------------------------------
def _normal(key, shape, scale=0.05):
    return scale * jax.random.normal(key, shape, jnp.float32)


def init_params(key):
    ks = iter(jax.random.split(key, 40))
    nxt = lambda: next(ks)

    def cnn_params(cin, h1, h2, cout, ksz):
        return {
            "w1": _normal(nxt(), (ksz, cin, h1)), "b1": _normal(nxt(), (1, h1)),
            "w2": _normal(nxt(), (ksz, h1, h2)),  "b2": _normal(nxt(), (1, h2)),
            "w3": _normal(nxt(), (ksz, h2, cout)), "b3": _normal(nxt(), (1, cout)),
        }

    return {
        "prot_aa_emb": _normal(nxt(), (22, 128)),
        "prot_ss_emb": _normal(nxt(), (64, 128)),
        "prot_pp_emb": _normal(nxt(), (8, 128)),
        "fc1_w": _normal(nxt(), (23, 128)), "fc1_b": _normal(nxt(), (1, 128)),
        "pep_aa_emb": _normal(nxt(), (22, 128)),
        "pep_ss_emb": _normal(nxt(), (64, 128)),
        "pep_pp_emb": _normal(nxt(), (8, 128)),
        "fc2_w": _normal(nxt(), (3, 128)), "fc2_b": _normal(nxt(), (1, 128)),
        "cnn1": cnn_params(512, 64, 128, 512, 5),
        "cnn2": cnn_params(512, 64, 128, 512, 5),
    }


# ---------------------------------------------------------------------------
# traditional_feature_encoder.forward
# ---------------------------------------------------------------------------
def _build_features(X_pep, X_p, X_SS_pep, X_SS_p, X_2_pep, X_2_p,
                    X_dense_pep, X_dense_p, p):
    # TODO(synk): embedding gathers + tiny fc1/fc2 matmuls kept in plain JAX
    # (sub-10-KFLOP glue; XLA fuses them with the concat feeding the CNN kernel).
    prot_aa = jnp.take(p["prot_aa_emb"], X_p, axis=0)
    pep_aa = jnp.take(p["pep_aa_emb"], X_pep, axis=0)
    prot_ss = jnp.take(p["prot_ss_emb"], X_SS_p, axis=0)
    pep_ss = jnp.take(p["pep_ss_emb"], X_SS_pep, axis=0)
    prot_pp = jnp.take(p["prot_pp_emb"], X_2_p, axis=0)
    pep_pp = jnp.take(p["pep_pp_emb"], X_2_pep, axis=0)

    prot_dense = jnp.dot(X_dense_p, p["fc1_w"]) + p["fc1_b"]
    pep_dense = jnp.dot(X_dense_pep, p["fc2_w"]) + p["fc2_b"]

    prot_all = jnp.concatenate([prot_aa, prot_ss, prot_pp, prot_dense], axis=2)
    pep_all = jnp.concatenate([pep_aa, pep_ss, pep_pp, pep_dense], axis=2)
    return prot_all, pep_all


def traditional_feature_encoder_forward(
    X_pep, X_p, X_SS_pep, X_SS_p, X_2_pep, X_2_p, X_dense_pep, X_dense_p, p
):
    prot_all, pep_all = _build_features(
        X_pep, X_p, X_SS_pep, X_SS_p, X_2_pep, X_2_p, X_dense_pep, X_dense_p, p)
    prot_cnn_fea = fused_cnn(prot_all, p["cnn1"])
    pep_cnn_fea = fused_cnn(pep_all, p["cnn2"])
    return prot_cnn_fea, pep_cnn_fea


# ---------------------------------------------------------------------------
# Pure-JAX reference (f32) for correctness checking
# ---------------------------------------------------------------------------
def _conv_relu_ref(x, w, b):
    B, L, Cin = x.shape
    K = w.shape[0]
    pad = (K - 1) // 2
    xp = jnp.pad(x, ((0, 0), (pad, pad), (0, 0)))
    cols = jnp.concatenate([xp[:, k:k + L, :] for k in range(K)], axis=2)
    y = jnp.einsum("blc,co->blo", cols, w.reshape(K * Cin, -1)) + b.reshape(1, 1, -1)
    return jnp.maximum(y, 0.0)


def _cnn_ref(x, cp):
    h = _conv_relu_ref(x, cp["w1"], cp["b1"])
    h = _conv_relu_ref(h, cp["w2"], cp["b2"])
    h = _conv_relu_ref(h, cp["w3"], cp["b3"])
    return h


# ---------------------------------------------------------------------------
if __name__ == "__main__":
    key = jax.random.PRNGKey(0)
    B, L_PROT, L_PEP = 2, 24, 16  # small seq lens; channel dims fixed by module
    k = jax.random.split(key, 8)

    X_p = jax.random.randint(k[0], (B, L_PROT), 0, 22)
    X_SS_p = jax.random.randint(k[1], (B, L_PROT), 0, 64)
    X_2_p = jax.random.randint(k[2], (B, L_PROT), 0, 8)
    X_dense_p = jax.random.normal(k[3], (B, L_PROT, 23), jnp.float32)

    X_pep = jax.random.randint(k[4], (B, L_PEP), 0, 22)
    X_SS_pep = jax.random.randint(k[5], (B, L_PEP), 0, 64)
    X_2_pep = jax.random.randint(k[6], (B, L_PEP), 0, 8)
    X_dense_pep = jax.random.normal(k[7], (B, L_PEP, 3), jnp.float32)

    params = init_params(jax.random.PRNGKey(42))

    prot_out, pep_out = jax.jit(traditional_feature_encoder_forward)(
        X_pep, X_p, X_SS_pep, X_SS_p, X_2_pep, X_2_p, X_dense_pep, X_dense_p, params
    )
    jax.block_until_ready((prot_out, pep_out))

    # shape / semantics checks
    assert prot_out.shape == (B, L_PROT, 512), prot_out.shape
    assert pep_out.shape == (B, L_PEP, 512), pep_out.shape
    assert bool(jnp.all(prot_out >= 0)) and bool(jnp.all(pep_out >= 0))

    # numerical check against pure-JAX f32 reference (bf16 MXU operands -> loose tol)
    prot_all, pep_all = _build_features(
        X_pep, X_p, X_SS_pep, X_SS_p, X_2_pep, X_2_p, X_dense_pep, X_dense_p, params)
    prot_ref = _cnn_ref(prot_all, params["cnn1"])
    pep_ref = _cnn_ref(pep_all, params["cnn2"])
    assert bool(jnp.allclose(prot_out, prot_ref, rtol=5e-2, atol=5e-2))
    assert bool(jnp.allclose(pep_out, pep_ref, rtol=5e-2, atol=5e-2))

    print("KERNEL_OK")
</pallas_src>

<mosaic_0001>
module attributes {stable_mosaic.version = 11 : i64} {
  func.func @_fused_cnn_kernel(%arg0: i32, %arg1: memref<2x28x512xbf16, #tpu.memory_space<vmem>>, %arg2: memref<2560x64xbf16, #tpu.memory_space<vmem>>, %arg3: memref<1x64xf32, #tpu.memory_space<vmem>>, %arg4: memref<320x128xbf16, #tpu.memory_space<vmem>>, %arg5: memref<1x128xf32, #tpu.memory_space<vmem>>, %arg6: memref<640x512xbf16, #tpu.memory_space<vmem>>, %arg7: memref<1x512xf32, #tpu.memory_space<vmem>>, %arg8: memref<2x24x512xf32, #tpu.memory_space<vmem>>) attributes {dimension_semantics = [#tpu.dimension_semantics<arbitrary>], iteration_bounds = array<i64: 1>, scalar_prefetch = 0 : i64, scratch_operands = 0 : i64, tpu.core_type = #tpu.core_type<tc>, window_params = [{pipeline_mode = #tpu.pipeline_mode<synchronous>, transform_indices = @transform_0, window_bounds = array<i64: 2, 28, 512>}, {pipeline_mode = #tpu.pipeline_mode<synchronous>, transform_indices = @transform_1, window_bounds = array<i64: 2560, 64>}, {pipeline_mode = #tpu.pipeline_mode<synchronous>, transform_indices = @transform_2, window_bounds = array<i64: 1, 64>}, {pipeline_mode = #tpu.pipeline_mode<synchronous>, transform_indices = @transform_3, window_bounds = array<i64: 320, 128>}, {pipeline_mode = #tpu.pipeline_mode<synchronous>, transform_indices = @transform_4, window_bounds = array<i64: 1, 128>}, {pipeline_mode = #tpu.pipeline_mode<synchronous>, transform_indices = @transform_5, window_bounds = array<i64: 640, 512>}, {pipeline_mode = #tpu.pipeline_mode<synchronous>, transform_indices = @transform_6, window_bounds = array<i64: 1, 512>}, {pipeline_mode = #tpu.pipeline_mode<synchronous>, transform_indices = @transform_7, window_bounds = array<i64: 2, 24, 512>}]} {
    %c0 = arith.constant 0 : index
    %c0_0 = arith.constant 0 : index
    %c0_1 = arith.constant 0 : index
    %0 = vector.load %arg1[%c0, %c0_0, %c0_1] : memref<2x28x512xbf16, #tpu.memory_space<vmem>>, vector<1x28x512xbf16>
    %1 = vector.shape_cast %0 : vector<1x28x512xbf16> to vector<28x512xbf16>
    %2 = vector.extract_strided_slice %1 {offsets = [0, 0], sizes = [24, 512], strides = [1, 1]} : vector<28x512xbf16> to vector<24x512xbf16>
    %3 = vector.extract_strided_slice %1 {offsets = [1, 0], sizes = [24, 512], strides = [1, 1]} : vector<28x512xbf16> to vector<24x512xbf16>
    %4 = vector.extract_strided_slice %1 {offsets = [2, 0], sizes = [24, 512], strides = [1, 1]} : vector<28x512xbf16> to vector<24x512xbf16>
    %5 = vector.extract_strided_slice %1 {offsets = [3, 0], sizes = [24, 512], strides = [1, 1]} : vector<28x512xbf16> to vector<24x512xbf16>
    %6 = vector.extract_strided_slice %1 {offsets = [4, 0], sizes = [24, 512], strides = [1, 1]} : vector<28x512xbf16> to vector<24x512xbf16>
    %7 = tpu.concatenate %2, %3, %4, %5, %6 in 1 : vector<24x512xbf16>, vector<24x512xbf16>, vector<24x512xbf16>, vector<24x512xbf16>, vector<24x512xbf16> -> vector<24x2560xbf16>
    %c0_2 = arith.constant 0 : index
    %c0_3 = arith.constant 0 : index
    %8 = vector.load %arg2[%c0_2, %c0_3] : memref<2560x64xbf16, #tpu.memory_space<vmem>>, vector<2560x64xbf16>
    %cst = arith.constant dense<0.000000e+00> : vector<24x64xf32>
    %9 = tpu.matmul %7, %8, %cst {dimension_numbers = #tpu.dot_dimension_numbers<[1], [0], [0], [1], [0, 0, 1, 1], [], []>} : vector<24x2560xbf16>, vector<2560x64xbf16>, vector<24x64xf32> -> vector<24x64xf32>
    %c0_4 = arith.constant 0 : index
    %c0_5 = arith.constant 0 : index
    %10 = vector.load %arg3[%c0_4, %c0_5] : memref<1x64xf32, #tpu.memory_space<vmem>>, vector<1x64xf32>
    %11 = vector.broadcast %10 : vector<1x64xf32> to vector<24x64xf32>
    %12 = arith.addf %9, %11 : vector<24x64xf32>
    %cst_6 = arith.constant 0.000000e+00 : f32
    %13 = vector.broadcast %cst_6 : f32 to vector<24x64xf32>
    %14 = arith.maximumf %12, %13 : vector<24x64xf32>
    %15 = arith.truncf %14 : vector<24x64xf32> to vector<24x64xbf16>
    %cst_7 = arith.constant 0.000000e+00 : bf16
    %16 = vector.broadcast %cst_7 : bf16 to vector<2x64xbf16>
    %17 = tpu.concatenate %16, %15, %16 in 0 : vector<2x64xbf16>, vector<24x64xbf16>, vector<2x64xbf16> -> vector<28x64xbf16>
    %18 = vector.extract_strided_slice %17 {offsets = [0, 0], sizes = [24, 64], strides = [1, 1]} : vector<28x64xbf16> to vector<24x64xbf16>
    %19 = vector.extract_strided_slice %17 {offsets = [1, 0], sizes = [24, 64], strides = [1, 1]} : vector<28x64xbf16> to vector<24x64xbf16>
    %20 = vector.extract_strided_slice %17 {offsets = [2, 0], sizes = [24, 64], strides = [1, 1]} : vector<28x64xbf16> to vector<24x64xbf16>
    %21 = vector.extract_strided_slice %17 {offsets = [3, 0], sizes = [24, 64], strides = [1, 1]} : vector<28x64xbf16> to vector<24x64xbf16>
    %22 = vector.extract_strided_slice %17 {offsets = [4, 0], sizes = [24, 64], strides = [1, 1]} : vector<28x64xbf16> to vector<24x64xbf16>
    %23 = tpu.concatenate %18, %19, %20, %21, %22 in 1 : vector<24x64xbf16>, vector<24x64xbf16>, vector<24x64xbf16>, vector<24x64xbf16>, vector<24x64xbf16> -> vector<24x320xbf16>
    %c0_8 = arith.constant 0 : index
    %c0_9 = arith.constant 0 : index
    %24 = vector.load %arg4[%c0_8, %c0_9] : memref<320x128xbf16, #tpu.memory_space<vmem>>, vector<320x128xbf16>
    %cst_10 = arith.constant dense<0.000000e+00> : vector<24x128xf32>
    %25 = tpu.matmul %23, %24, %cst_10 {dimension_numbers = #tpu.dot_dimension_numbers<[1], [0], [0], [1], [0, 0, 1, 1], [], []>} : vector<24x320xbf16>, vector<320x128xbf16>, vector<24x128xf32> -> vector<24x128xf32>
    %c0_11 = arith.constant 0 : index
    %c0_12 = arith.constant 0 : index
    %26 = vector.load %arg5[%c0_11, %c0_12] : memref<1x128xf32, #tpu.memory_space<vmem>>, vector<1x128xf32>
    %27 = vector.broadcast %26 : vector<1x128xf32> to vector<24x128xf32>
    %28 = arith.addf %25, %27 : vector<24x128xf32>
    %cst_13 = arith.constant 0.000000e+00 : f32
    %29 = vector.broadcast %cst_13 : f32 to vector<24x128xf32>
    %30 = arith.maximumf %28, %29 : vector<24x128xf32>
    %31 = arith.truncf %30 : vector<24x128xf32> to vector<24x128xbf16>
    %cst_14 = arith.constant 0.000000e+00 : bf16
    %32 = vector.broadcast %cst_14 : bf16 to vector<2x128xbf16>
    %33 = tpu.concatenate %32, %31, %32 in 0 : vector<2x128xbf16>, vector<24x128xbf16>, vector<2x128xbf16> -> vector<28x128xbf16>
    %34 = vector.extract_strided_slice %33 {offsets = [0, 0], sizes = [24, 128], strides = [1, 1]} : vector<28x128xbf16> to vector<24x128xbf16>
    %35 = vector.extract_strided_slice %33 {offsets = [1, 0], sizes = [24, 128], strides = [1, 1]} : vector<28x128xbf16> to vector<24x128xbf16>
    %36 = vector.extract_strided_slice %33 {offsets = [2, 0], sizes = [24, 128], strides = [1, 1]} : vector<28x128xbf16> to vector<24x128xbf16>
    %37 = vector.extract_strided_slice %33 {offsets = [3, 0], sizes = [24, 128], strides = [1, 1]} : vector<28x128xbf16> to vector<24x128xbf16>
    %38 = vector.extract_strided_slice %33 {offsets = [4, 0], sizes = [24, 128], strides = [1, 1]} : vector<28x128xbf16> to vector<24x128xbf16>
    %39 = tpu.concatenate %34, %35, %36, %37, %38 in 1 : vector<24x128xbf16>, vector<24x128xbf16>, vector<24x128xbf16>, vector<24x128xbf16>, vector<24x128xbf16> -> vector<24x640xbf16>
    %c0_15 = arith.constant 0 : index
    %c0_16 = arith.constant 0 : index
    %40 = vector.load %arg6[%c0_15, %c0_16] : memref<640x512xbf16, #tpu.memory_space<vmem>>, vector<640x512xbf16>
    %cst_17 = arith.constant dense<0.000000e+00> : vector<24x512xf32>
    %41 = tpu.matmul %39, %40, %cst_17 {dimension_numbers = #tpu.dot_dimension_numbers<[1], [0], [0], [1], [0, 0, 1, 1], [], []>} : vector<24x640xbf16>, vector<640x512xbf16>, vector<24x512xf32> -> vector<24x512xf32>
    %c0_18 = arith.constant 0 : index
    %c0_19 = arith.constant 0 : index
    %42 = vector.load %arg7[%c0_18, %c0_19] : memref<1x512xf32, #tpu.memory_space<vmem>>, vector<1x512xf32>
    %43 = vector.broadcast %42 : vector<1x512xf32> to vector<24x512xf32>
    %44 = arith.addf %41, %43 : vector<24x512xf32>
    %cst_20 = arith.constant 0.000000e+00 : f32
    %45 = vector.broadcast %cst_20 : f32 to vector<24x512xf32>
    %46 = arith.maximumf %44, %45 : vector<24x512xf32>
    %c0_21 = arith.constant 0 : index
    %c0_22 = arith.constant 0 : index
    %c0_23 = arith.constant 0 : index
    %47 = vector.load %arg8[%c0_21, %c0_22, %c0_23] : memref<2x24x512xf32, #tpu.memory_space<vmem>>, vector<1x24x512xf32>
    %48 = vector.shape_cast %47 : vector<1x24x512xf32> to vector<24x512xf32>
    %49 = vector.shape_cast %46 : vector<24x512xf32> to vector<1x24x512xf32>
    tpu.vector_store %arg8[%c0_21, %c0_22, %c0_23], %49 {strides = array<i32>} : memref<2x24x512xf32, #tpu.memory_space<vmem>>, vector<1x24x512xf32>,
    %c1 = arith.constant 1 : index
    %c0_24 = arith.constant 0 : index
    %c0_25 = arith.constant 0 : index
    %50 = vector.load %arg1[%c1, %c0_24, %c0_25] : memref<2x28x512xbf16, #tpu.memory_space<vmem>>, vector<1x28x512xbf16>
    %51 = vector.shape_cast %50 : vector<1x28x512xbf16> to vector<28x512xbf16>
    %52 = vector.extract_strided_slice %51 {offsets = [0, 0], sizes = [24, 512], strides = [1, 1]} : vector<28x512xbf16> to vector<24x512xbf16>
    %53 = vector.extract_strided_slice %51 {offsets = [1, 0], sizes = [24, 512], strides = [1, 1]} : vector<28x512xbf16> to vector<24x512xbf16>
    %54 = vector.extract_strided_slice %51 {offsets = [2, 0], sizes = [24, 512], strides = [1, 1]} : vector<28x512xbf16> to vector<24x512xbf16>
    %55 = vector.extract_strided_slice %51 {offsets = [3, 0], sizes = [24, 512], strides = [1, 1]} : vector<28x512xbf16> to vector<24x512xbf16>
    %56 = vector.extract_strided_slice %51 {offsets = [4, 0], sizes = [24, 512], strides = [1, 1]} : vector<28x512xbf16> to vector<24x512xbf16>
    %57 = tpu.concatenate %52, %53, %54, %55, %56 in 1 : vector<24x512xbf16>, vector<24x512xbf16>, vector<24x512xbf16>, vector<24x512xbf16>, vector<24x512xbf16> -> vector<24x2560xbf16>
    %c0_26 = arith.constant 0 : index
    %c0_27 = arith.constant 0 : index
    %58 = vector.load %arg2[%c0_26, %c0_27] : memref<2560x64xbf16, #tpu.memory_space<vmem>>, vector<2560x64xbf16>
    %cst_28 = arith.constant dense<0.000000e+00> : vector<24x64xf32>
    %59 = tpu.matmul %57, %58, %cst_28 {dimension_numbers = #tpu.dot_dimension_numbers<[1], [0], [0], [1], [0, 0, 1, 1], [], []>} : vector<24x2560xbf16>, vector<2560x64xbf16>, vector<24x64xf32> -> vector<24x64xf32>
    %c0_29 = arith.constant 0 : index
    %c0_30 = arith.constant 0 : index
    %60 = vector.load %arg3[%c0_29, %c0_30] : memref<1x64xf32, #tpu.memory_space<vmem>>, vector<1x64xf32>
    %61 = vector.broadcast %60 : vector<1x64xf32> to vector<24x64xf32>
    %62 = arith.addf %59, %61 : vector<24x64xf32>
    %cst_31 = arith.constant 0.000000e+00 : f32
    %63 = vector.broadcast %cst_31 : f32 to vector<24x64xf32>
    %64 = arith.maximumf %62, %63 : vector<24x64xf32>
    %65 = arith.truncf %64 : vector<24x64xf32> to vector<24x64xbf16>
    %cst_32 = arith.constant 0.000000e+00 : bf16
    %66 = vector.broadcast %cst_32 : bf16 to vector<2x64xbf16>
    %67 = tpu.concatenate %66, %65, %66 in 0 : vector<2x64xbf16>, vector<24x64xbf16>, vector<2x64xbf16> -> vector<28x64xbf16>
    %68 = vector.extract_strided_slice %67 {offsets = [0, 0], sizes = [24, 64], strides = [1, 1]} : vector<28x64xbf16> to vector<24x64xbf16>
    %69 = vector.extract_strided_slice %67 {offsets = [1, 0], sizes = [24, 64], strides = [1, 1]} : vector<28x64xbf16> to vector<24x64xbf16>
    %70 = vector.extract_strided_slice %67 {offsets = [2, 0], sizes = [24, 64], strides = [1, 1]} : vector<28x64xbf16> to vector<24x64xbf16>
    %71 = vector.extract_strided_slice %67 {offsets = [3, 0], sizes = [24, 64], strides = [1, 1]} : vector<28x64xbf16> to vector<24x64xbf16>
    %72 = vector.extract_strided_slice %67 {offsets = [4, 0], sizes = [24, 64], strides = [1, 1]} : vector<28x64xbf16> to vector<24x64xbf16>
    %73 = tpu.concatenate %68, %69, %70, %71, %72 in 1 : vector<24x64xbf16>, vector<24x64xbf16>, vector<24x64xbf16>, vector<24x64xbf16>, vector<24x64xbf16> -> vector<24x320xbf16>
    %c0_33 = arith.constant 0 : index
    %c0_34 = arith.constant 0 : index
    %74 = vector.load %arg4[%c0_33, %c0_34] : memref<320x128xbf16, #tpu.memory_space<vmem>>, vector<320x128xbf16>
    %cst_35 = arith.constant dense<0.000000e+00> : vector<24x128xf32>
    %75 = tpu.matmul %73, %74, %cst_35 {dimension_numbers = #tpu.dot_dimension_numbers<[1], [0], [0], [1], [0, 0, 1, 1], [], []>} : vector<24x320xbf16>, vector<320x128xbf16>, vector<24x128xf32> -> vector<24x128xf32>
    %c0_36 = arith.constant 0 : index
    %c0_37 = arith.constant 0 : index
    %76 = vector.load %arg5[%c0_36, %c0_37] : memref<1x128xf32, #tpu.memory_space<vmem>>, vector<1x128xf32>
    %77 = vector.broadcast %76 : vector<1x128xf32> to vector<24x128xf32>
    %78 = arith.addf %75, %77 : vector<24x128xf32>
    %cst_38 = arith.constant 0.000000e+00 : f32
    %79 = vector.broadcast %cst_38 : f32 to vector<24x128xf32>
    %80 = arith.maximumf %78, %79 : vector<24x128xf32>
    %81 = arith.truncf %80 : vector<24x128xf32> to vector<24x128xbf16>
    %cst_39 = arith.constant 0.000000e+00 : bf16
    %82 = vector.broadcast %cst_39 : bf16 to vector<2x128xbf16>
    %83 = tpu.concatenate %82, %81, %82 in 0 : vector<2x128xbf16>, vector<24x128xbf16>, vector<2x128xbf16> -> vector<28x128xbf16>
    %84 = vector.extract_strided_slice %83 {offsets = [0, 0], sizes = [24, 128], strides = [1, 1]} : vector<28x128xbf16> to vector<24x128xbf16>
    %85 = vector.extract_strided_slice %83 {offsets = [1, 0], sizes = [24, 128], strides = [1, 1]} : vector<28x128xbf16> to vector<24x128xbf16>
    %86 = vector.extract_strided_slice %83 {offsets = [2, 0], sizes = [24, 128], strides = [1, 1]} : vector<28x128xbf16> to vector<24x128xbf16>
    %87 = vector.extract_strided_slice %83 {offsets = [3, 0], sizes = [24, 128], strides = [1, 1]} : vector<28x128xbf16> to vector<24x128xbf16>
    %88 = vector.extract_strided_slice %83 {offsets = [4, 0], sizes = [24, 128], strides = [1, 1]} : vector<28x128xbf16> to vector<24x128xbf16>
    %89 = tpu.concatenate %84, %85, %86, %87, %88 in 1 : vector<24x128xbf16>, vector<24x128xbf16>, vector<24x128xbf16>, vector<24x128xbf16>, vector<24x128xbf16> -> vector<24x640xbf16>
    %c0_40 = arith.constant 0 : index
    %c0_41 = arith.constant 0 : index
    %90 = vector.load %arg6[%c0_40, %c0_41] : memref<640x512xbf16, #tpu.memory_space<vmem>>, vector<640x512xbf16>
    %cst_42 = arith.constant dense<0.000000e+00> : vector<24x512xf32>
    %91 = tpu.matmul %89, %90, %cst_42 {dimension_numbers = #tpu.dot_dimension_numbers<[1], [0], [0], [1], [0, 0, 1, 1], [], []>} : vector<24x640xbf16>, vector<640x512xbf16>, vector<24x512xf32> -> vector<24x512xf32>
    %c0_43 = arith.constant 0 : index
    %c0_44 = arith.constant 0 : index
    %92 = vector.load %arg7[%c0_43, %c0_44] : memref<1x512xf32, #tpu.memory_space<vmem>>, vector<1x512xf32>
    %93 = vector.broadcast %92 : vector<1x512xf32> to vector<24x512xf32>
    %94 = arith.addf %91, %93 : vector<24x512xf32>
    %cst_45 = arith.constant 0.000000e+00 : f32
    %95 = vector.broadcast %cst_45 : f32 to vector<24x512xf32>
    %96 = arith.maximumf %94, %95 : vector<24x512xf32>
    %c1_46 = arith.constant 1 : index
    %c0_47 = arith.constant 0 : index
    %c0_48 = arith.constant 0 : index
    %97 = vector.load %arg8[%c1_46, %c0_47, %c0_48] : memref<2x24x512xf32, #tpu.memory_space<vmem>>, vector<1x24x512xf32>
    %98 = vector.shape_cast %97 : vector<1x24x512xf32> to vector<24x512xf32>
    %99 = vector.shape_cast %96 : vector<24x512xf32> to vector<1x24x512xf32>
    tpu.vector_store %arg8[%c1_46, %c0_47, %c0_48], %99 {strides = array<i32>} : memref<2x24x512xf32, #tpu.memory_space<vmem>>, vector<1x24x512xf32>,
    return
  }
  func.func @transform_0(%arg0: i32) -> (i32, i32, i32) {
    %c0_i32 = arith.constant 0 : i32
    %c0_i32_0 = arith.constant 0 : i32
    %c0_i32_1 = arith.constant 0 : i32
    %c0_i32_2 = arith.constant 0 : i32
    return %c0_i32, %c0_i32_0, %c0_i32_1 : i32, i32, i32
  }
  func.func @transform_1(%arg0: i32) -> (i32, i32) {
    %c0_i32 = arith.constant 0 : i32
    %c0_i32_0 = arith.constant 0 : i32
    %c0_i32_1 = arith.constant 0 : i32
    return %c0_i32, %c0_i32_0 : i32, i32
  }
  func.func @transform_2(%arg0: i32) -> (i32, i32) {
    %c0_i32 = arith.constant 0 : i32
    %c0_i32_0 = arith.constant 0 : i32
    %c0_i32_1 = arith.constant 0 : i32
    return %c0_i32, %c0_i32_0 : i32, i32
  }
  func.func @transform_3(%arg0: i32) -> (i32, i32) {
    %c0_i32 = arith.constant 0 : i32
    %c0_i32_0 = arith.constant 0 : i32
    %c0_i32_1 = arith.constant 0 : i32
    return %c0_i32, %c0_i32_0 : i32, i32
  }
  func.func @transform_4(%arg0: i32) -> (i32, i32) {
    %c0_i32 = arith.constant 0 : i32
    %c0_i32_0 = arith.constant 0 : i32
    %c0_i32_1 = arith.constant 0 : i32
    return %c0_i32, %c0_i32_0 : i32, i32
  }
  func.func @transform_5(%arg0: i32) -> (i32, i32) {
    %c0_i32 = arith.constant 0 : i32
    %c0_i32_0 = arith.constant 0 : i32
    %c0_i32_1 = arith.constant 0 : i32
    return %c0_i32, %c0_i32_0 : i32, i32
  }
  func.func @transform_6(%arg0: i32) -> (i32, i32) {
    %c0_i32 = arith.constant 0 : i32
    %c0_i32_0 = arith.constant 0 : i32
    %c0_i32_1 = arith.constant 0 : i32
    return %c0_i32, %c0_i32_0 : i32, i32
  }
  func.func @transform_7(%arg0: i32) -> (i32, i32, i32) {
    %c0_i32 = arith.constant 0 : i32
    %c0_i32_0 = arith.constant 0 : i32
    %c0_i32_1 = arith.constant 0 : i32
    %c0_i32_2 = arith.constant 0 : i32
    return %c0_i32, %c0_i32_0, %c0_i32_1 : i32, i32, i32
  }
}

module attributes {stable_mosaic.version = 11 : i64} {
  func.func @_fused_cnn_kernel(%arg0: i32, %arg1: memref<2x20x512xbf16, #tpu.memory_space<vmem>>, %arg2: memref<2560x64xbf16, #tpu.memory_space<vmem>>, %arg3: memref<1x64xf32, #tpu.memory_space<vmem>>, %arg4: memref<320x128xbf16, #tpu.memory_space<vmem>>, %arg5: memref<1x128xf32, #tpu.memory_space<vmem>>, %arg6: memref<640x512xbf16, #tpu.memory_space<vmem>>, %arg7: memref<1x512xf32, #tpu.memory_space<vmem>>, %arg8: memref<2x16x512xf32, #tpu.memory_space<vmem>>) attributes {dimension_semantics = [#tpu.dimension_semantics<arbitrary>], iteration_bounds = array<i64: 1>, scalar_prefetch = 0 : i64, scratch_operands = 0 : i64, tpu.core_type = #tpu.core_type<tc>, window_params = [{pipeline_mode = #tpu.pipeline_mode<synchronous>, transform_indices = @transform_0, window_bounds = array<i64: 2, 20, 512>}, {pipeline_mode = #tpu.pipeline_mode<synchronous>, transform_indices = @transform_1, window_bounds = array<i64: 2560, 64>}, {pipeline_mode = #tpu.pipeline_mode<synchronous>, transform_indices = @transform_2, window_bounds = array<i64: 1, 64>}, {pipeline_mode = #tpu.pipeline_mode<synchronous>, transform_indices = @transform_3, window_bounds = array<i64: 320, 128>}, {pipeline_mode = #tpu.pipeline_mode<synchronous>, transform_indices = @transform_4, window_bounds = array<i64: 1, 128>}, {pipeline_mode = #tpu.pipeline_mode<synchronous>, transform_indices = @transform_5, window_bounds = array<i64: 640, 512>}, {pipeline_mode = #tpu.pipeline_mode<synchronous>, transform_indices = @transform_6, window_bounds = array<i64: 1, 512>}, {pipeline_mode = #tpu.pipeline_mode<synchronous>, transform_indices = @transform_7, window_bounds = array<i64: 2, 16, 512>}]} {
    %c0 = arith.constant 0 : index
    %c0_0 = arith.constant 0 : index
    %c0_1 = arith.constant 0 : index
    %0 = vector.load %arg1[%c0, %c0_0, %c0_1] : memref<2x20x512xbf16, #tpu.memory_space<vmem>>, vector<1x20x512xbf16>
    %1 = vector.shape_cast %0 : vector<1x20x512xbf16> to vector<20x512xbf16>
    %2 = vector.extract_strided_slice %1 {offsets = [0, 0], sizes = [16, 512], strides = [1, 1]} : vector<20x512xbf16> to vector<16x512xbf16>
    %3 = vector.extract_strided_slice %1 {offsets = [1, 0], sizes = [16, 512], strides = [1, 1]} : vector<20x512xbf16> to vector<16x512xbf16>
    %4 = vector.extract_strided_slice %1 {offsets = [2, 0], sizes = [16, 512], strides = [1, 1]} : vector<20x512xbf16> to vector<16x512xbf16>
    %5 = vector.extract_strided_slice %1 {offsets = [3, 0], sizes = [16, 512], strides = [1, 1]} : vector<20x512xbf16> to vector<16x512xbf16>
    %6 = vector.extract_strided_slice %1 {offsets = [4, 0], sizes = [16, 512], strides = [1, 1]} : vector<20x512xbf16> to vector<16x512xbf16>
    %7 = tpu.concatenate %2, %3, %4, %5, %6 in 1 : vector<16x512xbf16>, vector<16x512xbf16>, vector<16x512xbf16>, vector<16x512xbf16>, vector<16x512xbf16> -> vector<16x2560xbf16>
    %c0_2 = arith.constant 0 : index
    %c0_3 = arith.constant 0 : index
    %8 = vector.load %arg2[%c0_2, %c0_3] : memref<2560x64xbf16, #tpu.memory_space<vmem>>, vector<2560x64xbf16>
    %cst = arith.constant dense<0.000000e+00> : vector<16x64xf32>
    %9 = tpu.matmul %7, %8, %cst {dimension_numbers = #tpu.dot_dimension_numbers<[1], [0], [0], [1], [0, 0, 1, 1], [], []>} : vector<16x2560xbf16>, vector<2560x64xbf16>, vector<16x64xf32> -> vector<16x64xf32>
    %c0_4 = arith.constant 0 : index
    %c0_5 = arith.constant 0 : index
    %10 = vector.load %arg3[%c0_4, %c0_5] : memref<1x64xf32, #tpu.memory_space<vmem>>, vector<1x64xf32>
    %11 = vector.broadcast %10 : vector<1x64xf32> to vector<16x64xf32>
    %12 = arith.addf %9, %11 : vector<16x64xf32>
    %cst_6 = arith.constant 0.000000e+00 : f32
    %13 = vector.broadcast %cst_6 : f32 to vector<16x64xf32>
    %14 = arith.maximumf %12, %13 : vector<16x64xf32>
    %15 = arith.truncf %14 : vector<16x64xf32> to vector<16x64xbf16>
    %cst_7 = arith.constant 0.000000e+00 : bf16
    %16 = vector.broadcast %cst_7 : bf16 to vector<2x64xbf16>
    %17 = tpu.concatenate %16, %15, %16 in 0 : vector<2x64xbf16>, vector<16x64xbf16>, vector<2x64xbf16> -> vector<20x64xbf16>
    %18 = vector.extract_strided_slice %17 {offsets = [0, 0], sizes = [16, 64], strides = [1, 1]} : vector<20x64xbf16> to vector<16x64xbf16>
    %19 = vector.extract_strided_slice %17 {offsets = [1, 0], sizes = [16, 64], strides = [1, 1]} : vector<20x64xbf16> to vector<16x64xbf16>
    %20 = vector.extract_strided_slice %17 {offsets = [2, 0], sizes = [16, 64], strides = [1, 1]} : vector<20x64xbf16> to vector<16x64xbf16>
    %21 = vector.extract_strided_slice %17 {offsets = [3, 0], sizes = [16, 64], strides = [1, 1]} : vector<20x64xbf16> to vector<16x64xbf16>
    %22 = vector.extract_strided_slice %17 {offsets = [4, 0], sizes = [16, 64], strides = [1, 1]} : vector<20x64xbf16> to vector<16x64xbf16>
    %23 = tpu.concatenate %18, %19, %20, %21, %22 in 1 : vector<16x64xbf16>, vector<16x64xbf16>, vector<16x64xbf16>, vector<16x64xbf16>, vector<16x64xbf16> -> vector<16x320xbf16>
    %c0_8 = arith.constant 0 : index
    %c0_9 = arith.constant 0 : index
    %24 = vector.load %arg4[%c0_8, %c0_9] : memref<320x128xbf16, #tpu.memory_space<vmem>>, vector<320x128xbf16>
    %cst_10 = arith.constant dense<0.000000e+00> : vector<16x128xf32>
    %25 = tpu.matmul %23, %24, %cst_10 {dimension_numbers = #tpu.dot_dimension_numbers<[1], [0], [0], [1], [0, 0, 1, 1], [], []>} : vector<16x320xbf16>, vector<320x128xbf16>, vector<16x128xf32> -> vector<16x128xf32>
    %c0_11 = arith.constant 0 : index
    %c0_12 = arith.constant 0 : index
    %26 = vector.load %arg5[%c0_11, %c0_12] : memref<1x128xf32, #tpu.memory_space<vmem>>, vector<1x128xf32>
    %27 = vector.broadcast %26 : vector<1x128xf32> to vector<16x128xf32>
    %28 = arith.addf %25, %27 : vector<16x128xf32>
    %cst_13 = arith.constant 0.000000e+00 : f32
    %29 = vector.broadcast %cst_13 : f32 to vector<16x128xf32>
    %30 = arith.maximumf %28, %29 : vector<16x128xf32>
    %31 = arith.truncf %30 : vector<16x128xf32> to vector<16x128xbf16>
    %cst_14 = arith.constant 0.000000e+00 : bf16
    %32 = vector.broadcast %cst_14 : bf16 to vector<2x128xbf16>
    %33 = tpu.concatenate %32, %31, %32 in 0 : vector<2x128xbf16>, vector<16x128xbf16>, vector<2x128xbf16> -> vector<20x128xbf16>
    %34 = vector.extract_strided_slice %33 {offsets = [0, 0], sizes = [16, 128], strides = [1, 1]} : vector<20x128xbf16> to vector<16x128xbf16>
    %35 = vector.extract_strided_slice %33 {offsets = [1, 0], sizes = [16, 128], strides = [1, 1]} : vector<20x128xbf16> to vector<16x128xbf16>
    %36 = vector.extract_strided_slice %33 {offsets = [2, 0], sizes = [16, 128], strides = [1, 1]} : vector<20x128xbf16> to vector<16x128xbf16>
    %37 = vector.extract_strided_slice %33 {offsets = [3, 0], sizes = [16, 128], strides = [1, 1]} : vector<20x128xbf16> to vector<16x128xbf16>
    %38 = vector.extract_strided_slice %33 {offsets = [4, 0], sizes = [16, 128], strides = [1, 1]} : vector<20x128xbf16> to vector<16x128xbf16>
    %39 = tpu.concatenate %34, %35, %36, %37, %38 in 1 : vector<16x128xbf16>, vector<16x128xbf16>, vector<16x128xbf16>, vector<16x128xbf16>, vector<16x128xbf16> -> vector<16x640xbf16>
    %c0_15 = arith.constant 0 : index
    %c0_16 = arith.constant 0 : index
    %40 = vector.load %arg6[%c0_15, %c0_16] : memref<640x512xbf16, #tpu.memory_space<vmem>>, vector<640x512xbf16>
    %cst_17 = arith.constant dense<0.000000e+00> : vector<16x512xf32>
    %41 = tpu.matmul %39, %40, %cst_17 {dimension_numbers = #tpu.dot_dimension_numbers<[1], [0], [0], [1], [0, 0, 1, 1], [], []>} : vector<16x640xbf16>, vector<640x512xbf16>, vector<16x512xf32> -> vector<16x512xf32>
    %c0_18 = arith.constant 0 : index
    %c0_19 = arith.constant 0 : index
    %42 = vector.load %arg7[%c0_18, %c0_19] : memref<1x512xf32, #tpu.memory_space<vmem>>, vector<1x512xf32>
    %43 = vector.broadcast %42 : vector<1x512xf32> to vector<16x512xf32>
    %44 = arith.addf %41, %43 : vector<16x512xf32>
    %cst_20 = arith.constant 0.000000e+00 : f32
    %45 = vector.broadcast %cst_20 : f32 to vector<16x512xf32>
    %46 = arith.maximumf %44, %45 : vector<16x512xf32>
    %c0_21 = arith.constant 0 : index
    %c0_22 = arith.constant 0 : index
    %c0_23 = arith.constant 0 : index
    %47 = vector.load %arg8[%c0_21, %c0_22, %c0_23] : memref<2x16x512xf32, #tpu.memory_space<vmem>>, vector<1x16x512xf32>
    %48 = vector.shape_cast %47 : vector<1x16x512xf32> to vector<16x512xf32>
    %49 = vector.shape_cast %46 : vector<16x512xf32> to vector<1x16x512xf32>
    tpu.vector_store %arg8[%c0_21, %c0_22, %c0_23], %49 {strides = array<i32>} : memref<2x16x512xf32, #tpu.memory_space<vmem>>, vector<1x16x512xf32>,
    %c1 = arith.constant 1 : index
    %c0_24 = arith.constant 0 : index
    %c0_25 = arith.constant 0 : index
    %50 = vector.load %arg1[%c1, %c0_24, %c0_25] : memref<2x20x512xbf16, #tpu.memory_space<vmem>>, vector<1x20x512xbf16>
    %51 = vector.shape_cast %50 : vector<1x20x512xbf16> to vector<20x512xbf16>
    %52 = vector.extract_strided_slice %51 {offsets = [0, 0], sizes = [16, 512], strides = [1, 1]} : vector<20x512xbf16> to vector<16x512xbf16>
    %53 = vector.extract_strided_slice %51 {offsets = [1, 0], sizes = [16, 512], strides = [1, 1]} : vector<20x512xbf16> to vector<16x512xbf16>
    %54 = vector.extract_strided_slice %51 {offsets = [2, 0], sizes = [16, 512], strides = [1, 1]} : vector<20x512xbf16> to vector<16x512xbf16>
    %55 = vector.extract_strided_slice %51 {offsets = [3, 0], sizes = [16, 512], strides = [1, 1]} : vector<20x512xbf16> to vector<16x512xbf16>
    %56 = vector.extract_strided_slice %51 {offsets = [4, 0], sizes = [16, 512], strides = [1, 1]} : vector<20x512xbf16> to vector<16x512xbf16>
    %57 = tpu.concatenate %52, %53, %54, %55, %56 in 1 : vector<16x512xbf16>, vector<16x512xbf16>, vector<16x512xbf16>, vector<16x512xbf16>, vector<16x512xbf16> -> vector<16x2560xbf16>
    %c0_26 = arith.constant 0 : index
    %c0_27 = arith.constant 0 : index
    %58 = vector.load %arg2[%c0_26, %c0_27] : memref<2560x64xbf16, #tpu.memory_space<vmem>>, vector<2560x64xbf16>
    %cst_28 = arith.constant dense<0.000000e+00> : vector<16x64xf32>
    %59 = tpu.matmul %57, %58, %cst_28 {dimension_numbers = #tpu.dot_dimension_numbers<[1], [0], [0], [1], [0, 0, 1, 1], [], []>} : vector<16x2560xbf16>, vector<2560x64xbf16>, vector<16x64xf32> -> vector<16x64xf32>
    %c0_29 = arith.constant 0 : index
    %c0_30 = arith.constant 0 : index
    %60 = vector.load %arg3[%c0_29, %c0_30] : memref<1x64xf32, #tpu.memory_space<vmem>>, vector<1x64xf32>
    %61 = vector.broadcast %60 : vector<1x64xf32> to vector<16x64xf32>
    %62 = arith.addf %59, %61 : vector<16x64xf32>
    %cst_31 = arith.constant 0.000000e+00 : f32
    %63 = vector.broadcast %cst_31 : f32 to vector<16x64xf32>
    %64 = arith.maximumf %62, %63 : vector<16x64xf32>
    %65 = arith.truncf %64 : vector<16x64xf32> to vector<16x64xbf16>
    %cst_32 = arith.constant 0.000000e+00 : bf16
    %66 = vector.broadcast %cst_32 : bf16 to vector<2x64xbf16>
    %67 = tpu.concatenate %66, %65, %66 in 0 : vector<2x64xbf16>, vector<16x64xbf16>, vector<2x64xbf16> -> vector<20x64xbf16>
    %68 = vector.extract_strided_slice %67 {offsets = [0, 0], sizes = [16, 64], strides = [1, 1]} : vector<20x64xbf16> to vector<16x64xbf16>
    %69 = vector.extract_strided_slice %67 {offsets = [1, 0], sizes = [16, 64], strides = [1, 1]} : vector<20x64xbf16> to vector<16x64xbf16>
    %70 = vector.extract_strided_slice %67 {offsets = [2, 0], sizes = [16, 64], strides = [1, 1]} : vector<20x64xbf16> to vector<16x64xbf16>
    %71 = vector.extract_strided_slice %67 {offsets = [3, 0], sizes = [16, 64], strides = [1, 1]} : vector<20x64xbf16> to vector<16x64xbf16>
    %72 = vector.extract_strided_slice %67 {offsets = [4, 0], sizes = [16, 64], strides = [1, 1]} : vector<20x64xbf16> to vector<16x64xbf16>
    %73 = tpu.concatenate %68, %69, %70, %71, %72 in 1 : vector<16x64xbf16>, vector<16x64xbf16>, vector<16x64xbf16>, vector<16x64xbf16>, vector<16x64xbf16> -> vector<16x320xbf16>
    %c0_33 = arith.constant 0 : index
    %c0_34 = arith.constant 0 : index
    %74 = vector.load %arg4[%c0_33, %c0_34] : memref<320x128xbf16, #tpu.memory_space<vmem>>, vector<320x128xbf16>
    %cst_35 = arith.constant dense<0.000000e+00> : vector<16x128xf32>
    %75 = tpu.matmul %73, %74, %cst_35 {dimension_numbers = #tpu.dot_dimension_numbers<[1], [0], [0], [1], [0, 0, 1, 1], [], []>} : vector<16x320xbf16>, vector<320x128xbf16>, vector<16x128xf32> -> vector<16x128xf32>
    %c0_36 = arith.constant 0 : index
    %c0_37 = arith.constant 0 : index
    %76 = vector.load %arg5[%c0_36, %c0_37] : memref<1x128xf32, #tpu.memory_space<vmem>>, vector<1x128xf32>
    %77 = vector.broadcast %76 : vector<1x128xf32> to vector<16x128xf32>
    %78 = arith.addf %75, %77 : vector<16x128xf32>
    %cst_38 = arith.constant 0.000000e+00 : f32
    %79 = vector.broadcast %cst_38 : f32 to vector<16x128xf32>
    %80 = arith.maximumf %78, %79 : vector<16x128xf32>
    %81 = arith.truncf %80 : vector<16x128xf32> to vector<16x128xbf16>
    %cst_39 = arith.constant 0.000000e+00 : bf16
    %82 = vector.broadcast %cst_39 : bf16 to vector<2x128xbf16>
    %83 = tpu.concatenate %82, %81, %82 in 0 : vector<2x128xbf16>, vector<16x128xbf16>, vector<2x128xbf16> -> vector<20x128xbf16>
    %84 = vector.extract_strided_slice %83 {offsets = [0, 0], sizes = [16, 128], strides = [1, 1]} : vector<20x128xbf16> to vector<16x128xbf16>
    %85 = vector.extract_strided_slice %83 {offsets = [1, 0], sizes = [16, 128], strides = [1, 1]} : vector<20x128xbf16> to vector<16x128xbf16>
    %86 = vector.extract_strided_slice %83 {offsets = [2, 0], sizes = [16, 128], strides = [1, 1]} : vector<20x128xbf16> to vector<16x128xbf16>
    %87 = vector.extract_strided_slice %83 {offsets = [3, 0], sizes = [16, 128], strides = [1, 1]} : vector<20x128xbf16> to vector<16x128xbf16>
    %88 = vector.extract_strided_slice %83 {offsets = [4, 0], sizes = [16, 128], strides = [1, 1]} : vector<20x128xbf16> to vector<16x128xbf16>
    %89 = tpu.concatenate %84, %85, %86, %87, %88 in 1 : vector<16x128xbf16>, vector<16x128xbf16>, vector<16x128xbf16>, vector<16x128xbf16>, vector<16x128xbf16> -> vector<16x640xbf16>
    %c0_40 = arith.constant 0 : index
    %c0_41 = arith.constant 0 : index
    %90 = vector.load %arg6[%c0_40, %c0_41] : memref<640x512xbf16, #tpu.memory_space<vmem>>, vector<640x512xbf16>
    %cst_42 = arith.constant dense<0.000000e+00> : vector<16x512xf32>
    %91 = tpu.matmul %89, %90, %cst_42 {dimension_numbers = #tpu.dot_dimension_numbers<[1], [0], [0], [1], [0, 0, 1, 1], [], []>} : vector<16x640xbf16>, vector<640x512xbf16>, vector<16x512xf32> -> vector<16x512xf32>
    %c0_43 = arith.constant 0 : index
    %c0_44 = arith.constant 0 : index
    %92 = vector.load %arg7[%c0_43, %c0_44] : memref<1x512xf32, #tpu.memory_space<vmem>>, vector<1x512xf32>
    %93 = vector.broadcast %92 : vector<1x512xf32> to vector<16x512xf32>
    %94 = arith.addf %91, %93 : vector<16x512xf32>
    %cst_45 = arith.constant 0.000000e+00 : f32
    %95 = vector.broadcast %cst_45 : f32 to vector<16x512xf32>
    %96 = arith.maximumf %94, %95 : vector<16x512xf32>
    %c1_46 = arith.constant 1 : index
    %c0_47 = arith.constant 0 : index
    %c0_48 = arith.constant 0 : index
    %97 = vector.load %arg8[%c1_46, %c0_47, %c0_48] : memref<2x16x512xf32, #tpu.memory_space<vmem>>, vector<1x16x512xf32>
    %98 = vector.shape_cast %97 : vector<1x16x512xf32> to vector<16x512xf32>
    %99 = vector.shape_cast %96 : vector<16x512xf32> to vector<1x16x512xf32>
    tpu.vector_store %arg8[%c1_46, %c0_47, %c0_48], %99 {strides = array<i32>} : memref<2x16x512xf32, #tpu.memory_space<vmem>>, vector<1x16x512xf32>,
    return
  }
  func.func @transform_0(%arg0: i32) -> (i32, i32, i32) {
    %c0_i32 = arith.constant 0 : i32
    %c0_i32_0 = arith.constant 0 : i32
    %c0_i32_1 = arith.constant 0 : i32
    %c0_i32_2 = arith.constant 0 : i32
    return %c0_i32, %c0_i32_0, %c0_i32_1 : i32, i32, i32
  }
  func.func @transform_1(%arg0: i32) -> (i32, i32) {
    %c0_i32 = arith.constant 0 : i32
    %c0_i32_0 = arith.constant 0 : i32
    %c0_i32_1 = arith.constant 0 : i32
    return %c0_i32, %c0_i32_0 : i32, i32
  }
  func.func @transform_2(%arg0: i32) -> (i32, i32) {
    %c0_i32 = arith.constant 0 : i32
    %c0_i32_0 = arith.constant 0 : i32
    %c0_i32_1 = arith.constant 0 : i32
    return %c0_i32, %c0_i32_0 : i32, i32
  }
  func.func @transform_3(%arg0: i32) -> (i32, i32) {
    %c0_i32 = arith.constant 0 : i32
    %c0_i32_0 = arith.constant 0 : i32
    %c0_i32_1 = arith.constant 0 : i32
    return %c0_i32, %c0_i32_0 : i32, i32
  }
  func.func @transform_4(%arg0: i32) -> (i32, i32) {
    %c0_i32 = arith.constant 0 : i32
    %c0_i32_0 = arith.constant 0 : i32
    %c0_i32_1 = arith.constant 0 : i32
    return %c0_i32, %c0_i32_0 : i32, i32
  }
  func.func @transform_5(%arg0: i32) -> (i32, i32) {
    %c0_i32 = arith.constant 0 : i32
    %c0_i32_0 = arith.constant 0 : i32
    %c0_i32_1 = arith.constant 0 : i32
    return %c0_i32, %c0_i32_0 : i32, i32
  }
  func.func @transform_6(%arg0: i32) -> (i32, i32) {
    %c0_i32 = arith.constant 0 : i32
    %c0_i32_0 = arith.constant 0 : i32
    %c0_i32_1 = arith.constant 0 : i32
    return %c0_i32, %c0_i32_0 : i32, i32
  }
  func.func @transform_7(%arg0: i32) -> (i32, i32, i32) {
    %c0_i32 = arith.constant 0 : i32
    %c0_i32_0 = arith.constant 0 : i32
    %c0_i32_1 = arith.constant 0 : i32
    %c0_i32_2 = arith.constant 0 : i32
    return %c0_i32, %c0_i32_0, %c0_i32_1 : i32, i32, i32
  }
}

</mosaic_0001>

<bundles_post_ra>
// kernel: traditional_feature_encoder_forward.2
= control target key start
LH: loop header
LB: loop body
LE: loop exit
PB: predicated region body
PF: predicated region fallthrough
CT: control target
= control target key end

     0   :  { %s14568_s0 = inlined_call_operand.vmem [shape: bf16[2,28,512], index: 0, kind: input, shape index: {}]   ;;  %s14569_s1 = inlined_call_operand.vmem [shape: bf16[2560,64], index: 1, kind: input, shape index: {}]   ;;  %s14570_s2 = inlined_call_operand.vmem [shape: f32[1,64], index: 2, kind: input, shape index: {}]   ;;  %s14571_s3 = inlined_call_operand.vmem [shape: bf16[320,128], index: 3, kind: input, shape index: {}]   ;;  %s14572_s4 = inlined_call_operand.vmem [shape: f32[1,128], index: 4, kind: input, shape index: {}]   ;;  %s14573_s5 = inlined_call_operand.vmem [shape: bf16[640,512], index: 5, kind: input, shape index: {}]   ;;  %s14574_s6 = inlined_call_operand.vmem [shape: f32[1,512], index: 6, kind: input, shape index: {}]   ;;  %s14575_s7 = inlined_call_operand.hbm [shape: f32[2,24,512], index: 7, kind: output, shape index: {}]  }
   0x1   :  { %v9952_v0 = vld [vmem:[%s14569_s1 + $0x38] sm:$0xff]  ;;  %v9951_v4 = vld [vmem:[%s14569_s1 + $0x30] sm:$0xff]  ;;  %v9950_v8 = vld [vmem:[%s14569_s1 + $0x28] sm:$0xff] }
   0x2   :  { %v9960_v1 = vld [vmem:[%s14569_s1 + $0x78] sm:$0xff]  ;;  %1512 = vmatpush.bf16.msra.mxu0 %v9952_v0  ;;  %v9959_v5 = vld [vmem:[%s14569_s1 + $0x70] sm:$0xff]  ;;  %v9958_v9 = vld [vmem:[%s14569_s1 + $0x68] sm:$0xff] }
   0x3   :  { %v9968_v2 = vld [vmem:[%s14569_s1 + $0xb8] sm:$0xff]  ;;  %1530 = vmatpush.bf16.msra.mxu1 %v9960_v1  ;;  %v9967_v6 = vld [vmem:[%s14569_s1 + $0xb0] sm:$0xff]  ;;  %v9966_v10 = vld [vmem:[%s14569_s1 + $0xa8] sm:$0xff] }
   0x4   :  { %v9976_v3 = vld [vmem:[%s14569_s1 + $0xf8] sm:$0xff]  ;;  %1548 = vmatpush.bf16.msra.mxu2 %v9968_v2  ;;  %v9975_v7 = vld [vmem:[%s14569_s1 + $0xf0] sm:$0xff]  ;;  %v9974_v11 = vld [vmem:[%s14569_s1 + $0xe8] sm:$0xff] }
   0x5   :  { %1566 = vmatpush.bf16.msra.mxu3 %v9976_v3  ;;  %v9949_v12 = vld [vmem:[%s14569_s1 + $0x20] sm:$0xff]  ;;  %v9948_v16 = vld [vmem:[%s14569_s1 + $0x18] sm:$0xff]  ;;  %v9947_v20 = vld [vmem:[%s14569_s1 + $0x10] sm:$0xff] }
   0x6   :  { %1513 = vmatpush.bf16.msra.mxu0 %v9951_v4  ;;  %v9957_v13 = vld [vmem:[%s14569_s1 + $0x60] sm:$0xff]  ;;  %v9956_v17 = vld [vmem:[%s14569_s1 + $0x58] sm:$0xff]  ;;  %v9955_v21 = vld [vmem:[%s14569_s1 + $0x50] sm:$0xff] }
   0x7   :  { %1531 = vmatpush.bf16.msra.mxu1 %v9959_v5  ;;  %v9965_v14 = vld [vmem:[%s14569_s1 + $0xa0] sm:$0xff]  ;;  %v9964_v18 = vld [vmem:[%s14569_s1 + $0x98] sm:$0xff]  ;;  %v9963_v22 = vld [vmem:[%s14569_s1 + $0x90] sm:$0xff] }
   0x8   :  { %1549 = vmatpush.bf16.msra.mxu2 %v9967_v6  ;;  %v9973_v15 = vld [vmem:[%s14569_s1 + $0xe0] sm:$0xff]  ;;  %v9972_v19 = vld [vmem:[%s14569_s1 + $0xd8] sm:$0xff]  ;;  %v9971_v23 = vld [vmem:[%s14569_s1 + $0xd0] sm:$0xff] }
   0x9   :  { %1567 = vmatpush.bf16.msra.mxu3 %v9975_v7  ;;  %v9946_v24 = vld [vmem:[%s14569_s1 + $0x8] sm:$0xff]  ;;  %v9945_v28 = vld [vmem:[%s14569_s1] sm:$0xff]  ;;  %v9943_v33 = vld [vmem:[%s14568_s0 + $0xc] sm:$0xf0] }
   0xa   :  { %1514 = vmatpush.bf16.msra.mxu0 %v9950_v8  ;;  %v9954_v25 = vld [vmem:[%s14569_s1 + $0x48] sm:$0xff]  ;;  %v9953_v29 = vld [vmem:[%s14569_s1 + $0x40] sm:$0xff] }
   0xb   :  { %1532 = vmatpush.bf16.msra.mxu1 %v9958_v9  ;;  %v9962_v26 = vld [vmem:[%s14569_s1 + $0x88] sm:$0xff]  ;;  %v9961_v30 = vld [vmem:[%s14569_s1 + $0x80] sm:$0xff] }
   0xc   :  { %1550 = vmatpush.bf16.msra.mxu2 %v9966_v10  ;;  %v9970_v27 = vld [vmem:[%s14569_s1 + $0xc8] sm:$0xff]  ;;  %v9969_v31 = vld [vmem:[%s14569_s1 + $0xc0] sm:$0xff] }
   0xd   :  { %1568 = vmatpush.bf16.msra.mxu3 %v9974_v11  ;;  %v7155_v32 = vld [vmem:[%s14568_s0] sm:$0xf] }
   0xe   :  { %1515 = vmatpush.bf16.msra.mxu0 %v9949_v12 }
   0xf   :  { %1533 = vmatpush.bf16.msra.mxu1 %v9957_v13 }
  0x10   :  { %1551 = vmatpush.bf16.msra.mxu2 %v9965_v14 }
  0x11   :  { %1569 = vmatpush.bf16.msra.mxu3 %v9973_v15 }
  0x12   :  { %1516 = vmatpush.bf16.msra.mxu0 %v9948_v16 }
  0x13   :  { %1534 = vmatpush.bf16.msra.mxu1 %v9956_v17 }
  0x14   :  { %1552 = vmatpush.bf16.msra.mxu2 %v9964_v18 }
  0x15   :  { %1570 = vmatpush.bf16.msra.mxu3 %v9972_v19 }
  0x16   :  { %1517 = vmatpush.bf16.msra.mxu0 %v9947_v20 }
  0x17   :  { %1535 = vmatpush.bf16.msra.mxu1 %v9955_v21 }
  0x18   :  { %1553 = vmatpush.bf16.msra.mxu2 %v9963_v22 }
  0x19   :  { %1571 = vmatpush.bf16.msra.mxu3 %v9971_v23 }
  0x1a   :  { %12 = vsyncpa [#allocation3], 0  ;;  %1518 = vmatpush.bf16.msra.mxu0 %v9946_v24  ;;  %v9941_v34 = vld [vmem:[%s14568_s0 + $0x4] sm:$0xf]  ;;  %v7157_v35 = vld [vmem:[%s14568_s0 + $0x10] sm:$0xf0]  ;;  %v10849_v42 = vor.u32 %v9943_v33, %v7155_v32 }
  0x1b   :  { %1536 = vmatpush.bf16.msra.mxu1 %v9954_v25  ;;  %v7163_v36 = vld [vmem:[%s14568_s0 + $0x8] sm:$0xf]  ;;  %v9944_v37 = vld [vmem:[%s14568_s0 + $0x14] sm:$0xf0]  ;;  %v9942_v38 = vld [vmem:[%s14568_s0 + $0xc] sm:$0xf]  ;;  %v10851_v43 = vor.u32 %v9941_v34, %v7157_v35 }
  0x1c   :  { %1554 = vmatpush.bf16.msra.mxu2 %v9962_v26  ;;  %v7165_v39 = vld [vmem:[%s14568_s0 + $0x18] sm:$0xf0]  ;;  %v10853_v44 = vor.u32 %v9944_v37, %v7163_v36  ;;  %v9999_v48 = vld [vmem:[%s14569_s1 + $0x1b0] sm:$0xff]  ;;  %v9998_v52 = vld [vmem:[%s14569_s1 + $0x1a8] sm:$0xff]  ;;  %v84_v19 = vshll.u32 %v10849_v42, 16  ;;  %vm149_vm1 = vcmask 1046528  }
  0x1d   :  { %1572 = vmatpush.bf16.msra.mxu3 %v9970_v27  ;;  %v10000_v40 = vld [vmem:[%s14569_s1 + $0x1b8] sm:$0xff]  ;;  %v10855_v45 = vor.u32 %v9942_v38, %v7165_v39  ;;  %v9983_v49 = vld [vmem:[%s14569_s1 + $0x130] sm:$0xff]  ;;  %v9982_v53 = vld [vmem:[%s14569_s1 + $0x128] sm:$0xff]  ;;  %v96_v20 = vshll.u32 %v10851_v43, 16  ;;  %v94_v33 = vshrl.u32 %v10851_v43, 16  ;;  %vm207_vm3 = vcmask 1045504  }
  0x1e   :  { %v9984_v41 = vld [vmem:[%s14569_s1 + $0x138] sm:$0xff]  ;;  %1519 = vmatpush.bf16.msra.mxu0 %v9945_v28  ;;  %v9991_v50 = vld [vmem:[%s14569_s1 + $0x170] sm:$0xff]  ;;  %v32_v54 = vld [vmem:[%s14568_s0 + $0x20] sm:$0xff]  ;;  %v108_v25 = vshll.u32 %v10853_v44, 16  ;;  %v106_v38 = vshrl.u32 %v10853_v44, 16  ;;  %vm1886_vm4 = vcmask 1040384  }
  0x1f   :  { %1537 = vmatpush.bf16.msra.mxu1 %v9953_v29  ;;  %v9992_v46 = vld [vmem:[%s14569_s1 + $0x178] sm:$0xff]  ;;  %v10007_v51 = vld [vmem:[%s14569_s1 + $0x1f0] sm:$0xff]  ;;  %v9990_v55 = vld [vmem:[%s14569_s1 + $0x168] sm:$0xff]  ;;  %v50_v60 = vunpack.c.l.b16 %v32_v54  ;;  %v51_v61 = vunpack.c.h.b16 %v32_v54  ;;  %v120_v29 = vshll.u32 %v10855_v45, 16  ;;  %v98_v34 = vrot.slane %v96_v20, 1  ;;  %s10679_s30 = smov 64  }
  0x20   :  { %1555 = vmatpush.bf16.msra.mxu2 %v9961_v30  ;;  %v10008_v47 = vld [vmem:[%s14569_s1 + $0x1f8] sm:$0xff]  ;;  %v10006_v56 = vld [vmem:[%s14569_s1 + $0x1e8] sm:$0xff]  ;;  %v9997_v58 = vld [vmem:[%s14569_s1 + $0x1a0] sm:$0xff]  ;;  %v82_v30 = vshrl.u32 %v10849_v42, 16  ;;  %v110_v39 = vrot.slane %v108_v25, 1  ;;  %vm1894_vm5 = vcmask 1044480  }
  0x21   :  { %1573 = vmatpush.bf16.msra.mxu3 %v9969_v31  ;;  %1520 = vmatmul.bf16.vlgmr.msra.gmra.mxu0 %v10849_v42  ;;  %v33_v57 = vld [vmem:[%s14568_s0 + $0x28] sm:$0xff]  ;;  %v9981_v59 = vld [vmem:[%s14569_s1 + $0x120] sm:$0xff]  ;;  %v34_v2 = vld [vmem:[%s14568_s0 + $0x30] sm:$0x33]  ;;  %v58_v6 = vpack.c.b16 %v50_v60, %v50_v60  ;;  %v59_v7 = vpack.c.b16 %v51_v61, %v51_v61  ;;  %v86_v31 = vrot.slane %v84_v19, 1  ;;  %vm1933_vm6 = vcmask 523264  }
  0x22   :  { %1584 = vmatpush.bf16.msrb.mxu0 %v9984_v41  ;;  %1538 = vmatmul.bf16.vlgmr.msra.gmra.mxu1 %v10851_v43  ;;  %v52_v62 = vunpack.c.l.b16 %v33_v57  ;;  %v53_v63 = vunpack.c.h.b16 %v33_v57  ;;  %v9989_v0 = vld [vmem:[%s14569_s1 + $0x160] sm:$0xff]  ;;  %v35_v3 = vld [vmem:[%s14568_s0 + $0x38] sm:$0x33]  ;;  %v72_v8 = vunpack.c.l.b16 %v34_v2  ;;  %v73_v11 = vunpack.c.h.b16 %v34_v2  ;;  %v9995_v16 = vld [vmem:[%s14569_s1 + $0x190] sm:$0xff]  ;;  %s7141_s28 = sshll.u32 %s14575_s7, 4  ;;  %s10681_s29 = smov 512   ;;  %s7142_s28 = int_to_ptr.hbm [resolvable:$true] %s7141_s28 }
  0x23   :  { %1556 = vmatmul.bf16.vlgmr.msra.gmra.mxu2 %v10853_v44  ;;  %1602 = vmatpush.bf16.msrb.mxu1 %v9992_v46  ;;  %v10005_v1 = vld [vmem:[%s14569_s1 + $0x1e0] sm:$0xff]  ;;  %v9996_v4 = vld [vmem:[%s14569_s1 + $0x198] sm:$0xff]  ;;  %v74_v12 = vunpack.c.l.b16 %v35_v3  ;;  %v75_v15 = vunpack.c.h.b16 %v35_v3  ;;  %v9979_v17 = vld [vmem:[%s14569_s1 + $0x110] sm:$0xff]  ;;  %vm80_vm0 = vsmask.f32 7424 }
  0x24   :  { %1620 = vmatpush.bf16.msrb.mxu2 %v10000_v40  ;;  %1574 = vmatmul.bf16.vlgmr.msra.gmra.mxu3 %v10855_v45  ;;  %v9980_v5 = vld [vmem:[%s14569_s1 + $0x118] sm:$0xff]  ;;  %v60_v9 = vpack.c.b16 %v52_v62, %v52_v62  ;;  %v61_v10 = vpack.c.b16 %v53_v63, %v53_v63  ;;  %v10933_v18 = vpack.c.b16 %v72_v8, %v50_v60  ;;  %v9987_v23 = vld [vmem:[%s14569_s1 + $0x150] sm:$0xff]  ;;  %v9994_v27 = vld [vmem:[%s14569_s1 + $0x188] sm:$0xff]  ;;  %vm170_vm2 = vsmask.f32 6400 }
  0x25   :  { %1638 = vmatpush.bf16.msrb.mxu3 %v10008_v47  ;;  %v9988_v13 = vld [vmem:[%s14569_s1 + $0x158] sm:$0xff]  ;;  %v10937_v21 = vpack.c.b16 %v73_v11, %v51_v61  ;;  %v10939_v22 = vpack.c.b16 %v74_v12, %v52_v62  ;;  %v10003_v24 = vld [vmem:[%s14569_s1 + $0x1d0] sm:$0xff]  ;;  %v10948_v26 = vpack.c.b16 %v75_v15, %v53_v63  ;;  %v9978_v28 = vld [vmem:[%s14569_s1 + $0x108] sm:$0xff]  ;;  %v118_v47 = vshrl.u32 %v10855_v45, 16 }
  0x26   :  { %1585 = vmatpush.bf16.msrb.mxu0 %v9983_v49  ;;  %v10004_v14 = vld [vmem:[%s14569_s1 + $0x1d8] sm:$0xff]  ;;  %v89_v32 = vshll.u32 %v10933_v18, 16  ;;  %v9986_v35 = vld [vmem:[%s14569_s1 + $0x148] sm:$0xff]  ;;  %v9993_v41 = vld [vmem:[%s14569_s1 + $0x180] sm:$0xff] }
  0x27   :  { %1603 = vmatpush.bf16.msrb.mxu1 %v9991_v50  ;;  %v10002_v36 = vld [vmem:[%s14569_s1 + $0x1c8] sm:$0xff]  ;;  %v101_v37 = vshll.u32 %v10937_v21, 16  ;;  %v113_v40 = vshll.u32 %v10939_v22, 16  ;;  %v9977_v46 = vld [vmem:[%s14569_s1 + $0x100] sm:$0xff]  ;;  %v125_v49 = vshll.u32 %v10948_v26, 16  ;;  %v10032_v50 = vld [vmem:[%s14569_s1 + $0x2b8] sm:$0xff] }
  0x28   :  { %1621 = vmatpush.bf16.msrb.mxu2 %v9999_v48  ;;  %v122_v48 = vrot.slane %v120_v29, 1  ;;  %v9985_v54 = vld [vmem:[%s14569_s1 + $0x140] sm:$0xff]  ;;  %v10024_v62 = vld [vmem:[%s14569_s1 + $0x278] sm:$0xff]  ;;  %v10030_v8 = vld [vmem:[%s14569_s1 + $0x2a8] sm:$0xff] }
  0x29   :  { %1639 = vmatpush.bf16.msrb.mxu3 %v10007_v51  ;;  %v10016_v51 = vld [vmem:[%s14569_s1 + $0x238] sm:$0xff]  ;;  %v103_v57 = vrot.slane %v101_v37, 1  ;;  %v127_v61 = vrot.slane %v125_v49, 1  ;;  %v10038_v11 = vld [vmem:[%s14569_s1 + $0x2e8] sm:$0xff]  ;;  %v10029_v12 = vld [vmem:[%s14569_s1 + $0x2a0] sm:$0xff] }
  0x2a   :  { %1586 = vmatpush.bf16.msrb.mxu0 %v9982_v53  ;;  %v91_v53 = vrot.slane %v89_v32, 1  ;;  %v123_v60 = vor.u32 %v122_v48, %v118_v47  ;;  %v10040_v63 = vld [vmem:[%s14569_s1 + $0x2f8] sm:$0xff]  ;;  %v10037_v15 = vld [vmem:[%s14569_s1 + $0x2e0] sm:$0xff]  ;;  %v10011_v48 = vld [vmem:[%s14569_s1 + $0x210] sm:$0xff] }
  0x2b   :  { %1604 = vmatpush.bf16.msrb.mxu1 %v9990_v55  ;;  %v10001_v55 = vld [vmem:[%s14569_s1 + $0x1c0] sm:$0xff]  ;;  %vm11812_vm7 = vmneg %vm1886_vm4 }
  0x2c   :  { %1622 = vmatpush.bf16.msrb.mxu2 %v9998_v52  ;;  %v87_v52 = vor.u32 %v86_v31, %v82_v30  ;;  %v10020_v31 = vld [vmem:[%s14569_s1 + $0x258] sm:$0xff] }
  0x2d   :  { %1640 = vmatpush.bf16.msrb.mxu3 %v10006_v56  ;;  %v99_v56 = vor.u32 %v98_v34, %v94_v33  ;;  %v10036_v34 = vld [vmem:[%s14569_s1 + $0x2d8] sm:$0xff] }
  0x2e   :  { %1587 = vmatpush.bf16.msrb.mxu0 %v9981_v59  ;;  %v115_v59 = vrot.slane %v113_v40, 1 }
  0x2f   :  { %1605 = vmatpush.bf16.msrb.mxu1 %v9989_v0  ;;  %v10031_v0 = vld [vmem:[%s14569_s1 + $0x2b0] sm:$0xff]  ;;  %v104_v2 = vsel %vm80_vm0, %v99_v56, %v103_v57  ;;  %v10025_v56 = vld [vmem:[%s14569_s1 + $0x280] sm:$0xff] }
  0x30   :  { %1623 = vmatpush.bf16.msrb.mxu2 %v9997_v58  ;;  %v111_v58 = vor.u32 %v110_v39, %v106_v38 }
  0x31   :  { %1641 = vmatpush.bf16.msrb.mxu3 %v10005_v1  ;;  %1525 = vmatmul.bf16.gmra.mxu0 %v58_v6  ;;  %v92_v1 = vsel %vm80_vm0, %v87_v52, %v91_v53  ;;  %v10023_v6 = vld [vmem:[%s14569_s1 + $0x270] sm:$0xff]  ;;  %v10026_v52 = vld [vmem:[%s14569_s1 + $0x288] sm:$0xff] }
  0x32   :  { %1588 = vmatpush.bf16.msrb.mxu0 %v9980_v5  ;;  %1543 = vmatmul.bf16.gmra.mxu1 %v59_v7  ;;  %v116_v3 = vsel %vm80_vm0, %v111_v58, %v115_v59  ;;  %v128_v5 = vsel %vm80_vm0, %v123_v60, %v127_v61  ;;  %v10039_v7 = vld [vmem:[%s14569_s1 + $0x2f0] sm:$0xff]  ;;  %v10009_v58 = vld [vmem:[%s14569_s1 + $0x200] sm:$0xff] }
  0x33   :  { %1561 = vmatmul.bf16.gmra.mxu2 %v60_v9  ;;  %1606 = vmatpush.bf16.msrb.mxu1 %v9988_v13  ;;  %v10014_v9 = vld [vmem:[%s14569_s1 + $0x228] sm:$0xff]  ;;  %v10013_v13 = vld [vmem:[%s14569_s1 + $0x220] sm:$0xff] }
  0x34   :  { %1624 = vmatpush.bf16.msrb.mxu2 %v9996_v4  ;;  %1579 = vmatmul.bf16.gmra.mxu3 %v61_v10  ;;  %v10015_v4 = vld [vmem:[%s14569_s1 + $0x230] sm:$0xff]  ;;  %v10022_v10 = vld [vmem:[%s14569_s1 + $0x268] sm:$0xff]  ;;  %v10033_v60 = vld [vmem:[%s14569_s1 + $0x2c0] sm:$0xff] }
  0x35   :  { %1642 = vmatpush.bf16.msrb.mxu3 %v10004_v14  ;;  %v10021_v14 = vld [vmem:[%s14569_s1 + $0x260] sm:$0xff] }
  0x36   :  { %1589 = vmatpush.bf16.msrb.mxu0 %v9979_v17  ;;  %v10028_v17 = vld [vmem:[%s14569_s1 + $0x298] sm:$0xff] }
  0x37   :  { %1607 = vmatpush.bf16.msrb.mxu1 %v9987_v23  ;;  %v132_v23 = vshrl.u32 %v10937_v21, 16 }
  0x38   :  { %1625 = vmatpush.bf16.msrb.mxu2 %v9995_v16  ;;  %v129_v16 = vshrl.u32 %v10933_v18, 16 }
  0x39   :  { %1643 = vmatpush.bf16.msrb.mxu3 %v10003_v24  ;;  %v135_v24 = vshrl.u32 %v10939_v22, 16  ;;  %v134_v39 = vor.u32 %v132_v23, %v103_v57  ;;  %v10064_v57 = vld [vmem:[%s14569_s1 + $0x3b8] sm:$0xff] }
  0x3a   :  { %1590 = vmatpush.bf16.msrb.mxu0 %v9978_v28  ;;  %v10012_v28 = vld [vmem:[%s14569_s1 + $0x218] sm:$0xff] }
  0x3b   :  { %1608 = vmatpush.bf16.msrb.mxu1 %v9986_v35  ;;  %v131_v35 = vor.u32 %v129_v16, %v91_v53  ;;  %v10010_v53 = vld [vmem:[%s14569_s1 + $0x208] sm:$0xff] }
  0x3c   :  { %1626 = vmatpush.bf16.msrb.mxu2 %v9994_v27  ;;  %v138_v27 = vshrl.u32 %v10948_v26, 16 }
  0x3d   :  { %1644 = vmatpush.bf16.msrb.mxu3 %v10002_v36  ;;  %v10027_v36 = vld [vmem:[%s14569_s1 + $0x290] sm:$0xff] }
  0x3e   :  { %1591 = vmatpush.bf16.msrb.mxu0 %v9977_v46  ;;  %v140_v46 = vor.u32 %v138_v27, %v127_v61  ;;  %v10048_v61 = vld [vmem:[%s14569_s1 + $0x338] sm:$0xff] }
  0x3f   :  { %1609 = vmatpush.bf16.msrb.mxu1 %v9985_v54  ;;  %v10018_v54 = vld [vmem:[%s14569_s1 + $0x248] sm:$0xff] }
  0x40   :  { %1627 = vmatpush.bf16.msrb.mxu2 %v9993_v41  ;;  %v137_v41 = vor.u32 %v135_v24, %v115_v59  ;;  %v10017_v59 = vld [vmem:[%s14569_s1 + $0x240] sm:$0xff] }
  0x41   :  { %1645 = vmatpush.bf16.msrb.mxu3 %v10001_v55  ;;  %1592 = vmatmul.bf16.vlgmr.msrb.gmra.mxu0 %v92_v1  ;;  %v10034_v55 = vld [vmem:[%s14569_s1 + $0x2c8] sm:$0xff]  ;;  %v10072_v1 = vld [vmem:[%s14569_s1 + $0x3f8] sm:$0xff] }
  0x42   :  { %1656 = vmatpush.bf16.msra.mxu0 %v10016_v51  ;;  %1610 = vmatmul.bf16.vlgmr.msrb.gmra.mxu1 %v104_v2  ;;  %v10035_v51 = vld [vmem:[%s14569_s1 + $0x2d0] sm:$0xff] }
  0x43   :  { %1674 = vmatpush.bf16.msra.mxu1 %v10024_v62  ;;  %1628 = vmatmul.bf16.vlgmr.msrb.gmra.mxu2 %v116_v3  ;;  %v10056_v62 = vld [vmem:[%s14569_s1 + $0x378] sm:$0xff]  ;;  %v10063_v2 = vld [vmem:[%s14569_s1 + $0x3b0] sm:$0xff]  ;;  %v153_v3 = vrot.slane %v10851_v43, 1 }
  0x44   :  { %1692 = vmatpush.bf16.msra.mxu2 %v10032_v50  ;;  %1646 = vmatmul.bf16.vlgmr.msrb.gmra.mxu3 %v128_v5  ;;  %v10019_v50 = vld [vmem:[%s14569_s1 + $0x250] sm:$0xff]  ;;  %v156_v5 = vrot.slane %v10853_v44, 1 }
  0x45   :  { %1710 = vmatpush.bf16.msra.mxu3 %v10040_v63  ;;  %v150_v63 = vrot.slane %v10849_v42, 1 }
  0x46   :  { %1657 = vmatpush.bf16.msra.mxu0 %v10015_v4  ;;  %v154_v4 = vrot.slane %v10937_v21, 1 }
  0x47   :  { %1675 = vmatpush.bf16.msra.mxu1 %v10023_v6  ;;  %v157_v6 = vrot.slane %v10939_v22, 1 }
  0x48   :  { %1693 = vmatpush.bf16.msra.mxu2 %v10031_v0  ;;  %v151_v0 = vrot.slane %v10933_v18, 1 }
  0x49   :  { %1711 = vmatpush.bf16.msra.mxu3 %v10039_v7  ;;  %v159_v7 = vrot.slane %v10855_v45, 1 }
  0x4a   :  { %1658 = vmatpush.bf16.msra.mxu0 %v10014_v9  ;;  %v10055_v9 = vld [vmem:[%s14569_s1 + $0x370] sm:$0xff] }
  0x4b   :  { %1676 = vmatpush.bf16.msra.mxu1 %v10022_v10  ;;  %v152_v10 = vsel %vm149_vm1, %v150_v63, %v151_v0  ;;  %v181_v63 = vrot.slane %v132_v23, 1  ;;  %v171_v23 = vrot.slane %v82_v30, 1  ;;  %v185_v30 = vrot.slane %v106_v38, 1 }
  0x4c   :  { %1694 = vmatpush.bf16.msra.mxu2 %v10030_v8  ;;  %v160_v8 = vrot.slane %v10948_v26, 1  ;;  %v193_v38 = vrot.slane %v120_v29, 2  ;;  %v10087_v29 = vld [vmem:[%s14569_s1 + $0x470] sm:$0xff] }
  0x4d   :  { %1712 = vmatpush.bf16.msra.mxu3 %v10038_v11  ;;  %v155_v11 = vsel %vm149_vm1, %v153_v3, %v154_v4  ;;  %v10088_v3 = vld [vmem:[%s14569_s1 + $0x478] sm:$0xff] }
  0x4e   :  { %1659 = vmatpush.bf16.msra.mxu0 %v10013_v13  ;;  %v10047_v13 = vld [vmem:[%s14569_s1 + $0x330] sm:$0xff] }
  0x4f   :  { %1677 = vmatpush.bf16.msra.mxu1 %v10021_v14  ;;  %v161_v14 = vsel %vm149_vm1, %v159_v7, %v160_v8 }
  0x50   :  { %1695 = vmatpush.bf16.msra.mxu2 %v10029_v12  ;;  %v158_v12 = vsel %vm149_vm1, %v156_v5, %v157_v6  ;;  %v195_v5 = vrot.slane %v138_v27, 1  ;;  %v10095_v27 = vld [vmem:[%s14569_s1 + $0x4b0] sm:$0xff] }
  0x51   :  { %1713 = vmatpush.bf16.msra.mxu3 %v10037_v15  ;;  %1597 = vmatmul.bf16.gmra.mxu0 %v131_v35  ;;  %v10071_v15 = vld [vmem:[%s14569_s1 + $0x3f0] sm:$0xff]  ;;  %v10061_v35 = vld [vmem:[%s14569_s1 + $0x3a0] sm:$0xff] }
  0x52   :  { %1660 = vmatpush.bf16.msra.mxu0 %v10012_v28  ;;  %1615 = vmatmul.bf16.gmra.mxu1 %v134_v39  ;;  %v10054_v28 = vld [vmem:[%s14569_s1 + $0x368] sm:$0xff]  ;;  %v10045_v39 = vld [vmem:[%s14569_s1 + $0x320] sm:$0xff] }
  0x53   :  { %1678 = vmatpush.bf16.msra.mxu1 %v10020_v31  ;;  %1633 = vmatmul.bf16.gmra.mxu2 %v137_v41  ;;  %v10046_v31 = vld [vmem:[%s14569_s1 + $0x328] sm:$0xff]  ;;  %v10069_v41 = vld [vmem:[%s14569_s1 + $0x3e0] sm:$0xff] }
  0x54   :  { %1696 = vmatpush.bf16.msra.mxu2 %v10028_v17  ;;  %1651 = vmatmul.bf16.gmra.mxu3 %v140_v46  ;;  %v10062_v17 = vld [vmem:[%s14569_s1 + $0x3a8] sm:$0xff]  ;;  %v10060_v46 = vld [vmem:[%s14569_s1 + $0x398] sm:$0xff] }
  0x55   :  { %1714 = vmatpush.bf16.msra.mxu3 %v10036_v34  ;;  %v10070_v34 = vld [vmem:[%s14569_s1 + $0x3e8] sm:$0xff] }
  0x56   :  { %1661 = vmatpush.bf16.msra.mxu0 %v10011_v48  ;;  %v10052_v48 = vld [vmem:[%s14569_s1 + $0x358] sm:$0xff] }
  0x57   :  { %1679 = vmatpush.bf16.msra.mxu1 %v10019_v50  ;;  %v10044_v50 = vld [vmem:[%s14569_s1 + $0x318] sm:$0xff] }
  0x58   :  { %1697 = vmatpush.bf16.msra.mxu2 %v10027_v36  ;;  %v10053_v36 = vld [vmem:[%s14569_s1 + $0x360] sm:$0xff] }
  0x59   :  { %1715 = vmatpush.bf16.msra.mxu3 %v10035_v51  ;;  %v10068_v51 = vld [vmem:[%s14569_s1 + $0x3d8] sm:$0xff] }
  0x5a   :  { %1662 = vmatpush.bf16.msra.mxu0 %v10010_v53  ;;  %v10051_v53 = vld [vmem:[%s14569_s1 + $0x350] sm:$0xff] }
  0x5b   :  { %1680 = vmatpush.bf16.msra.mxu1 %v10018_v54  ;;  %v10043_v54 = vld [vmem:[%s14569_s1 + $0x310] sm:$0xff] }
  0x5c   :  { %1698 = vmatpush.bf16.msra.mxu2 %v10026_v52  ;;  %v10059_v52 = vld [vmem:[%s14569_s1 + $0x390] sm:$0xff] }
  0x5d   :  { %1716 = vmatpush.bf16.msra.mxu3 %v10034_v55  ;;  %v10067_v55 = vld [vmem:[%s14569_s1 + $0x3d0] sm:$0xff] }
  0x5e   :  { %1663 = vmatpush.bf16.msra.mxu0 %v10009_v58  ;;  %v10042_v58 = vld [vmem:[%s14569_s1 + $0x308] sm:$0xff] }
  0x5f   :  { %1681 = vmatpush.bf16.msra.mxu1 %v10017_v59  ;;  %v10066_v59 = vld [vmem:[%s14569_s1 + $0x3c8] sm:$0xff] }
  0x60   :  { %1699 = vmatpush.bf16.msra.mxu2 %v10025_v56  ;;  %v10058_v56 = vld [vmem:[%s14569_s1 + $0x388] sm:$0xff] }
  0x61   :  { %1717 = vmatpush.bf16.msra.mxu3 %v10033_v60  ;;  %1664 = vmatmul.bf16.vlgmr.msra.gmra.mxu0 %v152_v10  ;;  %v10057_v60 = vld [vmem:[%s14569_s1 + $0x380] sm:$0xff] }
  0x62   :  { %1728 = vmatpush.bf16.msrb.mxu0 %v10048_v61  ;;  %1682 = vmatmul.bf16.vlgmr.msra.gmra.mxu1 %v155_v11  ;;  %v174_v61 = vrot.slane %v129_v16, 1  ;;  %v188_v16 = vrot.slane %v135_v24, 1  ;;  %v178_v24 = vrot.slane %v94_v33, 1  ;;  %v10065_v33 = vld [vmem:[%s14569_s1 + $0x3c0] sm:$0xff] }
  0x63   :  { %1746 = vmatpush.bf16.msrb.mxu1 %v10056_v62  ;;  %1700 = vmatmul.bf16.vlgmr.msra.gmra.mxu2 %v158_v12  ;;  %v175_v62 = vrot.slane %v89_v32, 2  ;;  %v189_v32 = vrot.slane %v113_v40, 2  ;;  %v179_v40 = vrot.slane %v96_v20, 2  ;;  %v192_v20 = vrot.slane %v118_v47, 1 }
  0x64   :  { %1764 = vmatpush.bf16.msrb.mxu2 %v10064_v57  ;;  %1718 = vmatmul.bf16.vlgmr.msra.gmra.mxu3 %v161_v14  ;;  %v10050_v57 = vld [vmem:[%s14569_s1 + $0x348] sm:$0xff]  ;;  %v10079_v14 = vld [vmem:[%s14569_s1 + $0x430] sm:$0xff] }
  0x65   :  { %1782 = vmatpush.bf16.msrb.mxu3 %v10072_v1  ;;  %v10049_v1 = vld [vmem:[%s14569_s1 + $0x340] sm:$0xff]  ;;  %v176_v7 = vor.u32 %v175_v62, %v174_v61  ;;  %v180_v10 = vor.u32 %v179_v40, %v178_v24  ;;  %v10074_v61 = vld [vmem:[%s14569_s1 + $0x408] sm:$0xff]  ;;  %v214_v24 = vrot.slane %v10853_v44, 2  ;;  %v215_v40 = vrot.slane %v10939_v22, 2 }
  0x66   :  { %1729 = vmatpush.bf16.msrb.mxu0 %v10047_v13  ;;  %v194_v13 = vor.u32 %v193_v38, %v192_v20  ;;  %v10082_v62 = vld [vmem:[%s14569_s1 + $0x448] sm:$0xff] }
  0x67   :  { %1747 = vmatpush.bf16.msrb.mxu1 %v10055_v9  ;;  %v190_v9 = vor.u32 %v189_v32, %v188_v16  ;;  %v10097_v16 = vld [vmem:[%s14569_s1 + $0x4c0] sm:$0xff]  ;;  %v208_v32 = vrot.slane %v10849_v42, 2  ;;  %v218_v42 = vrot.slane %v10948_v26, 2 }
  0x68   :  { %1765 = vmatpush.bf16.msrb.mxu2 %v10063_v2  ;;  %v10096_v2 = vld [vmem:[%s14569_s1 + $0x4b8] sm:$0xff] }
  0x69   :  { %1783 = vmatpush.bf16.msrb.mxu3 %v10071_v15  ;;  %v10103_v15 = vld [vmem:[%s14569_s1 + $0x4f0] sm:$0xff] }
  0x6a   :  { %1730 = vmatpush.bf16.msrb.mxu0 %v10046_v31 }
  0x6b   :  { %1748 = vmatpush.bf16.msrb.mxu1 %v10054_v28 }
  0x6c   :  { %1766 = vmatpush.bf16.msrb.mxu2 %v10062_v17 }
  0x6d   :  { %1784 = vmatpush.bf16.msrb.mxu3 %v10070_v34  ;;  %v10094_v34 = vld [vmem:[%s14569_s1 + $0x4a8] sm:$0xff] }
  0x6e   :  { %1731 = vmatpush.bf16.msrb.mxu0 %v10045_v39  ;;  %v10086_v39 = vld [vmem:[%s14569_s1 + $0x468] sm:$0xff] }
  0x6f   :  { %1749 = vmatpush.bf16.msrb.mxu1 %v10053_v36  ;;  %v10078_v36 = vld [vmem:[%s14569_s1 + $0x428] sm:$0xff] }
  0x70   :  { %1767 = vmatpush.bf16.msrb.mxu2 %v10061_v35 }
  0x71   :  { %1785 = vmatpush.bf16.msrb.mxu3 %v10069_v41  ;;  %1669 = vmatmul.bf16.gmra.mxu0 %v151_v0  ;;  %v182_v0 = vrot.slane %v101_v37, 2  ;;  %v172_v37 = vrot.slane %v84_v19, 2  ;;  %v186_v19 = vrot.slane %v108_v25, 2  ;;  %v10080_v25 = vld [vmem:[%s14569_s1 + $0x438] sm:$0xff]  ;;  %v10102_v41 = vld [vmem:[%s14569_s1 + $0x4e8] sm:$0xff] }
  0x72   :  { %1732 = vmatpush.bf16.msrb.mxu0 %v10044_v50  ;;  %1687 = vmatmul.bf16.gmra.mxu1 %v154_v4  ;;  %v10041_v4 = vld [vmem:[%s14569_s1 + $0x300] sm:$0xff] }
  0x73   :  { %1750 = vmatpush.bf16.msrb.mxu1 %v10052_v48  ;;  %1705 = vmatmul.bf16.gmra.mxu2 %v157_v6  ;;  %v196_v6 = vrot.slane %v125_v49, 2  ;;  %v10104_v49 = vld [vmem:[%s14569_s1 + $0x4f8] sm:$0xff]  ;;  %v173_v47 = vor.u32 %v172_v37, %v171_v23  ;;  %v187_v11 = vor.u32 %v186_v19, %v185_v30  ;;  %v10077_v48 = vld [vmem:[%s14569_s1 + $0x420] sm:$0xff]  ;;  %v209_v23 = vrot.slane %v10933_v18, 2 }
  0x74   :  { %1768 = vmatpush.bf16.msrb.mxu2 %v10060_v46  ;;  %1723 = vmatmul.bf16.gmra.mxu3 %v160_v8  ;;  %v11274_v8 = vor.u32 %v182_v0, %v181_v63  ;;  %v10093_v46 = vld [vmem:[%s14569_s1 + $0x4a0] sm:$0xff]  ;;  %v10098_v63 = vld [vmem:[%s14569_s1 + $0x4c8] sm:$0xff]  ;;  %v211_v37 = vrot.slane %v10851_v43, 2  ;;  %v217_v30 = vrot.slane %v10855_v45, 2 }
  0x75   :  { %1786 = vmatpush.bf16.msrb.mxu3 %v10068_v51  ;;  %v197_v12 = vor.u32 %v196_v6, %v195_v5  ;;  %v177_v17 = vsel %vm170_vm2, %v173_v47, %v176_v7  ;;  %v191_v31 = vsel %vm170_vm2, %v187_v11, %v190_v9  ;;  %v10085_v50 = vld [vmem:[%s14569_s1 + $0x460] sm:$0xff]  ;;  %v210_v43 = vsel %vm207_vm3, %v208_v32, %v209_v23 }
  0x76   :  { %1733 = vmatpush.bf16.msrb.mxu0 %v10043_v54  ;;  %v184_v28 = vsel %vm170_vm2, %v180_v10, %v11274_v8  ;;  %v10101_v51 = vld [vmem:[%s14569_s1 + $0x4e0] sm:$0xff]  ;;  %v10084_v54 = vld [vmem:[%s14569_s1 + $0x458] sm:$0xff] }
  0x77   :  { %1751 = vmatpush.bf16.msrb.mxu1 %v10051_v53  ;;  %v198_v35 = vsel %vm170_vm2, %v194_v13, %v197_v12  ;;  %v10076_v53 = vld [vmem:[%s14569_s1 + $0x418] sm:$0xff]  ;;  %v10089_v0 = vld [vmem:[%s14569_s1 + $0x480] sm:$0xff] }
  0x78   :  { %1769 = vmatpush.bf16.msrb.mxu2 %v10059_v52  ;;  %v10092_v52 = vld [vmem:[%s14569_s1 + $0x498] sm:$0xff] }
  0x79   :  { %1787 = vmatpush.bf16.msrb.mxu3 %v10067_v55  ;;  %v10100_v55 = vld [vmem:[%s14569_s1 + $0x4d8] sm:$0xff] }
  0x7a   :  { %1734 = vmatpush.bf16.msrb.mxu0 %v10042_v58  ;;  %v10083_v58 = vld [vmem:[%s14569_s1 + $0x450] sm:$0xff] }
  0x7b   :  { %1752 = vmatpush.bf16.msrb.mxu1 %v10050_v57  ;;  %v10075_v57 = vld [vmem:[%s14569_s1 + $0x410] sm:$0xff] }
  0x7c   :  { %1770 = vmatpush.bf16.msrb.mxu2 %v10058_v56  ;;  %v10091_v56 = vld [vmem:[%s14569_s1 + $0x490] sm:$0xff] }
  0x7d   :  { %1788 = vmatpush.bf16.msrb.mxu3 %v10066_v59  ;;  %v10099_v59 = vld [vmem:[%s14569_s1 + $0x4d0] sm:$0xff] }
  0x7e   :  { %1735 = vmatpush.bf16.msrb.mxu0 %v10041_v4  ;;  %v212_v4 = vrot.slane %v10937_v21, 2  ;;  %v219_v21 = vsel %vm207_vm3, %v217_v30, %v218_v42 }
  0x7f   :  { %1753 = vmatpush.bf16.msrb.mxu1 %v10049_v1  ;;  %v10073_v1 = vld [vmem:[%s14569_s1 + $0x400] sm:$0xff] }
  0x80   :  { %1771 = vmatpush.bf16.msrb.mxu2 %v10057_v60  ;;  %v10090_v60 = vld [vmem:[%s14569_s1 + $0x488] sm:$0xff]  ;;  %v213_v6 = vsel %vm207_vm3, %v211_v37, %v212_v4 }
  0x81   :  { %1789 = vmatpush.bf16.msrb.mxu3 %v10065_v33  ;;  %1736 = vmatmul.bf16.vlgmr.msrb.gmra.mxu0 %v177_v17  ;;  %v216_v33 = vsel %vm207_vm3, %v214_v24, %v215_v40 }
  0x82   :  { %1800 = vmatpush.bf16.msra.mxu0 %v10080_v25  ;;  %1754 = vmatmul.bf16.vlgmr.msrb.gmra.mxu1 %v184_v28 }
  0x83   :  { %1818 = vmatpush.bf16.msra.mxu1 %v10088_v3  ;;  %1772 = vmatmul.bf16.vlgmr.msrb.gmra.mxu2 %v191_v31  ;;  %v11369_v3 = vld [vmem:[%s14570_s2] ss:$0 sm:$0xff] }
  0x84   :  { %1836 = vmatpush.bf16.msra.mxu2 %v10096_v2  ;;  %1790 = vmatmul.bf16.vlgmr.msrb.gmra.mxu3 %v198_v35  ;;  %v10081_v2 = vld [vmem:[%s14569_s1 + $0x440] sm:$0xff] }
  0x85   :  { %1854 = vmatpush.bf16.msra.mxu3 %v10104_v49 }
  0x86   :  { %1801 = vmatpush.bf16.msra.mxu0 %v10079_v14 }
  0x87   :  { %1819 = vmatpush.bf16.msra.mxu1 %v10087_v29 }
  0x88   :  { %1837 = vmatpush.bf16.msra.mxu2 %v10095_v27 }
  0x89   :  { %1855 = vmatpush.bf16.msra.mxu3 %v10103_v15 }
  0x8a   :  { %1802 = vmatpush.bf16.msra.mxu0 %v10078_v36 }
  0x8b   :  { %1820 = vmatpush.bf16.msra.mxu1 %v10086_v39 }
  0x8c   :  { %1838 = vmatpush.bf16.msra.mxu2 %v10094_v34 }
  0x8d   :  { %1856 = vmatpush.bf16.msra.mxu3 %v10102_v41 }
  0x8e   :  { %1803 = vmatpush.bf16.msra.mxu0 %v10077_v48 }
  0x8f   :  { %1821 = vmatpush.bf16.msra.mxu1 %v10085_v50 }
  0x90   :  { %1839 = vmatpush.bf16.msra.mxu2 %v10093_v46 }
  0x91   :  { %1857 = vmatpush.bf16.msra.mxu3 %v10101_v51  ;;  %1741 = vmatmul.bf16.gmra.mxu0 %v176_v7 }
  0x92   :  { %1804 = vmatpush.bf16.msra.mxu0 %v10076_v53  ;;  %1759 = vmatmul.bf16.gmra.mxu1 %v11274_v8 }
  0x93   :  { %1822 = vmatpush.bf16.msra.mxu1 %v10084_v54  ;;  %1777 = vmatmul.bf16.gmra.mxu2 %v190_v9 }
  0x94   :  { %1840 = vmatpush.bf16.msra.mxu2 %v10092_v52  ;;  %1795 = vmatmul.bf16.gmra.mxu3 %v197_v12 }
  0x95   :  { %1858 = vmatpush.bf16.msra.mxu3 %v10100_v55 }
  0x96   :  { %1805 = vmatpush.bf16.msra.mxu0 %v10075_v57 }
  0x97   :  { %1823 = vmatpush.bf16.msra.mxu1 %v10083_v58 }
  0x98   :  { %1841 = vmatpush.bf16.msra.mxu2 %v10091_v56 }
  0x99   :  { %1859 = vmatpush.bf16.msra.mxu3 %v10099_v59 }
  0x9a   :  { %1806 = vmatpush.bf16.msra.mxu0 %v10074_v61 }
  0x9b   :  { %1824 = vmatpush.bf16.msra.mxu1 %v10082_v62 }
  0x9c   :  { %1842 = vmatpush.bf16.msra.mxu2 %v10090_v60 }
  0x9d   :  { %1860 = vmatpush.bf16.msra.mxu3 %v10098_v63 }
  0x9e   :  { %1807 = vmatpush.bf16.msra.mxu0 %v10073_v1  ;;  %v1521_v19 = vpop.f32.mrf.mxu0 }
  0x9f   :  { %1825 = vmatpush.bf16.msra.mxu1 %v10081_v2  ;;  %v1539_v18 = vpop.f32.mrf.mxu1  ;;  %v1522_v5 = vadd.f32 %v11369_v3, %v1521_v19 }
  0xa0   :  { %1843 = vmatpush.bf16.msra.mxu2 %v10089_v0 }
  0xa1   :  { %1861 = vmatpush.bf16.msra.mxu3 %v10097_v16  ;;  %v1540_v20 = vadd.f32 %v1539_v18, %v1522_v5  ;;  %1808 = vmatmul.bf16.vlgmr.msra.gmra.mxu0 %v210_v43 }
  0xa2   :  { %1826 = vmatmul.bf16.vlgmr.msra.gmra.mxu1 %v213_v6 }
  0xa3   :  { %1844 = vmatmul.bf16.vlgmr.msra.gmra.mxu2 %v216_v33 }
  0xa4   :  { %1862 = vmatmul.bf16.vlgmr.msra.gmra.mxu3 %v219_v21 }
  0xa6   :  { %v1557_v44 = vpop.f32.mrf.mxu2  ;;  %v11381_v26 = vpop.f32.mrf.mxu0 }
  0xa7   :  { %v1575_v45 = vpop.f32.mrf.mxu3  ;;  %v1558_v22 = vadd.f32 %v1557_v44, %v1540_v20  ;;  %v11383_v38 = vpop.f32.mrf.mxu1  ;;  %v1524_v20 = vadd.f32 %v11369_v3, %v11381_v26 }
  0xa9   :  { %v1576_v25 = vadd.f32 %v1575_v45, %v1558_v22  ;;  %v1542_v44 = vadd.f32 %v11383_v38, %v1524_v20 }
  0xae   :  { %v11385_v49 = vpop.f32.mrf.mxu2  ;;  %v1526_v7 = vpop.f32.mrf.mxu0 }
  0xaf   :  { %v11387_v27 = vpop.f32.mrf.mxu3  ;;  %v1544_v8 = vpop.f32.mrf.mxu1  ;;  %v1527_v47 = vadd.f32 %v11369_v3, %v1526_v7  ;;  %v1560_v22 = vadd.f32 %v11385_v49, %v1542_v44 }
  0xb1   :  { %v1545_v29 = vadd.f32 %v1544_v8, %v1527_v47  ;;  %1813 = vmatmul.bf16.gmra.mxu0 %v209_v23  ;;  %v1578_v47 = vadd.f32 %v11387_v27, %v1560_v22 }
  0xb2   :  { %1831 = vmatmul.bf16.gmra.mxu1 %v212_v4 }
  0xb3   :  { %1849 = vmatmul.bf16.gmra.mxu2 %v215_v40 }
  0xb4   :  { %1867 = vmatmul.bf16.gmra.mxu3 %v218_v42 }
  0xb6   :  { %v1562_v9 = vpop.f32.mrf.mxu2  ;;  %v1528_v12 = vpop.f32.mrf.mxu0 }
  0xb7   :  { %v1580_v10 = vpop.f32.mrf.mxu3  ;;  %v1563_v11 = vadd.f32 %v1562_v9, %v1545_v29  ;;  %v1546_v13 = vpop.f32.mrf.mxu1 }
  0xb9   :  { %v1581_v14 = vadd.f32 %v1580_v10, %v1563_v11 }
  0xbe   :  { %v1564_v15 = vpop.f32.mrf.mxu2  ;;  %v1593_v28 = vpop.f32.mrf.mxu0 }
  0xbf   :  { %v1582_v17 = vpop.f32.mrf.mxu3  ;;  %v1594_v31 = vadd.f32 %v1593_v28, %v1576_v25  ;;  %v1611_v34 = vpop.f32.mrf.mxu1 }
  0xc1   :  { %v1612_v35 = vadd.f32 %v1611_v34, %v1594_v31 }
  0xc6   :  { %v1629_v36 = vpop.f32.mrf.mxu2  ;;  %v1595_v46 = vpop.f32.mrf.mxu0 }
  0xc7   :  { %v1630_v39 = vadd.f32 %v1629_v36, %v1612_v35  ;;  %v1647_v41 = vpop.f32.mrf.mxu3  ;;  %v1613_v48 = vpop.f32.mrf.mxu1  ;;  %v1596_v29 = vadd.f32 %v1595_v46, %v1578_v47 }
  0xc9   :  { %v1648_v50 = vadd.f32 %v1647_v41, %v1630_v39  ;;  %v1614_v13 = vadd.f32 %v1613_v48, %v1596_v29  ;;  %v10124_v48 = vld [vmem:[%s14571_s3 + $0x98] sm:$0xff] }
  0xca   :  { %2158 = vmatpush.bf16.msrb.mxu2 %v10124_v48  ;;  %v10110_v48 = vld [vmem:[%s14571_s3 + $0x28] sm:$0xff] }
  0xce   :  { %v1631_v51 = vpop.f32.mrf.mxu2  ;;  %v1598_v53 = vpop.f32.mrf.mxu0 }
  0xcf   :  { %v1649_v52 = vpop.f32.mrf.mxu3  ;;  %v1599_v54 = vadd.f32 %v1598_v53, %v1581_v14  ;;  %v1616_v55 = vpop.f32.mrf.mxu1  ;;  %v1632_v14 = vadd.f32 %v1631_v51, %v1614_v13 }
  0xd1   :  { %v1617_v56 = vadd.f32 %v1616_v55, %v1599_v54  ;;  %v1650_v17 = vadd.f32 %v1649_v52, %v1632_v14  ;;  %v10123_v55 = vld [vmem:[%s14571_s3 + $0x90] sm:$0xff] }
  0xd2   :  { %2159 = vmatpush.bf16.msrb.mxu2 %v10123_v55  ;;  %v10117_v55 = vld [vmem:[%s14571_s3 + $0x60] sm:$0xff] }
  0xd6   :  { %v1634_v57 = vpop.f32.mrf.mxu2  ;;  %v1600_v60 = vpop.f32.mrf.mxu0 }
  0xd7   :  { %v1635_v58 = vadd.f32 %v1634_v57, %v1617_v56  ;;  %v1652_v59 = vpop.f32.mrf.mxu3  ;;  %v1618_v61 = vpop.f32.mrf.mxu1 }
  0xd9   :  { %v1653_v62 = vadd.f32 %v1652_v59, %v1635_v58 }
  0xde   :  { %v1636_v63 = vpop.f32.mrf.mxu2  ;;  %v1665_v1 = vpop.f32.mrf.mxu0 }
  0xdf   :  { %v1654_v0 = vpop.f32.mrf.mxu3  ;;  %v1666_v2 = vadd.f32 %v1665_v1, %v1648_v50  ;;  %v1683_v16 = vpop.f32.mrf.mxu1  ;;  %v10122_v63 = vld [vmem:[%s14571_s3 + $0x88] sm:$0xff] }
  0xe0   :  { %2160 = vmatpush.bf16.msrb.mxu2 %v10122_v63 }
  0xe1   :  { %v1684_v32 = vadd.f32 %v1683_v16, %v1666_v2 }
  0xe6   :  { %v1701_v23 = vpop.f32.mrf.mxu2  ;;  %v1667_v24 = vpop.f32.mrf.mxu0 }
  0xe7   :  { %v1702_v37 = vadd.f32 %v1701_v23, %v1684_v32  ;;  %v1719_v4 = vpop.f32.mrf.mxu3  ;;  %v1685_v40 = vpop.f32.mrf.mxu1  ;;  %v1668_v28 = vadd.f32 %v1667_v24, %v1650_v17  ;;  %v10121_v23 = vld [vmem:[%s14571_s3 + $0x80] sm:$0xff] }
  0xe8   :  { %2161 = vmatpush.bf16.msrb.mxu2 %v10121_v23 }
  0xe9   :  { %v1720_v30 = vadd.f32 %v1719_v4, %v1702_v37  ;;  %v1686_v31 = vadd.f32 %v1685_v40, %v1668_v28  ;;  %v10120_v28 = vld [vmem:[%s14571_s3 + $0x78] sm:$0xff] }
  0xea   :  { %2136 = vmatpush.bf16.msrb.mxu1 %v10120_v28  ;;  %v10151_v28 = vld [vmem:[%s14573_s5 + $0xcc] sm:$0xf0] }
  0xee   :  { %v1703_v42 = vpop.f32.mrf.mxu2  ;;  %v1670_v18 = vpop.f32.mrf.mxu0 }
  0xef   :  { %v1721_v19 = vpop.f32.mrf.mxu3  ;;  %v1688_v43 = vpop.f32.mrf.mxu1  ;;  %v1704_v35 = vadd.f32 %v1703_v42, %v1686_v31  ;;  %v1671_v41 = vadd.f32 %v1670_v18, %v1653_v62 }
  0xf1   :  { %v1722_v50 = vadd.f32 %v1721_v19, %v1704_v35  ;;  %v1689_v52 = vadd.f32 %v1688_v43, %v1671_v41  ;;  %v10119_v35 = vld [vmem:[%s14571_s3 + $0x70] sm:$0xff] }
  0xf2   :  { %2137 = vmatpush.bf16.msrb.mxu1 %v10119_v35 }
  0xf6   :  { %v1706_v5 = vpop.f32.mrf.mxu2  ;;  %v1672_v33 = vpop.f32.mrf.mxu0 }
  0xf7   :  { %v1724_v6 = vpop.f32.mrf.mxu3  ;;  %v1690_v21 = vpop.f32.mrf.mxu1  ;;  %v1707_v56 = vadd.f32 %v1706_v5, %v1689_v52 }
  0xf9   :  { %v1725_v0 = vadd.f32 %v1724_v6, %v1707_v56 }
  0xfe   :  { %v1708_v45 = vpop.f32.mrf.mxu2  ;;  %v1737_v7 = vpop.f32.mrf.mxu0 }
  0xff   :  { %v1726_v25 = vpop.f32.mrf.mxu3  ;;  %v1755_v8 = vpop.f32.mrf.mxu1  ;;  %v1738_v49 = vadd.f32 %v1737_v7, %v1720_v30 }
 0x101   :  { %v1756_v46 = vadd.f32 %v1755_v8, %v1738_v49 }
 0x106   :  { %v1773_v9 = vpop.f32.mrf.mxu2  ;;  %v1739_v11 = vpop.f32.mrf.mxu0 }
 0x107   :  { %v1791_v10 = vpop.f32.mrf.mxu3  ;;  %v1757_v12 = vpop.f32.mrf.mxu1  ;;  %v1774_v51 = vadd.f32 %v1773_v9, %v1756_v46  ;;  %v1740_v53 = vadd.f32 %v1739_v11, %v1722_v50  ;;  %v10118_v50 = vld [vmem:[%s14571_s3 + $0x68] sm:$0xff] }
 0x108   :  { %2138 = vmatpush.bf16.msrb.mxu1 %v10118_v50  ;;  %v8133_v50 = vld [vmem:[%s14573_s5 + $0x1e0] sm:$0xf] }
 0x109   :  { %v1792_v57 = vadd.f32 %v1791_v10, %v1774_v51  ;;  %v1758_v61 = vadd.f32 %v1757_v12, %v1740_v53 }
 0x10c   :  { %2139 = vmatpush.bf16.msrb.mxu1 %v10117_v55 }
 0x10e   :  { %v1775_v15 = vpop.f32.mrf.mxu2  ;;  %v1742_v26 = vpop.f32.mrf.mxu0 }
 0x10f   :  { %v1793_v3 = vpop.f32.mrf.mxu3  ;;  %v1760_v38 = vpop.f32.mrf.mxu1  ;;  %v1776_v1 = vadd.f32 %v1775_v15, %v1758_v61  ;;  %v1743_v2 = vadd.f32 %v1742_v26, %v1725_v0  ;;  %v10108_v0 = vld [vmem:[%s14571_s3 + $0x18] sm:$0xff] }
 0x111   :  { %v1794_v37 = vadd.f32 %v1793_v3, %v1776_v1  ;;  %v1761_v42 = vadd.f32 %v1760_v38, %v1743_v2  ;;  %v10112_v38 = vld [vmem:[%s14571_s3 + $0x38] sm:$0xff] }
 0x112   :  { %2118 = vmatpush.bf16.msrb.mxu0 %v10112_v38  ;;  %v7989_v38 = vld [vmem:[%s14573_s5 + $0xc0] sm:$0xf] }
 0x116   :  { %v1778_v34 = vpop.f32.mrf.mxu2  ;;  %v1744_v39 = vpop.f32.mrf.mxu0 }
 0x117   :  { %v1796_v36 = vpop.f32.mrf.mxu3  ;;  %v1762_v27 = vpop.f32.mrf.mxu1  ;;  %v1779_v18 = vadd.f32 %v1778_v34, %v1761_v42  ;;  %v10111_v34 = vld [vmem:[%s14571_s3 + $0x30] sm:$0xff] }
 0x118   :  { %2119 = vmatpush.bf16.msrb.mxu0 %v10111_v34  ;;  %v10147_v34 = vld [vmem:[%s14573_s5 + $0xac] sm:$0xf0] }
 0x119   :  { %v1797_v33 = vadd.f32 %v1796_v36, %v1779_v18 }
 0x11c   :  { %2120 = vmatpush.bf16.msrb.mxu0 %v10110_v48 }
 0x11e   :  { %v1780_v54 = vpop.f32.mrf.mxu2  ;;  %v1809_v59 = vpop.f32.mrf.mxu0 }
 0x11f   :  { %v1798_v58 = vpop.f32.mrf.mxu3  ;;  %v1827_v60 = vpop.f32.mrf.mxu1  ;;  %v1810_v62 = vadd.f32 %v1809_v59, %v1792_v57  ;;  %v10109_v54 = vld [vmem:[%s14571_s3 + $0x20] sm:$0xff] }
 0x120   :  { %2121 = vmatpush.bf16.msrb.mxu0 %v10109_v54  ;;  %v10139_v54 = vld [vmem:[%s14573_s5 + $0x6c] sm:$0xf0] }
 0x121   :  { %v1828_v16 = vadd.f32 %v1827_v60, %v1810_v62 }
 0x124   :  { %2122 = vmatpush.bf16.msrb.mxu0 %v10108_v0 }
 0x126   :  { %v1845_v32 = vpop.f32.mrf.mxu2  ;;  %v1811_v40 = vpop.f32.mrf.mxu0 }
 0x127   :  { %v1846_v4 = vadd.f32 %v1845_v32, %v1828_v16  ;;  %v1863_v24 = vpop.f32.mrf.mxu3  ;;  %v1829_v30 = vpop.f32.mrf.mxu1  ;;  %v1812_v19 = vadd.f32 %v1811_v40, %v1794_v37  ;;  %v10116_v32 = vld [vmem:[%s14571_s3 + $0x58] sm:$0xff]  ;;  %v10107_v40 = vld [vmem:[%s14571_s3 + $0x10] sm:$0xff] }
 0x128   :  { %2140 = vmatpush.bf16.msrb.mxu1 %v10116_v32  ;;  %2123 = vmatpush.bf16.msrb.mxu0 %v10107_v40  ;;  %v8373_v32 = vld [vmem:[%s14573_s5 + $0x3c0] sm:$0xf] }
 0x129   :  { %v1864_v43 = vadd.f32 %v1863_v24, %v1846_v4  ;;  %v1830_v5 = vadd.f32 %v1829_v30, %v1812_v19  ;;  %v10115_v19 = vld [vmem:[%s14571_s3 + $0x50] sm:$0xff] }
 0x12b   :  { %v1872_v21 = vmax.f32 %v1864_v43, 0.0  ;;  %v10106_v43 = vld [vmem:[%s14571_s3 + $0x8] sm:$0xff] }
 0x12c   :  { %2141 = vmatpush.bf16.msrb.mxu1 %v10115_v19  ;;  %2124 = vmatpush.bf16.msrb.mxu0 %v10106_v43  ;;  %v10131_v43 = vld [vmem:[%s14573_s5 + $0x2c] sm:$0xf0] }
 0x12d   :  { %v1875_v8 = vpack.c.bf16 %v1872_v21, %v1872_v21  ;;  %v10114_v21 = vld [vmem:[%s14571_s3 + $0x48] sm:$0xff] }
 0x12e   :  { %v1847_v6 = vpop.f32.mrf.mxu2  ;;  %v1814_v45 = vpop.f32.mrf.mxu0 }
 0x12f   :  { %v1848_v20 = vadd.f32 %v1847_v6, %v1830_v5  ;;  %v1865_v44 = vpop.f32.mrf.mxu3  ;;  %v1832_v22 = vpop.f32.mrf.mxu1  ;;  %v1815_v7 = vadd.f32 %v1814_v45, %v1797_v33  ;;  %v1881_v11 = vunpack.c.l.b16 %v1875_v8  ;;  %v10105_v33 = vld [vmem:[%s14571_s3] sm:$0xff] }
 0x130   :  { %2125 = vmatpush.bf16.msrb.mxu0 %v10105_v33  ;;  %2142 = vmatpush.bf16.msrb.mxu1 %v10114_v21  ;;  %v10243_v33 = vld [vmem:[%s14573_s5 + $0x3ac] sm:$0xf0]  ;;  %v8213_v21 = vld [vmem:[%s14573_s5 + $0x280] sm:$0xf] }
 0x131   :  { %v1866_v25 = vadd.f32 %v1865_v44, %v1848_v20  ;;  %v1833_v9 = vadd.f32 %v1832_v22, %v1815_v7  ;;  %v10113_v20 = vld [vmem:[%s14571_s3 + $0x40] sm:$0xff] }
 0x133   :  { %v1873_v47 = vmax.f32 %v1866_v25, 0.0 }
 0x134   :  { %2143 = vmatpush.bf16.msrb.mxu1 %v10113_v20 }
 0x135   :  { %v1876_v29 = vpack.c.bf16 %v1873_v47, %v1873_v47 }
 0x136   :  { %v1850_v10 = vpop.f32.mrf.mxu2  ;;  %v1816_v15 = vpop.f32.mrf.mxu0 }
 0x137   :  { %v1882_v12 = vunpack.c.l.b16 %v1876_v29  ;;  %v1851_v13 = vadd.f32 %v1850_v10, %v1833_v9  ;;  %v1868_v14 = vpop.f32.mrf.mxu3  ;;  %v1834_v17 = vpop.f32.mrf.mxu1 }
 0x138   :  { %v8005_v17 = vld [vmem:[%s14573_s5 + $0xe0] sm:$0xf] }
 0x139   :  { %v1884_v3 = vpack.c.b16 %v1882_v12, %v1881_v11  ;;  %v1869_v26 = vadd.f32 %v1868_v14, %v1851_v13 }
 0x13b   :  { %v1887_v31 = vrot.slane %v1884_v3, 7  ;;  %v1874_v49 = vmax.f32 %v1869_v26, 0.0  ;;  %v10155_v3 = vld [vmem:[%s14573_s5 + $0xec] sm:$0xf0] }
 0x13c   :  { %v8006_v26 = vor.u32 %v10155_v3, %v8005_v17  ;;  %v10203_v17 = vld [vmem:[%s14573_s5 + $0x26c] sm:$0xf0] }
 0x13d   :  { %v1877_v36 = vpack.c.bf16 %v1874_v49, %v1874_v49  ;;  %v11420_v39 = vsel %vm1886_vm4, 0, %v1887_v31  ;;  %v7973_v49 = vld [vmem:[%s14573_s5 + $0xa0] sm:$0xf] }
 0x13e   :  { %v1852_v27 = vpop.f32.mrf.mxu2  ;;  %v1899_v52 = vshll.u32 %v11420_v39, 16  ;;  %v1930_v59 = vrot.slane %v11420_v39, 2  ;;  %v1897_v61 = vshrl.u32 %v11420_v39, 16  ;;  %v1916_v25 = vrot.slane %v11420_v39, 1  ;;  %3201 = vmatpush.bf16.msrb.mxu3 %v8006_v26  ;;  %v8069_v26 = vld [vmem:[%s14573_s5 + $0x160] sm:$0xf] }
 0x13f   :  { %v1883_v41 = vunpack.c.l.b16 %v1877_v36  ;;  %v1870_v46 = vpop.f32.mrf.mxu3  ;;  %v7974_v35 = vor.u32 %v10147_v34, %v7973_v49  ;;  %v7957_v36 = vld [vmem:[%s14573_s5 + $0x80] sm:$0xf]  ;;  %v10283_v49 = vld [vmem:[%s14573_s5 + $0x4ec] sm:$0xf0] }
 0x140   :  { %v1901_v57 = vrot.slane %v1899_v52, 1  ;;  %v1919_v30 = vrot.slane %v1897_v61, 1  ;;  %v1920_v42 = vrot.slane %v1899_v52, 2  ;;  %v10219_v46 = vld [vmem:[%s14573_s5 + $0x2ec] sm:$0xf0] }
 0x141   :  { %v1885_v51 = vpack.c.b16 %v1883_v41, %v1883_v41  ;;  %v8261_v41 = vld [vmem:[%s14573_s5 + $0x2e0] sm:$0xf] }
 0x142   :  { %v1902_v2 = vor.u32 %v1901_v57, %v1897_v61  ;;  %v1921_v5 = vor.u32 %v1920_v42, %v1919_v30  ;;  %v8262_v48 = vor.u32 %v10219_v46, %v8261_v41  ;;  %v10251_v57 = vld [vmem:[%s14573_s5 + $0x3ec] sm:$0xf0]  ;;  %v8101_v30 = vld [vmem:[%s14573_s5 + $0x1a0] sm:$0xf] }
 0x143   :  { %v1888_v53 = vrot.slane %v1885_v51, 7  ;;  %v10187_v51 = vld [vmem:[%s14573_s5 + $0x1ec] sm:$0xf0]  ;;  %v8325_v34 = vld [vmem:[%s14573_s5 + $0x360] sm:$0xf] }
 0x144   :  { %3237 = vmatpush.bf16.msra.mxu1 %v8262_v48  ;;  %v8134_v52 = vor.u32 %v10187_v51, %v8133_v50  ;;  %v10179_v42 = vld [vmem:[%s14573_s5 + $0x1ac] sm:$0xf0]  ;;  %v8181_v41 = vld [vmem:[%s14573_s5 + $0x240] sm:$0xf] }
 0x145   :  { %v1889_v56 = vsel %vm1886_vm4, %v1887_v31, %v1888_v53  ;;  %v7990_v31 = vor.u32 %v10151_v28, %v7989_v38  ;;  %v7941_v53 = vld [vmem:[%s14573_s5 + $0x60] sm:$0xf]  ;;  %v8102_v19 = vor.u32 %v10179_v42, %v8101_v30  ;;  %v10171_v38 = vld [vmem:[%s14573_s5 + $0x16c] sm:$0xf0] }
 0x146   :  { %v1896_v58 = vsel %vm1894_vm5, %v1889_v56, 0  ;;  %v7942_v55 = vor.u32 %v10139_v54, %v7941_v53  ;;  %v8389_v56 = vld [vmem:[%s14573_s5 + $0x3e0] sm:$0xf]  ;;  %3219 = vmatpush.bf16.msra.mxu0 %v8134_v52  ;;  %v8070_v28 = vor.u32 %v10171_v38, %v8069_v26  ;;  %v10199_v46 = vld [vmem:[%s14573_s5 + $0x24c] sm:$0xf0] }
 0x147   :  { %v1931_v60 = vrot.slane %v1896_v58, 2  ;;  %v1903_v62 = vshll.u32 %v1896_v58, 16  ;;  %v1907_v63 = vshrl.u32 %v1896_v58, 16  ;;  %v1917_v22 = vrot.slane %v1896_v58, 1  ;;  %3202 = vmatpush.bf16.msrb.mxu3 %v7990_v31  ;;  %v8517_v31 = vld [vmem:[%s14573_s5 + $0x4e0] sm:$0xf] }
 0x148   :  { %v8182_v48 = vor.u32 %v10199_v46, %v8181_v41  ;;  %v8053_v50 = vld [vmem:[%s14573_s5 + $0x140] sm:$0xf]  ;;  %v10167_v51 = vld [vmem:[%s14573_s5 + $0x14c] sm:$0xf0]  ;;  %v10217_v38 = vld [vmem:[%s14573_s5 + $0x2e4] sm:$0xf] }
 0x149   :  { %v1932_v1 = vsel %vm207_vm3, %v1930_v59, %v1931_v60  ;;  %v1905_v16 = vrot.slane %v1903_v62, 1  ;;  %v1922_v4 = vrot.slane %v1907_v63, 1  ;;  %v1923_v24 = vrot.slane %v1903_v62, 2  ;;  %v8117_v62 = vld [vmem:[%s14573_s5 + $0x1c0] sm:$0xf] }
 0x14a   :  { %7889 = vmatmul.msk.bf16.vlgmr.msrb.gmra.mxu2 %vm1933_vm6, %v1932_v1  ;;  %v1918_v7 = vsel %vm149_vm1, %v1916_v25, %v1917_v22  ;;  %v8390_v59 = vor.u32 %v10251_v57, %v8389_v56  ;;  %v7925_v1 = vld [vmem:[%s14573_s5 + $0x40] sm:$0xf]  ;;  %v10175_v25 = vld [vmem:[%s14573_s5 + $0x18c] sm:$0xf0]  ;;  %v8054_v53 = vor.u32 %v10167_v51, %v8053_v50  ;;  %v10213_v51 = vld [vmem:[%s14573_s5 + $0x2c4] sm:$0xf] }
 0x14b   :  { %v1906_v23 = vsel %vm80_vm0, %v1902_v2, %v1905_v16  ;;  %v1909_v37 = vor.u32 %v1907_v63, %v1905_v16  ;;  %v1924_v18 = vor.u32 %v1923_v24, %v1922_v4  ;;  %3203 = vmatpush.bf16.msrb.mxu3 %v7974_v35  ;;  %v10183_v63 = vld [vmem:[%s14573_s5 + $0x1cc] sm:$0xf0]  ;;  %v11644_v52 = vld [vmem:[%s14572_s4] ss:$0 sm:$0xff] }
 0x14c   :  { %1910 = vrot.lane.b32.xlu0 %v1906_v23, %s10679_s30  ;;  %3255 = vmatpush.bf16.msra.mxu2 %v8390_v59  ;;  %v8118_v0 = vor.u32 %v10183_v63, %v8117_v62  ;;  %v10135_v2 = vld [vmem:[%s14573_s5 + $0x4c] sm:$0xf0]  ;;  %v8501_v54 = vld [vmem:[%s14573_s5 + $0x4c0] sm:$0xf] }
 0x14d   :  { %1912 = vrot.lane.b32.xlu1 %v1909_v37, %s10679_s30  ;;  %v1925_v6 = vsel %vm170_vm2, %v1921_v5, %v1924_v18  ;;  %v7926_v16 = vor.u32 %v10135_v2, %v7925_v1  ;;  %v10247_v23 = vld [vmem:[%s14573_s5 + $0x3cc] sm:$0xf0]  ;;  %v8229_v37 = vld [vmem:[%s14573_s5 + $0x2a0] sm:$0xf] }
 0x14e   :  { %3220 = vmatpush.bf16.msra.mxu0 %v8118_v0  ;;  %v8374_v4 = vor.u32 %v10247_v23, %v8373_v32  ;;  %v10211_v24 = vld [vmem:[%s14573_s5 + $0x2ac] sm:$0xf0]  ;;  %v8309_v56 = vld [vmem:[%s14573_s5 + $0x340] sm:$0xf] }
 0x14f   :  { %v8230_v40 = vor.u32 %v10211_v24, %v8229_v37  ;;  %v10235_v35 = vld [vmem:[%s14573_s5 + $0x36c] sm:$0xf0]  ;;  %v8165_v59 = vld [vmem:[%s14573_s5 + $0x220] sm:$0xf] }
 0x150   :  { %3256 = vmatpush.bf16.msra.mxu2 %v8374_v4  ;;  %v10231_v57 = vld [vmem:[%s14573_s5 + $0x34c] sm:$0xf0]  ;;  %v8037_v63 = vld [vmem:[%s14573_s5 + $0x120] sm:$0xf] }
 0x151   :  { %v10163_v0 = vld [vmem:[%s14573_s5 + $0x12c] sm:$0xf0]  ;;  %v8485_v2 = vld [vmem:[%s14573_s5 + $0x4a0] sm:$0xf] }
 0x152   :  { %3221 = vmatpush.bf16.msra.mxu0 %v8102_v19  ;;  %v8038_v1 = vor.u32 %v10163_v0, %v8037_v63  ;;  %v8293_v23 = vld [vmem:[%s14573_s5 + $0x320] sm:$0xf]  ;;  %v10227_v37 = vld [vmem:[%s14573_s5 + $0x32c] sm:$0xf0] }
 0x153   :  { %v8149_v24 = vld [vmem:[%s14573_s5 + $0x200] sm:$0xf]  ;;  %v8294_v42 = vor.u32 %v10227_v37, %v8293_v23  ;;  %v10191_v19 = vld [vmem:[%s14573_s5 + $0x20c] sm:$0xf0]  ;;  %v10173_v37 = vld [vmem:[%s14573_s5 + $0x184] sm:$0xf] }
 0x154   :  { %1926 = vrot.lane.b32.xlu0 %v1925_v6, %s10679_s30  ;;  %v8357_v6 = vld [vmem:[%s14573_s5 + $0x3a0] sm:$0xf]  ;;  %v10263_v50 = vld [vmem:[%s14573_s5 + $0x44c] sm:$0xf0] }
 0x155   :  { %1928 = vrot.lane.b32.xlu1 %v1924_v18, %s10679_s30  ;;  %v7909_v18 = vld [vmem:[%s14573_s5 + $0x20] sm:$0xf]  ;;  %v8358_v20 = vor.u32 %v10243_v33, %v8357_v6  ;;  %v10159_v6 = vld [vmem:[%s14573_s5 + $0x10c] sm:$0xf0] }
 0x156   :  { %v7910_v5 = vor.u32 %v10131_v43, %v7909_v18  ;;  %v8150_v43 = vor.u32 %v10191_v19, %v8149_v24  ;;  %v8421_v63 = vld [vmem:[%s14573_s5 + $0x420] sm:$0xf] }
 0x157   :  { %3257 = vmatpush.bf16.msra.mxu2 %v8358_v20  ;;  %v10271_v20 = vld [vmem:[%s14573_s5 + $0x48c] sm:$0xf0] }
 0x15a   :  { %7890 = vmatmul.msk.bf16.gmra.mxu2 %vm1933_vm6, %v1931_v60  ;;  %v10215_v60 = vld [vmem:[%s14573_s5 + $0x2cc] sm:$0xf0] }
 0x1be   :  { %v1911_v44 = vpop.permute.xlu0 %1910 }
 0x1bf   :  { %v1935_v45 = vsel %vm1933_vm6, %v11420_v39, %v1911_v44  ;;  %v1913_v29 = vpop.permute.xlu1 %1912  ;;  %v10143_v39 = vld [vmem:[%s14573_s5 + $0x8c] sm:$0xf0] }
 0x1c0   :  { %2126 = vmatmul.bf16.vlgmr.msrb.gmra.mxu0 %v1935_v45  ;;  %v1938_v10 = vsel %vm1933_vm6, %v1896_v58, %v1913_v29  ;;  %v7958_v27 = vor.u32 %v10143_v39, %v7957_v36  ;;  %v8245_v58 = vld [vmem:[%s14573_s5 + $0x2c0] sm:$0xf]  ;;  %v10207_v44 = vld [vmem:[%s14573_s5 + $0x28c] sm:$0xf0]  ;;  %v8518_v36 = vor.u32 %v10283_v49, %v8517_v31  ;;  %v10181_v31 = vld [vmem:[%s14573_s5 + $0x1c4] sm:$0xf] }
 0x1c1   :  { %v8246_v61 = vor.u32 %v10215_v60, %v8245_v58  ;;  %v8214_v45 = vor.u32 %v10207_v44, %v8213_v21  ;;  %v8310_v60 = vor.u32 %v10231_v57, %v8309_v56  ;;  %v8469_v21 = vld [vmem:[%s14573_s5 + $0x480] sm:$0xf]  ;;  %v10177_v56 = vld [vmem:[%s14573_s5 + $0x1a4] sm:$0xf]  ;;  %v8103_v57 = vld [vmem:[%s14573_s5 + $0x1b0] sm:$0xf0] }
 0x1c2   :  { %3204 = vmatpush.bf16.msrb.mxu3 %v7958_v27  ;;  %v8326_v27 = vor.u32 %v10235_v35, %v8325_v34 }
 0x1c3   :  { %3238 = vmatpush.bf16.msra.mxu1 %v8246_v61  ;;  %v10195_v61 = vld [vmem:[%s14573_s5 + $0x22c] sm:$0xf0] }
 0x1c4   :  { %v8166_v62 = vor.u32 %v10195_v61, %v8165_v59  ;;  %v10145_v61 = vld [vmem:[%s14573_s5 + $0xa4] sm:$0xf] }
 0x1c6   :  { %v1927_v8 = vpop.permute.xlu0 %1926  ;;  %3205 = vmatpush.bf16.msrb.mxu3 %v7942_v55  ;;  %v10279_v55 = vld [vmem:[%s14573_s5 + $0x4cc] sm:$0xf0] }
 0x1c7   :  { %v1942_v47 = vsel %vm1933_vm6, %v1918_v7, %v1927_v8  ;;  %v1929_v11 = vpop.permute.xlu1 %1928  ;;  %3239 = vmatpush.bf16.msra.mxu1 %v8230_v40  ;;  %v7893_v8 = vld [vmem:[%s14573_s5] sm:$0xf]  ;;  %v8502_v58 = vor.u32 %v10279_v55, %v8501_v54  ;;  %v8247_v55 = vld [vmem:[%s14573_s5 + $0x2d0] sm:$0xf0] }
 0x1c8   :  { %2144 = vmatmul.bf16.vlgmr.msrb.gmra.mxu1 %v1942_v47  ;;  %v1946_v13 = vsel %vm1933_vm6, %v1917_v22, %v1929_v11  ;;  %v8085_v22 = vld [vmem:[%s14573_s5 + $0x180] sm:$0xf]  ;;  %v10127_v47 = vld [vmem:[%s14573_s5 + $0xc] sm:$0xf0]  ;;  %v8250_v59 = vor.u32 %v10213_v51, %v8247_v55  ;;  %v7927_v51 = vld [vmem:[%s14573_s5 + $0x50] sm:$0xf0] }
 0x1c9   :  { %v8086_v7 = vor.u32 %v10175_v25, %v8085_v22  ;;  %v7894_v29 = vor.u32 %v10127_v47, %v7893_v8  ;;  %v10239_v11 = vld [vmem:[%s14573_s5 + $0x38c] sm:$0xf0]  ;;  %v8470_v25 = vor.u32 %v10271_v20, %v8469_v21  ;;  %v10197_v55 = vld [vmem:[%s14573_s5 + $0x244] sm:$0xf] }
 0x1ca   :  { %3206 = vmatpush.bf16.msrb.mxu3 %v7926_v16  ;;  %v10275_v16 = vld [vmem:[%s14573_s5 + $0x4ac] sm:$0xf0] }
 0x1cb   :  { %3240 = vmatpush.bf16.msra.mxu1 %v8214_v45  ;;  %3222 = vmatpush.bf16.msra.mxu0 %v8086_v7  ;;  %v8486_v4 = vor.u32 %v10275_v16, %v8485_v2  ;;  %v8277_v45 = vld [vmem:[%s14573_s5 + $0x300] sm:$0xf]  ;;  %v10223_v22 = vld [vmem:[%s14573_s5 + $0x30c] sm:$0xf0]  ;;  %v10185_v7 = vld [vmem:[%s14573_s5 + $0x1e4] sm:$0xf] }
 0x1cc   :  { %v8278_v8 = vor.u32 %v10223_v22, %v8277_v45  ;;  %v8231_v2 = vld [vmem:[%s14573_s5 + $0x2b0] sm:$0xf0] }
 0x1cd   :  { %v11477_v9 = vpop.f32.mrf.mxu2 }
 0x1ce   :  { %3207 = vmatpush.bf16.msrb.mxu3 %v7910_v5  ;;  %v8021_v5 = vld [vmem:[%s14573_s5 + $0x100] sm:$0xf] }
 0x1cf   :  { %3223 = vmatpush.bf16.msra.mxu0 %v8070_v28  ;;  %v8022_v33 = vor.u32 %v10159_v6, %v8021_v5  ;;  %v8263_v28 = vld [vmem:[%s14573_s5 + $0x2f0] sm:$0xf0] }
 0x1d0   :  { %2131 = vmatmul.bf16.gmra.mxu0 %v1938_v10  ;;  %v8341_v10 = vld [vmem:[%s14573_s5 + $0x380] sm:$0xf]  ;;  %v8266_v35 = vor.u32 %v10217_v38, %v8263_v28  ;;  %v8391_v38 = vld [vmem:[%s14573_s5 + $0x3f0] sm:$0xf0] }
 0x1d2   :  { %3208 = vmatpush.bf16.msrb.mxu3 %v7894_v29  ;;  %v10153_v29 = vld [vmem:[%s14573_s5 + $0xe4] sm:$0xf] }
 0x1d3   :  { %3224 = vmatpush.bf16.msra.mxu0 %v8054_v53 }
 0x1d5   :  { %v11480_v12 = vpop.f32.mrf.mxu2 }
 0x1d6   :  { %3273 = vmatpush.bf16.msra.mxu3 %v8518_v36  ;;  %v8119_v36 = vld [vmem:[%s14573_s5 + $0x1d0] sm:$0xf0] }
 0x1d7   :  { %3225 = vmatpush.bf16.msra.mxu0 %v8038_v1  ;;  %v8122_v46 = vor.u32 %v10181_v31, %v8119_v36  ;;  %v10209_v1 = vld [vmem:[%s14573_s5 + $0x2a4] sm:$0xf] }
 0x1d8   :  { %2149 = vmatmul.bf16.gmra.mxu1 %v1946_v13  ;;  %v8197_v13 = vld [vmem:[%s14573_s5 + $0x260] sm:$0xf]  ;;  %v8234_v24 = vor.u32 %v10209_v1, %v8231_v2 }
 0x1d9   :  { %v8198_v3 = vor.u32 %v10203_v17, %v8197_v13  ;;  %v10267_v17 = vld [vmem:[%s14573_s5 + $0x46c] sm:$0xf0] }
 0x1da   :  { %3274 = vmatpush.bf16.msra.mxu3 %v8502_v58 }
 0x1db   :  { %3241 = vmatpush.bf16.msra.mxu1 %v8198_v3  ;;  %3226 = vmatpush.bf16.msra.mxu0 %v8022_v33 }
 0x1dd   :  { %v11483_v14 = vpop.f32.mrf.mxu2 }
 0x1de   :  { %3275 = vmatpush.bf16.msra.mxu3 %v8486_v4  ;;  %v8087_v4 = vld [vmem:[%s14573_s5 + $0x190] sm:$0xf0] }
 0x1df   :  { %3242 = vmatpush.bf16.msra.mxu1 %v8182_v48  ;;  %v8437_v48 = vld [vmem:[%s14573_s5 + $0x440] sm:$0xf] }
 0x1e0   :  { %v8438_v54 = vor.u32 %v10263_v50, %v8437_v48  ;;  %v8055_v48 = vld [vmem:[%s14573_s5 + $0x150] sm:$0xf0]  ;;  %v10133_v50 = vld [vmem:[%s14573_s5 + $0x44] sm:$0xf] }
 0x1e2   :  { %3276 = vmatpush.bf16.msra.mxu3 %v8470_v25 }
 0x1e3   :  { %3243 = vmatpush.bf16.msra.mxu1 %v8166_v62  ;;  %v7975_v62 = vld [vmem:[%s14573_s5 + $0xb0] sm:$0xf0] }
 0x1e4   :  { %v7978_v0 = vor.u32 %v10145_v61, %v7975_v62 }
 0x1e5   :  { %v2170_v15 = vpop.f32.mrf.mxu2 }
 0x1e6   :  { %v8342_v15 = vor.u32 %v10239_v11, %v8341_v10  ;;  %v8007_v10 = vld [vmem:[%s14573_s5 + $0xf0] sm:$0xf0] }
 0x1e7   :  { %3244 = vmatpush.bf16.msra.mxu1 %v8150_v43  ;;  %v8010_v13 = vor.u32 %v10153_v29, %v8007_v10  ;;  %v8071_v29 = vld [vmem:[%s14573_s5 + $0x170] sm:$0xf0] }
 0x1e8   :  { %3258 = vmatpush.bf16.msra.mxu2 %v8342_v15  ;;  %v8453_v15 = vld [vmem:[%s14573_s5 + $0x460] sm:$0xf] }
 0x1e9   :  { %v8454_v26 = vor.u32 %v10267_v17, %v8453_v15  ;;  %3291 = vmatpush.bf16.msrb.mxu0 %v8010_v13  ;;  %v10137_v15 = vld [vmem:[%s14573_s5 + $0x64] sm:$0xf]  ;;  %v7943_v17 = vld [vmem:[%s14573_s5 + $0x70] sm:$0xf0] }
 0x1eb   :  { %3277 = vmatpush.bf16.msra.mxu3 %v8454_v26  ;;  %v10249_v26 = vld [vmem:[%s14573_s5 + $0x3e4] sm:$0xf] }
 0x1ec   :  { %3259 = vmatpush.bf16.msra.mxu2 %v8326_v27  ;;  %v7991_v27 = vld [vmem:[%s14573_s5 + $0xd0] sm:$0xf0] }
 0x1ef   :  { %3278 = vmatpush.bf16.msra.mxu3 %v8438_v54 }
 0x1f0   :  { %3260 = vmatpush.bf16.msra.mxu2 %v8310_v60  ;;  %v8106_v60 = vor.u32 %v10177_v56, %v8103_v57  ;;  %v7930_v57 = vor.u32 %v10133_v50, %v7927_v51  ;;  %v8327_v50 = vld [vmem:[%s14573_s5 + $0x370] sm:$0xf0] }
 0x1f4   :  { %3261 = vmatpush.bf16.msra.mxu2 %v8294_v42 }
 0x1f8   :  { %3262 = vmatpush.bf16.msra.mxu2 %v8278_v8  ;;  %v8215_v8 = vld [vmem:[%s14573_s5 + $0x290] sm:$0xf0] }
 0x1fc   :  { %3327 = vmatpush.bf16.msrb.mxu2 %v8266_v35  ;;  %v8394_v35 = vor.u32 %v10249_v26, %v8391_v38  ;;  %v8013_v38 = vld [vmem:[%s14573_s5 + $0xe8] sm:$0xf] }
 0x200   :  { %3328 = vmatpush.bf16.msrb.mxu2 %v8250_v59  ;;  %v10245_v59 = vld [vmem:[%s14573_s5 + $0x3c4] sm:$0xf] }
 0x204   :  { %3329 = vmatpush.bf16.msrb.mxu2 %v8234_v24  ;;  %v10241_v24 = vld [vmem:[%s14573_s5 + $0x3a4] sm:$0xf] }
 0x23d   :  { %v2127_v39 = vpop.f32.mrf.mxu0 }
 0x23e   :  { %v2128_v32 = vadd.f32 %v11644_v52, %v2127_v39  ;;  %v10149_v39 = vld [vmem:[%s14573_s5 + $0xc4] sm:$0xf] }
 0x23f   :  { %v7994_v53 = vor.u32 %v10149_v39, %v7991_v27  ;;  %v10165_v27 = vld [vmem:[%s14573_s5 + $0x144] sm:$0xf] }
 0x240   :  { %v8058_v54 = vor.u32 %v10165_v27, %v8055_v48  ;;  %v10233_v48 = vld [vmem:[%s14573_s5 + $0x364] sm:$0xf] }
 0x241   :  { %3292 = vmatpush.bf16.msrb.mxu0 %v7994_v53 }
 0x245   :  { %v2129_v40 = vpop.f32.mrf.mxu0  ;;  %v2145_v30 = vpop.f32.mrf.mxu1  ;;  %3293 = vmatpush.bf16.msrb.mxu0 %v7978_v0  ;;  %v8039_v0 = vld [vmem:[%s14573_s5 + $0x130] sm:$0xf0] }
 0x246   :  { %v2146_v18 = vadd.f32 %v2145_v30, %v2128_v32  ;;  %v2130_v3 = vadd.f32 %v11644_v52, %v2129_v40  ;;  %v10141_v40 = vld [vmem:[%s14573_s5 + $0x84] sm:$0xf]  ;;  %v7959_v30 = vld [vmem:[%s14573_s5 + $0x90] sm:$0xf0] }
 0x247   :  { %v7962_v6 = vor.u32 %v10141_v40, %v7959_v30  ;;  %v8359_v40 = vld [vmem:[%s14573_s5 + $0x3b0] sm:$0xf0] }
 0x248   :  { %v2164_v44 = vadd.f32 %v11477_v9, %v2146_v18  ;;  %v8135_v9 = vld [vmem:[%s14573_s5 + $0x1f0] sm:$0xf0]  ;;  %v8090_v18 = vor.u32 %v10173_v37, %v8087_v4 }
 0x249   :  { %v8138_v47 = vor.u32 %v10185_v7, %v8135_v9  ;;  %v10205_v7 = vld [vmem:[%s14573_s5 + $0x284] sm:$0xf]  ;;  %3294 = vmatpush.bf16.msrb.mxu0 %v7962_v6  ;;  %v8167_v4 = vld [vmem:[%s14573_s5 + $0x230] sm:$0xf0] }
 0x24a   :  { %v2172_v11 = vmax.f32 %v2164_v44, 0.0  ;;  %v8405_v44 = vld [vmem:[%s14573_s5 + $0x400] sm:$0xf]  ;;  %v10169_v9 = vld [vmem:[%s14573_s5 + $0x164] sm:$0xf] }
 0x24b   :  { %3309 = vmatpush.bf16.msrb.mxu1 %v8138_v47  ;;  %v8074_v13 = vor.u32 %v10169_v9, %v8071_v29  ;;  %v10237_v9 = vld [vmem:[%s14573_s5 + $0x384] sm:$0xf] }
 0x24c   :  { %v2175_v16 = vpack.c.bf16 %v2172_v11, %v2172_v11 }
 0x24d   :  { %v2132_v49 = vpop.f32.mrf.mxu0  ;;  %v2147_v34 = vpop.f32.mrf.mxu1 }
 0x24e   :  { %v2148_v41 = vadd.f32 %v2147_v34, %v2130_v3  ;;  %v2133_v42 = vadd.f32 %v11644_v52, %v2132_v49  ;;  %v2181_v33 = vunpack.c.l.b16 %v2175_v16  ;;  %v10255_v52 = vld [vmem:[%s14573_s5 + $0x40c] sm:$0xf0]  ;;  %v7946_v3 = vor.u32 %v10137_v15, %v7943_v17  ;;  %v10201_v49 = vld [vmem:[%s14573_s5 + $0x264] sm:$0xf]  ;;  %v8199_v34 = vld [vmem:[%s14573_s5 + $0x270] sm:$0xf0] }
 0x24f   :  { %3310 = vmatpush.bf16.msrb.mxu1 %v8122_v46  ;;  %v8406_v25 = vor.u32 %v10255_v52, %v8405_v44  ;;  %v8202_v46 = vor.u32 %v10201_v49, %v8199_v34  ;;  %v7895_v44 = vld [vmem:[%s14573_s5 + $0x10] sm:$0xf0]  ;;  %v10189_v17 = vld [vmem:[%s14573_s5 + $0x204] sm:$0xf] }
 0x250   :  { %v2166_v58 = vadd.f32 %v11480_v12, %v2148_v41  ;;  %v10259_v12 = vld [vmem:[%s14573_s5 + $0x42c] sm:$0xf0]  ;;  %3295 = vmatpush.bf16.msrb.mxu0 %v7946_v3  ;;  %v8151_v3 = vld [vmem:[%s14573_s5 + $0x210] sm:$0xf0] }
 0x251   :  { %v8422_v23 = vor.u32 %v10259_v12, %v8421_v63  ;;  %v10161_v63 = vld [vmem:[%s14573_s5 + $0x124] sm:$0xf]  ;;  %v8154_v27 = vor.u32 %v10189_v17, %v8151_v3  ;;  %v10176_v17 = vld [vmem:[%s14573_s5 + $0x194] sm:$0xf0]  ;;  %v7949_v3 = vld [vmem:[%s14573_s5 + $0x68] sm:$0xf] }
 0x252   :  { %v2173_v32 = vmax.f32 %v2166_v58, 0.0  ;;  %v8183_v58 = vld [vmem:[%s14573_s5 + $0x250] sm:$0xf0]  ;;  %v10129_v12 = vld [vmem:[%s14573_s5 + $0x24] sm:$0xf]  ;;  %v8042_v16 = vor.u32 %v10161_v63, %v8039_v0 }
 0x253   :  { %3311 = vmatpush.bf16.msrb.mxu1 %v8106_v60  ;;  %3279 = vmatpush.bf16.msra.mxu3 %v8422_v23  ;;  %v8375_v60 = vld [vmem:[%s14573_s5 + $0x3d0] sm:$0xf0]  ;;  %v8186_v61 = vor.u32 %v10197_v55, %v8183_v58  ;;  %v10193_v23 = vld [vmem:[%s14573_s5 + $0x224] sm:$0xf]  ;;  %v10188_v55 = vld [vmem:[%s14573_s5 + $0x1f4] sm:$0xf0] }
 0x254   :  { %v2176_v19 = vpack.c.bf16 %v2173_v32, %v2173_v32  ;;  %v8378_v62 = vor.u32 %v10245_v59, %v8375_v60  ;;  %3296 = vmatpush.bf16.msrb.mxu0 %v7930_v57  ;;  %v7911_v32 = vld [vmem:[%s14573_s5 + $0x30] sm:$0xf0]  ;;  %v10152_v58 = vld [vmem:[%s14573_s5 + $0xd4] sm:$0xf0]  ;;  %v10277_v59 = vld [vmem:[%s14573_s5 + $0x4c4] sm:$0xf] }
 0x255   :  { %v2134_v43 = vpop.f32.mrf.mxu0  ;;  %v2150_v5 = vpop.f32.mrf.mxu1  ;;  %v7914_v37 = vor.u32 %v10129_v12, %v7911_v32  ;;  %v8503_v60 = vld [vmem:[%s14573_s5 + $0x4d0] sm:$0xf0]  ;;  %v10229_v63 = vld [vmem:[%s14573_s5 + $0x344] sm:$0xf]  ;;  %v8125_v12 = vld [vmem:[%s14573_s5 + $0x1c8] sm:$0xf] }
 0x256   :  { %v2182_v21 = vunpack.c.l.b16 %v2176_v19  ;;  %v2151_v20 = vadd.f32 %v2150_v5, %v2133_v42  ;;  %v8170_v42 = vor.u32 %v10193_v23, %v8167_v4  ;;  %v8362_v19 = vor.u32 %v10241_v24, %v8359_v40  ;;  %v8023_v43 = vld [vmem:[%s14573_s5 + $0x110] sm:$0xf0]  ;;  %v10125_v5 = vld [vmem:[%s14573_s5 + $0x4] sm:$0xf]  ;;  %v10148_v32 = vld [vmem:[%s14573_s5 + $0xb4] sm:$0xf0] }
 0x257   :  { %3312 = vmatpush.bf16.msrb.mxu1 %v8090_v18  ;;  %3280 = vmatpush.bf16.msra.mxu3 %v8406_v25  ;;  %v10157_v18 = vld [vmem:[%s14573_s5 + $0x104] sm:$0xf]  ;;  %v8311_v0 = vld [vmem:[%s14573_s5 + $0x350] sm:$0xf0] }
 0x258   :  { %v2184_v45 = vpack.c.b16 %v2182_v21, %v2181_v33  ;;  %v2169_v22 = vadd.f32 %v11483_v14, %v2151_v20  ;;  %v8218_v14 = vor.u32 %v10205_v7, %v8215_v8  ;;  %3297 = vmatpush.bf16.msrb.mxu0 %v7914_v37  ;;  %v8026_v25 = vor.u32 %v10157_v18, %v8023_v43  ;;  %v10273_v37 = vld [vmem:[%s14573_s5 + $0x4a4] sm:$0xf]  ;;  %v8487_v4 = vld [vmem:[%s14573_s5 + $0x4b0] sm:$0xf0]  ;;  %v10180_v18 = vld [vmem:[%s14573_s5 + $0x1b4] sm:$0xf0] }
 0x259   :  { %v7898_v8 = vor.u32 %v10125_v5, %v7895_v44  ;;  %v10225_v24 = vld [vmem:[%s14573_s5 + $0x324] sm:$0xf]  ;;  %v8490_v43 = vor.u32 %v10273_v37, %v8487_v4  ;;  %v7965_v5 = vld [vmem:[%s14573_s5 + $0x88] sm:$0xf]  ;;  %v10212_v4 = vld [vmem:[%s14573_s5 + $0x2b4] sm:$0xf0] }
 0x25a   :  { %v11819_v10 = vrot.slane %v2184_v45, 7  ;;  %v2174_v11 = vmax.f32 %v2169_v22, 0.0  ;;  %3330 = vmatpush.bf16.msrb.mxu2 %v8218_v14  ;;  %v8343_v14 = vld [vmem:[%s14573_s5 + $0x390] sm:$0xf0]  ;;  %v10269_v44 = vld [vmem:[%s14573_s5 + $0x484] sm:$0xf] }
 0x25b   :  { %3313 = vmatpush.bf16.msrb.mxu1 %v8074_v13  ;;  %v8346_v26 = vor.u32 %v10237_v9, %v8343_v14  ;;  %v10221_v9 = vld [vmem:[%s14573_s5 + $0x304] sm:$0xf]  ;;  %v8279_v14 = vld [vmem:[%s14573_s5 + $0x310] sm:$0xf0]  ;;  %v8237_v37 = vld [vmem:[%s14573_s5 + $0x2a8] sm:$0xf] }
 0x25c   :  { %v2177_v28 = vpack.c.bf16 %v2174_v11, %v2174_v11  ;;  %8532 = vmatmul.msk.bf16.vlgmr.msrb.gmra.mxu3 %vm11812_vm7, %v11819_v10  ;;  %v11838_v31 = vsel %vm1886_vm4, 0, %v11819_v10  ;;  %3298 = vmatpush.bf16.msrb.mxu0 %v7898_v8 }
 0x25d   :  { %v2152_v36 = vpop.f32.mrf.mxu1  ;;  %v2197_v39 = vshll.u32 %v11838_v31, 16  ;;  %3345 = vmatpush.bf16.msrb.mxu3 %v8394_v35  ;;  %v2195_v53 = vshrl.u32 %v11838_v31, 16  ;;  %v2212_v33 = vrot.slane %v11838_v31, 1 }
 0x25e   :  { %v2183_v41 = vunpack.c.l.b16 %v2177_v28  ;;  %3331 = vmatpush.bf16.msrb.mxu2 %v8202_v46  ;;  %v10156_v28 = vld [vmem:[%s14573_s5 + $0xf4] sm:$0xf0]  ;;  %v10281_v36 = vld [vmem:[%s14573_s5 + $0x4e4] sm:$0xf] }
 0x25f   :  { %3314 = vmatpush.bf16.msrb.mxu1 %v8058_v54  ;;  %v2199_v2 = vrot.slane %v2197_v39, 1  ;;  %v2217_v21 = vrot.slane %v2195_v53, 1  ;;  %v2218_v20 = vrot.slane %v2197_v39, 2  ;;  %v8519_v39 = vld [vmem:[%s14573_s5 + $0x4f0] sm:$0xf0] }
 0x260   :  { %v2185_v56 = vpack.c.b16 %v2183_v41, %v2183_v41  ;;  %v8014_v41 = vor.u32 %v10156_v28, %v8013_v38  ;;  %v8522_v46 = vor.u32 %v10281_v36, %v8519_v39  ;;  %v8141_v54 = vld [vmem:[%s14573_s5 + $0x1e8] sm:$0xf]  ;;  %v2226_v38 = vrot.slane %v11838_v31, 2  ;;  %v10265_v39 = vld [vmem:[%s14573_s5 + $0x464] sm:$0xf] }
 0x261   :  { %3346 = vmatpush.bf16.msrb.mxu3 %v8378_v62  ;;  %v2200_v7 = vor.u32 %v2199_v2, %v2195_v53  ;;  %v2219_v35 = vor.u32 %v2218_v20, %v2217_v21  ;;  %v8330_v53 = vor.u32 %v10233_v48, %v8327_v50  ;;  %v8142_v57 = vor.u32 %v10188_v55, %v8141_v54  ;;  %v10184_v2 = vld [vmem:[%s14573_s5 + $0x1d4] sm:$0xf0]  ;;  %v7933_v50 = vld [vmem:[%s14573_s5 + $0x48] sm:$0xf]  ;;  %v10261_v55 = vld [vmem:[%s14573_s5 + $0x444] sm:$0xf] }
 0x262   :  { %v2187_v1 = vrot.slane %v2185_v56, 7  ;;  %3332 = vmatpush.bf16.msrb.mxu2 %v8186_v61  ;;  %v7997_v56 = vld [vmem:[%s14573_s5 + $0xc8] sm:$0xf]  ;;  %v8506_v62 = vor.u32 %v10277_v59, %v8503_v60  ;;  %v8126_v23 = vor.u32 %v10184_v2, %v8125_v12  ;;  %v10144_v20 = vld [vmem:[%s14573_s5 + $0x94] sm:$0xf0] }
 0x263   :  { %3315 = vmatpush.bf16.msrb.mxu1 %v8042_v16  ;;  %v7998_v61 = vor.u32 %v10152_v58, %v7997_v56  ;;  %v7981_v16 = vld [vmem:[%s14573_s5 + $0xa8] sm:$0xf]  ;;  %v10136_v54 = vld [vmem:[%s14573_s5 + $0x54] sm:$0xf0]  ;;  %v8439_v56 = vld [vmem:[%s14573_s5 + $0x450] sm:$0xf0] }
 0x264   :  { %v11898_v30 = vsel %vm1886_vm4, %v11819_v10, %v2187_v1  ;;  %v8314_v1 = vor.u32 %v10229_v63, %v8311_v0  ;;  %v7982_v40 = vor.u32 %v10148_v32, %v7981_v16  ;;  %v8442_v58 = vor.u32 %v10261_v55, %v8439_v56  ;;  %v8061_v59 = vld [vmem:[%s14573_s5 + $0x148] sm:$0xf]  ;;  %v10168_v60 = vld [vmem:[%s14573_s5 + $0x154] sm:$0xf0]  ;;  %v10257_v2 = vld [vmem:[%s14573_s5 + $0x424] sm:$0xf] }
 0x265   :  { %v11911_v6 = vsel %vm1894_vm5, %v11898_v30, 0  ;;  %3347 = vmatpush.bf16.msrb.mxu3 %v8362_v19  ;;  %v8109_v19 = vld [vmem:[%s14573_s5 + $0x1a8] sm:$0xf]  ;;  %v10132_v0 = vld [vmem:[%s14573_s5 + $0x34] sm:$0xf0]  ;;  %v8062_v12 = vor.u32 %v10168_v60, %v8061_v59 }
 0x266   :  { %v2205_v52 = vshrl.u32 %v11911_v6, 16  ;;  %v11919_v45 = vrot.slane %v11911_v6, 1  ;;  %v2201_v22 = vshll.u32 %v11911_v6, 16  ;;  %3333 = vmatpush.bf16.msrb.mxu2 %v8170_v42  ;;  %v8295_v42 = vld [vmem:[%s14573_s5 + $0x330] sm:$0xf0]  ;;  %v8110_v21 = vor.u32 %v10180_v18, %v8109_v19 }
 0x267   :  { %3316 = vmatpush.bf16.msrb.mxu1 %v8026_v25  ;;  %v7966_v25 = vor.u32 %v10144_v20, %v7965_v5  ;;  %v12042_v8 = vrot.slane %v11911_v6, 2  ;;  %v8455_v6 = vld [vmem:[%s14573_s5 + $0x470] sm:$0xf0]  ;;  %v7917_v63 = vld [vmem:[%s14573_s5 + $0x28] sm:$0xf]  ;;  %v8238_v19 = vor.u32 %v10212_v4, %v8237_v37 }
 0x268   :  { %v11930_v29 = vsel %vm149_vm1, %v2212_v33, %v11919_v45  ;;  %v11932_v11 = vrot.slane %v2201_v22, 1  ;;  %v2220_v13 = vrot.slane %v2205_v52, 1  ;;  %v2221_v15 = vrot.slane %v2201_v22, 2  ;;  %v8471_v22 = vld [vmem:[%s14573_s5 + $0x490] sm:$0xf0] }
 0x269   :  { %3245 = vmatmul.bf16.vlgmr.msra.gmra.mxu1 %v11930_v29  ;;  %3348 = vmatpush.bf16.msrb.mxu3 %v8346_v26  ;;  %v8298_v33 = vor.u32 %v10225_v24, %v8295_v42  ;;  %v12078_v31 = vsel %vm207_vm3, %v2226_v38, %v12042_v8  ;;  %v8423_v16 = vld [vmem:[%s14573_s5 + $0x430] sm:$0xf0]  ;;  %v8045_v32 = vld [vmem:[%s14573_s5 + $0x128] sm:$0xf]  ;;  %v7918_v24 = vor.u32 %v10132_v0, %v7917_v63  ;;  %v10128_v18 = vld [vmem:[%s14573_s5 + $0x14] sm:$0xf0] }
 0x26a   :  { %v11951_v49 = vsel %vm80_vm0, %v2200_v7, %v11932_v11  ;;  %v11953_v34 = vor.u32 %v2221_v15, %v2220_v13  ;;  %3334 = vmatpush.bf16.msrb.mxu2 %v8154_v27  ;;  %v8474_v7 = vor.u32 %v10269_v44, %v8471_v22  ;;  %v8282_v13 = vor.u32 %v10221_v9, %v8279_v14  ;;  %v8093_v15 = vld [vmem:[%s14573_s5 + $0x188] sm:$0xf]  ;;  %v10220_v27 = vld [vmem:[%s14573_s5 + $0x2f4] sm:$0xf0]  ;;  %v8407_v5 = vld [vmem:[%s14573_s5 + $0x410] sm:$0xf0] }
 0x26b   :  { %3227 = vmatmul.bf16.vlgmr.msra.gmra.mxu0 %v11951_v49  ;;  %3381 = vmatpush.bf16.msra.mxu1 %v8014_v41  ;;  %v12063_v26 = vor.u32 %v2205_v52, %v11932_v11  ;;  %v8094_v28 = vor.u32 %v10176_v17, %v8093_v15  ;;  %v8458_v52 = vor.u32 %v10265_v39, %v8455_v6  ;;  %v8269_v11 = vld [vmem:[%s14573_s5 + $0x2e8] sm:$0xf]  ;;  %v10208_v22 = vld [vmem:[%s14573_s5 + $0x294] sm:$0xf0]  ;;  %v10154_v6 = vld [vmem:[%s14573_s5 + $0xec] sm:$0xf] }
 0x26c   :  { %8533 = vmatmul.msk.bf16.gmra.mxu3 %vm1894_vm5, %v11898_v30  ;;  %v11972_v51 = vsel %vm170_vm2, %v2219_v35, %v11953_v34  ;;  %3363 = vmatpush.bf16.msra.mxu0 %v8522_v46  ;;  %v10140_v35 = vld [vmem:[%s14573_s5 + $0x74] sm:$0xf0]  ;;  %v8077_v41 = vld [vmem:[%s14573_s5 + $0x168] sm:$0xf]  ;;  %v8270_v48 = vor.u32 %v10220_v27, %v8269_v11  ;;  %v10150_v56 = vld [vmem:[%s14573_s5 + $0xcc] sm:$0xf] }
 0x26d   :  { %3263 = vmatmul.bf16.vlgmr.msra.gmra.mxu2 %v11972_v51  ;;  %3349 = vmatpush.bf16.msrb.mxu3 %v8330_v53  ;;  %v7950_v36 = vor.u32 %v10140_v35, %v7949_v3  ;;  %v10172_v46 = vld [vmem:[%s14573_s5 + $0x174] sm:$0xf0]  ;;  %v7901_v42 = vld [vmem:[%s14573_s5 + $0x8] sm:$0xf] }
 0x26e   :  { %3399 = vmatpush.bf16.msra.mxu2 %v8142_v57  ;;  %v8078_v53 = vor.u32 %v10172_v46, %v8077_v41  ;;  %v7934_v57 = vor.u32 %v10136_v54, %v7933_v50  ;;  %v8221_v44 = vld [vmem:[%s14573_s5 + $0x288] sm:$0xf]  ;;  %v10284_v15 = vld [vmem:[%s14573_s5 + $0x4f4] sm:$0xf0] }
 0x26f   :  { %3382 = vmatpush.bf16.msra.mxu1 %v7998_v61  ;;  %v8253_v61 = vld [vmem:[%s14573_s5 + $0x2c8] sm:$0xf]  ;;  %v8222_v9 = vor.u32 %v10208_v22, %v8221_v44  ;;  %v10252_v38 = vld [vmem:[%s14573_s5 + $0x3f4] sm:$0xf0] }
 0x270   :  { %3364 = vmatpush.bf16.msra.mxu0 %v8506_v62  ;;  %v10216_v62 = vld [vmem:[%s14573_s5 + $0x2d4] sm:$0xf0]  ;;  %v8525_v14 = vld [vmem:[%s14573_s5 + $0x4e8] sm:$0xf] }
 0x271   :  { %3350 = vmatpush.bf16.msrb.mxu3 %v8314_v1  ;;  %v8254_v1 = vor.u32 %v10216_v62, %v8253_v61  ;;  %v8526_v17 = vor.u32 %v10284_v15, %v8525_v14  ;;  %v8397_v3 = vld [vmem:[%s14573_s5 + $0x3e8] sm:$0xf]  ;;  %v10280_v41 = vld [vmem:[%s14573_s5 + $0x4d4] sm:$0xf0]  ;;  %v10186_v15 = vld [vmem:[%s14573_s5 + $0x1ec] sm:$0xf] }
 0x272   :  { %3400 = vmatpush.bf16.msra.mxu2 %v8126_v23  ;;  %v10164_v23 = vld [vmem:[%s14573_s5 + $0x134] sm:$0xf0]  ;;  %v8205_v35 = vld [vmem:[%s14573_s5 + $0x268] sm:$0xf] }
 0x273   :  { %3383 = vmatpush.bf16.msra.mxu1 %v7982_v40  ;;  %v8426_v40 = vor.u32 %v10257_v2, %v8423_v16  ;;  %v8509_v11 = vld [vmem:[%s14573_s5 + $0x4c8] sm:$0xf]  ;;  %v10200_v55 = vld [vmem:[%s14573_s5 + $0x254] sm:$0xf0]  ;;  %v10146_v2 = vld [vmem:[%s14573_s5 + $0xac] sm:$0xf] }
 0x274   :  { %3365 = vmatpush.bf16.msra.mxu0 %v8490_v43  ;;  %v10253_v43 = vld [vmem:[%s14573_s5 + $0x404] sm:$0xf]  ;;  %v8381_v46 = vld [vmem:[%s14573_s5 + $0x3c8] sm:$0xf]  ;;  %v8510_v50 = vor.u32 %v10280_v41, %v8509_v11  ;;  %v10276_v60 = vld [vmem:[%s14573_s5 + $0x4b4] sm:$0xf0] }
 0x275   :  { %3351 = vmatpush.bf16.msrb.mxu3 %v8298_v33  ;;  %v8046_v33 = vor.u32 %v10164_v23, %v8045_v32  ;;  %v8410_v20 = vor.u32 %v10253_v43, %v8407_v5  ;;  %v8189_v54 = vld [vmem:[%s14573_s5 + $0x248] sm:$0xf]  ;;  %v10244_v63 = vld [vmem:[%s14573_s5 + $0x3b4] sm:$0xf0]  ;;  %v7983_v16 = vld [vmem:[%s14573_s5 + $0xb8] sm:$0xf0] }
 0x276   :  { %3401 = vmatpush.bf16.msra.mxu2 %v8110_v21  ;;  %v7902_v21 = vor.u32 %v10128_v18, %v7901_v42  ;;  %v8493_v59 = vld [vmem:[%s14573_s5 + $0x4a8] sm:$0xf]  ;;  %v7986_v4 = vor.u32 %v10146_v2, %v7983_v16  ;;  %v10240_v42 = vld [vmem:[%s14573_s5 + $0x394] sm:$0xf0]  ;;  %v10134_v41 = vld [vmem:[%s14573_s5 + $0x4c] sm:$0xf] }
 0x277   :  { %3384 = vmatpush.bf16.msra.mxu1 %v7966_v25  ;;  %v8029_v25 = vld [vmem:[%s14573_s5 + $0x108] sm:$0xf]  ;;  %v10192_v5 = vld [vmem:[%s14573_s5 + $0x214] sm:$0xf0] }
 0x278   :  { %3366 = vmatpush.bf16.msra.mxu0 %v8474_v7  ;;  %v10160_v7 = vld [vmem:[%s14573_s5 + $0x114] sm:$0xf0]  ;;  %v8365_v62 = vld [vmem:[%s14573_s5 + $0x3a8] sm:$0xf] }
 0x279   :  { %3250 = vmatmul.bf16.gmra.mxu1 %v11919_v45  ;;  %3352 = vmatpush.bf16.msrb.mxu3 %v8282_v13  ;;  %v8030_v13 = vor.u32 %v10160_v7, %v8029_v25  ;;  %v8173_v0 = vld [vmem:[%s14573_s5 + $0x228] sm:$0xf]  ;;  %v8366_v32 = vor.u32 %v10244_v63, %v8365_v62  ;;  %v10268_v25 = vld [vmem:[%s14573_s5 + $0x474] sm:$0xf0]  ;;  %v8111_v62 = vld [vmem:[%s14573_s5 + $0x1b8] sm:$0xf0] }
 0x27a   :  { %3402 = vmatpush.bf16.msra.mxu2 %v8094_v28  ;;  %v8398_v28 = vor.u32 %v10252_v38, %v8397_v3  ;;  %v8477_v23 = vld [vmem:[%s14573_s5 + $0x488] sm:$0xf]  ;;  %v10236_v14 = vld [vmem:[%s14573_s5 + $0x374] sm:$0xf0]  ;;  %v10138_v3 = vld [vmem:[%s14573_s5 + $0x6c] sm:$0xf] }
 0x27b   :  { %3232 = vmatmul.bf16.gmra.mxu0 %v12063_v26  ;;  %3385 = vmatpush.bf16.msra.mxu1 %v7950_v36  ;;  %v10204_v36 = vld [vmem:[%s14573_s5 + $0x274] sm:$0xf0]  ;;  %v8157_v43 = vld [vmem:[%s14573_s5 + $0x208] sm:$0xf]  ;;  %v7951_v38 = vld [vmem:[%s14573_s5 + $0x78] sm:$0xf0] }
 0x27c   :  { %3281 = vmatmul.bf16.vlgmr.msra.gmra.mxu3 %v12078_v31  ;;  %3367 = vmatpush.bf16.msra.mxu0 %v8458_v52  ;;  %v8206_v39 = vor.u32 %v10204_v36, %v8205_v35  ;;  %v8015_v52 = vld [vmem:[%s14573_s5 + $0xf8] sm:$0xf0]  ;;  %v8461_v44 = vld [vmem:[%s14573_s5 + $0x468] sm:$0xf]  ;;  %v7954_v36 = vor.u32 %v10138_v3, %v7951_v38  ;;  %v10256_v2 = vld [vmem:[%s14573_s5 + $0x414] sm:$0xf0] }
 0x27d   :  { %3268 = vmatmul.bf16.gmra.mxu2 %v11953_v34  ;;  %3417 = vmatpush.bf16.msra.mxu3 %v8270_v48  ;;  %v8018_v27 = vor.u32 %v10154_v6, %v8015_v52  ;;  %v10248_v48 = vld [vmem:[%s14573_s5 + $0x3d4] sm:$0xf0]  ;;  %v8462_v7 = vor.u32 %v10268_v25, %v8461_v44  ;;  %v8445_v35 = vld [vmem:[%s14573_s5 + $0x448] sm:$0xf]  ;;  %v8271_v44 = vld [vmem:[%s14573_s5 + $0x2f8] sm:$0xf0] }
 0x27e   :  { %3403 = vmatpush.bf16.msra.mxu2 %v8078_v53  ;;  %v8382_v53 = vor.u32 %v10248_v48, %v8381_v46  ;;  %v8317_v6 = vld [vmem:[%s14573_s5 + $0x348] sm:$0xf]  ;;  %v10232_v52 = vld [vmem:[%s14573_s5 + $0x354] sm:$0xf0]  ;;  %v7935_v46 = vld [vmem:[%s14573_s5 + $0x58] sm:$0xf0] }
 0x27f   :  { %3386 = vmatpush.bf16.msra.mxu1 %v7934_v57  ;;  %v8190_v57 = vor.u32 %v10200_v55, %v8189_v54  ;;  %v10182_v48 = vld [vmem:[%s14573_s5 + $0x1cc] sm:$0xf]  ;;  %v10260_v54 = vld [vmem:[%s14573_s5 + $0x434] sm:$0xf0]  ;;  %v7938_v55 = vor.u32 %v10134_v41, %v7935_v46  ;;  %v8285_v16 = vld [vmem:[%s14573_s5 + $0x308] sm:$0xf] }
 0x280   :  { %3368 = vmatpush.bf16.msra.mxu0 %v8442_v58  ;;  %v7999_v58 = vld [vmem:[%s14573_s5 + $0xd8] sm:$0xf0]  ;;  %v10170_v25 = vld [vmem:[%s14573_s5 + $0x16c] sm:$0xf] }
 0x281   :  { %3418 = vmatpush.bf16.msra.mxu3 %v8254_v1  ;;  %v8002_v61 = vor.u32 %v10150_v56, %v7999_v58  ;;  %v10196_v1 = vld [vmem:[%s14573_s5 + $0x234] sm:$0xf0]  ;;  %v8383_v3 = vld [vmem:[%s14573_s5 + $0x3d8] sm:$0xf0]  ;;  %v10214_v38 = vld [vmem:[%s14573_s5 + $0x2cc] sm:$0xf] }
 0x282   :  { %3404 = vmatpush.bf16.msra.mxu2 %v8062_v12  ;;  %v8494_v12 = vor.u32 %v10276_v60, %v8493_v59  ;;  %v8174_v37 = vor.u32 %v10196_v1, %v8173_v0  ;;  %v10228_v58 = vld [vmem:[%s14573_s5 + $0x334] sm:$0xf0]  ;;  %v10130_v59 = vld [vmem:[%s14573_s5 + $0x2c] sm:$0xf]  ;;  %v7919_v60 = vld [vmem:[%s14573_s5 + $0x38] sm:$0xf0] }
 0x283   :  { %3387 = vmatpush.bf16.msra.mxu1 %v7918_v24  ;;  %v10272_v24 = vld [vmem:[%s14573_s5 + $0x494] sm:$0xf0]  ;;  %v10242_v41 = vld [vmem:[%s14573_s5 + $0x3ac] sm:$0xf]  ;;  %v8367_v46 = vld [vmem:[%s14573_s5 + $0x3b8] sm:$0xf0] }
 0x284   :  { %3369 = vmatpush.bf16.msra.mxu0 %v8426_v40  ;;  %v8349_v40 = vld [vmem:[%s14573_s5 + $0x388] sm:$0xf] }
 0x285   :  { %3419 = vmatpush.bf16.msra.mxu3 %v8238_v19  ;;  %v8478_v19 = vor.u32 %v10272_v24, %v8477_v23  ;;  %v8350_v18 = vor.u32 %v10240_v42, %v8349_v40  ;;  %v7922_v23 = vor.u32 %v10130_v59, %v7919_v60  ;;  %v10174_v24 = vld [vmem:[%s14573_s5 + $0x18c] sm:$0xf]  ;;  %v8095_v40 = vld [vmem:[%s14573_s5 + $0x198] sm:$0xf0] }
 0x286   :  { %3405 = vmatpush.bf16.msra.mxu2 %v8046_v33  ;;  %v8158_v33 = vor.u32 %v10192_v5, %v8157_v43  ;;  %v10126_v42 = vld [vmem:[%s14573_s5 + $0xc] sm:$0xf] }
 0x287   :  { %3388 = vmatpush.bf16.msra.mxu1 %v7902_v21  ;;  %v10142_v21 = vld [vmem:[%s14573_s5 + $0x8c] sm:$0xf] }
 0x288   :  { %3370 = vmatpush.bf16.msra.mxu0 %v8410_v20  ;;  %v7967_v20 = vld [vmem:[%s14573_s5 + $0x98] sm:$0xf0]  ;;  %v10250_v43 = vld [vmem:[%s14573_s5 + $0x3ec] sm:$0xf] }
 0x289   :  { %3317 = vmatmul.bf16.vlgmr.msrb.gmra.mxu1 %v11951_v49  ;;  %3420 = vmatpush.bf16.msra.mxu3 %v8222_v9  ;;  %v7970_v22 = vor.u32 %v10142_v21, %v7967_v20  ;;  %v8333_v9 = vld [vmem:[%s14573_s5 + $0x368] sm:$0xf]  ;;  %v10218_v20 = vld [vmem:[%s14573_s5 + $0x2ec] sm:$0xf] }
 0x28a   :  { %3406 = vmatpush.bf16.msra.mxu2 %v8030_v13  ;;  %v8334_v13 = vor.u32 %v10236_v14, %v8333_v9  ;;  %v10282_v14 = vld [vmem:[%s14573_s5 + $0x4ec] sm:$0xf] }
 0x28b   :  { %8535 = vmatmul.msk.bf16.vlgmr.msrb.gmra.mxu0 %vm11812_vm7, %v11819_v10  ;;  %3453 = vmatpush.bf16.msrb.mxu1 %v8526_v17  ;;  %v8143_v17 = vld [vmem:[%s14573_s5 + $0x1f8] sm:$0xf0]  ;;  %v10238_v60 = vld [vmem:[%s14573_s5 + $0x38c] sm:$0xf] }
 0x28c   :  { %3286 = vmatmul.bf16.gmra.mxu3 %v12042_v8  ;;  %3435 = vmatpush.bf16.msrb.mxu0 %v8398_v28  ;;  %v8146_v28 = vor.u32 %v10186_v15, %v8143_v17  ;;  %v10246_v15 = vld [vmem:[%s14573_s5 + $0x3cc] sm:$0xf] }
 0x28d   :  { %3335 = vmatmul.bf16.vlgmr.msrb.gmra.mxu2 %v11930_v29  ;;  %3421 = vmatpush.bf16.msra.mxu3 %v8206_v39  ;;  %v10264_v39 = vld [vmem:[%s14573_s5 + $0x454] sm:$0xf0] }
 0x28e   :  { %3471 = vmatpush.bf16.msrb.mxu2 %v8018_v27  ;;  %v8446_v11 = vor.u32 %v10264_v39, %v8445_v35  ;;  %v8318_v27 = vor.u32 %v10232_v52, %v8317_v6  ;;  %v8386_v35 = vor.u32 %v10246_v15, %v8383_v3  ;;  %v10166_v39 = vld [vmem:[%s14573_s5 + $0x14c] sm:$0xf]  ;;  %v8063_v6 = vld [vmem:[%s14573_s5 + $0x158] sm:$0xf0]  ;;  %v10295_v3 = vld [vmem:[%s14569_s1 + $0x30] sm:$0xff] }
 0x28f   :  { %3454 = vmatpush.bf16.msrb.mxu1 %v8510_v50  ;;  %v8127_v50 = vld [vmem:[%s14573_s5 + $0x1d8] sm:$0xf0]  ;;  %v10278_v52 = vld [vmem:[%s14573_s5 + $0x4cc] sm:$0xf] }
 0x290   :  { %3436 = vmatpush.bf16.msrb.mxu0 %v8382_v53  ;;  %v8429_v53 = vld [vmem:[%s14573_s5 + $0x428] sm:$0xf]  ;;  %v8130_v56 = vor.u32 %v10182_v48, %v8127_v50  ;;  %v10210_v50 = vld [vmem:[%s14573_s5 + $0x2ac] sm:$0xf] }
 0x291   :  { %3422 = vmatpush.bf16.msra.mxu3 %v8190_v57  ;;  %v8301_v57 = vld [vmem:[%s14573_s5 + $0x328] sm:$0xf]  ;;  %v8430_v63 = vor.u32 %v10260_v54, %v8429_v53  ;;  %v8239_v53 = vld [vmem:[%s14573_s5 + $0x2b8] sm:$0xf0]  ;;  %v10162_v54 = vld [vmem:[%s14573_s5 + $0x12c] sm:$0xf] }
 0x292   :  { %3472 = vmatpush.bf16.msrb.mxu2 %v8002_v61  ;;  %v10178_v61 = vld [vmem:[%s14573_s5 + $0x1ac] sm:$0xf]  ;;  %v8302_v0 = vor.u32 %v10228_v58, %v8301_v57  ;;  %v8495_v58 = vld [vmem:[%s14573_s5 + $0x4b8] sm:$0xf0]  ;;  %v8242_v59 = vor.u32 %v10210_v50, %v8239_v53 }
 0x293   :  { %3455 = vmatpush.bf16.msrb.mxu1 %v8494_v12  ;;  %v8413_v12 = vld [vmem:[%s14573_s5 + $0x408] sm:$0xf]  ;;  %v8114_v1 = vor.u32 %v10178_v61, %v8111_v62  ;;  %v10274_v57 = vld [vmem:[%s14573_s5 + $0x4ac] sm:$0xf]  ;;  %v8287_v50 = vld [vmem:[%s14573_s5 + $0x318] sm:$0xf0] }
 0x294   :  { %3437 = vmatpush.bf16.msrb.mxu0 %v8366_v32  ;;  %v10224_v32 = vld [vmem:[%s14573_s5 + $0x314] sm:$0xf0]  ;;  %v8498_v62 = vor.u32 %v10274_v57, %v8495_v58  ;;  %v10262_v15 = vld [vmem:[%s14573_s5 + $0x44c] sm:$0xf]  ;;  %v8415_v58 = vld [vmem:[%s14573_s5 + $0x418] sm:$0xf0] }
 0x295   :  { %3423 = vmatpush.bf16.msra.mxu3 %v8174_v37  ;;  %v8414_v37 = vor.u32 %v10256_v2, %v8413_v12  ;;  %v8223_v12 = vld [vmem:[%s14573_s5 + $0x298] sm:$0xf0]  ;;  %v10254_v57 = vld [vmem:[%s14573_s5 + $0x40c] sm:$0xf] }
 0x296   :  { %3473 = vmatpush.bf16.msrb.mxu2 %v7986_v4  ;;  %v8286_v4 = vor.u32 %v10224_v32, %v8285_v16  ;;  %v10158_v16 = vld [vmem:[%s14573_s5 + $0x10c] sm:$0xf]  ;;  %v8031_v32 = vld [vmem:[%s14573_s5 + $0x118] sm:$0xf0] }
 0x297   :  { %3456 = vmatpush.bf16.msrb.mxu1 %v8478_v19  ;;  %v7903_v19 = vld [vmem:[%s14573_s5 + $0x18] sm:$0xf0] }
 0x298   :  { %3438 = vmatpush.bf16.msrb.mxu0 %v8350_v18  ;;  %v8098_v18 = vor.u32 %v10174_v24, %v8095_v40  ;;  %v7906_v5 = vor.u32 %v10126_v42, %v7903_v19  ;;  %v10234_v24 = vld [vmem:[%s14573_s5 + $0x36c] sm:$0xf]  ;;  %v8335_v42 = vld [vmem:[%s14573_s5 + $0x378] sm:$0xf0] }
 0x299   :  { %3322 = vmatmul.bf16.gmra.mxu1 %v12063_v26  ;;  %3424 = vmatpush.bf16.msra.mxu3 %v8158_v33  ;;  %v8399_v33 = vld [vmem:[%s14573_s5 + $0x3f8] sm:$0xf0]  ;;  %v8338_v19 = vor.u32 %v10234_v24, %v8335_v42  ;;  %v10301_v24 = vld [vmem:[%s14569_s1 + $0x60] sm:$0xff] }
 0x29a   :  { %3474 = vmatpush.bf16.msrb.mxu2 %v7970_v22  ;;  %v8402_v21 = vor.u32 %v10250_v43, %v8399_v33  ;;  %v8274_v22 = vor.u32 %v10218_v20, %v8271_v44  ;;  %v8207_v43 = vld [vmem:[%s14573_s5 + $0x278] sm:$0xf0]  ;;  %v10266_v33 = vld [vmem:[%s14573_s5 + $0x46c] sm:$0xf]  ;;  %v10317_v42 = vld [vmem:[%s14569_s1 + $0xe0] sm:$0xff] }
 0x29b   :  { %8536 = vmatmul.msk.bf16.gmra.mxu0 %vm1894_vm5, %v11898_v30  ;;  %3457 = vmatpush.bf16.msrb.mxu1 %v8462_v7  ;;  %v8079_v7 = vld [vmem:[%s14573_s5 + $0x178] sm:$0xf0] }
 0x29c   :  { %3353 = vmatmul.bf16.vlgmr.msrb.gmra.mxu3 %v11972_v51  ;;  %3439 = vmatpush.bf16.msrb.mxu0 %v8334_v13  ;;  %v8082_v9 = vor.u32 %v10170_v25, %v8079_v7  ;;  %v8527_v13 = vld [vmem:[%s14573_s5 + $0x4f8] sm:$0xf0] }
 0x29d   :  { %3340 = vmatmul.bf16.gmra.mxu2 %v11919_v45  ;;  %3489 = vmatpush.bf16.msrb.mxu3 %v8146_v28  ;;  %v8530_v17 = vor.u32 %v10282_v14, %v8527_v13  ;;  %v8255_v28 = vld [vmem:[%s14573_s5 + $0x2d8] sm:$0xf0] }
 0x29e   :  { %3475 = vmatpush.bf16.msrb.mxu2 %v7954_v36  ;;  %v8258_v36 = vor.u32 %v10214_v38, %v8255_v28  ;;  %v10296_v20 = vld [vmem:[%s14569_s1 + $0x38] sm:$0xff]  ;;  %v10226_v28 = vld [vmem:[%s14573_s5 + $0x32c] sm:$0xf] }
 0x29f   :  { %3458 = vmatpush.bf16.msrb.mxu1 %v8446_v11  ;;  %v8066_v11 = vor.u32 %v10166_v39, %v8063_v6  ;;  %v8319_v25 = vld [vmem:[%s14573_s5 + $0x358] sm:$0xf0] }
 0x2a0   :  { %3440 = vmatpush.bf16.msrb.mxu0 %v8318_v27  ;;  %v8511_v27 = vld [vmem:[%s14573_s5 + $0x4d8] sm:$0xf0] }
 0x2a1   :  { %3490 = vmatpush.bf16.msrb.mxu3 %v8130_v56  ;;  %v8514_v48 = vor.u32 %v10278_v52, %v8511_v27  ;;  %v8047_v56 = vld [vmem:[%s14573_s5 + $0x138] sm:$0xf0]  ;;  %v10258_v52 = vld [vmem:[%s14573_s5 + $0x42c] sm:$0xf] }
 0x2a2   :  { %3476 = vmatpush.bf16.msrb.mxu2 %v7938_v55  ;;  %v8370_v55 = vor.u32 %v10242_v41, %v8367_v46  ;;  %v8050_v61 = vor.u32 %v10162_v54, %v8047_v56  ;;  %v8191_v14 = vld [vmem:[%s14573_s5 + $0x258] sm:$0xf0]  ;;  %v10294_v41 = vld [vmem:[%s14569_s1 + $0x28] sm:$0xff] }
 0x2a3   :  { %3459 = vmatpush.bf16.msrb.mxu1 %v8430_v63  ;;  %v8351_v63 = vld [vmem:[%s14573_s5 + $0x398] sm:$0xf0]  ;;  %v10190_v54 = vld [vmem:[%s14573_s5 + $0x20c] sm:$0xf] }
 0x2a4   :  { %3441 = vmatpush.bf16.msrb.mxu0 %v8302_v0  ;;  %v10206_v0 = vld [vmem:[%s14573_s5 + $0x28c] sm:$0xf]  ;;  %v8175_v6 = vld [vmem:[%s14573_s5 + $0x238] sm:$0xf0] }
 0x2a5   :  { %3491 = vmatpush.bf16.msrb.mxu3 %v8114_v1  ;;  %v8354_v1 = vor.u32 %v10238_v60, %v8351_v63  ;;  %v8226_v2 = vor.u32 %v10206_v0, %v8223_v12  ;;  %v8418_v60 = vor.u32 %v10254_v57, %v8415_v58  ;;  %v10292_v63 = vld [vmem:[%s14569_s1 + $0x18] sm:$0xff]  ;;  %v10311_v12 = vld [vmem:[%s14569_s1 + $0xb0] sm:$0xff] }
 0x2a6   :  { %3477 = vmatpush.bf16.msrb.mxu2 %v7922_v23  ;;  %v8034_v23 = vor.u32 %v10158_v16, %v8031_v32  ;;  %v10320_v0 = vld [vmem:[%s14569_s1 + $0xf8] sm:$0xff]  ;;  %v10310_v16 = vld [vmem:[%s14569_s1 + $0xa8] sm:$0xff] }
 0x2a7   :  { %3460 = vmatpush.bf16.msrb.mxu1 %v8414_v37  ;;  %v10270_v37 = vld [vmem:[%s14573_s5 + $0x48c] sm:$0xf] }
 0x2a8   :  { %3442 = vmatpush.bf16.msrb.mxu0 %v8286_v4  ;;  %v8479_v4 = vld [vmem:[%s14573_s5 + $0x498] sm:$0xf0]  ;;  %v10302_v32 = vld [vmem:[%s14569_s1 + $0x68] sm:$0xff] }
 0x2a9   :  { %8538 = vmatmul.msk.bf16.vlgmr.msra.gmra.mxu1 %vm11812_vm7, %v11819_v10  ;;  %3492 = vmatpush.bf16.msrb.mxu3 %v8098_v18  ;;  %v8482_v40 = vor.u32 %v10270_v37, %v8479_v4  ;;  %v10202_v18 = vld [vmem:[%s14573_s5 + $0x26c] sm:$0xf]  ;;  %v10309_v4 = vld [vmem:[%s14569_s1 + $0xa0] sm:$0xff] }
 0x2aa   :  { %3478 = vmatpush.bf16.msrb.mxu2 %v7906_v5  ;;  %v8210_v5 = vor.u32 %v10202_v18, %v8207_v43  ;;  %v10318_v37 = vld [vmem:[%s14569_s1 + $0xe8] sm:$0xff]  ;;  %v10300_v18 = vld [vmem:[%s14569_s1 + $0x58] sm:$0xff] }
 0x2ab   :  { %3371 = vmatmul.bf16.vlgmr.msra.gmra.mxu0 %v12078_v31  ;;  %3525 = vmatpush.bf16.msra.mxu1 %v8402_v21  ;;  %v8463_v21 = vld [vmem:[%s14573_s5 + $0x478] sm:$0xf0] }
 0x2ac   :  { %3358 = vmatmul.bf16.gmra.mxu3 %v11953_v34  ;;  %3507 = vmatpush.bf16.msra.mxu0 %v8274_v22  ;;  %v8466_v44 = vor.u32 %v10266_v33, %v8463_v21  ;;  %v10230_v22 = vld [vmem:[%s14573_s5 + $0x34c] sm:$0xf]  ;;  %v10328_v43 = vld [vmem:[%s14569_s1 + $0x138] sm:$0xff]  ;;  %v10307_v33 = vld [vmem:[%s14569_s1 + $0x90] sm:$0xff] }
 0x2ad   :  { %3407 = vmatmul.bf16.vlgmr.msra.gmra.mxu2 %v11951_v49  ;;  %3493 = vmatpush.bf16.msrb.mxu3 %v8082_v9  ;;  %v8322_v7 = vor.u32 %v10230_v22, %v8319_v25  ;;  %v10198_v9 = vld [vmem:[%s14573_s5 + $0x24c] sm:$0xf] }
 0x2ae   :  { %3543 = vmatpush.bf16.msra.mxu2 %v8530_v17  ;;  %v8194_v13 = vor.u32 %v10198_v9, %v8191_v14  ;;  %v8447_v17 = vld [vmem:[%s14573_s5 + $0x458] sm:$0xf0]  ;;  %v10298_v22 = vld [vmem:[%s14569_s1 + $0x48] sm:$0xff]  ;;  %v10305_v14 = vld [vmem:[%s14569_s1 + $0x80] sm:$0xff] }
 0x2af   :  { %3526 = vmatpush.bf16.msra.mxu1 %v8386_v35  ;;  %v8450_v38 = vor.u32 %v10262_v15, %v8447_v17  ;;  %v8303_v35 = vld [vmem:[%s14573_s5 + $0x338] sm:$0xf0]  ;;  %v10314_v25 = vld [vmem:[%s14569_s1 + $0xc8] sm:$0xff]  ;;  %v10297_v15 = vld [vmem:[%s14569_s1 + $0x40] sm:$0xff] }
 0x2b0   :  { %3508 = vmatpush.bf16.msra.mxu0 %v8258_v36  ;;  %v10194_v36 = vld [vmem:[%s14573_s5 + $0x22c] sm:$0xf]  ;;  %v8306_v39 = vor.u32 %v10226_v28, %v8303_v35  ;;  %v10344_v28 = vld [vmem:[%s14569_s1 + $0x1b8] sm:$0xff] }
 0x2b1   :  { %3494 = vmatpush.bf16.msrb.mxu3 %v8066_v11  ;;  %v8431_v11 = vld [vmem:[%s14573_s5 + $0x438] sm:$0xf0]  ;;  %v8178_v27 = vor.u32 %v10194_v36, %v8175_v6 }
 0x2b2   :  { %3544 = vmatpush.bf16.msra.mxu2 %v8514_v48  ;;  %v8434_v46 = vor.u32 %v10258_v52, %v8431_v11  ;;  %v10222_v48 = vld [vmem:[%s14573_s5 + $0x30c] sm:$0xf]  ;;  %v10336_v35 = vld [vmem:[%s14569_s1 + $0x178] sm:$0xff] }
 0x2b3   :  { %3527 = vmatpush.bf16.msra.mxu1 %v8370_v55  ;;  %v8290_v53 = vor.u32 %v10222_v48, %v8287_v50  ;;  %v8159_v55 = vld [vmem:[%s14573_s5 + $0x218] sm:$0xf0]  ;;  %v10334_v50 = vld [vmem:[%s14569_s1 + $0x168] sm:$0xff] }
 0x2b4   :  { %3509 = vmatpush.bf16.msra.mxu0 %v8242_v59  ;;  %v8162_v56 = vor.u32 %v10190_v54, %v8159_v55  ;;  %v10293_v59 = vld [vmem:[%s14569_s1 + $0x20] sm:$0xff]  ;;  %v10352_v36 = vld [vmem:[%s14569_s1 + $0x1f8] sm:$0xff]  ;;  %v10350_v54 = vld [vmem:[%s14569_s1 + $0x1e8] sm:$0xff] }
 0x2b5   :  { %3495 = vmatpush.bf16.msrb.mxu3 %v8050_v61  ;;  %v10312_v61 = vld [vmem:[%s14569_s1 + $0xb8] sm:$0xff]  ;;  %v8553_v55 = vld [vmem:[%s14568_s0 + $0x40] sm:$0xf] }
 0x2b6   :  { %3545 = vmatpush.bf16.msra.mxu2 %v8498_v62  ;;  %v10304_v62 = vld [vmem:[%s14569_s1 + $0x78] sm:$0xff] }
 0x2b7   :  { %3528 = vmatpush.bf16.msra.mxu1 %v8354_v1  ;;  %v10303_v1 = vld [vmem:[%s14569_s1 + $0x70] sm:$0xff] }
 0x2b8   :  { %3510 = vmatpush.bf16.msra.mxu0 %v8226_v2  ;;  %v10319_v2 = vld [vmem:[%s14569_s1 + $0xf0] sm:$0xff] }
 0x2b9   :  { %8539 = vmatmul.msk.bf16.gmra.mxu1 %vm1894_vm5, %v11898_v30  ;;  %3496 = vmatpush.bf16.msrb.mxu3 %v8034_v23  ;;  %v10290_v23 = vld [vmem:[%s14569_s1 + $0x8] sm:$0xff] }
 0x2ba   :  { %3546 = vmatpush.bf16.msra.mxu2 %v8482_v40  ;;  %v10289_v40 = vld [vmem:[%s14569_s1] sm:$0xff] }
 0x2bb   :  { %3376 = vmatmul.bf16.gmra.mxu0 %v12042_v8  ;;  %3529 = vmatpush.bf16.msra.mxu1 %v8338_v19  ;;  %v10308_v19 = vld [vmem:[%s14569_s1 + $0x98] sm:$0xff] }
 0x2bc   :  { %3425 = vmatmul.bf16.vlgmr.msra.gmra.mxu3 %v11930_v29  ;;  %3511 = vmatpush.bf16.msra.mxu0 %v8210_v5  ;;  %v10316_v5 = vld [vmem:[%s14569_s1 + $0xd8] sm:$0xff] }
 0x2bd   :  { %3412 = vmatmul.bf16.gmra.mxu2 %v12063_v26  ;;  %5066 = vmatpush.bf16.msra.mxu3 %v10296_v20  ;;  %v10315_v20 = vld [vmem:[%s14569_s1 + $0xd0] sm:$0xff] }
 0x2be   :  { %3547 = vmatpush.bf16.msra.mxu2 %v8466_v44  ;;  %v10306_v44 = vld [vmem:[%s14569_s1 + $0x88] sm:$0xff] }
 0x2bf   :  { %3530 = vmatpush.bf16.msra.mxu1 %v8322_v7  ;;  %v10326_v7 = vld [vmem:[%s14569_s1 + $0x128] sm:$0xff] }
 0x2c0   :  { %3512 = vmatpush.bf16.msra.mxu0 %v8194_v13 }
 0x2c1   :  { %5067 = vmatpush.bf16.msra.mxu3 %v10295_v3  ;;  %v10325_v3 = vld [vmem:[%s14569_s1 + $0x120] sm:$0xff] }
 0x2c2   :  { %3548 = vmatpush.bf16.msra.mxu2 %v8450_v38  ;;  %v10313_v38 = vld [vmem:[%s14569_s1 + $0xc0] sm:$0xff] }
 0x2c3   :  { %3531 = vmatpush.bf16.msra.mxu1 %v8306_v39 }
 0x2c4   :  { %3513 = vmatpush.bf16.msra.mxu0 %v8178_v27  ;;  %v10323_v27 = vld [vmem:[%s14569_s1 + $0x110] sm:$0xff] }
 0x2c5   :  { %5068 = vmatpush.bf16.msra.mxu3 %v10294_v41  ;;  %v10351_v41 = vld [vmem:[%s14569_s1 + $0x1f0] sm:$0xff] }
 0x2c6   :  { %3549 = vmatpush.bf16.msra.mxu2 %v8434_v46  ;;  %v10342_v46 = vld [vmem:[%s14569_s1 + $0x1a8] sm:$0xff] }
 0x2c7   :  { %3532 = vmatpush.bf16.msra.mxu1 %v8290_v53  ;;  %v10322_v53 = vld [vmem:[%s14569_s1 + $0x108] sm:$0xff] }
 0x2c8   :  { %3514 = vmatpush.bf16.msra.mxu0 %v8162_v56  ;;  %v10287_v56 = vld [vmem:[%s14568_s0 + $0x4c] sm:$0xf0] }
 0x2c9   :  { %3461 = vmatmul.bf16.vlgmr.msrb.gmra.mxu1 %v12078_v31  ;;  %5069 = vmatpush.bf16.msra.mxu3 %v10293_v59  ;;  %v10341_v59 = vld [vmem:[%s14569_s1 + $0x1a0] sm:$0xff] }
 0x2ca   :  { %3550 = vmatpush.bf16.msra.mxu2 %v8418_v60 }
 0x2cb   :  { %3443 = vmatmul.bf16.vlgmr.msrb.gmra.mxu0 %v11972_v51  ;;  %5102 = vmatpush.bf16.msrb.mxu1 %v10312_v61  ;;  %v10333_v61 = vld [vmem:[%s14569_s1 + $0x160] sm:$0xff] }
 0x2cc   :  { %3430 = vmatmul.bf16.gmra.mxu3 %v11919_v45  ;;  %5084 = vmatpush.bf16.msrb.mxu0 %v10304_v62 }
 0x2cd   :  { %8541 = vmatmul.msk.bf16.vlgmr.msrb.gmra.mxu2 %vm11812_vm7, %v11819_v10  ;;  %5070 = vmatpush.bf16.msra.mxu3 %v10292_v63  ;;  %v10291_v10 = vld [vmem:[%s14569_s1 + $0x10] sm:$0xff] }
 0x2ce   :  { %5120 = vmatpush.bf16.msrb.mxu2 %v10320_v0 }
 0x2cf   :  { %5103 = vmatpush.bf16.msrb.mxu1 %v10311_v12  ;;  %v12740_v12 = vor.u32 %v10287_v56, %v8553_v55  ;;  %v10376_v55 = vld [vmem:[%s14569_s1 + $0x2b8] sm:$0xff] }
 0x2d0   :  { %5085 = vmatpush.bf16.msrb.mxu0 %v10303_v1  ;;  %v10321_v1 = vld [vmem:[%s14569_s1 + $0x100] sm:$0xff] }
 0x2d1   :  { %5071 = vmatpush.bf16.msra.mxu3 %v10291_v10  ;;  %v10349_v10 = vld [vmem:[%s14569_s1 + $0x1e0] sm:$0xff] }
 0x2d2   :  { %5121 = vmatpush.bf16.msrb.mxu2 %v10319_v2  ;;  %v10340_v2 = vld [vmem:[%s14569_s1 + $0x198] sm:$0xff] }
 0x2d3   :  { %5104 = vmatpush.bf16.msrb.mxu1 %v10310_v16  ;;  %v10332_v16 = vld [vmem:[%s14569_s1 + $0x158] sm:$0xff] }
 0x2d4   :  { %5086 = vmatpush.bf16.msrb.mxu0 %v10302_v32 }
 0x2d5   :  { %5072 = vmatpush.bf16.msra.mxu3 %v10290_v23 }
 0x2d6   :  { %5122 = vmatpush.bf16.msrb.mxu2 %v10318_v37 }
 0x2d7   :  { %5105 = vmatpush.bf16.msrb.mxu1 %v10309_v4 }
 0x2d8   :  { %5087 = vmatpush.bf16.msrb.mxu0 %v10301_v24  ;;  %v10339_v24 = vld [vmem:[%s14569_s1 + $0x190] sm:$0xff] }
 0x2d9   :  { %3466 = vmatmul.bf16.gmra.mxu1 %v12042_v8  ;;  %5073 = vmatpush.bf16.msra.mxu3 %v10289_v40 }
 0x2da   :  { %5123 = vmatpush.bf16.msrb.mxu2 %v10317_v42 }
 0x2db   :  { %3448 = vmatmul.bf16.gmra.mxu0 %v11953_v34  ;;  %5106 = vmatpush.bf16.msrb.mxu1 %v10308_v19 }
 0x2dc   :  { %3497 = vmatmul.bf16.vlgmr.msrb.gmra.mxu3 %v11951_v49  ;;  %5088 = vmatpush.bf16.msrb.mxu0 %v10300_v18  ;;  %v10299_v49 = vld [vmem:[%s14569_s1 + $0x50] sm:$0xff] }
 0x2dd   :  { %8542 = vmatmul.msk.bf16.gmra.mxu2 %vm1894_vm5, %v11898_v30  ;;  %5138 = vmatpush.bf16.msrb.mxu3 %v10328_v43  ;;  %v10327_v30 = vld [vmem:[%s14569_s1 + $0x130] sm:$0xff] }
 0x2de   :  { %5124 = vmatpush.bf16.msrb.mxu2 %v10316_v5  ;;  %v10359_v5 = vld [vmem:[%s14569_s1 + $0x230] sm:$0xff] }
 0x2df   :  { %v3210_v21 = vpop.f32.mrf.mxu3  ;;  %5107 = vmatpush.bf16.msrb.mxu1 %v10307_v33  ;;  %v8561_v33 = vld [vmem:[%s14568_s0 + $0x48] sm:$0xf] }
 0x2e0   :  { %5089 = vmatpush.bf16.msrb.mxu0 %v10299_v49  ;;  %v10347_v49 = vld [vmem:[%s14569_s1 + $0x1d0] sm:$0xff] }
 0x2e1   :  { %5139 = vmatpush.bf16.msrb.mxu3 %v10327_v30 }
 0x2e2   :  { %5125 = vmatpush.bf16.msrb.mxu2 %v10315_v20  ;;  %v10288_v20 = vld [vmem:[%s14568_s0 + $0x54] sm:$0xf0] }
 0x2e3   :  { %5108 = vmatpush.bf16.msrb.mxu1 %v10306_v44  ;;  %v10338_v44 = vld [vmem:[%s14569_s1 + $0x188] sm:$0xff] }
 0x2e4   :  { %5090 = vmatpush.bf16.msrb.mxu0 %v10298_v22  ;;  %v10330_v22 = vld [vmem:[%s14569_s1 + $0x148] sm:$0xff] }
 0x2e5   :  { %5140 = vmatpush.bf16.msrb.mxu3 %v10326_v7 }
 0x2e6   :  { %v12655_v9 = vpop.f32.mrf.mxu1  ;;  %5126 = vmatpush.bf16.msrb.mxu2 %v10314_v25  ;;  %v10358_v25 = vld [vmem:[%s14569_s1 + $0x228] sm:$0xff] }
 0x2e7   :  { %v12660_v13 = vpop.f32.mrf.mxu3  ;;  %5109 = vmatpush.bf16.msrb.mxu1 %v10305_v14  ;;  %v8555_v14 = vld [vmem:[%s14568_s0 + $0x50] sm:$0xf0] }
 0x2e8   :  { %v3228_v17 = vpop.f32.mrf.mxu0  ;;  %5091 = vmatpush.bf16.msrb.mxu0 %v10297_v15  ;;  %v10346_v15 = vld [vmem:[%s14569_s1 + $0x1c8] sm:$0xff] }
 0x2e9   :  { %3533 = vmatmul.bf16.vlgmr.msra.gmra.mxu1 %v11972_v51  ;;  %5141 = vmatpush.bf16.msrb.mxu3 %v10325_v3  ;;  %v10324_v51 = vld [vmem:[%s14569_s1 + $0x118] sm:$0xff]  ;;  %v10286_v3 = vld [vmem:[%s14568_s0 + $0x4c] sm:$0xf] }
 0x2ea   :  { %5127 = vmatpush.bf16.msrb.mxu2 %v10313_v38 }
 0x2eb   :  { %3515 = vmatmul.bf16.vlgmr.msra.gmra.mxu0 %v11930_v29  ;;  %5174 = vmatpush.bf16.msra.mxu1 %v10344_v28  ;;  %v10343_v29 = vld [vmem:[%s14569_s1 + $0x1b0] sm:$0xff] }
 0x2ec   :  { %3502 = vmatmul.bf16.gmra.mxu3 %v12063_v26  ;;  %5156 = vmatpush.bf16.msra.mxu0 %v10336_v35  ;;  %v12695_v26 = vld [vmem:[%s14574_s6] sm:$0xf] }
 0x2ed   :  { %3551 = vmatmul.bf16.vlgmr.msra.gmra.mxu2 %v12078_v31  ;;  %5142 = vmatpush.bf16.msrb.mxu3 %v10324_v51  ;;  %v10335_v31 = vld [vmem:[%s14569_s1 + $0x170] sm:$0xff]  ;;  %v12712_v48 = vperm.slane %v12695_v26, 0 }
 0x2ee   :  { %v12690_v39 = vpop.f32.mrf.mxu1  ;;  %5192 = vmatpush.bf16.msra.mxu2 %v10352_v36  ;;  %v12824_v51 = vld [vmem:[%s14568_s0 + $0x70] sm:$0x33]  ;;  %v8563_v36 = vld [vmem:[%s14568_s0 + $0x58] sm:$0xf0] }
 0x2ef   :  { %v12697_v6 = vpop.f32.mrf.mxu3  ;;  %5175 = vmatpush.bf16.msra.mxu1 %v10343_v29  ;;  %v3211_v57 = vadd.f32 %v3210_v21, %v12712_v48  ;;  %v3213_v23 = vadd.f32 %v12660_v13, %v12712_v48  ;;  %v12784_v21 = vld [vmem:[%s14568_s0 + $0x60] sm:$0xff] }
 0x2f0   :  { %v3230_v52 = vpop.f32.mrf.mxu0  ;;  %v3264_v11 = vpop.f32.mrf.mxu2  ;;  %5157 = vmatpush.bf16.msra.mxu0 %v10335_v31  ;;  %v3608_v13 = vunpack.c.l.b16 %v12784_v21  ;;  %v3216_v38 = vadd.f32 %v12697_v6, %v12712_v48  ;;  %v10337_v29 = vld [vmem:[%s14569_s1 + $0x180] sm:$0xff] }
 0x2f1   :  { %5143 = vmatpush.bf16.msrb.mxu3 %v10323_v27  ;;  %v3229_v62 = vadd.f32 %v3228_v17, %v3211_v57  ;;  %v3231_v42 = vadd.f32 %v3230_v52, %v3213_v23  ;;  %v12812_v17 = vor.u32 %v10288_v20, %v8561_v33  ;;  %v10329_v31 = vld [vmem:[%s14569_s1 + $0x140] sm:$0xff]  ;;  %v10368_v57 = vld [vmem:[%s14569_s1 + $0x278] sm:$0xff]  ;;  %v10355_v23 = vld [vmem:[%s14569_s1 + $0x210] sm:$0xff] }
 0x2f2   :  { %5193 = vmatpush.bf16.msra.mxu2 %v10351_v41  ;;  %v10357_v48 = vld [vmem:[%s14569_s1 + $0x220] sm:$0xff]  ;;  %v10354_v33 = vld [vmem:[%s14569_s1 + $0x208] sm:$0xff] }
 0x2f3   :  { %5176 = vmatpush.bf16.msra.mxu1 %v10342_v46  ;;  %v3247_v32 = vadd.f32 %v12655_v9, %v3229_v62  ;;  %v3249_v7 = vadd.f32 %v12690_v39, %v3231_v42  ;;  %v10285_v9 = vld [vmem:[%s14568_s0 + $0x44] sm:$0xf]  ;;  %v3616_v46 = vpack.c.b16 %v3608_v13, %v3608_v13  ;;  %v3641_v62 = vshll.u32 %v12740_v12, 16  ;;  %v10374_v42 = vld [vmem:[%s14569_s1 + $0x2a8] sm:$0xff] }
 0x2f4   :  { %5158 = vmatpush.bf16.msra.mxu0 %v10334_v50  ;;  %v12832_v6 = vor.u32 %v10285_v9, %v8555_v14  ;;  %v3630_v50 = vunpack.c.l.b16 %v12824_v51 }
 0x2f5   :  { %5144 = vmatpush.bf16.msrb.mxu3 %v10322_v53  ;;  %v3265_v37 = vadd.f32 %v3264_v11, %v3247_v32  ;;  %v12845_v53 = vor.u32 %v10286_v3, %v8563_v36 }
 0x2f6   :  { %v12730_v58 = vpop.f32.mrf.mxu1  ;;  %5194 = vmatpush.bf16.msra.mxu2 %v10350_v54  ;;  %v10345_v54 = vld [vmem:[%s14569_s1 + $0x1c0] sm:$0xff] }
 0x2f7   :  { %v3217_v60 = vpop.f32.mrf.mxu3  ;;  %5177 = vmatpush.bf16.msra.mxu1 %v10341_v59 }
 0x2f8   :  { %v12738_v63 = vpop.f32.mrf.mxu0  ;;  %v3266_v0 = vpop.f32.mrf.mxu2  ;;  %5159 = vmatpush.bf16.msra.mxu0 %v10333_v61  ;;  %v10356_v60 = vld [vmem:[%s14569_s1 + $0x218] sm:$0xff]  ;;  %v12861_v61 = vpack.c.b16 %v3630_v50, %v3608_v13  ;;  %v10365_v13 = vld [vmem:[%s14569_s1 + $0x260] sm:$0xff]  ;;  %v3653_v50 = vshll.u32 %v12832_v6, 16 }
 0x2f9   :  { %3538 = vmatmul.bf16.gmra.mxu1 %v11953_v34  ;;  %5145 = vmatpush.bf16.msrb.mxu3 %v10321_v1  ;;  %v10360_v34 = vld [vmem:[%s14569_s1 + $0x238] sm:$0xff]  ;;  %v3267_v28 = vadd.f32 %v3266_v0, %v3249_v7  ;;  %v3234_v52 = vadd.f32 %v12738_v63, %v3216_v38  ;;  %v10373_v7 = vld [vmem:[%s14569_s1 + $0x2a0] sm:$0xff]  ;;  %v3631_v38 = vunpack.c.h.b16 %v12824_v51 }
 0x2fa   :  { %5195 = vmatpush.bf16.msra.mxu2 %v10349_v10  ;;  %v10384_v63 = vld [vmem:[%s14569_s1 + $0x2f8] sm:$0xff]  ;;  %v8548_v10 = vld [vmem:[%s14568_s0 + $0x68] sm:$0xff] }
 0x2fb   :  { %3520 = vmatmul.bf16.gmra.mxu0 %v11919_v45  ;;  %v10348_v45 = vld [vmem:[%s14569_s1 + $0x1d8] sm:$0xff]  ;;  %5178 = vmatpush.bf16.msra.mxu1 %v10340_v2  ;;  %v3252_v59 = vadd.f32 %v12730_v58, %v3234_v52  ;;  %v10375_v58 = vld [vmem:[%s14569_s1 + $0x2b0] sm:$0xff] }
 0x2fc   :  { %5074 = vmatmul.bf16.vlgmr.msra.gmra.mxu3 %v12740_v12  ;;  %5160 = vmatpush.bf16.msra.mxu0 %v10332_v16  ;;  %v10367_v16 = vld [vmem:[%s14569_s1 + $0x270] sm:$0xff]  ;;  %v10372_v51 = vld [vmem:[%s14569_s1 + $0x298] sm:$0xff] }
 0x2fd   :  { %3556 = vmatmul.bf16.gmra.mxu2 %v12042_v8  ;;  %5210 = vmatpush.bf16.msra.mxu3 %v10360_v34  ;;  %v10331_v8 = vld [vmem:[%s14569_s1 + $0x150] sm:$0xff] }
 0x2fe   :  { %v3253_v4 = vpop.f32.mrf.mxu1  ;;  %5196 = vmatpush.bf16.msra.mxu2 %v10348_v45 }
 0x2ff   :  { %v3282_v40 = vpop.f32.mrf.mxu3  ;;  %5179 = vmatpush.bf16.msra.mxu1 %v10339_v24  ;;  %v3639_v4 = vshrl.u32 %v12740_v12, 16  ;;  %v3643_v24 = vrot.slane %v3641_v62, 1 }
 0x300   :  { %v3283_v19 = vadd.f32 %v3282_v40, %v3265_v37  ;;  %v3235_v18 = vpop.f32.mrf.mxu0  ;;  %v12773_v43 = vpop.f32.mrf.mxu2  ;;  %5161 = vmatpush.bf16.msra.mxu0 %v10331_v8  ;;  %v3610_v37 = vunpack.c.l.b16 %v8548_v10  ;;  %v3646_v40 = vshll.u32 %v12861_v61, 16  ;;  %v10383_v8 = vld [vmem:[%s14569_s1 + $0x2f0] sm:$0xff] }
 0x301   :  { %5211 = vmatpush.bf16.msra.mxu3 %v10359_v5  ;;  %v3270_v0 = vadd.f32 %v12773_v43, %v3252_v59  ;;  %v8550_v18 = vld [vmem:[%s14568_s0 + $0x78] sm:$0x33]  ;;  %v3609_v43 = vunpack.c.h.b16 %v12784_v21  ;;  %v10366_v5 = vld [vmem:[%s14569_s1 + $0x268] sm:$0xff]  ;;  %v3611_v21 = vunpack.c.h.b16 %v8548_v10 }
 0x302   :  { %v3561_v30 = vmax.f32 %v3283_v19, 0.0  ;;  %5197 = vmatpush.bf16.msra.mxu2 %v10347_v49  ;;  %v3618_v49 = vpack.c.b16 %v3610_v37, %v3610_v37  ;;  %v12911_v20 = vrot.slane %v3646_v40, 1 }
 0x303   :  { %5180 = vmatpush.bf16.msra.mxu1 %v10338_v44  ;;  %v10382_v44 = vld [vmem:[%s14569_s1 + $0x2e8] sm:$0xff]  ;;  %v3617_v14 = vpack.c.b16 %v3609_v43, %v3609_v43 }
 0x304   :  { %3573 = vst [vmem:[#allocation2] sm:$0xff] %v3561_v30  ;;  %5162 = vmatpush.bf16.msra.mxu0 %v10330_v22  ;;  %v3644_v30 = vor.u32 %v3643_v24, %v3639_v4  ;;  %v3655_v24 = vrot.slane %v3653_v50, 1 }
 0x305   :  { %5212 = vmatpush.bf16.msra.mxu3 %v10358_v25  ;;  %v3632_v25 = vunpack.c.l.b16 %v8550_v18 }
 0x306   :  { %v12819_v35 = vpop.f32.mrf.mxu1  ;;  %5198 = vmatpush.bf16.msra.mxu2 %v10346_v15  ;;  %v3649_v36 = vsel %vm80_vm0, %v3644_v30, %v12911_v20  ;;  %v10362_v30 = vld [vmem:[%s14569_s1 + $0x248] sm:$0xff] }
 0x307   :  { %v3284_v39 = vpop.f32.mrf.mxu3  ;;  %5181 = vmatpush.bf16.msra.mxu1 %v10337_v29  ;;  %v3619_v29 = vpack.c.b16 %v3611_v21, %v3611_v21  ;;  %v12938_v52 = vpack.c.b16 %v3632_v25, %v3610_v37  ;;  %v3651_v37 = vshrl.u32 %v12832_v6, 16 }
 0x308   :  { %v3285_v11 = vadd.f32 %v3284_v39, %v3267_v28  ;;  %v3271_v27 = vpop.f32.mrf.mxu2  ;;  %v12838_v41 = vpop.f32.mrf.mxu0  ;;  %5163 = vmatpush.bf16.msra.mxu0 %v10329_v31  ;;  %v10353_v28 = vld [vmem:[%s14569_s1 + $0x200] sm:$0xff]  ;;  %v3665_v39 = vshll.u32 %v12812_v17, 16 }
 0x309   :  { %5110 = vmatmul.bf16.vlgmr.msrb.gmra.mxu1 %v12812_v17  ;;  %5213 = vmatpush.bf16.msra.mxu3 %v10357_v48  ;;  %v10381_v31 = vld [vmem:[%s14569_s1 + $0x2e0] sm:$0xff]  ;;  %v12944_v27 = vperm.slane %v12695_v26, 1  ;;  %v12949_v48 = vpack.c.b16 %v3631_v38, %v3609_v43  ;;  %v3675_v43 = vshrl.u32 %v12845_v53, 16  ;;  %v3656_v25 = vor.u32 %v3655_v24, %v3651_v37  ;;  %v10388_v24 = vld [vmem:[%s14569_s1 + $0x318] sm:$0xff] }
 0x30a   :  { %v3565_v56 = vmax.f32 %v3285_v11, 0.0  ;;  %5199 = vmatpush.bf16.msra.mxu2 %v10345_v54  ;;  %v3633_v11 = vunpack.c.h.b16 %v8550_v18  ;;  %v10392_v54 = vld [vmem:[%s14569_s1 + $0x338] sm:$0xff] }
 0x30b   :  { %5092 = vmatmul.bf16.vlgmr.msrb.gmra.mxu0 %v12832_v6  ;;  %5246 = vmatpush.bf16.msrb.mxu1 %v10376_v55  ;;  %v3663_v55 = vshrl.u32 %v12812_v17, 16  ;;  %v3301_v10 = vadd.f32 %v12838_v41, %v12944_v27  ;;  %v10391_v41 = vld [vmem:[%s14569_s1 + $0x330] sm:$0xff] }
 0x30c   :  { %3577 = vst [vmem:[#allocation2 + $0x20] sm:$0xff] %v3565_v56  ;;  %5079 = vmatmul.bf16.gmra.mxu3 %v3616_v46  ;;  %5228 = vmatpush.bf16.msrb.mxu0 %v10368_v57  ;;  %v10364_v46 = vld [vmem:[%s14569_s1 + $0x258] sm:$0xff]  ;;  %v3667_v56 = vrot.slane %v3665_v39, 1  ;;  %v12961_v59 = vpack.c.b16 %v3633_v11, %v3611_v21 }
 0x30d   :  { %5128 = vmatmul.bf16.vlgmr.msrb.gmra.mxu2 %v12845_v53  ;;  %5214 = vmatpush.bf16.msra.mxu3 %v10356_v60  ;;  %v10380_v57 = vld [vmem:[%s14569_s1 + $0x2d8] sm:$0xff]  ;;  %v3319_v21 = vadd.f32 %v12819_v35, %v3301_v10 }
 0x30e   :  { %v12872_v1 = vpop.f32.mrf.mxu1  ;;  %5264 = vmatpush.bf16.msrb.mxu2 %v10384_v63  ;;  %v3670_v63 = vshll.u32 %v12938_v52, 16  ;;  %v10408_v10 = vld [vmem:[%s14569_s1 + $0x3b8] sm:$0xff] }
 0x30f   :  { %v3287_v2 = vpop.f32.mrf.mxu3  ;;  %5247 = vmatpush.bf16.msrb.mxu1 %v10375_v58  ;;  %v3677_v58 = vshll.u32 %v12845_v53, 16 }
 0x310   :  { %v3288_v32 = vadd.f32 %v3287_v2, %v3270_v0  ;;  %v12880_v34 = vpop.f32.mrf.mxu0  ;;  %v12882_v45 = vpop.f32.mrf.mxu2  ;;  %5229 = vmatpush.bf16.msrb.mxu0 %v10367_v16  ;;  %v10371_v0 = vld [vmem:[%s14569_s1 + $0x290] sm:$0xff]  ;;  %v12989_v18 = vrot.slane %v3670_v63, 1 }
 0x311   :  { %5215 = vmatpush.bf16.msra.mxu3 %v10355_v23  ;;  %v10363_v16 = vld [vmem:[%s14569_s1 + $0x250] sm:$0xff]  ;;  %v3337_v35 = vadd.f32 %v12882_v45, %v3319_v21  ;;  %v3303_v45 = vadd.f32 %v12880_v34, %v12944_v27  ;;  %v10389_v34 = vld [vmem:[%s14569_s1 + $0x320] sm:$0xff] }
 0x312   :  { %v3569_v19 = vmax.f32 %v3288_v32, 0.0  ;;  %5265 = vmatpush.bf16.msrb.mxu2 %v10383_v8  ;;  %v3658_v8 = vshll.u32 %v12949_v48, 16 }
 0x313   :  { %5248 = vmatpush.bf16.msrb.mxu1 %v10374_v42  ;;  %v3668_v42 = vor.u32 %v3667_v56, %v3663_v55 }
 0x314   :  { %3581 = vst [vmem:[#allocation2 + $0x40] sm:$0xff] %v3569_v19  ;;  %5230 = vmatpush.bf16.msrb.mxu0 %v10366_v5  ;;  %v10379_v19 = vld [vmem:[%s14569_s1 + $0x2d0] sm:$0xff]  ;;  %v3679_v5 = vrot.slane %v3677_v58, 1 }
 0x315   :  { %5216 = vmatpush.bf16.msra.mxu3 %v10354_v33  ;;  %v3682_v33 = vshll.u32 %v12961_v59, 16  ;;  %v3673_v38 = vsel %vm80_vm0, %v3668_v42, %v12989_v18  ;;  %v10407_v42 = vld [vmem:[%s14569_s1 + $0x3b0] sm:$0xff] }
 0x316   :  { %v12916_v22 = vpop.f32.mrf.mxu1  ;;  %5266 = vmatpush.bf16.msrb.mxu2 %v10382_v44  ;;  %v10390_v44 = vld [vmem:[%s14569_s1 + $0x328] sm:$0xff] }
 0x317   :  { %v3289_v9 = vpop.f32.mrf.mxu3  ;;  %5249 = vmatpush.bf16.msrb.mxu1 %v10373_v7  ;;  %v13009_v7 = vrot.slane %v3658_v8, 1 }
 0x318   :  { %v12924_v15 = vpop.f32.mrf.mxu0  ;;  %v12926_v3 = vpop.f32.mrf.mxu2  ;;  %5231 = vmatpush.bf16.msrb.mxu0 %v10365_v13  ;;  %v3686_v9 = vshrl.u32 %v12861_v61, 16 }
 0x319   :  { %5115 = vmatmul.bf16.gmra.mxu1 %v3618_v49  ;;  %5217 = vmatpush.bf16.msra.mxu3 %v10353_v28  ;;  %v10370_v49 = vld [vmem:[%s14569_s1 + $0x288] sm:$0xff]  ;;  %v3680_v28 = vor.u32 %v3679_v5, %v3675_v43  ;;  %v3661_v56 = vsel %vm80_vm0, %v3656_v25, %v13009_v7  ;;  %v3306_v5 = vadd.f32 %v12924_v15, %v12944_v27  ;;  %v3692_v25 = vshrl.u32 %v12938_v52, 16  ;;  %v10415_v15 = vld [vmem:[%s14569_s1 + $0x3f0] sm:$0xff] }
 0x31a   :  { %5267 = vmatpush.bf16.msrb.mxu2 %v10381_v31  ;;  %v10406_v27 = vld [vmem:[%s14569_s1 + $0x3a8] sm:$0xff] }
 0x31b   :  { %5097 = vmatmul.bf16.gmra.mxu0 %v3617_v14  ;;  %5250 = vmatpush.bf16.msrb.mxu1 %v10372_v51  ;;  %v10378_v14 = vld [vmem:[%s14569_s1 + $0x2c8] sm:$0xff]  ;;  %v10361_v51 = vld [vmem:[%s14569_s1 + $0x240] sm:$0xff] }
 0x31c   :  { %5146 = vmatmul.bf16.vlgmr.msrb.gmra.mxu3 %v3649_v36  ;;  %5232 = vmatpush.bf16.msrb.mxu0 %v10364_v46  ;;  %v13024_v36 = vrot.slane %v3682_v33, 1 }
 0x31d   :  { %5133 = vmatmul.bf16.gmra.mxu2 %v3619_v29  ;;  %5282 = vmatpush.bf16.msrb.mxu3 %v10392_v54  ;;  %v10369_v29 = vld [vmem:[%s14569_s1 + $0x280] sm:$0xff] }
 0x31e   :  { %v3325_v60 = vpop.f32.mrf.mxu1  ;;  %5268 = vmatpush.bf16.msrb.mxu2 %v10380_v57  ;;  %v3688_v57 = vor.u32 %v3686_v9, %v12911_v20  ;;  %v3321_v20 = vadd.f32 %v12872_v1, %v3303_v45  ;;  %v10416_v1 = vld [vmem:[%s14569_s1 + $0x3f8] sm:$0xff]  ;;  %v10398_v45 = vld [vmem:[%s14569_s1 + $0x368] sm:$0xff] }
 0x31f   :  { %v3354_v2 = vpop.f32.mrf.mxu3  ;;  %5251 = vmatpush.bf16.msrb.mxu1 %v10371_v0  ;;  %v10377_v0 = vld [vmem:[%s14569_s1 + $0x2c0] sm:$0xff] }
 0x320   :  { %v3307_v32 = vpop.f32.mrf.mxu0  ;;  %v12973_v23 = vpop.f32.mrf.mxu2  ;;  %5233 = vmatpush.bf16.msrb.mxu0 %v10363_v16  ;;  %v3355_v31 = vadd.f32 %v3354_v2, %v3337_v35  ;;  %v3685_v2 = vsel %vm80_vm0, %v3680_v28, %v13024_v36 }
 0x321   :  { %5283 = vmatpush.bf16.msrb.mxu3 %v10391_v41  ;;  %v10400_v32 = vld [vmem:[%s14569_s1 + $0x378] sm:$0xff]  ;;  %v3339_v41 = vadd.f32 %v12926_v3, %v3321_v20  ;;  %v10399_v3 = vld [vmem:[%s14569_s1 + $0x370] sm:$0xff]  ;;  %v10385_v20 = vld [vmem:[%s14569_s1 + $0x300] sm:$0xff] }
 0x322   :  { %5269 = vmatpush.bf16.msrb.mxu2 %v10379_v19 }
 0x323   :  { %5252 = vmatpush.bf16.msrb.mxu1 %v10370_v49 }
 0x324   :  { %5234 = vmatpush.bf16.msrb.mxu0 %v10362_v30 }
 0x325   :  { %5284 = vmatpush.bf16.msrb.mxu3 %v10390_v44 }
 0x326   :  { %v13016_v13 = vpop.f32.mrf.mxu1  ;;  %5270 = vmatpush.bf16.msrb.mxu2 %v10378_v14  ;;  %v10387_v14 = vld [vmem:[%s14569_s1 + $0x310] sm:$0xff] }
 0x327   :  { %v3356_v11 = vpop.f32.mrf.mxu3  ;;  %5253 = vmatpush.bf16.msrb.mxu1 %v10369_v29  ;;  %v3689_v29 = vshrl.u32 %v12949_v48, 16 }
 0x328   :  { %v3343_v46 = vpop.f32.mrf.mxu2  ;;  %v3372_v54 = vpop.f32.mrf.mxu0  ;;  %5235 = vmatpush.bf16.msrb.mxu0 %v10361_v51  ;;  %v3357_v49 = vadd.f32 %v3356_v11, %v3339_v41  ;;  %v10386_v11 = vld [vmem:[%s14569_s1 + $0x308] sm:$0xff]  ;;  %v10404_v41 = vld [vmem:[%s14569_s1 + $0x398] sm:$0xff] }
 0x329   :  { %v3373_v60 = vadd.f32 %v3372_v54, %v3355_v31  ;;  %5182 = vmatmul.bf16.vlgmr.msra.gmra.mxu1 %v3673_v38  ;;  %5285 = vmatpush.bf16.msrb.mxu3 %v10389_v34  ;;  %v3324_v38 = vadd.f32 %v12916_v22, %v3306_v5  ;;  %v3694_v31 = vor.u32 %v3692_v25, %v12989_v18  ;;  %v3706_v22 = vrot.slane %v12740_v12, 1  ;;  %v10405_v18 = vld [vmem:[%s14569_s1 + $0x3a0] sm:$0xff]  ;;  %v10412_v5 = vld [vmem:[%s14569_s1 + $0x3d8] sm:$0xff] }
 0x32a   :  { %5271 = vmatpush.bf16.msrb.mxu2 %v10377_v0  ;;  %v3707_v46 = vrot.slane %v12861_v61, 1  ;;  %v3695_v54 = vshrl.u32 %v12961_v59, 16  ;;  %v10397_v0 = vld [vmem:[%s14569_s1 + $0x360] sm:$0xff] }
 0x32b   :  { %v3562_v16 = vmax.f32 %v3373_v60, 0.0  ;;  %5164 = vmatmul.bf16.vlgmr.msra.gmra.mxu0 %v3661_v56  ;;  %5318 = vmatpush.bf16.msra.mxu1 %v10408_v10  ;;  %v3342_v51 = vadd.f32 %v12973_v23, %v3324_v38  ;;  %v10414_v56 = vld [vmem:[%s14569_s1 + $0x3e8] sm:$0xff]  ;;  %v3691_v60 = vor.u32 %v3689_v29, %v13009_v7  ;;  %v10411_v38 = vld [vmem:[%s14569_s1 + $0x3d0] sm:$0xff] }
 0x32c   :  { %5151 = vmatmul.bf16.gmra.mxu3 %v3688_v57  ;;  %5300 = vmatpush.bf16.msra.mxu0 %v10400_v32  ;;  %v3708_v32 = vsel %vm149_vm1, %v3706_v22, %v3707_v46  ;;  %v3697_v7 = vor.u32 %v3695_v54, %v13024_v36  ;;  %v10424_v36 = vld [vmem:[%s14569_s1 + $0x438] sm:$0xff]  ;;  %v10422_v22 = vld [vmem:[%s14569_s1 + $0x428] sm:$0xff] }
 0x32d   :  { %3574 = vst [vmem:[#allocation2 + $0x8] sm:$0xff] %v3562_v16  ;;  %5200 = vmatmul.bf16.vlgmr.msra.gmra.mxu2 %v3685_v2  ;;  %5286 = vmatpush.bf16.msrb.mxu3 %v10388_v24  ;;  %v10413_v24 = vld [vmem:[%s14569_s1 + $0x3e0] sm:$0xff] }
 0x32e   :  { %v13064_v19 = vpop.f32.mrf.mxu1  ;;  %5336 = vmatpush.bf16.msra.mxu2 %v10416_v1 }
 0x32f   :  { %v3359_v30 = vpop.f32.mrf.mxu3  ;;  %5319 = vmatpush.bf16.msra.mxu1 %v10407_v42  ;;  %v10396_v42 = vld [vmem:[%s14569_s1 + $0x358] sm:$0xff] }
 0x330   :  { %v3374_v21 = vpop.f32.mrf.mxu0  ;;  %v13071_v44 = vpop.f32.mrf.mxu2  ;;  %5301 = vmatpush.bf16.msra.mxu0 %v10399_v3  ;;  %v3360_v23 = vadd.f32 %v3359_v30, %v3342_v51  ;;  %v10403_v30 = vld [vmem:[%s14569_s1 + $0x390] sm:$0xff]  ;;  %v13142_v3 = vperm.slane %v12695_v26, 2 }
 0x331   :  { %v3375_v35 = vadd.f32 %v3374_v21, %v3357_v49  ;;  %5287 = vmatpush.bf16.msrb.mxu3 %v10387_v14  ;;  %v10395_v14 = vld [vmem:[%s14569_s1 + $0x350] sm:$0xff] }
 0x332   :  { %5337 = vmatpush.bf16.msra.mxu2 %v10415_v15  ;;  %v3391_v51 = vadd.f32 %v13016_v13, %v13142_v3 }
 0x333   :  { %v3566_v28 = vmax.f32 %v3375_v35, 0.0  ;;  %5320 = vmatpush.bf16.msra.mxu1 %v10406_v27  ;;  %v10423_v27 = vld [vmem:[%s14569_s1 + $0x430] sm:$0xff] }
 0x334   :  { %5302 = vmatpush.bf16.msra.mxu0 %v10398_v45  ;;  %v3713_v45 = vrot.slane %v12938_v52, 1 }
 0x335   :  { %3578 = vst [vmem:[#allocation2 + $0x28] sm:$0xff] %v3566_v28  ;;  %5288 = vmatpush.bf16.msrb.mxu3 %v10386_v11  ;;  %v3712_v28 = vrot.slane %v12812_v17, 1  ;;  %v10394_v11 = vld [vmem:[%s14569_s1 + $0x348] sm:$0xff] }
 0x336   :  { %v13101_v57 = vpop.f32.mrf.mxu1  ;;  %5338 = vmatpush.bf16.msra.mxu2 %v10414_v56  ;;  %v3709_v56 = vrot.slane %v12832_v6, 1 }
 0x337   :  { %v3361_v34 = vpop.f32.mrf.mxu3  ;;  %5321 = vmatpush.bf16.msra.mxu1 %v10405_v18  ;;  %v3710_v18 = vrot.slane %v12949_v48, 1  ;;  %v3714_v13 = vsel %vm149_vm1, %v3712_v28, %v3713_v45  ;;  %v10439_v28 = vld [vmem:[%s14569_s1 + $0x4b0] sm:$0xff] }
 0x338   :  { %v3377_v10 = vpop.f32.mrf.mxu0  ;;  %v13112_v2 = vpop.f32.mrf.mxu2  ;;  %5303 = vmatpush.bf16.msra.mxu0 %v10397_v0  ;;  %v3409_v34 = vadd.f32 %v13071_v44, %v3391_v51  ;;  %v3715_v0 = vrot.slane %v12845_v53, 1  ;;  %v10393_v44 = vld [vmem:[%s14569_s1 + $0x340] sm:$0xff]  ;;  %v3729_v51 = vrot.slane %v3686_v9, 1  ;;  %v10447_v9 = vld [vmem:[%s14569_s1 + $0x4f0] sm:$0xff] }
 0x339   :  { %v3378_v16 = vadd.f32 %v3377_v10, %v3360_v23  ;;  %5187 = vmatmul.bf16.gmra.mxu1 %v3694_v31  ;;  %5289 = vmatpush.bf16.msrb.mxu3 %v10385_v20  ;;  %v10402_v31 = vld [vmem:[%s14569_s1 + $0x388] sm:$0xff]  ;;  %v3716_v10 = vrot.slane %v12961_v59, 1  ;;  %v10401_v20 = vld [vmem:[%s14569_s1 + $0x380] sm:$0xff] }
 0x33a   :  { %5339 = vmatpush.bf16.msra.mxu2 %v10413_v24  ;;  %v10410_v23 = vld [vmem:[%s14569_s1 + $0x3c8] sm:$0xff] }
 0x33b   :  { %v3570_v1 = vmax.f32 %v3378_v16, 0.0  ;;  %5169 = vmatmul.bf16.gmra.mxu0 %v3691_v60  ;;  %5322 = vmatpush.bf16.msra.mxu1 %v10404_v41  ;;  %v3711_v41 = vsel %vm149_vm1, %v3709_v56, %v3710_v18 }
 0x33c   :  { %5218 = vmatmul.bf16.vlgmr.msra.gmra.mxu3 %v3708_v32  ;;  %5304 = vmatpush.bf16.msra.mxu0 %v10396_v42 }
 0x33d   :  { %3582 = vst [vmem:[#allocation2 + $0x48] sm:$0xff] %v3570_v1  ;;  %5205 = vmatmul.bf16.gmra.mxu2 %v3697_v7  ;;  %5354 = vmatpush.bf16.msra.mxu3 %v10424_v36  ;;  %v10421_v1 = vld [vmem:[%s14569_s1 + $0x420] sm:$0xff] }
 0x33e   :  { %v3397_v49 = vpop.f32.mrf.mxu1  ;;  %5340 = vmatpush.bf16.msra.mxu2 %v10412_v5  ;;  %v10409_v36 = vld [vmem:[%s14569_s1 + $0x3c0] sm:$0xff]  ;;  %v10440_v5 = vld [vmem:[%s14569_s1 + $0x4b8] sm:$0xff] }
 0x33f   :  { %v3426_v21 = vpop.f32.mrf.mxu3  ;;  %5323 = vmatpush.bf16.msra.mxu1 %v10403_v30  ;;  %v3717_v49 = vsel %vm149_vm1, %v3715_v0, %v3716_v10  ;;  %v3393_v30 = vadd.f32 %v13064_v19, %v13142_v3  ;;  %v10448_v19 = vld [vmem:[%s14569_s1 + $0x4f8] sm:$0xff]  ;;  %v3727_v0 = vrot.slane %v3641_v62, 2  ;;  %v10430_v62 = vld [vmem:[%s14569_s1 + $0x468] sm:$0xff] }
 0x340   :  { %v3379_v35 = vpop.f32.mrf.mxu0  ;;  %v13147_v15 = vpop.f32.mrf.mxu2  ;;  %5305 = vmatpush.bf16.msra.mxu0 %v10395_v14  ;;  %v3427_v16 = vadd.f32 %v3426_v21, %v3409_v34  ;;  %v10432_v14 = vld [vmem:[%s14569_s1 + $0x478] sm:$0xff]  ;;  %v3730_v34 = vrot.slane %v3646_v40, 2  ;;  %v3396_v40 = vadd.f32 %v13101_v57, %v13142_v3  ;;  %v10446_v57 = vld [vmem:[%s14569_s1 + $0x4e8] sm:$0xff] }
 0x341   :  { %5355 = vmatpush.bf16.msra.mxu3 %v10423_v27  ;;  %v10420_v35 = vld [vmem:[%s14569_s1 + $0x418] sm:$0xff]  ;;  %v3411_v27 = vadd.f32 %v13112_v2, %v3393_v30  ;;  %v10431_v2 = vld [vmem:[%s14569_s1 + $0x470] sm:$0xff] }
 0x342   :  { %5341 = vmatpush.bf16.msra.mxu2 %v10411_v38 }
 0x343   :  { %5324 = vmatpush.bf16.msra.mxu1 %v10402_v31 }
 0x344   :  { %5306 = vmatpush.bf16.msra.mxu0 %v10394_v11 }
 0x345   :  { %5356 = vmatpush.bf16.msra.mxu3 %v10422_v22 }
 0x346   :  { %v3462_v60 = vpop.f32.mrf.mxu1  ;;  %5342 = vmatpush.bf16.msra.mxu2 %v10410_v23  ;;  %v10419_v23 = vld [vmem:[%s14569_s1 + $0x410] sm:$0xff] }
 0x347   :  { %v3428_v32 = vpop.f32.mrf.mxu3  ;;  %5325 = vmatpush.bf16.msra.mxu1 %v10401_v20  ;;  %v10438_v20 = vld [vmem:[%s14569_s1 + $0x4a8] sm:$0xff] }
 0x348   :  { %v3415_v7 = vpop.f32.mrf.mxu2  ;;  %v3444_v24 = vpop.f32.mrf.mxu0  ;;  %5307 = vmatpush.bf16.msra.mxu0 %v10393_v44  ;;  %v3414_v44 = vadd.f32 %v13147_v15, %v3396_v40  ;;  %v10429_v15 = vld [vmem:[%s14569_s1 + $0x460] sm:$0xff] }
 0x349   :  { %v3445_v42 = vadd.f32 %v3444_v24, %v3427_v16  ;;  %5254 = vmatmul.bf16.vlgmr.msrb.gmra.mxu1 %v3714_v13  ;;  %5357 = vmatpush.bf16.msra.mxu3 %v10421_v1  ;;  %v3726_v13 = vrot.slane %v3639_v4, 1  ;;  %v10418_v4 = vld [vmem:[%s14569_s1 + $0x408] sm:$0xff] }
 0x34a   :  { %5343 = vmatpush.bf16.msra.mxu2 %v10409_v36 }
 0x34b   :  { %v3463_v21 = vadd.f32 %v3462_v60, %v3445_v42  ;;  %5236 = vmatmul.bf16.vlgmr.msrb.gmra.mxu0 %v3711_v41  ;;  %5390 = vmatpush.bf16.msrb.mxu1 %v10440_v5  ;;  %v3728_v24 = vor.u32 %v3727_v0, %v3726_v13  ;;  %v10437_v41 = vld [vmem:[%s14569_s1 + $0x4a0] sm:$0xff]  ;;  %v3747_v0 = vrot.slane %v3675_v43, 1  ;;  %v10442_v43 = vld [vmem:[%s14569_s1 + $0x4c8] sm:$0xff] }
 0x34c   :  { %5223 = vmatmul.bf16.gmra.mxu3 %v3707_v46  ;;  %5372 = vmatpush.bf16.msrb.mxu0 %v10432_v14  ;;  %v3429_v46 = vadd.f32 %v3428_v32, %v3411_v27  ;;  %v13247_v32 = vor.u32 %v3730_v34, %v3729_v51  ;;  %v10445_v14 = vld [vmem:[%s14569_s1 + $0x4e0] sm:$0xff]  ;;  %v3750_v34 = vrot.slane %v3695_v54, 1  ;;  %v10426_v54 = vld [vmem:[%s14569_s1 + $0x448] sm:$0xff] }
 0x34d   :  { %v3563_v38 = vmax.f32 %v3463_v21, 0.0  ;;  %5272 = vmatmul.bf16.vlgmr.msrb.gmra.mxu2 %v3717_v49  ;;  %5358 = vmatpush.bf16.msra.mxu3 %v10420_v35  ;;  %v10417_v49 = vld [vmem:[%s14569_s1 + $0x400] sm:$0xff]  ;;  %v10436_v35 = vld [vmem:[%s14569_s1 + $0x498] sm:$0xff] }
 0x34e   :  { %v3464_v31 = vpop.f32.mrf.mxu1  ;;  %5408 = vmatpush.bf16.msrb.mxu2 %v10448_v19  ;;  %v3732_v21 = vsel %vm170_vm2, %v3728_v24, %v13247_v32  ;;  %v10444_v19 = vld [vmem:[%s14569_s1 + $0x4d8] sm:$0xff] }
 0x34f   :  { %3575 = vst [vmem:[#allocation2 + $0x10] sm:$0xff] %v3563_v38  ;;  %v3431_v11 = vpop.f32.mrf.mxu3  ;;  %5391 = vmatpush.bf16.msrb.mxu1 %v10439_v28  ;;  %v3743_v28 = vrot.slane %v3692_v25, 1  ;;  %v10427_v25 = vld [vmem:[%s14569_s1 + $0x450] sm:$0xff] }
 0x350   :  { %v3446_v22 = vpop.f32.mrf.mxu0  ;;  %v13222_v56 = vpop.f32.mrf.mxu2  ;;  %5373 = vmatpush.bf16.msrb.mxu0 %v10431_v2  ;;  %v3432_v1 = vadd.f32 %v3431_v11, %v3414_v44  ;;  %v3741_v11 = vrot.slane %v3665_v39, 2 }
 0x351   :  { %v3447_v60 = vadd.f32 %v3446_v22, %v3429_v46  ;;  %5359 = vmatpush.bf16.msra.mxu3 %v10419_v23  ;;  %v3740_v46 = vrot.slane %v3663_v55, 1  ;;  %v3737_v55 = vrot.slane %v3658_v8, 2  ;;  %v3733_v22 = vrot.slane %v3651_v37, 1 }
 0x352   :  { %5409 = vmatpush.bf16.msrb.mxu2 %v10447_v9  ;;  %v3734_v23 = vrot.slane %v3653_v50, 2  ;;  %v3748_v37 = vrot.slane %v3677_v58, 2  ;;  %v10434_v50 = vld [vmem:[%s14569_s1 + $0x488] sm:$0xff] }
 0x353   :  { %v3465_v16 = vadd.f32 %v3464_v31, %v3447_v60  ;;  %5392 = vmatpush.bf16.msrb.mxu1 %v10438_v20  ;;  %v3751_v60 = vrot.slane %v3682_v33, 2  ;;  %v3742_v13 = vor.u32 %v3741_v11, %v3740_v46  ;;  %v2396_v33 = vperm.slane %v12695_v26, 3  ;;  %v10433_v26 = vld [vmem:[%s14569_s1 + $0x480] sm:$0xff] }
 0x354   :  { %5374 = vmatpush.bf16.msrb.mxu0 %v10430_v62  ;;  %v3735_v20 = vor.u32 %v3734_v23, %v3733_v22  ;;  %v3749_v62 = vor.u32 %v3748_v37, %v3747_v0  ;;  %v13348_v23 = vld [vmem:[%s14570_s2] ss:$0 sm:$0xff]  ;;  %v3766_v0 = vrot.slane %v12949_v48, 2 }
 0x355   :  { %v3567_v7 = vmax.f32 %v3465_v16, 0.0  ;;  %5360 = vmatpush.bf16.msra.mxu3 %v10418_v4  ;;  %v3752_v58 = vor.u32 %v3751_v60, %v3750_v34  ;;  %v3481_v4 = vadd.f32 %v13222_v56, %v2396_v33  ;;  %v3768_v60 = vrot.slane %v12812_v17, 2 }
 0x356   :  { %v3467_v3 = vpop.f32.mrf.mxu1  ;;  %5410 = vmatpush.bf16.msrb.mxu2 %v10446_v57 }
 0x357   :  { %3579 = vst [vmem:[#allocation2 + $0x30] sm:$0xff] %v3567_v7  ;;  %v3433_v42 = vpop.f32.mrf.mxu3  ;;  %5393 = vmatpush.bf16.msrb.mxu1 %v10437_v41  ;;  %v10425_v7 = vld [vmem:[%s14569_s1 + $0x440] sm:$0xff] }
 0x358   :  { %v3449_v36 = vpop.f32.mrf.mxu0  ;;  %v13259_v5 = vpop.f32.mrf.mxu2  ;;  %5375 = vmatpush.bf16.msrb.mxu0 %v10429_v15  ;;  %v3753_v42 = vsel %vm170_vm2, %v3749_v62, %v3752_v58 }
 0x359   :  { %v3450_v30 = vadd.f32 %v3449_v36, %v3432_v1  ;;  %5259 = vmatmul.bf16.gmra.mxu1 %v3713_v45  ;;  %5361 = vmatpush.bf16.msra.mxu3 %v10417_v49  ;;  %v10428_v45 = vld [vmem:[%s14569_s1 + $0x458] sm:$0xff]  ;;  %v10441_v1 = vld [vmem:[%s14569_s1 + $0x4c0] sm:$0xff]  ;;  %v3483_v36 = vadd.f32 %v13259_v5, %v2396_v33 }
 0x35a   :  { %5411 = vmatpush.bf16.msrb.mxu2 %v10445_v14 }
 0x35b   :  { %v3468_v27 = vadd.f32 %v3467_v3, %v3450_v30  ;;  %5241 = vmatmul.bf16.gmra.mxu0 %v3710_v18  ;;  %v3744_v18 = vrot.slane %v3670_v63, 2  ;;  %5394 = vmatpush.bf16.msrb.mxu1 %v10436_v35  ;;  %v3736_v63 = vrot.slane %v3689_v29, 1  ;;  %v10443_v29 = vld [vmem:[%s14569_s1 + $0x4d0] sm:$0xff] }
 0x35c   :  { %5290 = vmatmul.bf16.vlgmr.msrb.gmra.mxu3 %v3732_v21  ;;  %5376 = vmatpush.bf16.msrb.mxu0 %v10428_v45 }
 0x35d   :  { %v3571_v38 = vmax.f32 %v3468_v27, 0.0  ;;  %5277 = vmatmul.bf16.gmra.mxu2 %v3716_v10  ;;  %v10435_v10 = vld [vmem:[%s14569_s1 + $0x490] sm:$0xff]  ;;  %v3745_v8 = vor.u32 %v3744_v18, %v3743_v28  ;;  %v3738_v9 = vor.u32 %v3737_v55, %v3736_v63  ;;  %v3763_v28 = vrot.slane %v12861_v61, 2 }
 0x35e   :  { %v3469_v31 = vpop.f32.mrf.mxu1  ;;  %5412 = vmatpush.bf16.msrb.mxu2 %v10444_v19  ;;  %v3762_v19 = vrot.slane %v12740_v12, 2 }
 0x35f   :  { %3583 = vst [vmem:[#allocation2 + $0x50] sm:$0xff] %v3571_v38  ;;  %v3498_v2 = vpop.f32.mrf.mxu3  ;;  %5395 = vmatpush.bf16.msrb.mxu1 %v10435_v10  ;;  %v3746_v16 = vsel %vm170_vm2, %v3742_v13, %v3745_v8  ;;  %v3739_v3 = vsel %vm170_vm2, %v3735_v20, %v3738_v9  ;;  %v3765_v13 = vrot.slane %v12832_v6, 2 }
 0x360   :  { %v3451_v51 = vpop.f32.mrf.mxu0  ;;  %v3485_v39 = vpop.f32.mrf.mxu2  ;;  %5377 = vmatpush.bf16.msrb.mxu0 %v10427_v25  ;;  %v3499_v41 = vadd.f32 %v3498_v2, %v3481_v4  ;;  %v3764_v25 = vsel %vm207_vm3, %v3762_v19, %v3763_v28 }
 0x362   :  { %5413 = vmatpush.bf16.msrb.mxu2 %v10443_v29  ;;  %v3769_v29 = vrot.slane %v12938_v52, 2  ;;  %v3767_v52 = vsel %vm207_vm3, %v3765_v13, %v3766_v0 }
 0x363   :  { %5396 = vmatpush.bf16.msrb.mxu1 %v10434_v50 }
 0x364   :  { %5378 = vmatpush.bf16.msrb.mxu0 %v10426_v54  ;;  %v3771_v54 = vrot.slane %v12845_v53, 2 }
 0x366   :  { %v3534_v40 = vpop.f32.mrf.mxu1  ;;  %5414 = vmatpush.bf16.msrb.mxu2 %v10442_v43 }
 0x367   :  { %v3500_v44 = vpop.f32.mrf.mxu3  ;;  %5397 = vmatpush.bf16.msrb.mxu1 %v10433_v26 }
 0x368   :  { %v3487_v24 = vpop.f32.mrf.mxu2  ;;  %v3516_v57 = vpop.f32.mrf.mxu0  ;;  %5379 = vmatpush.bf16.msrb.mxu0 %v10425_v7  ;;  %v3501_v35 = vadd.f32 %v3500_v44, %v3483_v36 }
 0x369   :  { %5326 = vmatmul.bf16.vlgmr.msra.gmra.mxu1 %v3746_v16  ;;  %v3517_v56 = vadd.f32 %v3516_v57, %v3499_v41 }
 0x36a   :  { %5415 = vmatpush.bf16.msrb.mxu2 %v10441_v1 }
 0x36b   :  { %5308 = vmatmul.bf16.vlgmr.msra.gmra.mxu0 %v3739_v3  ;;  %v3535_v30 = vadd.f32 %v3534_v40, %v3517_v56 }
 0x36c   :  { %5295 = vmatmul.bf16.gmra.mxu3 %v13247_v32  ;;  %v3486_v32 = vadd.f32 %v3485_v39, %v2396_v33  ;;  %v3770_v33 = vsel %vm207_vm3, %v3768_v60, %v3769_v29 }
 0x36d   :  { %5344 = vmatmul.bf16.vlgmr.msra.gmra.mxu2 %v3753_v42 }
 0x36e   :  { %v3536_v15 = vpop.f32.mrf.mxu1 }
 0x36f   :  { %v3503_v49 = vpop.f32.mrf.mxu3 }
 0x370   :  { %v3518_v21 = vpop.f32.mrf.mxu0  ;;  %v3552_v14 = vpop.f32.mrf.mxu2  ;;  %v3504_v5 = vadd.f32 %v3503_v49, %v3486_v32 }
 0x371   :  { %v3553_v27 = vadd.f32 %v3552_v14, %v3535_v30  ;;  %v3519_v45 = vadd.f32 %v3518_v21, %v3501_v35 }
 0x373   :  { %v3564_v38 = vmax.f32 %v3553_v27, 0.0  ;;  %v3537_v46 = vadd.f32 %v3536_v15, %v3519_v45 }
 0x375   :  { %3576 = vst [vmem:[#allocation2 + $0x18] sm:$0xff] %v3564_v38 }
 0x376   :  { %v3539_v18 = vpop.f32.mrf.mxu1 }
 0x377   :  { %v3505_v31 = vpop.f32.mrf.mxu3 }
 0x378   :  { %v3521_v11 = vpop.f32.mrf.mxu0  ;;  %v3554_v10 = vpop.f32.mrf.mxu2 }
 0x379   :  { %v3555_v2 = vadd.f32 %v3554_v10, %v3537_v46  ;;  %5331 = vmatmul.bf16.gmra.mxu1 %v3745_v8  ;;  %v3522_v63 = vadd.f32 %v3521_v11, %v3504_v5 }
 0x37b   :  { %v3568_v55 = vmax.f32 %v3555_v2, 0.0  ;;  %5313 = vmatmul.bf16.gmra.mxu0 %v3738_v9  ;;  %v3540_v61 = vadd.f32 %v3539_v18, %v3522_v63  ;;  %v3772_v9 = vrot.slane %v12961_v59, 2 }
 0x37c   :  { %5362 = vmatmul.bf16.vlgmr.msra.gmra.mxu3 %v3764_v25 }
 0x37d   :  { %3580 = vst [vmem:[#allocation2 + $0x38] sm:$0xff] %v3568_v55  ;;  %5349 = vmatmul.bf16.gmra.mxu2 %v3752_v58  ;;  %v3773_v6 = vsel %vm207_vm3, %v3771_v54, %v3772_v9 }
 0x37e   :  { %v3541_v12 = vpop.f32.mrf.mxu1 }
 0x37f   :  { %v5075_v51 = vpop.f32.mrf.mxu3 }
 0x380   :  { %v3523_v22 = vpop.f32.mrf.mxu0  ;;  %v3557_v39 = vpop.f32.mrf.mxu2  ;;  %v5076_v37 = vadd.f32 %v13348_v23, %v5075_v51 }
 0x381   :  { %v3558_v34 = vadd.f32 %v3557_v39, %v3540_v61 }
 0x383   :  { %v3572_v8 = vmax.f32 %v3558_v34, 0.0 }
 0x385   :  { %3584 = vst [vmem:[#allocation2 + $0x58] sm:$0xff] %v3572_v8 }
 0x386   :  { %v5111_v50 = vpop.f32.mrf.mxu1 }
 0x387   :  { %v13358_v20 = vpop.f32.mrf.mxu3 }
 0x388   :  { %v3559_v17 = vpop.f32.mrf.mxu2  ;;  %v5093_v43 = vpop.f32.mrf.mxu0 }
 0x389   :  { %v5094_v58 = vadd.f32 %v5093_v43, %v5076_v37  ;;  %5398 = vmatmul.bf16.vlgmr.msrb.gmra.mxu1 %v3770_v33 }
 0x38b   :  { %5380 = vmatmul.bf16.vlgmr.msrb.gmra.mxu0 %v3767_v52  ;;  %v5112_v48 = vadd.f32 %v5111_v50, %v5094_v58 }
 0x38c   :  { %5367 = vmatmul.bf16.gmra.mxu3 %v3763_v28 }
 0x38d   :  { %5416 = vmatmul.bf16.vlgmr.msrb.gmra.mxu2 %v3773_v6 }
 0x38e   :  { %v13362_v40 = vpop.f32.mrf.mxu1 }
 0x38f   :  { %v5080_v16 = vpop.f32.mrf.mxu3 }
 0x390   :  { %v13364_v53 = vpop.f32.mrf.mxu0  ;;  %v5129_v59 = vpop.f32.mrf.mxu2  ;;  %v5081_v26 = vadd.f32 %v13348_v23, %v5080_v16 }
 0x391   :  { %v5130_v62 = vadd.f32 %v5129_v59, %v5112_v48 }
 0x396   :  { %v5116_v4 = vpop.f32.mrf.mxu1 }
 0x397   :  { %v5082_v44 = vpop.f32.mrf.mxu3 }
 0x398   :  { %v5098_v7 = vpop.f32.mrf.mxu0  ;;  %v13367_v24 = vpop.f32.mrf.mxu2 }
 0x399   :  { %v5099_v57 = vadd.f32 %v5098_v7, %v5081_v26  ;;  %5403 = vmatmul.bf16.gmra.mxu1 %v3769_v29  ;;  %v5078_v26 = vadd.f32 %v13348_v23, %v13358_v20 }
 0x39b   :  { %5385 = vmatmul.bf16.gmra.mxu0 %v3766_v0  ;;  %v5117_v3 = vadd.f32 %v5116_v4, %v5099_v57  ;;  %v5096_v4 = vadd.f32 %v13364_v53, %v5078_v26 }
 0x39d   :  { %5421 = vmatmul.bf16.gmra.mxu2 %v3772_v9  ;;  %v5114_v7 = vadd.f32 %v13362_v40, %v5096_v4 }
 0x39e   :  { %v5118_v41 = vpop.f32.mrf.mxu1 }
 0x39f   :  { %v5147_v1 = vpop.f32.mrf.mxu3 }
 0x3a0   :  { %v5148_v42 = vadd.f32 %v5147_v1, %v5130_v62  ;;  %v5100_v56 = vpop.f32.mrf.mxu0  ;;  %v5134_v15 = vpop.f32.mrf.mxu2  ;;  %v5132_v1 = vadd.f32 %v13367_v24, %v5114_v7  ;;  %v10468_v24 = vld [vmem:[%s14571_s3 + $0x98] sm:$0xff] }
 0x3a1   :  { %v5135_v36 = vadd.f32 %v5134_v15, %v5117_v3  ;;  %5707 = vmatpush.bf16.msra.mxu1 %v10468_v24 }
 0x3a6   :  { %v5183_v49 = vpop.f32.mrf.mxu1 }
 0x3a7   :  { %v5149_v30 = vpop.f32.mrf.mxu3 }
 0x3a8   :  { %v5136_v21 = vpop.f32.mrf.mxu2  ;;  %v5165_v14 = vpop.f32.mrf.mxu0 }
 0x3a9   :  { %v5166_v35 = vadd.f32 %v5165_v14, %v5148_v42  ;;  %v5150_v42 = vadd.f32 %v5149_v30, %v5132_v1 }
 0x3ab   :  { %v5184_v27 = vadd.f32 %v5183_v49, %v5166_v35 }
 0x3ae   :  { %v5185_v45 = vpop.f32.mrf.mxu1 }
 0x3af   :  { %v5152_v38 = vpop.f32.mrf.mxu3 }
 0x3b0   :  { %v5153_v19 = vadd.f32 %v5152_v38, %v5135_v36  ;;  %v5167_v28 = vpop.f32.mrf.mxu0  ;;  %v5201_v18 = vpop.f32.mrf.mxu2 }
 0x3b1   :  { %v5202_v32 = vadd.f32 %v5201_v18, %v5184_v27  ;;  %v5168_v56 = vadd.f32 %v5167_v28, %v5150_v42 }
 0x3b3   :  { %v5186_v14 = vadd.f32 %v5185_v45, %v5168_v56  ;;  %v10467_v45 = vld [vmem:[%s14571_s3 + $0x90] sm:$0xff] }
 0x3b4   :  { %5708 = vmatpush.bf16.msra.mxu1 %v10467_v45 }
 0x3b6   :  { %v5188_v31 = vpop.f32.mrf.mxu1 }
 0x3b7   :  { %v5154_v46 = vpop.f32.mrf.mxu3 }
 0x3b8   :  { %v5170_v11 = vpop.f32.mrf.mxu0  ;;  %v5203_v10 = vpop.f32.mrf.mxu2 }
 0x3b9   :  { %v5171_v5 = vadd.f32 %v5170_v11, %v5153_v19  ;;  %v5204_v35 = vadd.f32 %v5203_v10, %v5186_v14 }
 0x3bb   :  { %v5189_v2 = vadd.f32 %v5188_v31, %v5171_v5 }
 0x3be   :  { %v5190_v25 = vpop.f32.mrf.mxu1 }
 0x3bf   :  { %v5219_v63 = vpop.f32.mrf.mxu3 }
 0x3c0   :  { %v5220_v55 = vadd.f32 %v5219_v63, %v5202_v32  ;;  %v5172_v12 = vpop.f32.mrf.mxu0  ;;  %v5206_v51 = vpop.f32.mrf.mxu2 }
 0x3c1   :  { %v5207_v61 = vadd.f32 %v5206_v51, %v5189_v2  ;;  %v10466_v51 = vld [vmem:[%s14571_s3 + $0x88] sm:$0xff] }
 0x3c2   :  { %5709 = vmatpush.bf16.msra.mxu1 %v10466_v51 }
 0x3c6   :  { %v5255_v22 = vpop.f32.mrf.mxu1 }
 0x3c7   :  { %v5221_v39 = vpop.f32.mrf.mxu3 }
 0x3c8   :  { %v5208_v34 = vpop.f32.mrf.mxu2  ;;  %v5237_v60 = vpop.f32.mrf.mxu0  ;;  %v5222_v27 = vadd.f32 %v5221_v39, %v5204_v35 }
 0x3c9   :  { %v5238_v29 = vadd.f32 %v5237_v60, %v5220_v55 }
 0x3cb   :  { %v5256_v8 = vadd.f32 %v5255_v22, %v5238_v29 }
 0x3ce   :  { %v5257_v13 = vpop.f32.mrf.mxu1 }
 0x3cf   :  { %v5224_v0 = vpop.f32.mrf.mxu3 }
 0x3d0   :  { %v5239_v37 = vpop.f32.mrf.mxu0  ;;  %v5273_v50 = vpop.f32.mrf.mxu2  ;;  %v5225_v32 = vadd.f32 %v5224_v0, %v5207_v61 }
 0x3d1   :  { %v5240_v20 = vadd.f32 %v5239_v37, %v5222_v27  ;;  %v5274_v53 = vadd.f32 %v5273_v50, %v5256_v8  ;;  %v10465_v8 = vld [vmem:[%s14571_s3 + $0x80] sm:$0xff]  ;;  %v10456_v27 = vld [vmem:[%s14571_s3 + $0x38] sm:$0xff] }
 0x3d2   :  { %5710 = vmatpush.bf16.msra.mxu1 %v10465_v8  ;;  %5667 = vmatpush.bf16.msrb.mxu3 %v10456_v27 }
 0x3d3   :  { %v5258_v30 = vadd.f32 %v5257_v13, %v5240_v20 }
 0x3d6   :  { %v5260_v33 = vpop.f32.mrf.mxu1 }
 0x3d7   :  { %v5226_v54 = vpop.f32.mrf.mxu3 }
 0x3d8   :  { %v5242_v9 = vpop.f32.mrf.mxu0  ;;  %v5275_v17 = vpop.f32.mrf.mxu2 }
 0x3d9   :  { %v5276_v31 = vadd.f32 %v5275_v17, %v5258_v30  ;;  %v5243_v11 = vadd.f32 %v5242_v9, %v5225_v32  ;;  %v10454_v32 = vld [vmem:[%s14571_s3 + $0x28] sm:$0xff] }
 0x3db   :  { %v5261_v61 = vadd.f32 %v5260_v33, %v5243_v11 }
 0x3de   :  { %v5262_v43 = vpop.f32.mrf.mxu1 }
 0x3df   :  { %v5291_v52 = vpop.f32.mrf.mxu3 }
 0x3e0   :  { %v5244_v58 = vpop.f32.mrf.mxu0  ;;  %v5278_v6 = vpop.f32.mrf.mxu2  ;;  %v5292_v18 = vadd.f32 %v5291_v52, %v5274_v53  ;;  %v10464_v53 = vld [vmem:[%s14571_s3 + $0x78] sm:$0xff] }
 0x3e1   :  { %v5279_v39 = vadd.f32 %v5278_v6, %v5261_v61  ;;  %5685 = vmatpush.bf16.msra.mxu0 %v10464_v53  ;;  %v9371_v53 = vld [vmem:[%s14573_s5 + $0xa0] sm:$0xf] }
 0x3e6   :  { %v5327_v48 = vpop.f32.mrf.mxu1 }
 0x3e7   :  { %v5293_v16 = vpop.f32.mrf.mxu3 }
 0x3e8   :  { %v5280_v59 = vpop.f32.mrf.mxu2  ;;  %v5309_v62 = vpop.f32.mrf.mxu0  ;;  %v5294_v10 = vadd.f32 %v5293_v16, %v5276_v31 }
 0x3e9   :  { %v5310_v28 = vadd.f32 %v5309_v62, %v5292_v18  ;;  %v10463_v18 = vld [vmem:[%s14571_s3 + $0x70] sm:$0xff] }
 0x3ea   :  { %5686 = vmatpush.bf16.msra.mxu0 %v10463_v18  ;;  %v10487_v18 = vld [vmem:[%s14573_s5 + $0x8c] sm:$0xf0] }
 0x3eb   :  { %v5328_v5 = vadd.f32 %v5327_v48, %v5310_v28 }
 0x3ee   :  { %v5329_v44 = vpop.f32.mrf.mxu1 }
 0x3ef   :  { %v5296_v57 = vpop.f32.mrf.mxu3 }
 0x3f0   :  { %v5311_v3 = vpop.f32.mrf.mxu0  ;;  %v5345_v41 = vpop.f32.mrf.mxu2  ;;  %v5297_v13 = vadd.f32 %v5296_v57, %v5279_v39  ;;  %v10452_v39 = vld [vmem:[%s14571_s3 + $0x18] sm:$0xff] }
 0x3f1   :  { %v5312_v55 = vadd.f32 %v5311_v3, %v5294_v10  ;;  %v5346_v12 = vadd.f32 %v5345_v41, %v5328_v5  ;;  %v10453_v10 = vld [vmem:[%s14571_s3 + $0x20] sm:$0xff] }
 0x3f3   :  { %v5330_v34 = vadd.f32 %v5329_v44, %v5312_v55 }
 0x3f6   :  { %v5332_v15 = vpop.f32.mrf.mxu1 }
 0x3f7   :  { %v5298_v36 = vpop.f32.mrf.mxu3 }
 0x3f8   :  { %v5314_v49 = vpop.f32.mrf.mxu0  ;;  %v5347_v21 = vpop.f32.mrf.mxu2 }
 0x3f9   :  { %v5348_v0 = vadd.f32 %v5347_v21, %v5330_v34  ;;  %v5315_v9 = vadd.f32 %v5314_v49, %v5297_v13  ;;  %v10460_v13 = vld [vmem:[%s14571_s3 + $0x58] sm:$0xff] }
 0x3fb   :  { %v5333_v58 = vadd.f32 %v5332_v15, %v5315_v9 }
 0x3fe   :  { %v5334_v23 = vpop.f32.mrf.mxu1 }
 0x3ff   :  { %v5363_v38 = vpop.f32.mrf.mxu3 }
 0x400   :  { %v5316_v19 = vpop.f32.mrf.mxu0  ;;  %v5350_v40 = vpop.f32.mrf.mxu2  ;;  %v5364_v22 = vadd.f32 %v5363_v38, %v5346_v12  ;;  %v10455_v38 = vld [vmem:[%s14571_s3 + $0x30] sm:$0xff] }
 0x401   :  { %v5351_v48 = vadd.f32 %v5350_v40, %v5333_v58  ;;  %5668 = vmatpush.bf16.msrb.mxu3 %v10455_v38  ;;  %v10491_v38 = vld [vmem:[%s14573_s5 + $0xac] sm:$0xf0] }
 0x405   :  { %5669 = vmatpush.bf16.msrb.mxu3 %v10454_v32 }
 0x406   :  { %v5399_v46 = vpop.f32.mrf.mxu1 }
 0x407   :  { %v5365_v2 = vpop.f32.mrf.mxu3 }
 0x408   :  { %v5352_v25 = vpop.f32.mrf.mxu2  ;;  %v5381_v63 = vpop.f32.mrf.mxu0  ;;  %v5366_v17 = vadd.f32 %v5365_v2, %v5348_v0  ;;  %v10461_v2 = vld [vmem:[%s14571_s3 + $0x60] sm:$0xff] }
 0x409   :  { %v5382_v60 = vadd.f32 %v5381_v63, %v5364_v22  ;;  %5670 = vmatpush.bf16.msrb.mxu3 %v10453_v10  ;;  %v10563_v10 = vld [vmem:[%s14573_s5 + $0x2ec] sm:$0xf0] }
 0x40b   :  { %v5400_v43 = vadd.f32 %v5399_v46, %v5382_v60  ;;  %v10462_v46 = vld [vmem:[%s14571_s3 + $0x68] sm:$0xff] }
 0x40c   :  { %5687 = vmatpush.bf16.msra.mxu0 %v10462_v46  ;;  %v10479_v46 = vld [vmem:[%s14573_s5 + $0x4c] sm:$0xf0] }
 0x40d   :  { %5671 = vmatpush.bf16.msrb.mxu3 %v10452_v39  ;;  %v9787_v39 = vld [vmem:[%s14573_s5 + $0x3e0] sm:$0xf] }
 0x40e   :  { %v5401_v29 = vpop.f32.mrf.mxu1 }
 0x40f   :  { %v5368_v37 = vpop.f32.mrf.mxu3 }
 0x410   :  { %v5383_v50 = vpop.f32.mrf.mxu0  ;;  %v5417_v54 = vpop.f32.mrf.mxu2  ;;  %v5369_v44 = vadd.f32 %v5368_v37, %v5351_v48  ;;  %5688 = vmatpush.bf16.msra.mxu0 %v10461_v2  ;;  %v10458_v48 = vld [vmem:[%s14571_s3 + $0x48] sm:$0xff]  ;;  %v9531_v2 = vld [vmem:[%s14573_s5 + $0x1e0] sm:$0xf] }
 0x411   :  { %v5384_v33 = vadd.f32 %v5383_v50, %v5366_v17  ;;  %v5418_v52 = vadd.f32 %v5417_v54, %v5400_v43  ;;  %v10451_v54 = vld [vmem:[%s14571_s3 + $0x10] sm:$0xff] }
 0x412   :  { %v10459_v43 = vld [vmem:[%s14571_s3 + $0x50] sm:$0xff]  ;;  %5672 = vmatpush.bf16.msrb.mxu3 %v10451_v54 }
 0x413   :  { %v5426_v16 = vmax.f32 %v5418_v52, 0.0  ;;  %v5402_v59 = vadd.f32 %v5401_v29, %v5384_v33  ;;  %v10450_v33 = vld [vmem:[%s14571_s3 + $0x8] sm:$0xff] }
 0x414   :  { %5689 = vmatpush.bf16.msra.mxu0 %v10460_v13  ;;  %v10527_v13 = vld [vmem:[%s14573_s5 + $0x1cc] sm:$0xf0] }
 0x415   :  { %v5429_v57 = vpack.c.bf16 %v5426_v16, %v5426_v16  ;;  %v10457_v16 = vld [vmem:[%s14571_s3 + $0x40] sm:$0xff] }
 0x416   :  { %v5404_v6 = vpop.f32.mrf.mxu1  ;;  %5673 = vmatpush.bf16.msrb.mxu3 %v10450_v33 }
 0x417   :  { %v5370_v62 = vpop.f32.mrf.mxu3  ;;  %v5435_v56 = vunpack.c.l.b16 %v5429_v57 }
 0x418   :  { %v5386_v26 = vpop.f32.mrf.mxu0  ;;  %v5419_v4 = vpop.f32.mrf.mxu2  ;;  %5690 = vmatpush.bf16.msra.mxu0 %v10459_v43  ;;  %v9771_v43 = vld [vmem:[%s14573_s5 + $0x3c0] sm:$0xf] }
 0x419   :  { %v5420_v7 = vadd.f32 %v5419_v4, %v5402_v59  ;;  %v5387_v3 = vadd.f32 %v5386_v26, %v5369_v44 }
 0x41b   :  { %v5427_v41 = vmax.f32 %v5420_v7, 0.0  ;;  %v5405_v49 = vadd.f32 %v5404_v6, %v5387_v3  ;;  %v10449_v6 = vld [vmem:[%s14571_s3] sm:$0xff] }
 0x41c   :  { %5674 = vmatpush.bf16.msrb.mxu3 %v10449_v6  ;;  %5691 = vmatpush.bf16.msra.mxu0 %v10458_v48  ;;  %v9499_v6 = vld [vmem:[%s14573_s5 + $0x1a0] sm:$0xf]  ;;  %v10523_v48 = vld [vmem:[%s14573_s5 + $0x1ac] sm:$0xf0] }
 0x41d   :  { %v5430_v1 = vpack.c.bf16 %v5427_v41, %v5427_v41 }
 0x41e   :  { %v5406_v42 = vpop.f32.mrf.mxu1 }
 0x41f   :  { %v5436_v36 = vunpack.c.l.b16 %v5430_v1  ;;  %v9403_v1 = vld [vmem:[%s14573_s5 + $0xe0] sm:$0xf]  ;;  %v10499_v42 = vld [vmem:[%s14573_s5 + $0xec] sm:$0xf0] }
 0x420   :  { %v5388_v21 = vpop.f32.mrf.mxu0  ;;  %v5422_v14 = vpop.f32.mrf.mxu2  ;;  %5692 = vmatpush.bf16.msra.mxu0 %v10457_v16  ;;  %v9500_v16 = vor.u32 %v10523_v48, %v9499_v6  ;;  %v9547_v6 = vld [vmem:[%s14573_s5 + $0x200] sm:$0xf]  ;;  %v10535_v48 = vld [vmem:[%s14573_s5 + $0x20c] sm:$0xf0] }
 0x421   :  { %v5438_v15 = vpack.c.b16 %v5436_v36, %v5435_v56  ;;  %v5423_v35 = vadd.f32 %v5422_v14, %v5405_v49  ;;  %v9387_v56 = vld [vmem:[%s14573_s5 + $0xc0] sm:$0xf]  ;;  %v9404_v21 = vor.u32 %v10499_v42, %v9403_v1  ;;  %v10495_v14 = vld [vmem:[%s14573_s5 + $0xcc] sm:$0xf0] }
 0x422   :  { %v9483_v1 = vld [vmem:[%s14573_s5 + $0x180] sm:$0xf]  ;;  %v10519_v42 = vld [vmem:[%s14573_s5 + $0x18c] sm:$0xf0] }
 0x423   :  { %v5440_v23 = vrot.slane %v5438_v15, 7  ;;  %v5428_v20 = vmax.f32 %v5423_v35, 0.0  ;;  %6750 = vmatpush.bf16.msra.mxu2 %v9404_v21  ;;  %v9388_v15 = vor.u32 %v10495_v14, %v9387_v56  ;;  %v13587_v56 = vld [vmem:[%s14572_s4] ss:$0 sm:$0xff]  ;;  %v10547_v21 = vld [vmem:[%s14573_s5 + $0x26c] sm:$0xf0] }
 0x424   :  { %v9739_v14 = vld [vmem:[%s14573_s5 + $0x380] sm:$0xf]  ;;  %s10682_s4 = smov 32  }
 0x425   :  { %v13396_v19 = vsel %vm1886_vm4, 0, %v5440_v23  ;;  %v5431_v40 = vpack.c.bf16 %v5428_v20, %v5428_v20 }
 0x426   :  { %v5449_v28 = vshll.u32 %v13396_v19, 16  ;;  %v5447_v63 = vshrl.u32 %v13396_v19, 16  ;;  %v5480_v55 = vrot.slane %v13396_v19, 2  ;;  %v5466_v4 = vrot.slane %v13396_v19, 1 }
 0x427   :  { %v5437_v24 = vunpack.c.l.b16 %v5431_v40  ;;  %6751 = vmatpush.bf16.msra.mxu2 %v9388_v15  ;;  %v9355_v40 = vld [vmem:[%s14573_s5 + $0x80] sm:$0xf] }
 0x428   :  { %v5424_v30 = vpop.f32.mrf.mxu2  ;;  %v5451_v11 = vrot.slane %v5449_v28, 1  ;;  %v5469_v9 = vrot.slane %v5447_v63, 1  ;;  %v5470_v17 = vrot.slane %v5449_v28, 2  ;;  %v10483_v28 = vld [vmem:[%s14573_s5 + $0x6c] sm:$0xf0] }
 0x429   :  { %v5439_v31 = vpack.c.b16 %v5437_v24, %v5437_v24  ;;  %v9356_v24 = vor.u32 %v10487_v18, %v9355_v40  ;;  %v9339_v30 = vld [vmem:[%s14573_s5 + $0x60] sm:$0xf] }
 0x42a   :  { %v5452_v22 = vor.u32 %v5451_v11, %v5447_v63  ;;  %v5471_v52 = vor.u32 %v5470_v17, %v5469_v9  ;;  %v9340_v32 = vor.u32 %v10483_v28, %v9339_v30  ;;  %v9659_v11 = vld [vmem:[%s14573_s5 + $0x2e0] sm:$0xf]  ;;  %v10555_v17 = vld [vmem:[%s14573_s5 + $0x2ac] sm:$0xf0] }
 0x42b   :  { %v5441_v45 = vrot.slane %v5439_v31, 7  ;;  %v9323_v31 = vld [vmem:[%s14573_s5 + $0x40] sm:$0xf]  ;;  %v10515_v30 = vld [vmem:[%s14573_s5 + $0x16c] sm:$0xf0] }
 0x42c   :  { %v9307_v63 = vld [vmem:[%s14573_s5 + $0x20] sm:$0xf] }
 0x42d   :  { %v5442_v5 = vsel %vm1886_vm4, %v5440_v23, %v5441_v45  ;;  %v9324_v45 = vor.u32 %v10479_v46, %v9323_v31  ;;  %v9627_v9 = vld [vmem:[%s14573_s5 + $0x2a0] sm:$0xf] }
 0x42e   :  { %v5446_v25 = vsel %vm1894_vm5, %v5442_v5, 0  ;;  %v9660_v5 = vor.u32 %v10563_v10, %v9659_v11  ;;  %v9628_v33 = vor.u32 %v10555_v17, %v9627_v9  ;;  %v9579_v46 = vld [vmem:[%s14573_s5 + $0x240] sm:$0xf]  ;;  %v10507_v9 = vld [vmem:[%s14573_s5 + $0x12c] sm:$0xf0] }
 0x42f   :  { %v5481_v12 = vrot.slane %v5446_v25, 2  ;;  %v5453_v51 = vshll.u32 %v5446_v25, 16  ;;  %v5457_v61 = vshrl.u32 %v5446_v25, 16  ;;  %v5467_v26 = vrot.slane %v5446_v25, 1  ;;  %v9723_v11 = vld [vmem:[%s14573_s5 + $0x360] sm:$0xf] }
 0x430   :  { %6786 = vmatpush.bf16.msrb.mxu0 %v9660_v5 }
 0x431   :  { %v5482_v34 = vsel %vm207_vm3, %v5480_v55, %v5481_v12  ;;  %v5455_v60 = vrot.slane %v5453_v51, 1  ;;  %v5472_v29 = vrot.slane %v5457_v61, 1  ;;  %v5473_v8 = vrot.slane %v5453_v51, 2 }
 0x432   :  { %9287 = vmatmul.msk.bf16.vlgmr.msra.gmra.mxu1 %vm1933_vm6, %v5482_v34  ;;  %v5468_v44 = vsel %vm149_vm1, %v5466_v4, %v5467_v26 }
 0x433   :  { %v5456_v0 = vsel %vm80_vm0, %v5452_v22, %v5455_v60  ;;  %v5474_v37 = vor.u32 %v5473_v8, %v5472_v29  ;;  %v5459_v50 = vor.u32 %v5457_v61, %v5455_v60  ;;  %v9643_v61 = vld [vmem:[%s14573_s5 + $0x2c0] sm:$0xf]  ;;  %v10559_v22 = vld [vmem:[%s14573_s5 + $0x2cc] sm:$0xf0] }
 0x434   :  { %5460 = vrot.lane.b32.xlu2 %v5456_v0, %s10679_s30  ;;  %v9644_v34 = vor.u32 %v10559_v22, %v9643_v61  ;;  %v10595_v60 = vld [vmem:[%s14573_s5 + $0x3ec] sm:$0xf0]  ;;  %v9515_v8 = vld [vmem:[%s14573_s5 + $0x1c0] sm:$0xf] }
 0x435   :  { %5478 = vrot.lane.b32.xlu1 %v5474_v37, %s10679_s30  ;;  %5462 = vrot.lane.b32.xlu0 %v5459_v50, %s10679_s30  ;;  %v5475_v58 = vsel %vm170_vm2, %v5471_v52, %v5474_v37  ;;  %v9788_v29 = vor.u32 %v10595_v60, %v9787_v39  ;;  %v9291_v0 = vld [vmem:[%s14573_s5] sm:$0xf]  ;;  %v9516_v37 = vor.u32 %v10527_v13, %v9515_v8  ;;  %v10471_v50 = vld [vmem:[%s14573_s5 + $0xc] sm:$0xf0] }
 0x436   :  { %6787 = vmatpush.bf16.msrb.mxu0 %v9644_v34  ;;  %v9292_v54 = vor.u32 %v10471_v50, %v9291_v0  ;;  %v10591_v52 = vld [vmem:[%s14573_s5 + $0x3cc] sm:$0xf0]  ;;  %v9563_v34 = vld [vmem:[%s14573_s5 + $0x220] sm:$0xf] }
 0x437   :  { %6804 = vmatpush.bf16.msrb.mxu1 %v9788_v29  ;;  %v10511_v61 = vld [vmem:[%s14573_s5 + $0x14c] sm:$0xf0]  ;;  %v9707_v29 = vld [vmem:[%s14573_s5 + $0x340] sm:$0xf] }
 0x438   :  { %v10539_v60 = vld [vmem:[%s14573_s5 + $0x22c] sm:$0xf0]  ;;  %v9867_v13 = vld [vmem:[%s14573_s5 + $0x480] sm:$0xf] }
 0x439   :  { %v9564_v8 = vor.u32 %v10539_v60, %v9563_v34  ;;  %v10615_v50 = vld [vmem:[%s14573_s5 + $0x48c] sm:$0xf0] }
 0x43a   :  { %6788 = vmatpush.bf16.msrb.mxu0 %v9628_v33  ;;  %v9868_v33 = vor.u32 %v10615_v50, %v9867_v13  ;;  %v10599_v60 = vld [vmem:[%s14573_s5 + $0x40c] sm:$0xf0]  ;;  %v9645_v13 = vld [vmem:[%s14573_s5 + $0x2d0] sm:$0xf0] }
 0x43c   :  { %5476 = vrot.lane.b32.xlu2 %v5475_v58, %s10679_s30  ;;  %v9772_v58 = vor.u32 %v10591_v52, %v9771_v43 }
 0x43e   :  { %6805 = vmatpush.bf16.msrb.mxu1 %v9772_v58 }
 0x442   :  { %9288 = vmatmul.msk.bf16.gmra.mxu1 %vm1933_vm6, %v5481_v12  ;;  %v10475_v12 = vld [vmem:[%s14573_s5 + $0x2c] sm:$0xf0] }
 0x443   :  { %v9308_v51 = vor.u32 %v10475_v12, %v9307_v63  ;;  %v10619_v63 = vld [vmem:[%s14573_s5 + $0x4ac] sm:$0xf0] }
 0x48e   :  { %v5461_v59 = vpop.permute.xlu2 %5460 }
 0x48f   :  { %v5484_v62 = vsel %vm1933_vm6, %v13396_v19, %v5461_v59  ;;  %v9372_v19 = vor.u32 %v10491_v38, %v9371_v53  ;;  %v9611_v59 = vld [vmem:[%s14573_s5 + $0x280] sm:$0xf]  ;;  %v10623_v38 = vld [vmem:[%s14573_s5 + $0x4cc] sm:$0xf0] }
 0x490   :  { %5675 = vmatmul.bf16.vlgmr.msrb.gmra.mxu3 %v5484_v62  ;;  %v10551_v62 = vld [vmem:[%s14573_s5 + $0x28c] sm:$0xf0]  ;;  %v9899_v53 = vld [vmem:[%s14573_s5 + $0x4c0] sm:$0xf] }
 0x491   :  { %6752 = vmatpush.bf16.msra.mxu2 %v9372_v19  ;;  %v9612_v4 = vor.u32 %v10551_v62, %v9611_v59  ;;  %v9900_v18 = vor.u32 %v10623_v38, %v9899_v53  ;;  %v9548_v62 = vor.u32 %v10535_v48, %v9547_v6  ;;  %v10529_v53 = vld [vmem:[%s14573_s5 + $0x1e4] sm:$0xf]  ;;  %v9485_v48 = vld [vmem:[%s14573_s5 + $0x190] sm:$0xf0] }
 0x493   :  { %6789 = vmatpush.bf16.msrb.mxu0 %v9612_v4  ;;  %v9851_v4 = vld [vmem:[%s14573_s5 + $0x460] sm:$0xf] }
 0x495   :  { %6753 = vmatpush.bf16.msra.mxu2 %v9356_v24  ;;  %v9467_v24 = vld [vmem:[%s14573_s5 + $0x160] sm:$0xf] }
 0x496   :  { %v5477_v7 = vpop.permute.xlu2 %5476 }
 0x497   :  { %v5491_v57 = vsel %vm1933_vm6, %v5468_v44, %v5477_v7  ;;  %v10587_v44 = vld [vmem:[%s14573_s5 + $0x3ac] sm:$0xf0]  ;;  %v9915_v7 = vld [vmem:[%s14573_s5 + $0x4e0] sm:$0xf] }
 0x498   :  { %5693 = vmatmul.bf16.vlgmr.msra.gmra.mxu0 %v5491_v57  ;;  %v10627_v57 = vld [vmem:[%s14573_s5 + $0x4ec] sm:$0xf0] }
 0x499   :  { %6754 = vmatpush.bf16.msra.mxu2 %v9340_v32  ;;  %v9468_v32 = vor.u32 %v10515_v30, %v9467_v24 }
 0x49d   :  { %6755 = vmatpush.bf16.msra.mxu2 %v9324_v45  ;;  %v10543_v45 = vld [vmem:[%s14573_s5 + $0x24c] sm:$0xf0] }
 0x49e   :  { %v9580_v5 = vor.u32 %v10543_v45, %v9579_v46  ;;  %v10525_v46 = vld [vmem:[%s14573_s5 + $0x1c4] sm:$0xf] }
 0x4a1   :  { %6756 = vmatpush.bf16.msra.mxu2 %v9308_v51  ;;  %v9451_v51 = vld [vmem:[%s14573_s5 + $0x140] sm:$0xf] }
 0x4a2   :  { %v9452_v39 = vor.u32 %v10511_v61, %v9451_v51  ;;  %v10493_v51 = vld [vmem:[%s14573_s5 + $0xc4] sm:$0xf]  ;;  %v9389_v61 = vld [vmem:[%s14573_s5 + $0xd0] sm:$0xf0] }
 0x4a3   :  { %v9392_v34 = vor.u32 %v10493_v51, %v9389_v61  ;;  %v9325_v51 = vld [vmem:[%s14573_s5 + $0x50] sm:$0xf0]  ;;  %v10505_v61 = vld [vmem:[%s14573_s5 + $0x124] sm:$0xf] }
 0x4a5   :  { %6757 = vmatpush.bf16.msra.mxu2 %v9292_v54  ;;  %v9435_v54 = vld [vmem:[%s14573_s5 + $0x120] sm:$0xf] }
 0x4a6   :  { %v9436_v52 = vor.u32 %v10507_v9, %v9435_v54 }
 0x4a7   :  { %v5479_v3 = vpop.permute.xlu1 %5478  ;;  %v5463_v41 = vpop.permute.xlu0 %5462 }
 0x4a8   :  { %v5487_v36 = vsel %vm1933_vm6, %v5446_v25, %v5463_v41  ;;  %v5495_v49 = vsel %vm1933_vm6, %v5467_v26, %v5479_v3  ;;  %v10531_v25 = vld [vmem:[%s14573_s5 + $0x1ec] sm:$0xf0]  ;;  %v9755_v26 = vld [vmem:[%s14573_s5 + $0x3a0] sm:$0xf]  ;;  %v9916_v41 = vor.u32 %v10627_v57, %v9915_v7 }
 0x4a9   :  { %5680 = vmatmul.bf16.gmra.mxu3 %v5487_v36  ;;  %5698 = vmatmul.bf16.gmra.mxu0 %v5495_v49  ;;  %v9532_v55 = vor.u32 %v10531_v25, %v9531_v2  ;;  %v9756_v3 = vor.u32 %v10587_v44, %v9755_v26  ;;  %v9484_v36 = vor.u32 %v10519_v42, %v9483_v1  ;;  %v9595_v49 = vld [vmem:[%s14573_s5 + $0x260] sm:$0xf]  ;;  %v10579_v2 = vld [vmem:[%s14573_s5 + $0x36c] sm:$0xf0] }
 0x4aa   :  { %6822 = vmatpush.bf16.msrb.mxu2 %v9916_v41  ;;  %v9596_v15 = vor.u32 %v10547_v21, %v9595_v49  ;;  %v9883_v25 = vld [vmem:[%s14573_s5 + $0x4a0] sm:$0xf]  ;;  %v10571_v26 = vld [vmem:[%s14573_s5 + $0x32c] sm:$0xf0] }
 0x4ab   :  { %6768 = vmatpush.bf16.msra.mxu3 %v9532_v55  ;;  %6806 = vmatpush.bf16.msrb.mxu1 %v9756_v3  ;;  %v9724_v55 = vor.u32 %v10579_v2, %v9723_v11  ;;  %v9884_v12 = vor.u32 %v10619_v63, %v9883_v25  ;;  %v10611_v44 = vld [vmem:[%s14573_s5 + $0x46c] sm:$0xf0]  ;;  %v9419_v3 = vld [vmem:[%s14573_s5 + $0x100] sm:$0xf]  ;;  %v9517_v2 = vld [vmem:[%s14573_s5 + $0x1d0] sm:$0xf0] }
 0x4ac   :  { %6790 = vmatpush.bf16.msrb.mxu0 %v9596_v15  ;;  %v9852_v57 = vor.u32 %v10611_v44, %v9851_v4  ;;  %v10503_v41 = vld [vmem:[%s14573_s5 + $0x10c] sm:$0xf0]  ;;  %v9835_v21 = vld [vmem:[%s14573_s5 + $0x440] sm:$0xf]  ;;  %v10561_v25 = vld [vmem:[%s14573_s5 + $0x2e4] sm:$0xf] }
 0x4ad   :  { %v9420_v42 = vor.u32 %v10503_v41, %v9419_v3  ;;  %v10567_v49 = vld [vmem:[%s14573_s5 + $0x30c] sm:$0xf0]  ;;  %v9661_v63 = vld [vmem:[%s14573_s5 + $0x2f0] sm:$0xf0]  ;;  %v10593_v44 = vld [vmem:[%s14573_s5 + $0x3e4] sm:$0xf] }
 0x4ae   :  { %6823 = vmatpush.bf16.msrb.mxu2 %v9900_v18  ;;  %v9405_v18 = vld [vmem:[%s14573_s5 + $0xf0] sm:$0xf0] }
 0x4af   :  { %v13470_v35 = vpop.f32.mrf.mxu1  ;;  %6769 = vmatpush.bf16.msra.mxu3 %v9516_v37 }
 0x4b0   :  { %6791 = vmatpush.bf16.msrb.mxu0 %v9580_v5 }
 0x4b2   :  { %6824 = vmatpush.bf16.msrb.mxu2 %v9884_v12  ;;  %v9664_v12 = vor.u32 %v10561_v25, %v9661_v63 }
 0x4b3   :  { %6770 = vmatpush.bf16.msra.mxu3 %v9500_v16  ;;  %v9691_v16 = vld [vmem:[%s14573_s5 + $0x320] sm:$0xf] }
 0x4b4   :  { %6792 = vmatpush.bf16.msrb.mxu0 %v9564_v8  ;;  %v9692_v7 = vor.u32 %v10571_v26, %v9691_v16  ;;  %v9501_v8 = vld [vmem:[%s14573_s5 + $0x1b0] sm:$0xf0]  ;;  %v10553_v16 = vld [vmem:[%s14573_s5 + $0x2a4] sm:$0xf] }
 0x4b6   :  { %6825 = vmatpush.bf16.msrb.mxu2 %v9868_v33 }
 0x4b7   :  { %v13472_v27 = vpop.f32.mrf.mxu1  ;;  %6771 = vmatpush.bf16.msra.mxu3 %v9484_v36  ;;  %v9675_v36 = vld [vmem:[%s14573_s5 + $0x300] sm:$0xf] }
 0x4b8   :  { %6793 = vmatpush.bf16.msrb.mxu0 %v9548_v62  ;;  %v9629_v62 = vld [vmem:[%s14573_s5 + $0x2b0] sm:$0xf0] }
 0x4b9   :  { %v9632_v4 = vor.u32 %v10553_v16, %v9629_v62  ;;  %v9421_v16 = vld [vmem:[%s14573_s5 + $0x110] sm:$0xf0] }
 0x4ba   :  { %6826 = vmatpush.bf16.msrb.mxu2 %v9852_v57  ;;  %v10485_v57 = vld [vmem:[%s14573_s5 + $0x84] sm:$0xf] }
 0x4bb   :  { %6772 = vmatpush.bf16.msra.mxu3 %v9468_v32  ;;  %v9819_v32 = vld [vmem:[%s14573_s5 + $0x420] sm:$0xf] }
 0x4bf   :  { %v13474_v23 = vpop.f32.mrf.mxu1  ;;  %6773 = vmatpush.bf16.msra.mxu3 %v9452_v39 }
 0x4c3   :  { %6774 = vmatpush.bf16.msra.mxu3 %v9436_v52 }
 0x4c7   :  { %v5719_v20 = vpop.f32.mrf.mxu1  ;;  %6775 = vmatpush.bf16.msra.mxu3 %v9420_v42  ;;  %v10513_v42 = vld [vmem:[%s14573_s5 + $0x164] sm:$0xf] }
 0x4c8   :  { %v10583_v20 = vld [vmem:[%s14573_s5 + $0x38c] sm:$0xf0] }
 0x4c9   :  { %v9740_v40 = vor.u32 %v10583_v20, %v9739_v14  ;;  %v10607_v20 = vld [vmem:[%s14573_s5 + $0x44c] sm:$0xf0] }
 0x4ca   :  { %v9836_v38 = vor.u32 %v10607_v20, %v9835_v21 }
 0x4cb   :  { %6807 = vmatpush.bf16.msrb.mxu1 %v9740_v40  ;;  %v10497_v40 = vld [vmem:[%s14573_s5 + $0xe4] sm:$0xf] }
 0x4cc   :  { %6827 = vmatpush.bf16.msrb.mxu2 %v9836_v38  ;;  %v10481_v38 = vld [vmem:[%s14573_s5 + $0x64] sm:$0xf] }
 0x4cf   :  { %6808 = vmatpush.bf16.msrb.mxu1 %v9724_v55  ;;  %v9520_v55 = vor.u32 %v10525_v46, %v9517_v2  ;;  %v9453_v46 = vld [vmem:[%s14573_s5 + $0x150] sm:$0xf0] }
 0x4d0   :  { %v9757_v2 = vld [vmem:[%s14573_s5 + $0x3b0] sm:$0xf0] }
 0x513   :  { %v5676_v19 = vpop.f32.mrf.mxu3 }
 0x514   :  { %v5677_v28 = vadd.f32 %v13587_v56, %v5676_v19  ;;  %v9533_v19 = vld [vmem:[%s14573_s5 + $0x1f0] sm:$0xf0] }
 0x515   :  { %v5694_v31 = vpop.f32.mrf.mxu0  ;;  %v9536_v30 = vor.u32 %v10529_v53, %v9533_v19  ;;  %v9773_v53 = vld [vmem:[%s14573_s5 + $0x3d0] sm:$0xf0] }
 0x516   :  { %v5695_v10 = vadd.f32 %v5694_v31, %v5677_v28  ;;  %v9408_v28 = vor.u32 %v10497_v40, %v9405_v18  ;;  %v10603_v31 = vld [vmem:[%s14573_s5 + $0x42c] sm:$0xf0] }
 0x517   :  { %6858 = vmatpush.bf16.msra.mxu0 %v9536_v30  ;;  %v9820_v5 = vor.u32 %v10603_v31, %v9819_v32  ;;  %v9341_v30 = vld [vmem:[%s14573_s5 + $0x70] sm:$0xf0]  ;;  %v10509_v31 = vld [vmem:[%s14573_s5 + $0x144] sm:$0xf] }
 0x518   :  { %v5713_v22 = vadd.f32 %v13470_v35, %v5695_v10  ;;  %v10575_v35 = vld [vmem:[%s14573_s5 + $0x34c] sm:$0xf0]  ;;  %6840 = vmatpush.bf16.msrb.mxu3 %v9408_v28  ;;  %v9344_v32 = vor.u32 %v10481_v38, %v9341_v30 }
 0x519   :  { %v9708_v37 = vor.u32 %v10575_v35, %v9707_v29  ;;  %v10521_v29 = vld [vmem:[%s14573_s5 + $0x1a4] sm:$0xf]  ;;  %6828 = vmatpush.bf16.msrb.mxu2 %v9820_v5 }
 0x51a   :  { %v5721_v17 = vmax.f32 %v5713_v22, 0.0  ;;  %v9803_v22 = vld [vmem:[%s14573_s5 + $0x400] sm:$0xf]  ;;  %v10557_v35 = vld [vmem:[%s14573_s5 + $0x2c4] sm:$0xf]  ;;  %v9504_v54 = vor.u32 %v10521_v29, %v9501_v8 }
 0x51b   :  { %v5678_v0 = vpop.f32.mrf.mxu3  ;;  %6809 = vmatpush.bf16.msrb.mxu1 %v9708_v37  ;;  %6859 = vmatpush.bf16.msra.mxu0 %v9520_v55  ;;  %v9804_v50 = vor.u32 %v10599_v60, %v9803_v22  ;;  %v9648_v9 = vor.u32 %v10557_v35, %v9645_v13  ;;  %v10585_v5 = vld [vmem:[%s14573_s5 + $0x3a4] sm:$0xf]  ;;  %v9581_v60 = vld [vmem:[%s14573_s5 + $0x250] sm:$0xf0] }
 0x51c   :  { %v5679_v43 = vadd.f32 %v13587_v56, %v5678_v0  ;;  %v5724_v14 = vpack.c.bf16 %v5721_v17, %v5721_v17  ;;  %v10489_v0 = vld [vmem:[%s14573_s5 + $0xa4] sm:$0xf]  ;;  %v9373_v17 = vld [vmem:[%s14573_s5 + $0xb0] sm:$0xf0]  ;;  %6841 = vmatpush.bf16.msrb.mxu3 %v9392_v34  ;;  %v9760_v55 = vor.u32 %v10585_v5, %v9757_v2 }
 0x51d   :  { %v5696_v58 = vpop.f32.mrf.mxu0  ;;  %6829 = vmatpush.bf16.msrb.mxu2 %v9804_v50  ;;  %v10541_v34 = vld [vmem:[%s14573_s5 + $0x244] sm:$0xf]  ;;  %v9741_v35 = vld [vmem:[%s14573_s5 + $0x390] sm:$0xf0] }
 0x51e   :  { %v5697_v59 = vadd.f32 %v5696_v58, %v5679_v43  ;;  %v5730_v45 = vunpack.c.l.b16 %v5724_v14  ;;  %v9376_v43 = vor.u32 %v10489_v0, %v9373_v17  ;;  %v10517_v58 = vld [vmem:[%s14573_s5 + $0x184] sm:$0xf]  ;;  %v9613_v14 = vld [vmem:[%s14573_s5 + $0x290] sm:$0xf0] }
 0x51f   :  { %6810 = vmatpush.bf16.msrb.mxu1 %v9692_v7  ;;  %6860 = vmatpush.bf16.msra.mxu0 %v9504_v54  ;;  %v9488_v26 = vor.u32 %v10517_v58, %v9485_v48  ;;  %v9789_v7 = vld [vmem:[%s14573_s5 + $0x3f0] sm:$0xf0]  ;;  %v10581_v8 = vld [vmem:[%s14573_s5 + $0x384] sm:$0xf] }
 0x520   :  { %v5715_v1 = vadd.f32 %v13472_v27, %v5697_v59  ;;  %v9676_v27 = vor.u32 %v10567_v49, %v9675_v36  ;;  %6842 = vmatpush.bf16.msrb.mxu3 %v9376_v43  ;;  %v9792_v41 = vor.u32 %v10593_v44, %v9789_v7  ;;  %v9469_v36 = vld [vmem:[%s14573_s5 + $0x170] sm:$0xf0]  ;;  %v10473_v13 = vld [vmem:[%s14573_s5 + $0x24] sm:$0xf]  ;;  %v9744_v17 = vor.u32 %v10581_v8, %v9741_v35 }
 0x521   :  { %v9472_v21 = vor.u32 %v10513_v42, %v9469_v36  ;;  %v9309_v50 = vld [vmem:[%s14573_s5 + $0x30] sm:$0xf0]  ;;  %v10501_v48 = vld [vmem:[%s14573_s5 + $0x104] sm:$0xf] }
 0x522   :  { %v5722_v15 = vmax.f32 %v5715_v1, 0.0  ;;  %v9357_v1 = vld [vmem:[%s14573_s5 + $0x90] sm:$0xf0]  ;;  %v9312_v58 = vor.u32 %v10473_v13, %v9309_v50  ;;  %v10577_v44 = vld [vmem:[%s14573_s5 + $0x364] sm:$0xf] }
 0x523   :  { %6811 = vmatpush.bf16.msrb.mxu1 %v9676_v27  ;;  %6861 = vmatpush.bf16.msra.mxu0 %v9488_v26  ;;  %v9360_v49 = vor.u32 %v10485_v57, %v9357_v1  ;;  %v9725_v1 = vld [vmem:[%s14573_s5 + $0x370] sm:$0xf0]  ;;  %v10565_v35 = vld [vmem:[%s14573_s5 + $0x304] sm:$0xf] }
 0x524   :  { %v5725_v24 = vpack.c.bf16 %v5722_v15, %v5722_v15  ;;  %v10589_v15 = vld [vmem:[%s14573_s5 + $0x3c4] sm:$0xf]  ;;  %v9917_v2 = vld [vmem:[%s14573_s5 + $0x4f0] sm:$0xf0] }
 0x525   :  { %6843 = vmatpush.bf16.msrb.mxu3 %v9360_v49  ;;  %v9728_v49 = vor.u32 %v10577_v44, %v9725_v1  ;;  %v9901_v8 = vld [vmem:[%s14573_s5 + $0x4d0] sm:$0xf0]  ;;  %v9363_v44 = vld [vmem:[%s14573_s5 + $0x88] sm:$0xf] }
 0x526   :  { %v5731_v11 = vunpack.c.l.b16 %v5725_v24  ;;  %v5699_v10 = vpop.f32.mrf.mxu0  ;;  %v9776_v24 = vor.u32 %v10589_v15, %v9773_v53  ;;  %v10533_v53 = vld [vmem:[%s14573_s5 + $0x204] sm:$0xf]  ;;  %v9677_v50 = vld [vmem:[%s14573_s5 + $0x310] sm:$0xf0]  ;;  %v9667_v1 = vld [vmem:[%s14573_s5 + $0x2e8] sm:$0xf] }
 0x527   :  { %6876 = vmatpush.bf16.msra.mxu1 %v9664_v12  ;;  %6862 = vmatpush.bf16.msra.mxu0 %v9472_v21  ;;  %v10477_v12 = vld [vmem:[%s14573_s5 + $0x44] sm:$0xf] }
 0x528   :  { %v5733_v39 = vpack.c.b16 %v5731_v11, %v5730_v45  ;;  %v10545_v45 = vld [vmem:[%s14573_s5 + $0x264] sm:$0xf]  ;;  %v9456_v11 = vor.u32 %v10509_v31, %v9453_v46  ;;  %v9328_v22 = vor.u32 %v10477_v12, %v9325_v51  ;;  %v10500_v31 = vld [vmem:[%s14573_s5 + $0xf4] sm:$0xf0]  ;;  %v9693_v12 = vld [vmem:[%s14573_s5 + $0x330] sm:$0xf0] }
 0x529   :  { %6844 = vmatpush.bf16.msrb.mxu3 %v9344_v32  ;;  %v10469_v21 = vld [vmem:[%s14573_s5 + $0x4] sm:$0xf]  ;;  %v9411_v32 = vld [vmem:[%s14573_s5 + $0xe8] sm:$0xf] }
 0x52a   :  { %v13758_v37 = vrot.slane %v5733_v39, 7  ;;  %v9437_v39 = vld [vmem:[%s14573_s5 + $0x130] sm:$0xf0]  ;;  %v10625_v46 = vld [vmem:[%s14573_s5 + $0x4e4] sm:$0xf]  ;;  %v9412_v5 = vor.u32 %v10500_v31, %v9411_v32 }
 0x52b   :  { %6877 = vmatpush.bf16.msra.mxu1 %v9648_v9  ;;  %6863 = vmatpush.bf16.msra.mxu0 %v9456_v11  ;;  %v9440_v0 = vor.u32 %v10505_v61, %v9437_v39  ;;  %v9584_v9 = vor.u32 %v10541_v34, %v9581_v60  ;;  %v9395_v51 = vld [vmem:[%s14573_s5 + $0xc8] sm:$0xf]  ;;  %v10496_v61 = vld [vmem:[%s14573_s5 + $0xd4] sm:$0xf0] }
 0x52c   :  { %v5681_v33 = vpop.f32.mrf.mxu3  ;;  %9930 = vmatmul.msk.bf16.vlgmr.msra.gmra.mxu2 %vm11812_vm7, %v13758_v37  ;;  %v10532_v39 = vld [vmem:[%s14573_s5 + $0x1f4] sm:$0xf0]  ;;  %v9396_v34 = vor.u32 %v10496_v61, %v9395_v51 }
 0x52d   :  { %v5682_v52 = vadd.f32 %v13587_v56, %v5681_v33  ;;  %v13778_v56 = vsel %vm1886_vm4, 0, %v13758_v37  ;;  %6894 = vmatpush.bf16.msra.mxu2 %v9792_v41  ;;  %6845 = vmatpush.bf16.msrb.mxu3 %v9328_v22  ;;  %v9424_v41 = vor.u32 %v10501_v48, %v9421_v16  ;;  %v9539_v22 = vld [vmem:[%s14573_s5 + $0x1e8] sm:$0xf]  ;;  %v9885_v48 = vld [vmem:[%s14573_s5 + $0x4b0] sm:$0xf0] }
 0x52e   :  { %v5701_v6 = vpop.f32.mrf.mxu0  ;;  %v5744_v40 = vshrl.u32 %v13778_v56, 16  ;;  %v5746_v18 = vshll.u32 %v13778_v56, 16  ;;  %v5761_v43 = vrot.slane %v13778_v56, 1  ;;  %v9540_v60 = vor.u32 %v10532_v39, %v9539_v22  ;;  %v10560_v32 = vld [vmem:[%s14573_s5 + $0x2d4] sm:$0xf0] }
 0x52f   :  { %v5700_v59 = vadd.f32 %v5699_v10, %v5682_v52  ;;  %6878 = vmatpush.bf16.msra.mxu1 %v9632_v4  ;;  %v9597_v10 = vld [vmem:[%s14573_s5 + $0x270] sm:$0xf0]  ;;  %6864 = vmatpush.bf16.msra.mxu0 %v9440_v0  ;;  %v5775_v16 = vrot.slane %v13778_v56, 2  ;;  %v9507_v56 = vld [vmem:[%s14573_s5 + $0x1a8] sm:$0xf] }
 0x530   :  { %v9600_v63 = vor.u32 %v10545_v45, %v9597_v10  ;;  %v5748_v33 = vrot.slane %v5746_v18, 1  ;;  %v5766_v52 = vrot.slane %v5744_v40, 1  ;;  %v5767_v26 = vrot.slane %v5746_v18, 2  ;;  %v9565_v4 = vld [vmem:[%s14573_s5 + $0x230] sm:$0xf0] }
 0x531   :  { %v5718_v3 = vadd.f32 %v13474_v23, %v5700_v59  ;;  %v10549_v23 = vld [vmem:[%s14573_s5 + $0x284] sm:$0xf]  ;;  %6895 = vmatpush.bf16.msra.mxu2 %v9776_v24  ;;  %6846 = vmatpush.bf16.msrb.mxu3 %v9312_v58  ;;  %v9709_v18 = vld [vmem:[%s14573_s5 + $0x350] sm:$0xf0] }
 0x532   :  { %v9616_v20 = vor.u32 %v10549_v23, %v9613_v14  ;;  %v10537_v59 = vld [vmem:[%s14573_s5 + $0x224] sm:$0xf]  ;;  %v5749_v42 = vor.u32 %v5748_v33, %v5744_v40  ;;  %v9293_v23 = vld [vmem:[%s14573_s5 + $0x10] sm:$0xf0] }
 0x533   :  { %v5723_v27 = vmax.f32 %v5718_v3, 0.0  ;;  %v9568_v36 = vor.u32 %v10537_v59, %v9565_v4  ;;  %v9296_v38 = vor.u32 %v10469_v21, %v9293_v23  ;;  %v10573_v40 = vld [vmem:[%s14573_s5 + $0x344] sm:$0xf]  ;;  %6865 = vmatpush.bf16.msra.mxu0 %v9424_v41  ;;  %v10524_v41 = vld [vmem:[%s14573_s5 + $0x1b4] sm:$0xf0] }
 0x534   :  { %v5683_v19 = vpop.f32.mrf.mxu3  ;;  %6879 = vmatpush.bf16.msra.mxu1 %v9616_v20  ;;  %v9712_v10 = vor.u32 %v10573_v40, %v9709_v18  ;;  %v10617_v33 = vld [vmem:[%s14573_s5 + $0x4a4] sm:$0xf]  ;;  %v10520_v18 = vld [vmem:[%s14573_s5 + $0x194] sm:$0xf0] }
 0x535   :  { %v5726_v28 = vpack.c.bf16 %v5723_v27, %v5723_v27  ;;  %6896 = vmatpush.bf16.msra.mxu2 %v9760_v55  ;;  %v9549_v19 = vld [vmem:[%s14573_s5 + $0x210] sm:$0xf0]  ;;  %6847 = vmatpush.bf16.msrb.mxu3 %v9296_v38  ;;  %v10569_v55 = vld [vmem:[%s14573_s5 + $0x324] sm:$0xf]  ;;  %v9888_v59 = vor.u32 %v10617_v33, %v9885_v48  ;;  %v10484_v38 = vld [vmem:[%s14573_s5 + $0x74] sm:$0xf0] }
 0x536   :  { %v9552_v11 = vor.u32 %v10533_v53, %v9549_v19  ;;  %v9696_v13 = vor.u32 %v10569_v55, %v9693_v12  ;;  %v10613_v23 = vld [vmem:[%s14573_s5 + $0x484] sm:$0xf]  ;;  %v9347_v53 = vld [vmem:[%s14573_s5 + $0x68] sm:$0xf]  ;;  %v10556_v12 = vld [vmem:[%s14573_s5 + $0x2b4] sm:$0xf0] }
 0x537   :  { %v5732_v25 = vunpack.c.l.b16 %v5726_v28  ;;  %v5768_v28 = vor.u32 %v5767_v26, %v5766_v52  ;;  %v9680_v26 = vor.u32 %v10565_v35, %v9677_v50  ;;  %v9491_v19 = vld [vmem:[%s14573_s5 + $0x188] sm:$0xf]  ;;  %v9348_v31 = vor.u32 %v10484_v38, %v9347_v53  ;;  %v10605_v39 = vld [vmem:[%s14573_s5 + $0x444] sm:$0xf]  ;;  %v10472_v48 = vld [vmem:[%s14573_s5 + $0x14] sm:$0xf0] }
 0x538   :  { %6880 = vmatpush.bf16.msra.mxu1 %v9600_v63  ;;  %v9920_v63 = vor.u32 %v10625_v46, %v9917_v2  ;;  %v9492_v46 = vor.u32 %v10520_v18, %v9491_v19  ;;  %v9475_v2 = vld [vmem:[%s14573_s5 + $0x168] sm:$0xf]  ;;  %v10628_v38 = vld [vmem:[%s14573_s5 + $0x4f4] sm:$0xf0] }
 0x539   :  { %v5734_v29 = vpack.c.b16 %v5732_v25, %v5732_v25  ;;  %6897 = vmatpush.bf16.msra.mxu2 %v9744_v17  ;;  %v9523_v17 = vld [vmem:[%s14573_s5 + $0x1c8] sm:$0xf] }
 0x53a   :  { %v9635_v55 = vld [vmem:[%s14573_s5 + $0x2a8] sm:$0xf] }
 0x53b   :  { %v5736_v54 = vrot.slane %v5734_v29, 7  ;;  %v10621_v29 = vld [vmem:[%s14573_s5 + $0x4c4] sm:$0xf]  ;;  %v9636_v22 = vor.u32 %v10556_v12, %v9635_v55  ;;  %v9459_v35 = vld [vmem:[%s14573_s5 + $0x148] sm:$0xf] }
 0x53c   :  { %6881 = vmatpush.bf16.msra.mxu1 %v9584_v9  ;;  %v9904_v0 = vor.u32 %v10621_v29, %v9901_v8  ;;  %v10492_v9 = vld [vmem:[%s14573_s5 + $0xb4] sm:$0xf0]  ;;  %v9619_v50 = vld [vmem:[%s14573_s5 + $0x288] sm:$0xf] }
 0x53d   :  { %v13873_v6 = vsel %vm1886_vm4, %v13758_v37, %v5736_v54  ;;  %6898 = vmatpush.bf16.msra.mxu2 %v9728_v49  ;;  %v9379_v54 = vld [vmem:[%s14573_s5 + $0xa8] sm:$0xf]  ;;  %v9508_v49 = vor.u32 %v10524_v41, %v9507_v56  ;;  %v10476_v8 = vld [vmem:[%s14573_s5 + $0x34] sm:$0xf0] }
 0x53e   :  { %v13886_v62 = vsel %vm1894_vm5, %v13873_v6, 0  ;;  %9931 = vmatmul.msk.bf16.gmra.mxu2 %vm1894_vm5, %v13873_v6  ;;  %v9380_v52 = vor.u32 %v10492_v9, %v9379_v54  ;;  %v10552_v54 = vld [vmem:[%s14573_s5 + $0x294] sm:$0xf0]  ;;  %v10601_v9 = vld [vmem:[%s14573_s5 + $0x424] sm:$0xf] }
 0x53f   :  { %v5754_v7 = vshrl.u32 %v13886_v62, 16  ;;  %v13898_v57 = vrot.slane %v13886_v62, 1  ;;  %v5750_v3 = vshll.u32 %v13886_v62, 16  ;;  %v13947_v45 = vrot.slane %v13886_v62, 2  ;;  %v10609_v62 = vld [vmem:[%s14573_s5 + $0x464] sm:$0xf] }
 0x540   :  { %6882 = vmatpush.bf16.msra.mxu1 %v9568_v36  ;;  %v9923_v53 = vld [vmem:[%s14573_s5 + $0x4e8] sm:$0xf]  ;;  %v10592_v12 = vld [vmem:[%s14573_s5 + $0x3d4] sm:$0xf0] }
 0x541   :  { %v5769_v14 = vrot.slane %v5754_v7, 1  ;;  %v13914_v15 = vsel %vm149_vm1, %v5761_v43, %v13898_v57  ;;  %v13916_v27 = vrot.slane %v5750_v3, 1  ;;  %v5770_v20 = vrot.slane %v5750_v3, 2  ;;  %6899 = vmatpush.bf16.msra.mxu2 %v9712_v10  ;;  %v10528_v43 = vld [vmem:[%s14573_s5 + $0x1d4] sm:$0xf0] }
 0x542   :  { %6794 = vmatmul.bf16.vlgmr.msrb.gmra.mxu0 %v13914_v15  ;;  %v9524_v58 = vor.u32 %v10528_v43, %v9523_v17  ;;  %v14009_v4 = vsel %vm207_vm3, %v5775_v16, %v13947_v45  ;;  %v10488_v3 = vld [vmem:[%s14573_s5 + $0x94] sm:$0xf0]  ;;  %v9331_v10 = vld [vmem:[%s14573_s5 + $0x48] sm:$0xf]  ;;  %v9620_v17 = vor.u32 %v10552_v54, %v9619_v50  ;;  %v9821_v43 = vld [vmem:[%s14573_s5 + $0x430] sm:$0xf0]  ;;  %v9924_v18 = vor.u32 %v10628_v38, %v9923_v53 }
 0x543   :  { %v13933_v24 = vsel %vm80_vm0, %v5749_v42, %v13916_v27  ;;  %v13935_v30 = vor.u32 %v5770_v20, %v5769_v14  ;;  %6930 = vmatpush.bf16.msrb.mxu0 %v9412_v5  ;;  %v10564_v42 = vld [vmem:[%s14573_s5 + $0x2f4] sm:$0xf0]  ;;  %v9364_v36 = vor.u32 %v10488_v3, %v9363_v44  ;;  %v9869_v14 = vld [vmem:[%s14573_s5 + $0x490] sm:$0xf0]  ;;  %v14049_v40 = vor.u32 %v5754_v7, %v13916_v27  ;;  %v9443_v16 = vld [vmem:[%s14573_s5 + $0x128] sm:$0xf] }
 0x544   :  { %6776 = vmatmul.bf16.vlgmr.msra.gmra.mxu3 %v13933_v24  ;;  %6883 = vmatpush.bf16.msra.mxu1 %v9552_v11  ;;  %v9668_v21 = vor.u32 %v10564_v42, %v9667_v1  ;;  %v9872_v20 = vor.u32 %v10613_v23, %v9869_v14  ;;  %v9853_v7 = vld [vmem:[%s14573_s5 + $0x470] sm:$0xf0]  ;;  %v10480_v5 = vld [vmem:[%s14573_s5 + $0x54] sm:$0xf0]  ;;  %v10597_v1 = vld [vmem:[%s14573_s5 + $0x404] sm:$0xf] }
 0x545   :  { %v13955_v25 = vsel %vm170_vm2, %v5768_v28, %v13935_v30  ;;  %6912 = vmatpush.bf16.msra.mxu3 %v9920_v63  ;;  %6900 = vmatpush.bf16.msra.mxu2 %v9696_v13  ;;  %v9651_v28 = vld [vmem:[%s14573_s5 + $0x2c8] sm:$0xf]  ;;  %v9856_v27 = vor.u32 %v10609_v62, %v9853_v7  ;;  %v10516_v63 = vld [vmem:[%s14573_s5 + $0x174] sm:$0xf0]  ;;  %v9332_v51 = vor.u32 %v10480_v5, %v9331_v10  ;;  %v9805_v42 = vld [vmem:[%s14573_s5 + $0x410] sm:$0xf0] }
 0x546   :  { %6812 = vmatmul.bf16.vlgmr.msrb.gmra.mxu1 %v13955_v25  ;;  %v9652_v11 = vor.u32 %v10560_v32, %v9651_v28  ;;  %v9476_v61 = vor.u32 %v10516_v63, %v9475_v2  ;;  %v10512_v13 = vld [vmem:[%s14573_s5 + $0x154] sm:$0xf0]  ;;  %v9587_v23 = vld [vmem:[%s14573_s5 + $0x248] sm:$0xf]  ;;  %v10498_v10 = vld [vmem:[%s14573_s5 + $0xec] sm:$0xf] }
 0x547   :  { %6931 = vmatpush.bf16.msrb.mxu0 %v9396_v34  ;;  %v9837_v34 = vld [vmem:[%s14573_s5 + $0x450] sm:$0xf0]  ;;  %v10548_v44 = vld [vmem:[%s14573_s5 + $0x274] sm:$0xf0]  ;;  %v9795_v28 = vld [vmem:[%s14573_s5 + $0x3e8] sm:$0xf] }
 0x548   :  { %6948 = vmatpush.bf16.msrb.mxu1 %v9540_v60  ;;  %v9315_v60 = vld [vmem:[%s14573_s5 + $0x28] sm:$0xf]  ;;  %v9840_v29 = vor.u32 %v10605_v39, %v9837_v34  ;;  %v10596_v32 = vld [vmem:[%s14573_s5 + $0x3f4] sm:$0xf0]  ;;  %v9413_v5 = vld [vmem:[%s14573_s5 + $0xf8] sm:$0xf0] }
 0x549   :  { %6913 = vmatpush.bf16.msra.mxu3 %v9904_v0  ;;  %6901 = vmatpush.bf16.msra.mxu2 %v9680_v26  ;;  %v9460_v0 = vor.u32 %v10512_v13, %v9459_v35  ;;  %v9316_v33 = vor.u32 %v10476_v8, %v9315_v60  ;;  %v9603_v26 = vld [vmem:[%s14573_s5 + $0x268] sm:$0xf]  ;;  %v9416_v63 = vor.u32 %v10498_v10, %v9413_v5  ;;  %v10620_v34 = vld [vmem:[%s14573_s5 + $0x4b4] sm:$0xf0]  ;;  %v9397_v8 = vld [vmem:[%s14573_s5 + $0xd8] sm:$0xf0] }
 0x54a   :  { %v9604_v41 = vor.u32 %v10548_v44, %v9603_v26  ;;  %v9907_v62 = vld [vmem:[%s14573_s5 + $0x4c8] sm:$0xf]  ;;  %v10588_v50 = vld [vmem:[%s14573_s5 + $0x3b4] sm:$0xf0] }
 0x54b   :  { %6932 = vmatpush.bf16.msrb.mxu0 %v9380_v52  ;;  %v9824_v52 = vor.u32 %v10601_v9, %v9821_v43  ;;  %v9779_v55 = vld [vmem:[%s14573_s5 + $0x3c8] sm:$0xf]  ;;  %v10490_v43 = vld [vmem:[%s14573_s5 + $0xac] sm:$0xf]  ;;  %v10584_v44 = vld [vmem:[%s14573_s5 + $0x394] sm:$0xf0] }
 0x54c   :  { %6949 = vmatpush.bf16.msrb.mxu1 %v9524_v58  ;;  %v9299_v58 = vld [vmem:[%s14573_s5 + $0x8] sm:$0xf]  ;;  %v10580_v53 = vld [vmem:[%s14573_s5 + $0x374] sm:$0xf0] }
 0x54d   :  { %6914 = vmatpush.bf16.msra.mxu3 %v9888_v59  ;;  %v10508_v59 = vld [vmem:[%s14573_s5 + $0x134] sm:$0xf0]  ;;  %v9300_v3 = vor.u32 %v10472_v48, %v9299_v58  ;;  %v9891_v39 = vld [vmem:[%s14573_s5 + $0x4a8] sm:$0xf]  ;;  %v9541_v58 = vld [vmem:[%s14573_s5 + $0x1f8] sm:$0xf0] }
 0x54e   :  { %6830 = vmatmul.bf16.vlgmr.msrb.gmra.mxu2 %v14009_v4  ;;  %v9444_v56 = vor.u32 %v10508_v59, %v9443_v16  ;;  %v9763_v35 = vld [vmem:[%s14573_s5 + $0x3a8] sm:$0xf]  ;;  %v9892_v13 = vor.u32 %v10620_v34, %v9891_v39  ;;  %v10576_v10 = vld [vmem:[%s14573_s5 + $0x354] sm:$0xf0] }
 0x54f   :  { %6966 = vmatpush.bf16.msrb.mxu2 %v9668_v21  ;;  %6933 = vmatpush.bf16.msrb.mxu0 %v9364_v36  ;;  %v9808_v36 = vor.u32 %v10597_v1, %v9805_v42  ;;  %v10504_v21 = vld [vmem:[%s14573_s5 + $0x114] sm:$0xf0]  ;;  %v9764_v54 = vor.u32 %v10588_v50, %v9763_v35  ;;  %v9875_v9 = vld [vmem:[%s14573_s5 + $0x488] sm:$0xf]  ;;  %v10486_v1 = vld [vmem:[%s14573_s5 + $0x8c] sm:$0xf] }
 0x550   :  { %6950 = vmatpush.bf16.msrb.mxu1 %v9508_v49  ;;  %v9427_v49 = vld [vmem:[%s14573_s5 + $0x108] sm:$0xf]  ;;  %v9365_v42 = vld [vmem:[%s14573_s5 + $0x98] sm:$0xf0] }
 0x551   :  { %6915 = vmatpush.bf16.msra.mxu3 %v9872_v20  ;;  %v9428_v14 = vor.u32 %v10504_v21, %v9427_v49  ;;  %v10544_v20 = vld [vmem:[%s14573_s5 + $0x254] sm:$0xf0]  ;;  %v9747_v26 = vld [vmem:[%s14573_s5 + $0x388] sm:$0xf]  ;;  %v9525_v49 = vld [vmem:[%s14573_s5 + $0x1d8] sm:$0xf0] }
 0x552   :  { %6799 = vmatmul.bf16.gmra.mxu0 %v13898_v57  ;;  %v9588_v19 = vor.u32 %v10544_v20, %v9587_v23  ;;  %v9368_v23 = vor.u32 %v10486_v1, %v9365_v42  ;;  %v9731_v20 = vld [vmem:[%s14573_s5 + $0x368] sm:$0xf]  ;;  %v9317_v50 = vld [vmem:[%s14573_s5 + $0x38] sm:$0xf0] }
 0x553   :  { %6967 = vmatpush.bf16.msrb.mxu2 %v9652_v11  ;;  %6934 = vmatpush.bf16.msrb.mxu0 %v9348_v31  ;;  %v9796_v31 = vor.u32 %v10596_v32, %v9795_v28  ;;  %v10540_v11 = vld [vmem:[%s14573_s5 + $0x234] sm:$0xf0]  ;;  %v9732_v38 = vor.u32 %v10580_v53, %v9731_v20  ;;  %v10482_v28 = vld [vmem:[%s14573_s5 + $0x6c] sm:$0xf]  ;;  %v9349_v32 = vld [vmem:[%s14573_s5 + $0x78] sm:$0xf0] }
 0x554   :  { %6781 = vmatmul.bf16.gmra.mxu3 %v14049_v40  ;;  %6951 = vmatpush.bf16.msrb.mxu1 %v9492_v46  ;;  %v9571_v46 = vld [vmem:[%s14573_s5 + $0x228] sm:$0xf]  ;;  %v10590_v20 = vld [vmem:[%s14573_s5 + $0x3cc] sm:$0xf] }
 0x555   :  { %6916 = vmatpush.bf16.msra.mxu3 %v9856_v27  ;;  %v9572_v7 = vor.u32 %v10540_v11, %v9571_v46  ;;  %v10624_v27 = vld [vmem:[%s14573_s5 + $0x4d4] sm:$0xf0]  ;;  %v9509_v46 = vld [vmem:[%s14573_s5 + $0x1b8] sm:$0xf0]  ;;  %v9827_v5 = vld [vmem:[%s14573_s5 + $0x428] sm:$0xf] }
 0x556   :  { %6817 = vmatmul.bf16.gmra.mxu1 %v13935_v30  ;;  %v9908_v2 = vor.u32 %v10624_v27, %v9907_v62  ;;  %v9352_v62 = vor.u32 %v10482_v28, %v9349_v32  ;;  %v9715_v27 = vld [vmem:[%s14573_s5 + $0x348] sm:$0xf] }
 0x557   :  { %6968 = vmatpush.bf16.msrb.mxu2 %v9636_v22  ;;  %6935 = vmatpush.bf16.msrb.mxu0 %v9332_v51  ;;  %v9555_v51 = vld [vmem:[%s14573_s5 + $0x208] sm:$0xf]  ;;  %v10536_v22 = vld [vmem:[%s14573_s5 + $0x214] sm:$0xf0] }
 0x558   :  { %6952 = vmatpush.bf16.msrb.mxu1 %v9476_v61  ;;  %v9780_v61 = vor.u32 %v10592_v12, %v9779_v55  ;;  %v9556_v60 = vor.u32 %v10536_v22, %v9555_v51  ;;  %v10478_v55 = vld [vmem:[%s14573_s5 + $0x4c] sm:$0xf]  ;;  %v9333_v12 = vld [vmem:[%s14573_s5 + $0x58] sm:$0xf0]  ;;  %v9699_v39 = vld [vmem:[%s14573_s5 + $0x328] sm:$0xf] }
 0x559   :  { %6917 = vmatpush.bf16.msra.mxu3 %v9840_v29  ;;  %v10494_v29 = vld [vmem:[%s14573_s5 + $0xcc] sm:$0xf]  ;;  %v9336_v51 = vor.u32 %v10478_v55, %v9333_v12  ;;  %v9493_v22 = vld [vmem:[%s14573_s5 + $0x198] sm:$0xf0]  ;;  %v9811_v35 = vld [vmem:[%s14573_s5 + $0x408] sm:$0xf] }
 0x55a   :  { %v10554_v55 = vld [vmem:[%s14573_s5 + $0x2ac] sm:$0xf] }
 0x55b   :  { %6969 = vmatpush.bf16.msrb.mxu2 %v9620_v17  ;;  %6936 = vmatpush.bf16.msrb.mxu0 %v9316_v33  ;;  %v10616_v17 = vld [vmem:[%s14573_s5 + $0x494] sm:$0xf0]  ;;  %v9381_v33 = vld [vmem:[%s14573_s5 + $0xb8] sm:$0xf0] }
 0x55c   :  { %6953 = vmatpush.bf16.msrb.mxu1 %v9460_v0  ;;  %v9400_v0 = vor.u32 %v10494_v29, %v9397_v8  ;;  %v9876_v48 = vor.u32 %v10616_v17, %v9875_v9  ;;  %v9384_v16 = vor.u32 %v10490_v43, %v9381_v33  ;;  %v9477_v9 = vld [vmem:[%s14573_s5 + $0x178] sm:$0xf0] }
 0x55d   :  { %6918 = vmatpush.bf16.msra.mxu3 %v9824_v52  ;;  %v10530_v52 = vld [vmem:[%s14573_s5 + $0x1ec] sm:$0xf] }
 0x55e   :  { %6835 = vmatmul.bf16.gmra.mxu2 %v13947_v45  ;;  %v9544_v59 = vor.u32 %v10530_v52, %v9541_v58  ;;  %v9683_v52 = vld [vmem:[%s14573_s5 + $0x308] sm:$0xf]  ;;  %v10568_v58 = vld [vmem:[%s14573_s5 + $0x314] sm:$0xf0] }
 0x55f   :  { %6970 = vmatpush.bf16.msrb.mxu2 %v9604_v41  ;;  %6937 = vmatpush.bf16.msrb.mxu0 %v9300_v3  ;;  %v9748_v3 = vor.u32 %v10584_v44, %v9747_v26  ;;  %v10612_v41 = vld [vmem:[%s14573_s5 + $0x474] sm:$0xf0]  ;;  %v10510_v26 = vld [vmem:[%s14573_s5 + $0x14c] sm:$0xf] }
 0x560   :  { %6954 = vmatpush.bf16.msrb.mxu1 %v9444_v56  ;;  %v9859_v56 = vld [vmem:[%s14573_s5 + $0x468] sm:$0xf] }
 0x561   :  { %6919 = vmatpush.bf16.msra.mxu3 %v9808_v36  ;;  %v10526_v36 = vld [vmem:[%s14573_s5 + $0x1cc] sm:$0xf]  ;;  %v9860_v21 = vor.u32 %v10612_v41, %v9859_v56  ;;  %v9797_v41 = vld [vmem:[%s14573_s5 + $0x3f8] sm:$0xf0] }
 0x562   :  { %6866 = vmatmul.bf16.vlgmr.msra.gmra.mxu0 %v13933_v24  ;;  %v10594_v56 = vld [vmem:[%s14573_s5 + $0x3ec] sm:$0xf] }
 0x563   :  { %6971 = vmatpush.bf16.msrb.mxu2 %v9588_v19  ;;  %7002 = vmatpush.bf16.msra.mxu0 %v9924_v18  ;;  %v9843_v19 = vld [vmem:[%s14573_s5 + $0x448] sm:$0xf]  ;;  %v10608_v18 = vld [vmem:[%s14573_s5 + $0x454] sm:$0xf0]  ;;  %v9800_v42 = vor.u32 %v10594_v56, %v9797_v41 }
 0x564   :  { %9933 = vmatmul.msk.bf16.vlgmr.msrb.gmra.mxu3 %vm11812_vm7, %v13758_v37  ;;  %6955 = vmatpush.bf16.msrb.mxu1 %v9428_v14  ;;  %v9528_v14 = vor.u32 %v10526_v36, %v9525_v49  ;;  %v9844_v11 = vor.u32 %v10608_v18, %v9843_v19  ;;  %v10562_v36 = vld [vmem:[%s14573_s5 + $0x2ec] sm:$0xf]  ;;  %v9669_v49 = vld [vmem:[%s14573_s5 + $0x2f8] sm:$0xf0] }
 0x565   :  { %6984 = vmatpush.bf16.msrb.mxu3 %v9796_v31  ;;  %v10522_v31 = vld [vmem:[%s14573_s5 + $0x1ac] sm:$0xf]  ;;  %v9925_v18 = vld [vmem:[%s14573_s5 + $0x4f8] sm:$0xf0] }
 0x566   :  { %6884 = vmatmul.bf16.vlgmr.msra.gmra.mxu1 %v13914_v15  ;;  %v10626_v19 = vld [vmem:[%s14573_s5 + $0x4ec] sm:$0xf] }
 0x567   :  { %6972 = vmatpush.bf16.msrb.mxu2 %v9572_v7  ;;  %7003 = vmatpush.bf16.msra.mxu0 %v9908_v2  ;;  %v9512_v7 = vor.u32 %v10522_v31, %v9509_v46  ;;  %v9716_v2 = vor.u32 %v10576_v10, %v9715_v27  ;;  %v14391_v32 = vor.u32 %v10626_v19, %v9925_v18  ;;  %v10558_v31 = vld [vmem:[%s14573_s5 + $0x2cc] sm:$0xf]  ;;  %v9653_v46 = vld [vmem:[%s14573_s5 + $0x2d8] sm:$0xf0] }
 0x568   :  { %7020 = vmatpush.bf16.msra.mxu1 %v9416_v63  ;;  %v10604_v63 = vld [vmem:[%s14573_s5 + $0x434] sm:$0xf0]  ;;  %v10586_v27 = vld [vmem:[%s14573_s5 + $0x3ac] sm:$0xf]  ;;  %v9765_v10 = vld [vmem:[%s14573_s5 + $0x3b8] sm:$0xf0] }
 0x569   :  { %6985 = vmatpush.bf16.msrb.mxu3 %v9780_v61  ;;  %v10518_v61 = vld [vmem:[%s14573_s5 + $0x18c] sm:$0xf]  ;;  %v9828_v29 = vor.u32 %v10604_v63, %v9827_v5  ;;  %v9909_v63 = vld [vmem:[%s14573_s5 + $0x4d8] sm:$0xf0]  ;;  %v9768_v12 = vor.u32 %v10586_v27, %v9765_v10 }
 0x56a   :  { %v9496_v34 = vor.u32 %v10518_v61, %v9493_v22  ;;  %v9637_v61 = vld [vmem:[%s14573_s5 + $0x2b8] sm:$0xf0]  ;;  %v10534_v27 = vld [vmem:[%s14573_s5 + $0x20c] sm:$0xf] }
 0x56b   :  { %6973 = vmatpush.bf16.msrb.mxu2 %v9556_v60  ;;  %7004 = vmatpush.bf16.msra.mxu0 %v9892_v13  ;;  %v10572_v60 = vld [vmem:[%s14573_s5 + $0x334] sm:$0xf0]  ;;  %v9640_v22 = vor.u32 %v10554_v55, %v9637_v61  ;;  %v9557_v10 = vld [vmem:[%s14573_s5 + $0x218] sm:$0xf0] }
 0x56c   :  { %7021 = vmatpush.bf16.msra.mxu1 %v9400_v0  ;;  %v9700_v8 = vor.u32 %v10572_v60, %v9699_v39  ;;  %v10600_v13 = vld [vmem:[%s14573_s5 + $0x414] sm:$0xf0]  ;;  %v10474_v0 = vld [vmem:[%s14573_s5 + $0x2c] sm:$0xf] }
 0x56d   :  { %6986 = vmatpush.bf16.msrb.mxu3 %v9764_v54  ;;  %v10514_v54 = vld [vmem:[%s14573_s5 + $0x16c] sm:$0xf]  ;;  %v9812_v17 = vor.u32 %v10600_v13, %v9811_v35  ;;  %v9320_v43 = vor.u32 %v10474_v0, %v9317_v50  ;;  %v9621_v0 = vld [vmem:[%s14573_s5 + $0x298] sm:$0xf0] }
 0x56e   :  { %6902 = vmatmul.bf16.vlgmr.msra.gmra.mxu2 %v13955_v25  ;;  %v9480_v33 = vor.u32 %v10514_v54, %v9477_v9  ;;  %v10582_v39 = vld [vmem:[%s14573_s5 + $0x38c] sm:$0xf]  ;;  %v9733_v9 = vld [vmem:[%s14573_s5 + $0x378] sm:$0xf0] }
 0x56f   :  { %7038 = vmatpush.bf16.msra.mxu2 %v9544_v59  ;;  %7005 = vmatpush.bf16.msra.mxu0 %v9876_v48  ;;  %v9684_v48 = vor.u32 %v10568_v58, %v9683_v52  ;;  %v9301_v59 = vld [vmem:[%s14573_s5 + $0x18] sm:$0xf0]  ;;  %v10618_v60 = vld [vmem:[%s14573_s5 + $0x4ac] sm:$0xf] }
 0x570   :  { %7022 = vmatpush.bf16.msra.mxu1 %v9384_v16  ;;  %v10470_v16 = vld [vmem:[%s14573_s5 + $0xc] sm:$0xf] }
 0x571   :  { %6987 = vmatpush.bf16.msrb.mxu3 %v9748_v3  ;;  %v9304_v44 = vor.u32 %v10470_v16, %v9301_v59  ;;  %v9461_v3 = vld [vmem:[%s14573_s5 + $0x158] sm:$0xf0]  ;;  %v10550_v13 = vld [vmem:[%s14573_s5 + $0x28c] sm:$0xf] }
 0x572   :  { %6871 = vmatmul.bf16.gmra.mxu0 %v14049_v40  ;;  %v9464_v1 = vor.u32 %v10510_v26, %v9461_v3  ;;  %v9624_v50 = vor.u32 %v10550_v13, %v9621_v0  ;;  %v10578_v54 = vld [vmem:[%s14573_s5 + $0x36c] sm:$0xf]  ;;  %v9717_v26 = vld [vmem:[%s14573_s5 + $0x358] sm:$0xf0] }
 0x573   :  { %7039 = vmatpush.bf16.msra.mxu2 %v9528_v14  ;;  %7006 = vmatpush.bf16.msra.mxu0 %v9860_v21  ;;  %v9672_v21 = vor.u32 %v10562_v36, %v9669_v49  ;;  %v9445_v14 = vld [vmem:[%s14573_s5 + $0x138] sm:$0xf0]  ;;  %v10546_v58 = vld [vmem:[%s14573_s5 + $0x26c] sm:$0xf] }
 0x574   :  { %9934 = vmatmul.msk.bf16.gmra.mxu3 %vm1894_vm5, %v13873_v6  ;;  %7023 = vmatpush.bf16.msra.mxu1 %v9368_v23  ;;  %v10506_v23 = vld [vmem:[%s14573_s5 + $0x12c] sm:$0xf]  ;;  %v9861_v3 = vld [vmem:[%s14573_s5 + $0x478] sm:$0xf0] }
 0x575   :  { %6988 = vmatpush.bf16.msrb.mxu3 %v9732_v38  ;;  %v9448_v53 = vor.u32 %v10506_v23, %v9445_v14  ;;  %v9781_v38 = vld [vmem:[%s14573_s5 + $0x3d8] sm:$0xf0]  ;;  %v10574_v59 = vld [vmem:[%s14573_s5 + $0x34c] sm:$0xf] }
 0x576   :  { %6889 = vmatmul.bf16.gmra.mxu1 %v13898_v57  ;;  %v9784_v28 = vor.u32 %v10590_v20, %v9781_v38  ;;  %v9720_v56 = vor.u32 %v10574_v59, %v9717_v26  ;;  %v10570_v49 = vld [vmem:[%s14573_s5 + $0x32c] sm:$0xf]  ;;  %v9845_v14 = vld [vmem:[%s14573_s5 + $0x458] sm:$0xf0] }
 0x577   :  { %7040 = vmatpush.bf16.msra.mxu2 %v9512_v7  ;;  %7007 = vmatpush.bf16.msra.mxu0 %v9844_v11  ;;  %v10502_v11 = vld [vmem:[%s14573_s5 + $0x10c] sm:$0xf]  ;;  %v9429_v7 = vld [vmem:[%s14573_s5 + $0x118] sm:$0xf0] }
 0x578   :  { %7024 = vmatpush.bf16.msra.mxu1 %v9352_v62  ;;  %v9656_v62 = vor.u32 %v10558_v31, %v9653_v46  ;;  %v9432_v5 = vor.u32 %v10502_v11, %v9429_v7  ;;  %v10606_v23 = vld [vmem:[%s14573_s5 + $0x44c] sm:$0xf]  ;;  %v9685_v31 = vld [vmem:[%s14573_s5 + $0x318] sm:$0xf0] }
 0x579   :  { %6989 = vmatpush.bf16.msrb.mxu3 %v9716_v2  ;;  %v10622_v2 = vld [vmem:[%s14573_s5 + $0x4cc] sm:$0xf]  ;;  %v9848_v38 = vor.u32 %v10606_v23, %v9845_v14  ;;  %v9829_v11 = vld [vmem:[%s14573_s5 + $0x438] sm:$0xf0] }
 0x57a   :  { %v10538_v20 = vld [vmem:[%s14573_s5 + $0x22c] sm:$0xf] }
 0x57b   :  { %7041 = vmatpush.bf16.msra.mxu2 %v9496_v34  ;;  %7008 = vmatpush.bf16.msra.mxu0 %v9828_v29  ;;  %v9749_v34 = vld [vmem:[%s14573_s5 + $0x398] sm:$0xf0]  ;;  %v10602_v46 = vld [vmem:[%s14573_s5 + $0x42c] sm:$0xf] }
 0x57c   :  { %7025 = vmatpush.bf16.msra.mxu1 %v9336_v51  ;;  %v14421_v51 = vor.u32 %v10622_v2, %v9909_v63  ;;  %v9893_v29 = vld [vmem:[%s14573_s5 + $0x4b8] sm:$0xf0]  ;;  %v9832_v7 = vor.u32 %v10602_v46, %v9829_v11  ;;  %v10598_v2 = vld [vmem:[%s14573_s5 + $0x40c] sm:$0xf] }
 0x57d   :  { %6990 = vmatpush.bf16.msrb.mxu3 %v9700_v8  ;;  %v9752_v8 = vor.u32 %v10582_v39, %v9749_v34  ;;  %v14440_v35 = vor.u32 %v10618_v60, %v9893_v29  ;;  %v9813_v63 = vld [vmem:[%s14573_s5 + $0x418] sm:$0xf0] }
 0x57e   :  { %6907 = vmatmul.bf16.gmra.mxu2 %v13935_v30  ;;  %v9816_v55 = vor.u32 %v10598_v2, %v9813_v63 }
 0x57f   :  { %7042 = vmatpush.bf16.msra.mxu2 %v9480_v33  ;;  %7009 = vmatpush.bf16.msra.mxu0 %v9812_v17  ;;  %v10614_v17 = vld [vmem:[%s14573_s5 + $0x48c] sm:$0xf]  ;;  %v9736_v33 = vor.u32 %v10578_v54, %v9733_v9 }
 0x580   :  { %7026 = vmatpush.bf16.msra.mxu1 %v9320_v43  ;;  %v9877_v43 = vld [vmem:[%s14573_s5 + $0x498] sm:$0xf0] }
 0x581   :  { %6991 = vmatpush.bf16.msrb.mxu3 %v9684_v48  ;;  %v14463_v52 = vor.u32 %v10614_v17, %v9877_v43  ;;  %v9605_v48 = vld [vmem:[%s14573_s5 + $0x278] sm:$0xf0] }
 0x582   :  { %9936 = vmatmul.msk.bf16.vlgmr.msrb.gmra.mxu0 %vm11812_vm7, %v13758_v37  ;;  %v9608_v16 = vor.u32 %v10546_v58, %v9605_v48 }
 0x583   :  { %7043 = vmatpush.bf16.msra.mxu2 %v9464_v1  ;;  %7074 = vmatpush.bf16.msrb.mxu0 %v9800_v42  ;;  %v10542_v1 = vld [vmem:[%s14573_s5 + $0x24c] sm:$0xf] }
 0x584   :  { %6920 = vmatmul.bf16.vlgmr.msra.gmra.mxu3 %v14009_v4  ;;  %7027 = vmatpush.bf16.msra.mxu1 %v9304_v44  ;;  %v10610_v44 = vld [vmem:[%s14573_s5 + $0x46c] sm:$0xf] }
 0x585   :  { %7056 = vmatpush.bf16.msra.mxu3 %v9672_v21  ;;  %v9864_v41 = vor.u32 %v10610_v44, %v9861_v3  ;;  %v9701_v21 = vld [vmem:[%s14573_s5 + $0x338] sm:$0xf0] }
 0x586   :  { %6956 = vmatmul.bf16.vlgmr.msrb.gmra.mxu1 %v13933_v24  ;;  %v9704_v19 = vor.u32 %v10570_v49, %v9701_v21 }
 0x587   :  { %7044 = vmatpush.bf16.msra.mxu2 %v9448_v53  ;;  %7075 = vmatpush.bf16.msrb.mxu0 %v9784_v28  ;;  %v9573_v53 = vld [vmem:[%s14573_s5 + $0x238] sm:$0xf0] }
 0x588   :  { %7092 = vmatpush.bf16.msrb.mxu1 %v14391_v32  ;;  %v9576_v18 = vor.u32 %v10538_v20, %v9573_v53 }
 0x589   :  { %7057 = vmatpush.bf16.msra.mxu3 %v9656_v62 }
 0x58b   :  { %7045 = vmatpush.bf16.msra.mxu2 %v9432_v5  ;;  %7076 = vmatpush.bf16.msrb.mxu0 %v9768_v12  ;;  %v9560_v5 = vor.u32 %v10534_v27, %v9557_v10 }
 0x58c   :  { %7093 = vmatpush.bf16.msrb.mxu1 %v14421_v51 }
 0x58d   :  { %7058 = vmatpush.bf16.msra.mxu3 %v9640_v22 }
 0x58e   :  { %6974 = vmatmul.bf16.vlgmr.msrb.gmra.mxu2 %v13914_v15 }
 0x58f   :  { %10629 = vmatpush.bf16.msrb.mxu2 %v9800_v42  ;;  %7077 = vmatpush.bf16.msrb.mxu0 %v9752_v8  ;;  %v9589_v42 = vld [vmem:[%s14573_s5 + $0x258] sm:$0xf0] }
 0x590   :  { %7094 = vmatpush.bf16.msrb.mxu1 %v14440_v35  ;;  %v9592_v36 = vor.u32 %v10542_v1, %v9589_v42 }
 0x591   :  { %7059 = vmatpush.bf16.msra.mxu3 %v9624_v50 }
 0x592   :  { %9937 = vmatmul.msk.bf16.gmra.mxu0 %vm1894_vm5, %v13873_v6 }
 0x593   :  { %10630 = vmatpush.bf16.msrb.mxu2 %v9784_v28  ;;  %7078 = vmatpush.bf16.msrb.mxu0 %v9736_v33  ;;  %v10566_v28 = vld [vmem:[%s14573_s5 + $0x30c] sm:$0xf] }
 0x594   :  { %6925 = vmatmul.bf16.gmra.mxu3 %v13947_v45  ;;  %7095 = vmatpush.bf16.msrb.mxu1 %v14463_v52  ;;  %v9688_v62 = vor.u32 %v10566_v28, %v9685_v31 }
 0x595   :  { %7060 = vmatpush.bf16.msra.mxu3 %v9608_v16 }
 0x596   :  { %6961 = vmatmul.bf16.gmra.mxu1 %v14049_v40 }
 0x597   :  { %10631 = vmatpush.bf16.msrb.mxu2 %v9768_v12  ;;  %7079 = vmatpush.bf16.msrb.mxu0 %v9720_v56 }
 0x598   :  { %7096 = vmatpush.bf16.msrb.mxu1 %v9864_v41 }
 0x599   :  { %7061 = vmatpush.bf16.msra.mxu3 %v9592_v36 }
 0x59b   :  { %10632 = vmatpush.bf16.msrb.mxu2 %v9752_v8  ;;  %7080 = vmatpush.bf16.msrb.mxu0 %v9704_v19 }
 0x59c   :  { %7097 = vmatpush.bf16.msrb.mxu1 %v9848_v38 }
 0x59d   :  { %7062 = vmatpush.bf16.msra.mxu3 %v9576_v18 }
 0x59e   :  { %6979 = vmatmul.bf16.gmra.mxu2 %v13898_v57 }
 0x59f   :  { %10633 = vmatpush.bf16.msrb.mxu2 %v9736_v33  ;;  %7081 = vmatpush.bf16.msrb.mxu0 %v9688_v62 }
 0x5a0   :  { %7098 = vmatpush.bf16.msrb.mxu1 %v9832_v7 }
 0x5a1   :  { %7063 = vmatpush.bf16.msra.mxu3 %v9560_v5 }
 0x5a2   :  { %7010 = vmatmul.bf16.vlgmr.msra.gmra.mxu0 %v14009_v4 }
 0x5a3   :  { %10634 = vmatpush.bf16.msrb.mxu2 %v9720_v56 }
 0x5a4   :  { %6992 = vmatmul.bf16.vlgmr.msrb.gmra.mxu3 %v13955_v25  ;;  %7099 = vmatpush.bf16.msrb.mxu1 %v9816_v55 }
 0x5a5   :  { %10637 = vmatpush.bf16.msrb.mxu3 %v14391_v32 }
 0x5a6   :  { %9939 = vmatmul.msk.bf16.vlgmr.msra.gmra.mxu1 %vm11812_vm7, %v13758_v37  ;;  %v14553_v37 = vld [vmem:[%s14574_s6] sm:$0xf]  ;;  %s10680_s6 = smov [#allocation2]  }
 0x5a7   :  { %10635 = vmatpush.bf16.msrb.mxu2 %v9704_v19  ;;  %v5943_v28 = vperm.slane %v14553_v37, 1  ;;  %s7139_s3 = sshll.u32 %s10680_s6, 4  ;;  %s7140_s3 = int_to_ptr.vmem [resolvable:$true] %s7139_s3 }
 0x5a9   :  { %10638 = vmatpush.bf16.msrb.mxu3 %v14421_v51  ;;  %v5942_v51 = vperm.slane %v14553_v37, 0 }
 0x5ab   :  { %10636 = vmatpush.bf16.msrb.mxu2 %v9688_v62 }
 0x5ad   :  { %10639 = vmatpush.bf16.msrb.mxu3 %v14440_v35 }
 0x5ae   :  { %7046 = vmatmul.bf16.vlgmr.msra.gmra.mxu2 %v13933_v24 }
 0x5af   :  { %v6759_v12 = vpop.f32.mrf.mxu2 }
 0x5b1   :  { %10640 = vmatpush.bf16.msrb.mxu3 %v14463_v52 }
 0x5b2   :  { %7015 = vmatmul.bf16.gmra.mxu0 %v13947_v45 }
 0x5b4   :  { %6997 = vmatmul.bf16.gmra.mxu3 %v13935_v30 }
 0x5b5   :  { %10641 = vmatpush.bf16.msrb.mxu3 %v9864_v41 }
 0x5b6   :  { %9940 = vmatmul.msk.bf16.gmra.mxu1 %vm1894_vm5, %v13873_v6  ;;  %v6760_v6 = vadd.f32 %v6759_v12, %v5942_v51 }
 0x5b7   :  { %v6761_v47 = vpop.f32.mrf.mxu2 }
 0x5b8   :  { %v6762_v8 = vadd.f32 %v6761_v47, %v5942_v51 }
 0x5b9   :  { %10642 = vmatpush.bf16.msrb.mxu3 %v9848_v38 }
 0x5bd   :  { %10643 = vmatpush.bf16.msrb.mxu3 %v9832_v7 }
 0x5be   :  { %7051 = vmatmul.bf16.gmra.mxu2 %v14049_v40 }
 0x5bf   :  { %v6795_v24 = vpop.f32.mrf.mxu0 }
 0x5c1   :  { %v6764_v32 = vpop.f32.mrf.mxu2  ;;  %10644 = vmatpush.bf16.msrb.mxu3 %v9816_v55 }
 0x5c2   :  { %7082 = vmatmul.bf16.vlgmr.msrb.gmra.mxu0 %v13955_v25 }
 0x5c3   :  { %v6813_v61 = vpop.f32.mrf.mxu1 }
 0x5c4   :  { %7064 = vmatmul.bf16.vlgmr.msra.gmra.mxu3 %v13914_v15 }
 0x5c6   :  { %7100 = vmatmul.bf16.vlgmr.msrb.gmra.mxu1 %v14009_v4  ;;  %v6765_v4 = vadd.f32 %v6764_v32, %v5942_v51 }
 0x5c7   :  { %v6777_v22 = vpop.f32.mrf.mxu3  ;;  %v6797_v40 = vpop.f32.mrf.mxu0 }
 0x5c8   :  { %v6778_v39 = vadd.f32 %v6777_v22, %v6760_v6 }
 0x5c9   :  { %v6766_v34 = vpop.f32.mrf.mxu2 }
 0x5ca   :  { %v6796_v29 = vadd.f32 %v6795_v24, %v6778_v39 }
 0x5cb   :  { %v6815_v60 = vpop.f32.mrf.mxu1 }
 0x5cc   :  { %v6814_v50 = vadd.f32 %v6813_v61, %v6796_v29 }
 0x5ce   :  { %7087 = vmatmul.bf16.vlgmr.msrb.gmra.mxu2 %v13935_v30 }
 0x5cf   :  { %v6779_v35 = vpop.f32.mrf.mxu3  ;;  %v6800_v13 = vpop.f32.mrf.mxu0 }
 0x5d0   :  { %v6780_v0 = vadd.f32 %v6779_v35, %v6762_v8 }
 0x5d1   :  { %v6831_v25 = vpop.f32.mrf.mxu2 }
 0x5d2   :  { %v6832_v54 = vadd.f32 %v6831_v25, %v6814_v50  ;;  %v6798_v15 = vadd.f32 %v6797_v40, %v6780_v0 }
 0x5d3   :  { %v6818_v9 = vpop.f32.mrf.mxu1 }
 0x5d4   :  { %v7110_v17 = vmax.f32 %v6832_v54, 0.0  ;;  %7069 = vmatmul.bf16.gmra.mxu3 %v13898_v57  ;;  %v6816_v58 = vadd.f32 %v6815_v60, %v6798_v15 }
 0x5d6   :  { %7123 = vst [vmem:[#allocation2 + $0x60] sm:$0xff] %v7110_v17 }
 0x5d7   :  { %v6782_v43 = vpop.f32.mrf.mxu3  ;;  %v6802_v33 = vpop.f32.mrf.mxu0 }
 0x5d8   :  { %v6783_v52 = vadd.f32 %v6782_v43, %v6765_v4  ;;  %v5944_v43 = vperm.slane %v14553_v37, 2 }
 0x5d9   :  { %v6833_v48 = vpop.f32.mrf.mxu2 }
 0x5da   :  { %v6834_v16 = vadd.f32 %v6833_v48, %v6816_v58  ;;  %v6801_v59 = vadd.f32 %v6800_v13, %v6783_v52 }
 0x5db   :  { %v6820_v30 = vpop.f32.mrf.mxu1 }
 0x5dc   :  { %v7114_v26 = vmax.f32 %v6834_v16, 0.0  ;;  %v6819_v56 = vadd.f32 %v6818_v9, %v6801_v59 }
 0x5de   :  { %7127 = vst [vmem:[#allocation2 + $0x80] sm:$0xff] %v7114_v26 }
 0x5df   :  { %v6784_v44 = vpop.f32.mrf.mxu3  ;;  %v6867_v3 = vpop.f32.mrf.mxu0 }
 0x5e1   :  { %v6836_v41 = vpop.f32.mrf.mxu2 }
 0x5e2   :  { %v6837_v1 = vadd.f32 %v6836_v41, %v6819_v56 }
 0x5e3   :  { %v6885_v42 = vpop.f32.mrf.mxu1 }
 0x5e4   :  { %v7118_v36 = vmax.f32 %v6837_v1, 0.0  ;;  %7105 = vmatmul.bf16.vlgmr.msrb.gmra.mxu3 %v13947_v45 }
 0x5e6   :  { %7131 = vst [vmem:[#allocation2 + $0xa0] sm:$0xff] %v7118_v36 }
 0x5e7   :  { %v6849_v57 = vpop.f32.mrf.mxu3  ;;  %v6869_v49 = vpop.f32.mrf.mxu0 }
 0x5e8   :  { %v6850_v11 = vadd.f32 %v6849_v57, %v5943_v28 }
 0x5e9   :  { %v6838_v21 = vpop.f32.mrf.mxu2 }
 0x5ea   :  { %v6868_v27 = vadd.f32 %v6867_v3, %v6850_v11 }
 0x5eb   :  { %v6887_v23 = vpop.f32.mrf.mxu1 }
 0x5ec   :  { %v6886_v2 = vadd.f32 %v6885_v42, %v6868_v27 }
 0x5ef   :  { %v6851_v14 = vpop.f32.mrf.mxu3  ;;  %v6872_v20 = vpop.f32.mrf.mxu0 }
 0x5f0   :  { %v6852_v5 = vadd.f32 %v6851_v14, %v5943_v28 }
 0x5f1   :  { %v6903_v53 = vpop.f32.mrf.mxu2 }
 0x5f2   :  { %v6904_v63 = vadd.f32 %v6903_v53, %v6886_v2  ;;  %v6870_v47 = vadd.f32 %v6869_v49, %v6852_v5  ;;  %v5945_v2 = vperm.slane %v14553_v37, 3 }
 0x5f3   :  { %v6890_v38 = vpop.f32.mrf.mxu1 }
 0x5f4   :  { %v6888_v22 = vadd.f32 %v6887_v23, %v6870_v47 }
 0x5f7   :  { %v6854_v19 = vpop.f32.mrf.mxu3  ;;  %v6874_v18 = vpop.f32.mrf.mxu0 }
 0x5f8   :  { %v6855_v6 = vadd.f32 %v6854_v19, %v5943_v28 }
 0x5f9   :  { %v6905_v31 = vpop.f32.mrf.mxu2 }
 0x5fa   :  { %v6906_v40 = vadd.f32 %v6905_v31, %v6888_v22  ;;  %v6873_v60 = vadd.f32 %v6872_v20, %v6855_v6 }
 0x5fb   :  { %v6892_v46 = vpop.f32.mrf.mxu1 }
 0x5fc   :  { %v6891_v0 = vadd.f32 %v6890_v38, %v6873_v60 }
 0x5ff   :  { %v6856_v62 = vpop.f32.mrf.mxu3  ;;  %v6939_v7 = vpop.f32.mrf.mxu0 }
 0x600   :  { %v6940_v48 = vadd.f32 %v6939_v7, %v5944_v43 }
 0x601   :  { %v6908_v45 = vpop.f32.mrf.mxu2 }
 0x602   :  { %v6909_v50 = vadd.f32 %v6908_v45, %v6891_v0 }
 0x603   :  { %v6957_v10 = vpop.f32.mrf.mxu1 }
 0x604   :  { %v6958_v30 = vadd.f32 %v6957_v10, %v6940_v48 }
 0x607   :  { %v6921_v55 = vpop.f32.mrf.mxu3  ;;  %v6941_v12 = vpop.f32.mrf.mxu0 }
 0x608   :  { %v6922_v24 = vadd.f32 %v6921_v55, %v6904_v63  ;;  %v6942_v41 = vadd.f32 %v6941_v12, %v5944_v43 }
 0x609   :  { %v6910_v32 = vpop.f32.mrf.mxu2 }
 0x60a   :  { %v7111_v51 = vmax.f32 %v6922_v24, 0.0 }
 0x60b   :  { %v6959_v61 = vpop.f32.mrf.mxu1 }
 0x60c   :  { %7124 = vst [vmem:[#allocation2 + $0x68] sm:$0xff] %v7111_v51  ;;  %v6960_v36 = vadd.f32 %v6959_v61, %v6942_v41 }
 0x60f   :  { %v6923_v39 = vpop.f32.mrf.mxu3  ;;  %v6944_v34 = vpop.f32.mrf.mxu0 }
 0x610   :  { %v6924_v29 = vadd.f32 %v6923_v39, %v6906_v40  ;;  %v6945_v53 = vadd.f32 %v6944_v34, %v5944_v43 }
 0x611   :  { %v6975_v8 = vpop.f32.mrf.mxu2 }
 0x612   :  { %v7115_v35 = vmax.f32 %v6924_v29, 0.0  ;;  %v6976_v59 = vadd.f32 %v6975_v8, %v6958_v30 }
 0x613   :  { %v6962_v13 = vpop.f32.mrf.mxu1 }
 0x614   :  { %7128 = vst [vmem:[#allocation2 + $0x88] sm:$0xff] %v7115_v35  ;;  %v6963_v18 = vadd.f32 %v6962_v13, %v6945_v53 }
 0x617   :  { %v6926_v25 = vpop.f32.mrf.mxu3  ;;  %v6946_v54 = vpop.f32.mrf.mxu0 }
 0x618   :  { %v6927_v9 = vadd.f32 %v6926_v25, %v6909_v50 }
 0x619   :  { %v6977_v15 = vpop.f32.mrf.mxu2 }
 0x61a   :  { %v7119_v17 = vmax.f32 %v6927_v9, 0.0  ;;  %v6978_v49 = vadd.f32 %v6977_v15, %v6960_v36 }
 0x61b   :  { %v6964_v4 = vpop.f32.mrf.mxu1 }
 0x61c   :  { %7132 = vst [vmem:[#allocation2 + $0xa8] sm:$0xff] %v7119_v17 }
 0x61f   :  { %v6928_v33 = vpop.f32.mrf.mxu3  ;;  %v7011_v52 = vpop.f32.mrf.mxu0 }
 0x621   :  { %v6980_v58 = vpop.f32.mrf.mxu2 }
 0x622   :  { %v6981_v31 = vadd.f32 %v6980_v58, %v6963_v18 }
 0x623   :  { %v7029_v16 = vpop.f32.mrf.mxu1 }
 0x624   :  { %v7030_v55 = vadd.f32 %v7029_v16, %v5945_v2 }
 0x627   :  { %v6993_v26 = vpop.f32.mrf.mxu3  ;;  %v7013_v44 = vpop.f32.mrf.mxu0 }
 0x628   :  { %v6994_v3 = vadd.f32 %v6993_v26, %v6976_v59 }
 0x629   :  { %v6982_v56 = vpop.f32.mrf.mxu2 }
 0x62a   :  { %v7012_v1 = vadd.f32 %v7011_v52, %v6994_v3 }
 0x62b   :  { %v7031_v42 = vpop.f32.mrf.mxu1 }
 0x62c   :  { %v7112_v57 = vmax.f32 %v7012_v1, 0.0  ;;  %v7032_v22 = vadd.f32 %v7031_v42, %v5945_v2 }
 0x62e   :  { %7125 = vst [vmem:[#allocation2 + $0x70] sm:$0xff] %v7112_v57 }
 0x62f   :  { %v6995_v21 = vpop.f32.mrf.mxu3  ;;  %v7016_v23 = vpop.f32.mrf.mxu0 }
 0x630   :  { %v6996_v14 = vadd.f32 %v6995_v21, %v6978_v49 }
 0x631   :  { %v7047_v20 = vpop.f32.mrf.mxu2 }
 0x632   :  { %v7014_v38 = vadd.f32 %v7013_v44, %v6996_v14  ;;  %v7048_v12 = vadd.f32 %v7047_v20, %v7030_v55 }
 0x633   :  { %v7034_v19 = vpop.f32.mrf.mxu1 }
 0x634   :  { %v7116_v28 = vmax.f32 %v7014_v38, 0.0  ;;  %v7035_v9 = vadd.f32 %v7034_v19, %v5945_v2 }
 0x636   :  { %7129 = vst [vmem:[#allocation2 + $0x90] sm:$0xff] %v7116_v28 }
 0x637   :  { %v6998_v46 = vpop.f32.mrf.mxu3  ;;  %v7018_v11 = vpop.f32.mrf.mxu0 }
 0x638   :  { %v6999_v62 = vadd.f32 %v6998_v46, %v6981_v31 }
 0x639   :  { %v7049_v7 = vpop.f32.mrf.mxu2 }
 0x63a   :  { %v7017_v27 = vadd.f32 %v7016_v23, %v6999_v62  ;;  %v7050_v39 = vadd.f32 %v7049_v7, %v7032_v22 }
 0x63b   :  { %v7036_v45 = vpop.f32.mrf.mxu1 }
 0x63c   :  { %v7120_v10 = vmax.f32 %v7017_v27, 0.0 }
 0x63e   :  { %7133 = vst [vmem:[#allocation2 + $0xb0] sm:$0xff] %v7120_v10 }
 0x63f   :  { %v7000_v5 = vpop.f32.mrf.mxu3  ;;  %v7083_v47 = vpop.f32.mrf.mxu0 }
 0x641   :  { %v7052_v63 = vpop.f32.mrf.mxu2 }
 0x642   :  { %v7053_v17 = vadd.f32 %v7052_v63, %v7035_v9 }
 0x643   :  { %v7101_v51 = vpop.f32.mrf.mxu1 }
 0x647   :  { %v7065_v24 = vpop.f32.mrf.mxu3  ;;  %v7085_v8 = vpop.f32.mrf.mxu0 }
 0x648   :  { %v7066_v32 = vadd.f32 %v7065_v24, %v7048_v12 }
 0x649   :  { %v7054_v61 = vpop.f32.mrf.mxu2 }
 0x64a   :  { %v7084_v6 = vadd.f32 %v7083_v47, %v7066_v32 }
 0x64b   :  { %v7103_v37 = vpop.f32.mrf.mxu1 }
 0x64c   :  { %v7102_v40 = vadd.f32 %v7101_v51, %v7084_v6 }
 0x64e   :  { %v7113_v34 = vmax.f32 %v7102_v40, 0.0 }
 0x64f   :  { %v7067_v60 = vpop.f32.mrf.mxu3 }
 0x650   :  { %7126 = vst [vmem:[#allocation2 + $0x78] sm:$0xff] %v7113_v34  ;;  %v7068_v29 = vadd.f32 %v7067_v60, %v7050_v39 }
 0x651   :  { %v7088_v35 = vpop.f32.mrf.mxu2 }
 0x652   :  { %v7086_v13 = vadd.f32 %v7085_v8, %v7068_v29 }
 0x654   :  { %v7104_v0 = vadd.f32 %v7103_v37, %v7086_v13 }
 0x656   :  { %v7117_v50 = vmax.f32 %v7104_v0, 0.0 }
 0x657   :  { %v7070_v25 = vpop.f32.mrf.mxu3 }
 0x658   :  { %7130 = vst [vmem:[#allocation2 + $0x98] sm:$0xff] %v7117_v50  ;;  %v7071_v4 = vadd.f32 %v7070_v25, %v7053_v17 }
 0x659   :  { %v7090_v54 = vpop.f32.mrf.mxu2 }
 0x65a   :  { %v7089_v43 = vadd.f32 %v7088_v35, %v7071_v4 }
 0x65f   :  { %v7072_v15 = vpop.f32.mrf.mxu3 }
 0x667   :  { %v7106_v33 = vpop.f32.mrf.mxu3 }
 0x668   :  { %v7107_v52 = vadd.f32 %v7106_v33, %v7089_v43 }
 0x66a   :  { %v7121_v58 = vmax.f32 %v7107_v52, 0.0 }
 0x66c   :  { %7134 = vst [vmem:[#allocation2 + $0xb8] sm:$0xff] %v7121_v58 }
 0x66d   :  { %7147 = dma.vmem_to_hbm [thread:$0]  %s7140_s3, 3072, %s7142_s28, [#allocation3], %s10681_s29, %s10681_s29, %s10682_s4  }
 0x66f   :  { %v7108_v48 = vpop.f32.mrf.mxu3 }
 0x670   :  { %10677 = dma.done.wait [#allocation3], 3072  }
 0x671   :  { %10678 = vsyncadd [#allocation3], 4294964224 }
 0x672   :  { %7152 = vsyncpa [#allocation3], 1 }

// kernel: traditional_feature_encoder_forward.3
= control target key start
LH: loop header
LB: loop body
LE: loop exit
PB: predicated region body
PF: predicated region fallthrough
CT: control target
= control target key end

     0   :  { %s13681_s0 = inlined_call_operand.vmem [shape: bf16[2,20,512], index: 0, kind: input, shape index: {}]   ;;  %s13682_s1 = inlined_call_operand.vmem [shape: bf16[2560,64], index: 1, kind: input, shape index: {}]   ;;  %s13683_s2 = inlined_call_operand.vmem [shape: f32[1,64], index: 2, kind: input, shape index: {}]   ;;  %s13684_s3 = inlined_call_operand.vmem [shape: bf16[320,128], index: 3, kind: input, shape index: {}]   ;;  %s13685_s4 = inlined_call_operand.vmem [shape: f32[1,128], index: 4, kind: input, shape index: {}]   ;;  %s13686_s5 = inlined_call_operand.vmem [shape: bf16[640,512], index: 5, kind: input, shape index: {}]   ;;  %s13687_s6 = inlined_call_operand.vmem [shape: f32[1,512], index: 6, kind: input, shape index: {}]   ;;  %s13688_s7 = inlined_call_operand.hbm [shape: f32[2,16,512], index: 7, kind: output, shape index: {}]  }
   0x1   :  { %v9432_v0 = vld [vmem:[%s13682_s1 + $0x38] sm:$0xff]  ;;  %v9431_v4 = vld [vmem:[%s13682_s1 + $0x30] sm:$0xff]  ;;  %v9430_v8 = vld [vmem:[%s13682_s1 + $0x28] sm:$0xff] }
   0x2   :  { %v9440_v1 = vld [vmem:[%s13682_s1 + $0x78] sm:$0xff]  ;;  %1476 = vmatpush.bf16.msra.mxu0 %v9432_v0  ;;  %v9439_v5 = vld [vmem:[%s13682_s1 + $0x70] sm:$0xff]  ;;  %v9438_v9 = vld [vmem:[%s13682_s1 + $0x68] sm:$0xff] }
   0x3   :  { %v9448_v2 = vld [vmem:[%s13682_s1 + $0xb8] sm:$0xff]  ;;  %1490 = vmatpush.bf16.msra.mxu1 %v9440_v1  ;;  %v9447_v6 = vld [vmem:[%s13682_s1 + $0xb0] sm:$0xff]  ;;  %v9446_v10 = vld [vmem:[%s13682_s1 + $0xa8] sm:$0xff] }
   0x4   :  { %v9456_v3 = vld [vmem:[%s13682_s1 + $0xf8] sm:$0xff]  ;;  %1504 = vmatpush.bf16.msra.mxu2 %v9448_v2  ;;  %v9455_v7 = vld [vmem:[%s13682_s1 + $0xf0] sm:$0xff]  ;;  %v9454_v11 = vld [vmem:[%s13682_s1 + $0xe8] sm:$0xff] }
   0x5   :  { %1518 = vmatpush.bf16.msra.mxu3 %v9456_v3  ;;  %v9429_v12 = vld [vmem:[%s13682_s1 + $0x20] sm:$0xff]  ;;  %v9428_v16 = vld [vmem:[%s13682_s1 + $0x18] sm:$0xff]  ;;  %v9427_v20 = vld [vmem:[%s13682_s1 + $0x10] sm:$0xff] }
   0x6   :  { %1477 = vmatpush.bf16.msra.mxu0 %v9431_v4  ;;  %v9437_v13 = vld [vmem:[%s13682_s1 + $0x60] sm:$0xff]  ;;  %v9436_v17 = vld [vmem:[%s13682_s1 + $0x58] sm:$0xff]  ;;  %v9435_v21 = vld [vmem:[%s13682_s1 + $0x50] sm:$0xff] }
   0x7   :  { %1491 = vmatpush.bf16.msra.mxu1 %v9439_v5  ;;  %v9445_v14 = vld [vmem:[%s13682_s1 + $0xa0] sm:$0xff]  ;;  %v9444_v18 = vld [vmem:[%s13682_s1 + $0x98] sm:$0xff]  ;;  %v9443_v22 = vld [vmem:[%s13682_s1 + $0x90] sm:$0xff] }
   0x8   :  { %1505 = vmatpush.bf16.msra.mxu2 %v9447_v6  ;;  %v9453_v15 = vld [vmem:[%s13682_s1 + $0xe0] sm:$0xff]  ;;  %v9452_v19 = vld [vmem:[%s13682_s1 + $0xd8] sm:$0xff]  ;;  %v9451_v23 = vld [vmem:[%s13682_s1 + $0xd0] sm:$0xff] }
   0x9   :  { %1519 = vmatpush.bf16.msra.mxu3 %v9455_v7  ;;  %v9426_v24 = vld [vmem:[%s13682_s1 + $0x8] sm:$0xff]  ;;  %v9425_v28 = vld [vmem:[%s13682_s1] sm:$0xff] }
   0xa   :  { %1478 = vmatpush.bf16.msra.mxu0 %v9430_v8  ;;  %v9434_v25 = vld [vmem:[%s13682_s1 + $0x48] sm:$0xff] }
   0xb   :  { %1492 = vmatpush.bf16.msra.mxu1 %v9438_v9  ;;  %v9442_v26 = vld [vmem:[%s13682_s1 + $0x88] sm:$0xff] }
   0xc   :  { %1506 = vmatpush.bf16.msra.mxu2 %v9446_v10  ;;  %v9450_v27 = vld [vmem:[%s13682_s1 + $0xc8] sm:$0xff] }
   0xd   :  { %1520 = vmatpush.bf16.msra.mxu3 %v9454_v11 }
   0xe   :  { %1479 = vmatpush.bf16.msra.mxu0 %v9429_v12 }
   0xf   :  { %1493 = vmatpush.bf16.msra.mxu1 %v9437_v13 }
  0x10   :  { %1507 = vmatpush.bf16.msra.mxu2 %v9445_v14 }
  0x11   :  { %1521 = vmatpush.bf16.msra.mxu3 %v9453_v15 }
  0x12   :  { %1480 = vmatpush.bf16.msra.mxu0 %v9428_v16 }
  0x13   :  { %1494 = vmatpush.bf16.msra.mxu1 %v9436_v17 }
  0x14   :  { %1508 = vmatpush.bf16.msra.mxu2 %v9444_v18 }
  0x15   :  { %1522 = vmatpush.bf16.msra.mxu3 %v9452_v19 }
  0x16   :  { %1481 = vmatpush.bf16.msra.mxu0 %v9427_v20 }
  0x17   :  { %1495 = vmatpush.bf16.msra.mxu1 %v9435_v21 }
  0x18   :  { %1509 = vmatpush.bf16.msra.mxu2 %v9443_v22 }
  0x19   :  { %1523 = vmatpush.bf16.msra.mxu3 %v9451_v23 }
  0x1a   :  { %12 = vsyncpa [#allocation3], 0  ;;  %v9433_v29 = vld [vmem:[%s13682_s1 + $0x40] sm:$0xff]  ;;  %1482 = vmatpush.bf16.msra.mxu0 %v9426_v24  ;;  %v9464_v32 = vld [vmem:[%s13682_s1 + $0x138] sm:$0xff]  ;;  %vm64_vm0 = vsmask.f32 7424 }
  0x1b   :  { %v9441_v30 = vld [vmem:[%s13682_s1 + $0x80] sm:$0xff]  ;;  %1496 = vmatpush.bf16.msra.mxu1 %v9434_v25  ;;  %v9472_v33 = vld [vmem:[%s13682_s1 + $0x178] sm:$0xff]  ;;  %v9423_v35 = vld [vmem:[%s13681_s0 + $0xc] sm:$0xf0]  ;;  %vm117_vm1 = vcmask 1046528   ;;  %vm175_vm3 = vcmask 1045504  }
  0x1c   :  { %v9449_v31 = vld [vmem:[%s13682_s1 + $0xc0] sm:$0xff]  ;;  %1510 = vmatpush.bf16.msra.mxu2 %v9442_v26  ;;  %v6655_v36 = vld [vmem:[%s13681_s0 + $0x8] sm:$0xf]  ;;  %v9424_v37 = vld [vmem:[%s13681_s0 + $0x14] sm:$0xf0]  ;;  %vm1766_vm4 = vcmask 1040384  }
  0x1d   :  { %v6647_v34 = vld [vmem:[%s13681_s0] sm:$0xf]  ;;  %1524 = vmatpush.bf16.msra.mxu3 %v9450_v27  ;;  %v9421_v38 = vld [vmem:[%s13681_s0 + $0x4] sm:$0xf]  ;;  %v6649_v39 = vld [vmem:[%s13681_s0 + $0x10] sm:$0xf0]  ;;  %v10321_v45 = vor.u32 %v9424_v37, %v6655_v36 }
  0x1e   :  { %v9422_v40 = vld [vmem:[%s13681_s0 + $0xc] sm:$0xf]  ;;  %v6657_v41 = vld [vmem:[%s13681_s0 + $0x18] sm:$0xf0]  ;;  %1483 = vmatpush.bf16.msra.mxu0 %v9425_v28  ;;  %v10319_v44 = vor.u32 %v9423_v35, %v6647_v34  ;;  %v10323_v46 = vor.u32 %v9421_v38, %v6649_v39  ;;  %v9463_v48 = vld [vmem:[%s13682_s1 + $0x130] sm:$0xff]  ;;  %vm1802_vm5 = vcmask 523264  }
  0x1f   :  { %v9480_v42 = vld [vmem:[%s13682_s1 + $0x1b8] sm:$0xff]  ;;  %1497 = vmatpush.bf16.msra.mxu1 %v9433_v29  ;;  %v10325_v47 = vor.u32 %v9422_v40, %v6657_v41  ;;  %v9471_v49 = vld [vmem:[%s13682_s1 + $0x170] sm:$0xff]  ;;  %v9462_v52 = vld [vmem:[%s13682_s1 + $0x128] sm:$0xff]  ;;  %v92_v13 = vshll.u32 %v10321_v45, 16  ;;  %v90_v23 = vshrl.u32 %v10321_v45, 16  ;;  %s10143_s9 = smov 64  }
  0x20   :  { %v9488_v43 = vld [vmem:[%s13682_s1 + $0x1f8] sm:$0xff]  ;;  %1511 = vmatpush.bf16.msra.mxu2 %v9441_v30  ;;  %v9479_v50 = vld [vmem:[%s13682_s1 + $0x1b0] sm:$0xff]  ;;  %v9470_v53 = vld [vmem:[%s13682_s1 + $0x168] sm:$0xff]  ;;  %v68_v9 = vshll.u32 %v10319_v44, 16  ;;  %v80_v15 = vshll.u32 %v10323_v46, 16  ;;  %v66_v20 = vshrl.u32 %v10319_v44, 16 }
  0x21   :  { %1525 = vmatpush.bf16.msra.mxu3 %v9449_v31  ;;  %v9487_v51 = vld [vmem:[%s13682_s1 + $0x1f0] sm:$0xff]  ;;  %1484 = vmatmul.bf16.vlgmr.msra.gmra.mxu0 %v10319_v44  ;;  %v9478_v54 = vld [vmem:[%s13682_s1 + $0x1a8] sm:$0xff]  ;;  %v9461_v56 = vld [vmem:[%s13682_s1 + $0x120] sm:$0xff]  ;;  %v104_v17 = vshll.u32 %v10325_v47, 16  ;;  %v94_v26 = vrot.slane %v92_v13, 1  ;;  %v78_v28 = vshrl.u32 %v10323_v46, 16 }
  0x22   :  { %1532 = vmatpush.bf16.msrb.mxu0 %v9464_v32  ;;  %1498 = vmatmul.bf16.vlgmr.msra.gmra.mxu1 %v10323_v46  ;;  %v9486_v55 = vld [vmem:[%s13682_s1 + $0x1e8] sm:$0xff]  ;;  %v9469_v57 = vld [vmem:[%s13682_s1 + $0x160] sm:$0xff]  ;;  %v9460_v62 = vld [vmem:[%s13682_s1 + $0x118] sm:$0xff]  ;;  %v70_v21 = vrot.slane %v68_v9, 1  ;;  %v82_v30 = vrot.slane %v80_v15, 1  ;;  %v102_v31 = vshrl.u32 %v10325_v47, 16 }
  0x23   :  { %1546 = vmatpush.bf16.msrb.mxu1 %v9472_v33  ;;  %1512 = vmatmul.bf16.vlgmr.msra.gmra.mxu2 %v10321_v45  ;;  %v9477_v58 = vld [vmem:[%s13682_s1 + $0x1a0] sm:$0xff]  ;;  %v33_v61 = vld [vmem:[%s13681_s0 + $0x28] sm:$0x33]  ;;  %v9468_v63 = vld [vmem:[%s13682_s1 + $0x158] sm:$0xff]  ;;  %v106_v32 = vrot.slane %v104_v17, 1  ;;  %v95_v40 = vor.u32 %v94_v26, %v90_v23  ;;  %s6633_s22 = sshll.u32 %s13688_s7, 4  ;;  %s6634_s22 = int_to_ptr.hbm [resolvable:$true] %s6633_s22 }
  0x24   :  { %1560 = vmatpush.bf16.msrb.mxu2 %v9480_v42  ;;  %1526 = vmatmul.bf16.vlgmr.msra.gmra.mxu3 %v10325_v47  ;;  %v9485_v59 = vld [vmem:[%s13682_s1 + $0x1e0] sm:$0xff]  ;;  %v9476_v1 = vld [vmem:[%s13682_s1 + $0x198] sm:$0xff]  ;;  %v58_v3 = vunpack.c.l.b16 %v33_v61  ;;  %v59_v5 = vunpack.c.h.b16 %v33_v61  ;;  %v9459_v6 = vld [vmem:[%s13682_s1 + $0x110] sm:$0xff]  ;;  %v71_v36 = vor.u32 %v70_v21, %v66_v20  ;;  %vm134_vm2 = vsmask.f32 6400  ;;  %s10146_s23 = smov 32  }
  0x25   :  { %1574 = vmatpush.bf16.msrb.mxu3 %v9488_v43  ;;  %v32_v60 = vld [vmem:[%s13681_s0 + $0x20] sm:$0x33]  ;;  %v9484_v2 = vld [vmem:[%s13682_s1 + $0x1d8] sm:$0xff]  ;;  %v9467_v7 = vld [vmem:[%s13682_s1 + $0x150] sm:$0xff] }
  0x26   :  { %1533 = vmatpush.bf16.msrb.mxu0 %v9463_v48  ;;  %v56_v0 = vunpack.c.l.b16 %v32_v60  ;;  %v57_v4 = vunpack.c.h.b16 %v32_v60  ;;  %v9475_v10 = vld [vmem:[%s13682_s1 + $0x190] sm:$0xff]  ;;  %v10400_v12 = vpack.c.b16 %v58_v3, %v58_v3  ;;  %v10406_v16 = vpack.c.b16 %v59_v5, %v59_v5  ;;  %v9458_v18 = vld [vmem:[%s13682_s1 + $0x108] sm:$0xff]  ;;  %v9457_v34 = vld [vmem:[%s13682_s1 + $0x100] sm:$0xff] }
  0x27   :  { %1547 = vmatpush.bf16.msrb.mxu1 %v9471_v49  ;;  %v9483_v11 = vld [vmem:[%s13682_s1 + $0x1d0] sm:$0xff]  ;;  %v9466_v19 = vld [vmem:[%s13682_s1 + $0x148] sm:$0xff]  ;;  %v9465_v35 = vld [vmem:[%s13682_s1 + $0x140] sm:$0xff]  ;;  %v83_v48 = vor.u32 %v82_v30, %v78_v28 }
  0x28   :  { %1561 = vmatpush.bf16.msrb.mxu2 %v9479_v50  ;;  %v10391_v8 = vpack.c.b16 %v56_v0, %v56_v0  ;;  %v10403_v14 = vpack.c.b16 %v57_v4, %v57_v4  ;;  %v9474_v24 = vld [vmem:[%s13682_s1 + $0x188] sm:$0xff]  ;;  %v97_v27 = vshll.u32 %v10400_v12, 16  ;;  %v109_v33 = vshll.u32 %v10406_v16, 16  ;;  %v9473_v37 = vld [vmem:[%s13682_s1 + $0x180] sm:$0xff]  ;;  %v9496_v42 = vld [vmem:[%s13682_s1 + $0x238] sm:$0xff] }
  0x29   :  { %1575 = vmatpush.bf16.msrb.mxu3 %v9487_v51  ;;  %v9482_v25 = vld [vmem:[%s13682_s1 + $0x1c8] sm:$0xff]  ;;  %v9481_v38 = vld [vmem:[%s13682_s1 + $0x1c0] sm:$0xff]  ;;  %v9504_v43 = vld [vmem:[%s13682_s1 + $0x278] sm:$0xff]  ;;  %v107_v50 = vor.u32 %v106_v32, %v102_v31 }
  0x2a   :  { %1534 = vmatpush.bf16.msrb.mxu0 %v9462_v52  ;;  %v73_v22 = vshll.u32 %v10391_v8, 16  ;;  %v85_v29 = vshll.u32 %v10403_v14, 16  ;;  %v99_v41 = vrot.slane %v97_v27, 1  ;;  %v111_v51 = vrot.slane %v109_v33, 1  ;;  %v9512_v52 = vld [vmem:[%s13682_s1 + $0x2b8] sm:$0xff]  ;;  %v9511_v60 = vld [vmem:[%s13682_s1 + $0x2b0] sm:$0xff]  ;;  %vm11294_vm6 = vmneg %vm1766_vm4 }
  0x2b   :  { %1548 = vmatpush.bf16.msrb.mxu1 %v9470_v53  ;;  %v9520_v53 = vld [vmem:[%s13682_s1 + $0x2f8] sm:$0xff]  ;;  %v9519_v61 = vld [vmem:[%s13682_s1 + $0x2f0] sm:$0xff]  ;;  %v9510_v0 = vld [vmem:[%s13682_s1 + $0x2a8] sm:$0xff] }
  0x2c   :  { %1562 = vmatpush.bf16.msrb.mxu2 %v9478_v54  ;;  %v75_v39 = vrot.slane %v73_v22, 1  ;;  %v87_v49 = vrot.slane %v85_v29, 1  ;;  %v9501_v3 = vld [vmem:[%s13682_s1 + $0x260] sm:$0xff]  ;;  %v9507_v21 = vld [vmem:[%s13682_s1 + $0x290] sm:$0xff]  ;;  %v9498_v26 = vld [vmem:[%s13682_s1 + $0x248] sm:$0xff] }
  0x2d   :  { %1576 = vmatpush.bf16.msrb.mxu3 %v9486_v55  ;;  %v100_v55 = vsel %vm64_vm0, %v95_v40, %v99_v41  ;;  %v9509_v4 = vld [vmem:[%s13682_s1 + $0x2a0] sm:$0xff]  ;;  %v9506_v30 = vld [vmem:[%s13682_s1 + $0x288] sm:$0xff]  ;;  %v124_v40 = vrot.slane %v10321_v45, 1  ;;  %v125_v41 = vrot.slane %v10400_v12, 1 }
  0x2e   :  { %1535 = vmatpush.bf16.msrb.mxu0 %v9461_v56  ;;  %v76_v54 = vsel %vm64_vm0, %v71_v36, %v75_v39  ;;  %v88_v56 = vsel %vm64_vm0, %v83_v48, %v87_v49  ;;  %v9517_v5 = vld [vmem:[%s13682_s1 + $0x2e0] sm:$0xff]  ;;  %v9514_v32 = vld [vmem:[%s13682_s1 + $0x2c8] sm:$0xff]  ;;  %v118_v36 = vrot.slane %v10319_v44, 1  ;;  %v119_v39 = vrot.slane %v10391_v8, 1 }
  0x2f   :  { %1549 = vmatpush.bf16.msrb.mxu1 %v9469_v57  ;;  %v112_v57 = vsel %vm64_vm0, %v107_v50, %v111_v51  ;;  %v121_v48 = vrot.slane %v10323_v46, 1  ;;  %v122_v49 = vrot.slane %v10403_v14, 1  ;;  %v127_v50 = vrot.slane %v10325_v47, 1 }
  0x30   :  { %1563 = vmatpush.bf16.msrb.mxu2 %v9477_v58  ;;  %v9495_v58 = vld [vmem:[%s13682_s1 + $0x230] sm:$0xff]  ;;  %v128_v51 = vrot.slane %v10406_v16, 1 }
  0x31   :  { %1577 = vmatpush.bf16.msrb.mxu3 %v9485_v59  ;;  %v9503_v59 = vld [vmem:[%s13682_s1 + $0x270] sm:$0xff] }
  0x32   :  { %1536 = vmatpush.bf16.msrb.mxu0 %v9460_v62  ;;  %v9494_v62 = vld [vmem:[%s13682_s1 + $0x228] sm:$0xff] }
  0x33   :  { %1550 = vmatpush.bf16.msrb.mxu1 %v9468_v63  ;;  %v9502_v63 = vld [vmem:[%s13682_s1 + $0x268] sm:$0xff] }
  0x34   :  { %1564 = vmatpush.bf16.msrb.mxu2 %v9476_v1  ;;  %v9518_v1 = vld [vmem:[%s13682_s1 + $0x2e8] sm:$0xff] }
  0x35   :  { %1578 = vmatpush.bf16.msrb.mxu3 %v9484_v2  ;;  %v9493_v2 = vld [vmem:[%s13682_s1 + $0x220] sm:$0xff] }
  0x36   :  { %1537 = vmatpush.bf16.msrb.mxu0 %v9459_v6  ;;  %v9492_v6 = vld [vmem:[%s13682_s1 + $0x218] sm:$0xff] }
  0x37   :  { %1551 = vmatpush.bf16.msrb.mxu1 %v9467_v7  ;;  %v9500_v7 = vld [vmem:[%s13682_s1 + $0x258] sm:$0xff] }
  0x38   :  { %1565 = vmatpush.bf16.msrb.mxu2 %v9475_v10  ;;  %v9508_v10 = vld [vmem:[%s13682_s1 + $0x298] sm:$0xff] }
  0x39   :  { %1579 = vmatpush.bf16.msrb.mxu3 %v9483_v11  ;;  %v9516_v11 = vld [vmem:[%s13682_s1 + $0x2d8] sm:$0xff] }
  0x3a   :  { %1538 = vmatpush.bf16.msrb.mxu0 %v9458_v18  ;;  %v9491_v18 = vld [vmem:[%s13682_s1 + $0x210] sm:$0xff] }
  0x3b   :  { %1552 = vmatpush.bf16.msrb.mxu1 %v9466_v19  ;;  %v9499_v19 = vld [vmem:[%s13682_s1 + $0x250] sm:$0xff] }
  0x3c   :  { %1566 = vmatpush.bf16.msrb.mxu2 %v9474_v24  ;;  %v9515_v24 = vld [vmem:[%s13682_s1 + $0x2d0] sm:$0xff] }
  0x3d   :  { %1580 = vmatpush.bf16.msrb.mxu3 %v9482_v25  ;;  %v9490_v25 = vld [vmem:[%s13682_s1 + $0x208] sm:$0xff] }
  0x3e   :  { %1539 = vmatpush.bf16.msrb.mxu0 %v9457_v34  ;;  %v9489_v34 = vld [vmem:[%s13682_s1 + $0x200] sm:$0xff] }
  0x3f   :  { %1553 = vmatpush.bf16.msrb.mxu1 %v9465_v35  ;;  %v9497_v35 = vld [vmem:[%s13682_s1 + $0x240] sm:$0xff] }
  0x40   :  { %1567 = vmatpush.bf16.msrb.mxu2 %v9473_v37  ;;  %v9505_v37 = vld [vmem:[%s13682_s1 + $0x280] sm:$0xff] }
  0x41   :  { %1581 = vmatpush.bf16.msrb.mxu3 %v9481_v38  ;;  %1540 = vmatmul.bf16.vlgmr.msrb.gmra.mxu0 %v76_v54  ;;  %v9513_v38 = vld [vmem:[%s13682_s1 + $0x2c0] sm:$0xff]  ;;  %v120_v54 = vsel %vm117_vm1, %v118_v36, %v119_v39  ;;  %v9530_v39 = vld [vmem:[%s13682_s1 + $0x348] sm:$0xff] }
  0x42   :  { %1588 = vmatpush.bf16.msra.mxu0 %v9496_v42  ;;  %1554 = vmatmul.bf16.vlgmr.msrb.gmra.mxu1 %v88_v56  ;;  %v9528_v42 = vld [vmem:[%s13682_s1 + $0x338] sm:$0xff]  ;;  %v123_v56 = vsel %vm117_vm1, %v121_v48, %v122_v49  ;;  %v163_v49 = vrot.slane %v104_v17, 2  ;;  %v9537_v17 = vld [vmem:[%s13682_s1 + $0x380] sm:$0xff] }
  0x43   :  { %1602 = vmatpush.bf16.msra.mxu1 %v9504_v43  ;;  %1568 = vmatmul.bf16.vlgmr.msrb.gmra.mxu2 %v100_v55  ;;  %v9536_v43 = vld [vmem:[%s13682_s1 + $0x378] sm:$0xff]  ;;  %v126_v55 = vsel %vm117_vm1, %v124_v40, %v125_v41  ;;  %v9538_v41 = vld [vmem:[%s13682_s1 + $0x388] sm:$0xff] }
  0x44   :  { %1616 = vmatpush.bf16.msra.mxu2 %v9512_v52  ;;  %1582 = vmatmul.bf16.vlgmr.msrb.gmra.mxu3 %v112_v57  ;;  %v9544_v52 = vld [vmem:[%s13682_s1 + $0x3b8] sm:$0xff]  ;;  %v129_v57 = vsel %vm117_vm1, %v127_v50, %v128_v51  ;;  %v168_v51 = vrot.slane %v109_v33, 2 }
  0x45   :  { %1630 = vmatpush.bf16.msra.mxu3 %v9520_v53  ;;  %v9552_v53 = vld [vmem:[%s13682_s1 + $0x3f8] sm:$0xff] }
  0x46   :  { %1589 = vmatpush.bf16.msra.mxu0 %v9495_v58  ;;  %v9527_v58 = vld [vmem:[%s13682_s1 + $0x330] sm:$0xff] }
  0x47   :  { %1603 = vmatpush.bf16.msra.mxu1 %v9503_v59  ;;  %v9535_v59 = vld [vmem:[%s13682_s1 + $0x370] sm:$0xff] }
  0x48   :  { %1617 = vmatpush.bf16.msra.mxu2 %v9511_v60  ;;  %v9543_v60 = vld [vmem:[%s13682_s1 + $0x3b0] sm:$0xff] }
  0x49   :  { %1631 = vmatpush.bf16.msra.mxu3 %v9519_v61  ;;  %v9551_v61 = vld [vmem:[%s13682_s1 + $0x3f0] sm:$0xff] }
  0x4a   :  { %1590 = vmatpush.bf16.msra.mxu0 %v9494_v62  ;;  %v9526_v62 = vld [vmem:[%s13682_s1 + $0x328] sm:$0xff] }
  0x4b   :  { %1604 = vmatpush.bf16.msra.mxu1 %v9502_v63  ;;  %v9534_v63 = vld [vmem:[%s13682_s1 + $0x368] sm:$0xff] }
  0x4c   :  { %1618 = vmatpush.bf16.msra.mxu2 %v9510_v0  ;;  %v9542_v0 = vld [vmem:[%s13682_s1 + $0x3a8] sm:$0xff] }
  0x4d   :  { %1632 = vmatpush.bf16.msra.mxu3 %v9518_v1  ;;  %v9550_v1 = vld [vmem:[%s13682_s1 + $0x3e8] sm:$0xff] }
  0x4e   :  { %1591 = vmatpush.bf16.msra.mxu0 %v9493_v2  ;;  %v9525_v2 = vld [vmem:[%s13682_s1 + $0x320] sm:$0xff] }
  0x4f   :  { %1605 = vmatpush.bf16.msra.mxu1 %v9501_v3  ;;  %v9533_v3 = vld [vmem:[%s13682_s1 + $0x360] sm:$0xff] }
  0x50   :  { %1619 = vmatpush.bf16.msra.mxu2 %v9509_v4  ;;  %v9541_v4 = vld [vmem:[%s13682_s1 + $0x3a0] sm:$0xff] }
  0x51   :  { %1633 = vmatpush.bf16.msra.mxu3 %v9517_v5  ;;  %v9549_v5 = vld [vmem:[%s13682_s1 + $0x3e0] sm:$0xff] }
  0x52   :  { %1592 = vmatpush.bf16.msra.mxu0 %v9492_v6  ;;  %v9524_v6 = vld [vmem:[%s13682_s1 + $0x318] sm:$0xff] }
  0x53   :  { %1606 = vmatpush.bf16.msra.mxu1 %v9500_v7  ;;  %v9532_v7 = vld [vmem:[%s13682_s1 + $0x358] sm:$0xff] }
  0x54   :  { %1620 = vmatpush.bf16.msra.mxu2 %v9508_v10  ;;  %v9540_v10 = vld [vmem:[%s13682_s1 + $0x398] sm:$0xff] }
  0x55   :  { %1634 = vmatpush.bf16.msra.mxu3 %v9516_v11  ;;  %v9548_v11 = vld [vmem:[%s13682_s1 + $0x3d8] sm:$0xff] }
  0x56   :  { %1593 = vmatpush.bf16.msra.mxu0 %v9491_v18  ;;  %v138_v18 = vshrl.u32 %v10391_v8, 16 }
  0x57   :  { %1607 = vmatpush.bf16.msra.mxu1 %v9499_v19  ;;  %v9523_v19 = vld [vmem:[%s13682_s1 + $0x310] sm:$0xff] }
  0x58   :  { %1621 = vmatpush.bf16.msra.mxu2 %v9507_v21  ;;  %v9531_v21 = vld [vmem:[%s13682_s1 + $0x350] sm:$0xff]  ;;  %v140_v36 = vrot.slane %v138_v18, 1  ;;  %v9557_v18 = vld [vmem:[%s13682_s1 + $0x420] sm:$0xff] }
  0x59   :  { %1635 = vmatpush.bf16.msra.mxu3 %v9515_v24  ;;  %v156_v24 = vshrl.u32 %v10400_v12, 16 }
  0x5a   :  { %1594 = vmatpush.bf16.msra.mxu0 %v9490_v25  ;;  %v9539_v25 = vld [vmem:[%s13682_s1 + $0x390] sm:$0xff] }
  0x5b   :  { %1608 = vmatpush.bf16.msra.mxu1 %v9498_v26  ;;  %v9547_v26 = vld [vmem:[%s13682_s1 + $0x3d0] sm:$0xff]  ;;  %v158_v40 = vrot.slane %v156_v24, 1  ;;  %v9581_v24 = vld [vmem:[%s13682_s1 + $0x4e0] sm:$0xff] }
  0x5c   :  { %1622 = vmatpush.bf16.msra.mxu2 %v9506_v30  ;;  %v147_v30 = vshrl.u32 %v10403_v14, 16 }
  0x5d   :  { %1636 = vmatpush.bf16.msra.mxu3 %v9514_v32  ;;  %v165_v32 = vshrl.u32 %v10406_v16, 16 }
  0x5e   :  { %1595 = vmatpush.bf16.msra.mxu0 %v9489_v34  ;;  %v135_v34 = vrot.slane %v66_v20, 1  ;;  %v153_v20 = vrot.slane %v90_v23, 1  ;;  %v144_v23 = vrot.slane %v78_v28, 1  ;;  %v149_v48 = vrot.slane %v147_v30, 1  ;;  %v9529_v28 = vld [vmem:[%s13682_s1 + $0x340] sm:$0xff]  ;;  %v9572_v30 = vld [vmem:[%s13682_s1 + $0x498] sm:$0xff] }
  0x5f   :  { %1609 = vmatpush.bf16.msra.mxu1 %v9497_v35  ;;  %v136_v35 = vrot.slane %v68_v9, 2  ;;  %v154_v9 = vrot.slane %v92_v13, 2  ;;  %v145_v13 = vrot.slane %v80_v15, 2  ;;  %v167_v50 = vrot.slane %v165_v32, 1  ;;  %v9521_v15 = vld [vmem:[%s13682_s1 + $0x300] sm:$0xff]  ;;  %v9580_v32 = vld [vmem:[%s13682_s1 + $0x4d8] sm:$0xff] }
  0x60   :  { %1623 = vmatpush.bf16.msra.mxu2 %v9505_v37  ;;  %v141_v37 = vrot.slane %v73_v22, 2  ;;  %v159_v22 = vrot.slane %v97_v27, 2  ;;  %v162_v27 = vrot.slane %v102_v31, 1  ;;  %v9545_v31 = vld [vmem:[%s13682_s1 + $0x3c0] sm:$0xff] }
  0x61   :  { %1637 = vmatpush.bf16.msra.mxu3 %v9513_v38  ;;  %1596 = vmatmul.bf16.vlgmr.msra.gmra.mxu0 %v120_v54  ;;  %v9522_v38 = vld [vmem:[%s13682_s1 + $0x308] sm:$0xff]  ;;  %v9560_v54 = vld [vmem:[%s13682_s1 + $0x438] sm:$0xff] }
  0x62   :  { %1644 = vmatpush.bf16.msrb.mxu0 %v9528_v42  ;;  %1610 = vmatmul.bf16.vlgmr.msra.gmra.mxu1 %v123_v56  ;;  %v9546_v42 = vld [vmem:[%s13682_s1 + $0x3c8] sm:$0xff]  ;;  %v142_v33 = vor.u32 %v141_v37, %v140_v36  ;;  %v146_v56 = vor.u32 %v145_v13, %v144_v23  ;;  %v9571_v36 = vld [vmem:[%s13682_s1 + $0x490] sm:$0xff]  ;;  %v179_v23 = vrot.slane %v10323_v46, 2  ;;  %v180_v13 = vrot.slane %v10403_v14, 2 }
  0x63   :  { %1658 = vmatpush.bf16.msrb.mxu1 %v9536_v43  ;;  %1624 = vmatmul.bf16.vlgmr.msra.gmra.mxu2 %v126_v55  ;;  %v150_v43 = vrot.slane %v85_v29, 2  ;;  %v137_v29 = vor.u32 %v136_v35, %v135_v34  ;;  %v9568_v55 = vld [vmem:[%s13682_s1 + $0x478] sm:$0xff]  ;;  %v9555_v34 = vld [vmem:[%s13682_s1 + $0x410] sm:$0xff]  ;;  %v186_v46 = vrot.slane %v10406_v16, 2 }
  0x64   :  { %1672 = vmatpush.bf16.msrb.mxu2 %v9544_v52  ;;  %1638 = vmatmul.bf16.vlgmr.msra.gmra.mxu3 %v129_v57  ;;  %v155_v52 = vor.u32 %v154_v9, %v153_v20  ;;  %v9563_v35 = vld [vmem:[%s13682_s1 + $0x450] sm:$0xff]  ;;  %v9570_v20 = vld [vmem:[%s13682_s1 + $0x488] sm:$0xff] }
  0x65   :  { %1686 = vmatpush.bf16.msrb.mxu3 %v9552_v53  ;;  %v160_v53 = vor.u32 %v159_v22, %v158_v40  ;;  %v151_v57 = vor.u32 %v150_v43, %v149_v48  ;;  %v9579_v37 = vld [vmem:[%s13682_s1 + $0x4d0] sm:$0xff]  ;;  %v9578_v9 = vld [vmem:[%s13682_s1 + $0x4c8] sm:$0xff]  ;;  %v9553_v40 = vld [vmem:[%s13682_s1 + $0x400] sm:$0xff]  ;;  %v182_v48 = vrot.slane %v10321_v45, 2 }
  0x66   :  { %1645 = vmatpush.bf16.msrb.mxu0 %v9527_v58  ;;  %v164_v58 = vor.u32 %v163_v49, %v162_v27  ;;  %v9561_v22 = vld [vmem:[%s13682_s1 + $0x440] sm:$0xff]  ;;  %v181_v49 = vsel %vm175_vm3, %v179_v23, %v180_v13 }
  0x67   :  { %1659 = vmatpush.bf16.msrb.mxu1 %v9535_v59  ;;  %v169_v59 = vor.u32 %v168_v51, %v167_v50  ;;  %v9569_v43 = vld [vmem:[%s13682_s1 + $0x480] sm:$0xff] }
  0x68   :  { %1673 = vmatpush.bf16.msrb.mxu2 %v9543_v60  ;;  %v9576_v60 = vld [vmem:[%s13682_s1 + $0x4b8] sm:$0xff]  ;;  %v9577_v27 = vld [vmem:[%s13682_s1 + $0x4c0] sm:$0xff] }
  0x69   :  { %1687 = vmatpush.bf16.msrb.mxu3 %v9551_v61  ;;  %v9584_v61 = vld [vmem:[%s13682_s1 + $0x4f8] sm:$0xff] }
  0x6a   :  { %1646 = vmatpush.bf16.msrb.mxu0 %v9526_v62  ;;  %v143_v62 = vsel %vm134_vm2, %v137_v29, %v142_v33 }
  0x6b   :  { %1660 = vmatpush.bf16.msrb.mxu1 %v9534_v63  ;;  %v161_v63 = vsel %vm134_vm2, %v155_v52, %v160_v53 }
  0x6c   :  { %1674 = vmatpush.bf16.msrb.mxu2 %v9542_v0  ;;  %v152_v0 = vsel %vm134_vm2, %v146_v56, %v151_v57 }
  0x6d   :  { %1688 = vmatpush.bf16.msrb.mxu3 %v9550_v1  ;;  %v170_v1 = vsel %vm134_vm2, %v164_v58, %v169_v59 }
  0x6e   :  { %1647 = vmatpush.bf16.msrb.mxu0 %v9525_v2  ;;  %v9559_v2 = vld [vmem:[%s13682_s1 + $0x430] sm:$0xff] }
  0x6f   :  { %1661 = vmatpush.bf16.msrb.mxu1 %v9533_v3  ;;  %v9567_v3 = vld [vmem:[%s13682_s1 + $0x470] sm:$0xff] }
  0x70   :  { %1675 = vmatpush.bf16.msrb.mxu2 %v9541_v4  ;;  %v9575_v4 = vld [vmem:[%s13682_s1 + $0x4b0] sm:$0xff] }
  0x71   :  { %1689 = vmatpush.bf16.msrb.mxu3 %v9549_v5  ;;  %v9583_v5 = vld [vmem:[%s13682_s1 + $0x4f0] sm:$0xff] }
  0x72   :  { %1648 = vmatpush.bf16.msrb.mxu0 %v9524_v6  ;;  %v9558_v6 = vld [vmem:[%s13682_s1 + $0x428] sm:$0xff] }
  0x73   :  { %1662 = vmatpush.bf16.msrb.mxu1 %v9532_v7  ;;  %v9566_v7 = vld [vmem:[%s13682_s1 + $0x468] sm:$0xff] }
  0x74   :  { %1676 = vmatpush.bf16.msrb.mxu2 %v9540_v10  ;;  %v9574_v10 = vld [vmem:[%s13682_s1 + $0x4a8] sm:$0xff] }
  0x75   :  { %1690 = vmatpush.bf16.msrb.mxu3 %v9548_v11  ;;  %v9582_v11 = vld [vmem:[%s13682_s1 + $0x4e8] sm:$0xff] }
  0x76   :  { %1649 = vmatpush.bf16.msrb.mxu0 %v9523_v19  ;;  %v9565_v19 = vld [vmem:[%s13682_s1 + $0x460] sm:$0xff] }
  0x77   :  { %1663 = vmatpush.bf16.msrb.mxu1 %v9531_v21  ;;  %v9573_v21 = vld [vmem:[%s13682_s1 + $0x4a0] sm:$0xff] }
  0x78   :  { %1677 = vmatpush.bf16.msrb.mxu2 %v9539_v25  ;;  %v9556_v25 = vld [vmem:[%s13682_s1 + $0x418] sm:$0xff] }
  0x79   :  { %1691 = vmatpush.bf16.msrb.mxu3 %v9547_v26  ;;  %v9564_v26 = vld [vmem:[%s13682_s1 + $0x458] sm:$0xff] }
  0x7a   :  { %1650 = vmatpush.bf16.msrb.mxu0 %v9522_v38  ;;  %v9554_v38 = vld [vmem:[%s13682_s1 + $0x408] sm:$0xff] }
  0x7b   :  { %1664 = vmatpush.bf16.msrb.mxu1 %v9530_v39  ;;  %v9562_v39 = vld [vmem:[%s13682_s1 + $0x448] sm:$0xff] }
  0x7c   :  { %1678 = vmatpush.bf16.msrb.mxu2 %v9538_v41  ;;  %v176_v41 = vrot.slane %v10319_v44, 2  ;;  %v183_v44 = vrot.slane %v10400_v12, 2 }
  0x7d   :  { %1692 = vmatpush.bf16.msrb.mxu3 %v9546_v42  ;;  %v177_v42 = vrot.slane %v10391_v8, 2  ;;  %v185_v8 = vrot.slane %v10325_v47, 2 }
  0x7e   :  { %1651 = vmatpush.bf16.msrb.mxu0 %v9521_v15  ;;  %v184_v50 = vsel %vm175_vm3, %v182_v48, %v183_v44  ;;  %v9602_v48 = vld [vmem:[%s13684_s3 + $0x88] sm:$0xff] }
  0x7f   :  { %1665 = vmatpush.bf16.msrb.mxu1 %v9529_v28  ;;  %v178_v14 = vsel %vm175_vm3, %v176_v41, %v177_v42  ;;  %v187_v51 = vsel %vm175_vm3, %v185_v8, %v186_v46  ;;  %v9603_v42 = vld [vmem:[%s13684_s3 + $0x90] sm:$0xff] }
  0x80   :  { %1679 = vmatpush.bf16.msrb.mxu2 %v9537_v17 }
  0x81   :  { %1693 = vmatpush.bf16.msrb.mxu3 %v9545_v31  ;;  %1652 = vmatmul.bf16.vlgmr.msrb.gmra.mxu0 %v143_v62  ;;  %v10113_v31 = vld [vmem:[%s13683_s2] ss:$0 sm:$0xff] }
  0x82   :  { %1700 = vmatpush.bf16.msra.mxu0 %v9560_v54  ;;  %1666 = vmatmul.bf16.vlgmr.msrb.gmra.mxu1 %v152_v0 }
  0x83   :  { %1714 = vmatpush.bf16.msra.mxu1 %v9568_v55  ;;  %1680 = vmatmul.bf16.vlgmr.msrb.gmra.mxu2 %v161_v63 }
  0x84   :  { %1728 = vmatpush.bf16.msra.mxu2 %v9576_v60  ;;  %1694 = vmatmul.bf16.vlgmr.msrb.gmra.mxu3 %v170_v1 }
  0x85   :  { %1742 = vmatpush.bf16.msra.mxu3 %v9584_v61 }
  0x86   :  { %1701 = vmatpush.bf16.msra.mxu0 %v9559_v2 }
  0x87   :  { %1715 = vmatpush.bf16.msra.mxu1 %v9567_v3 }
  0x88   :  { %1729 = vmatpush.bf16.msra.mxu2 %v9575_v4 }
  0x89   :  { %1743 = vmatpush.bf16.msra.mxu3 %v9583_v5 }
  0x8a   :  { %1702 = vmatpush.bf16.msra.mxu0 %v9558_v6 }
  0x8b   :  { %1716 = vmatpush.bf16.msra.mxu1 %v9566_v7 }
  0x8c   :  { %1730 = vmatpush.bf16.msra.mxu2 %v9574_v10 }
  0x8d   :  { %1744 = vmatpush.bf16.msra.mxu3 %v9582_v11 }
  0x8e   :  { %1703 = vmatpush.bf16.msra.mxu0 %v9557_v18 }
  0x8f   :  { %1717 = vmatpush.bf16.msra.mxu1 %v9565_v19 }
  0x90   :  { %1731 = vmatpush.bf16.msra.mxu2 %v9573_v21 }
  0x91   :  { %1745 = vmatpush.bf16.msra.mxu3 %v9581_v24 }
  0x92   :  { %1704 = vmatpush.bf16.msra.mxu0 %v9556_v25 }
  0x93   :  { %1718 = vmatpush.bf16.msra.mxu1 %v9564_v26 }
  0x94   :  { %1732 = vmatpush.bf16.msra.mxu2 %v9572_v30 }
  0x95   :  { %1746 = vmatpush.bf16.msra.mxu3 %v9580_v32 }
  0x96   :  { %1705 = vmatpush.bf16.msra.mxu0 %v9555_v34 }
  0x97   :  { %1719 = vmatpush.bf16.msra.mxu1 %v9563_v35 }
  0x98   :  { %1733 = vmatpush.bf16.msra.mxu2 %v9571_v36 }
  0x99   :  { %1747 = vmatpush.bf16.msra.mxu3 %v9579_v37 }
  0x9a   :  { %1706 = vmatpush.bf16.msra.mxu0 %v9554_v38 }
  0x9b   :  { %1720 = vmatpush.bf16.msra.mxu1 %v9562_v39 }
  0x9c   :  { %1734 = vmatpush.bf16.msra.mxu2 %v9570_v20  ;;  %v9604_v20 = vld [vmem:[%s13684_s3 + $0x98] sm:$0xff] }
  0x9d   :  { %1748 = vmatpush.bf16.msra.mxu3 %v9578_v9 }
  0x9e   :  { %1707 = vmatpush.bf16.msra.mxu0 %v9553_v40  ;;  %v1485_v45 = vpop.f32.mrf.mxu0 }
  0x9f   :  { %1721 = vmatpush.bf16.msra.mxu1 %v9561_v22  ;;  %v1499_v47 = vpop.f32.mrf.mxu1  ;;  %v1486_v52 = vadd.f32 %v10113_v31, %v1485_v45 }
  0xa0   :  { %1735 = vmatpush.bf16.msra.mxu2 %v9569_v43 }
  0xa1   :  { %1749 = vmatpush.bf16.msra.mxu3 %v9577_v27  ;;  %1708 = vmatmul.bf16.vlgmr.msra.gmra.mxu0 %v178_v14  ;;  %v1500_v54 = vadd.f32 %v1499_v47, %v1486_v52 }
  0xa2   :  { %1722 = vmatmul.bf16.vlgmr.msra.gmra.mxu1 %v181_v49  ;;  %v9601_v49 = vld [vmem:[%s13684_s3 + $0x80] sm:$0xff] }
  0xa3   :  { %1736 = vmatmul.bf16.vlgmr.msra.gmra.mxu2 %v184_v50 }
  0xa4   :  { %1750 = vmatmul.bf16.vlgmr.msra.gmra.mxu3 %v187_v51  ;;  %2009 = vmatpush.bf16.msrb.mxu2 %v9604_v20  ;;  %v9587_v20 = vld [vmem:[%s13684_s3 + $0x10] sm:$0xff] }
  0xa6   :  { %v1513_v12 = vpop.f32.mrf.mxu2  ;;  %v1487_v15 = vpop.f32.mrf.mxu0 }
  0xa7   :  { %v1527_v16 = vpop.f32.mrf.mxu3  ;;  %v1501_v28 = vpop.f32.mrf.mxu1  ;;  %v1514_v57 = vadd.f32 %v1513_v12, %v1500_v54  ;;  %v1488_v59 = vadd.f32 %v10113_v31, %v1487_v15 }
  0xa8   :  { %2010 = vmatpush.bf16.msrb.mxu2 %v9603_v42 }
  0xa9   :  { %v1528_v61 = vadd.f32 %v1527_v16, %v1514_v57  ;;  %v1502_v62 = vadd.f32 %v1501_v28, %v1488_v59  ;;  %v9592_v59 = vld [vmem:[%s13684_s3 + $0x38] sm:$0xff] }
  0xaa   :  { %1977 = vmatpush.bf16.msrb.mxu0 %v9592_v59 }
  0xac   :  { %2011 = vmatpush.bf16.msrb.mxu2 %v9602_v48 }
  0xae   :  { %v1515_v29 = vpop.f32.mrf.mxu2 }
  0xaf   :  { %v1529_v17 = vpop.f32.mrf.mxu3  ;;  %v1516_v3 = vadd.f32 %v1515_v29, %v1502_v62 }
  0xb0   :  { %2012 = vmatpush.bf16.msrb.mxu2 %v9601_v49 }
  0xb1   :  { %v1530_v6 = vadd.f32 %v1529_v17, %v1516_v3 }
  0xbe   :  { %v1541_v33 = vpop.f32.mrf.mxu0 }
  0xbf   :  { %v1555_v53 = vpop.f32.mrf.mxu1  ;;  %v1542_v1 = vadd.f32 %v1541_v33, %v1528_v61  ;;  %v9600_v61 = vld [vmem:[%s13684_s3 + $0x78] sm:$0xff] }
  0xc0   :  { %1991 = vmatpush.bf16.msrb.mxu1 %v9600_v61  ;;  %v9731_v61 = vld [vmem:[%s13686_s5 + $0x3ec] sm:$0xf0] }
  0xc1   :  { %v1556_v5 = vadd.f32 %v1555_v53, %v1542_v1 }
  0xc6   :  { %v1569_v55 = vpop.f32.mrf.mxu2  ;;  %v1543_v58 = vpop.f32.mrf.mxu0 }
  0xc7   :  { %v1583_v56 = vpop.f32.mrf.mxu3  ;;  %v1557_v60 = vpop.f32.mrf.mxu1  ;;  %v1570_v11 = vadd.f32 %v1569_v55, %v1556_v5  ;;  %v1544_v18 = vadd.f32 %v1543_v58, %v1530_v6  ;;  %v9590_v6 = vld [vmem:[%s13684_s3 + $0x28] sm:$0xff] }
  0xc9   :  { %v1584_v21 = vadd.f32 %v1583_v56, %v1570_v11  ;;  %v1558_v25 = vadd.f32 %v1557_v60, %v1544_v18 }
  0xce   :  { %v1571_v63 = vpop.f32.mrf.mxu2 }
  0xcf   :  { %v1585_v0 = vpop.f32.mrf.mxu3  ;;  %v1572_v30 = vadd.f32 %v1571_v63, %v1558_v25 }
  0xd1   :  { %v1586_v37 = vadd.f32 %v1585_v0, %v1572_v30  ;;  %v9591_v0 = vld [vmem:[%s13684_s3 + $0x30] sm:$0xff]  ;;  %v9596_v30 = vld [vmem:[%s13684_s3 + $0x58] sm:$0xff] }
  0xd2   :  { %1978 = vmatpush.bf16.msrb.mxu0 %v9591_v0  ;;  %v9663_v0 = vld [vmem:[%s13686_s5 + $0x1cc] sm:$0xf0] }
  0xd6   :  { %1979 = vmatpush.bf16.msrb.mxu0 %v9590_v6  ;;  %v7448_v6 = vld [vmem:[%s13686_s5 + $0x80] sm:$0xf] }
  0xde   :  { %v1597_v2 = vpop.f32.mrf.mxu0 }
  0xdf   :  { %v1611_v4 = vpop.f32.mrf.mxu1  ;;  %v1598_v26 = vadd.f32 %v1597_v2, %v1584_v21  ;;  %v9599_v2 = vld [vmem:[%s13684_s3 + $0x70] sm:$0xff]  ;;  %v9597_v21 = vld [vmem:[%s13684_s3 + $0x60] sm:$0xff] }
  0xe0   :  { %1992 = vmatpush.bf16.msrb.mxu1 %v9599_v2  ;;  %v7720_v2 = vld [vmem:[%s13686_s5 + $0x2a0] sm:$0xf] }
  0xe1   :  { %v1612_v35 = vadd.f32 %v1611_v4, %v1598_v26  ;;  %v9588_v26 = vld [vmem:[%s13684_s3 + $0x18] sm:$0xff] }
  0xe6   :  { %v1625_v7 = vpop.f32.mrf.mxu2  ;;  %v1599_v19 = vpop.f32.mrf.mxu0 }
  0xe7   :  { %v1639_v10 = vpop.f32.mrf.mxu3  ;;  %v1613_v24 = vpop.f32.mrf.mxu1  ;;  %v1626_v38 = vadd.f32 %v1625_v7, %v1612_v35  ;;  %v1600_v9 = vadd.f32 %v1599_v19, %v1586_v37  ;;  %v9598_v7 = vld [vmem:[%s13684_s3 + $0x68] sm:$0xff]  ;;  %v9589_v19 = vld [vmem:[%s13684_s3 + $0x20] sm:$0xff] }
  0xe8   :  { %1993 = vmatpush.bf16.msrb.mxu1 %v9598_v7  ;;  %1980 = vmatpush.bf16.msrb.mxu0 %v9589_v19  ;;  %v9623_v7 = vld [vmem:[%s13686_s5 + $0x8c] sm:$0xf0]  ;;  %v7592_v19 = vld [vmem:[%s13686_s5 + $0x1a0] sm:$0xf] }
  0xe9   :  { %v1640_v40 = vadd.f32 %v1639_v10, %v1626_v38  ;;  %v1614_v23 = vadd.f32 %v1613_v24, %v1600_v9 }
  0xec   :  { %1994 = vmatpush.bf16.msrb.mxu1 %v9597_v21  ;;  %1981 = vmatpush.bf16.msrb.mxu0 %v9588_v26  ;;  %v9659_v21 = vld [vmem:[%s13686_s5 + $0x1ac] sm:$0xf0]  ;;  %v7848_v26 = vld [vmem:[%s13686_s5 + $0x3a0] sm:$0xf] }
  0xee   :  { %v1627_v32 = vpop.f32.mrf.mxu2 }
  0xef   :  { %v1641_v34 = vpop.f32.mrf.mxu3  ;;  %v1628_v43 = vadd.f32 %v1627_v32, %v1614_v23 }
  0xf0   :  { %1995 = vmatpush.bf16.msrb.mxu1 %v9596_v30  ;;  %1982 = vmatpush.bf16.msrb.mxu0 %v9587_v20  ;;  %v9723_v30 = vld [vmem:[%s13686_s5 + $0x3ac] sm:$0xf0]  ;;  %v7576_v20 = vld [vmem:[%s13686_s5 + $0x180] sm:$0xf] }
  0xf1   :  { %v1642_v46 = vadd.f32 %v1641_v34, %v1628_v43  ;;  %v9586_v43 = vld [vmem:[%s13684_s3 + $0x8] sm:$0xff] }
  0xf4   :  { %1983 = vmatpush.bf16.msrb.mxu0 %v9586_v43  ;;  %v9683_v43 = vld [vmem:[%s13686_s5 + $0x26c] sm:$0xf0] }
  0xfe   :  { %v1653_v36 = vpop.f32.mrf.mxu0 }
  0xff   :  { %v1667_v39 = vpop.f32.mrf.mxu1  ;;  %v1654_v13 = vadd.f32 %v1653_v36, %v1640_v40 }
 0x101   :  { %v1668_v44 = vadd.f32 %v1667_v39, %v1654_v13 }
 0x106   :  { %v1681_v22 = vpop.f32.mrf.mxu2  ;;  %v1655_v27 = vpop.f32.mrf.mxu0 }
 0x107   :  { %v1695_v41 = vpop.f32.mrf.mxu3  ;;  %v1669_v8 = vpop.f32.mrf.mxu1  ;;  %v1682_v14 = vadd.f32 %v1681_v22, %v1668_v44  ;;  %v1656_v50 = vadd.f32 %v1655_v27, %v1642_v46  ;;  %v9585_v46 = vld [vmem:[%s13684_s3] sm:$0xff] }
 0x108   :  { %1984 = vmatpush.bf16.msrb.mxu0 %v9585_v46  ;;  %v7416_v46 = vld [vmem:[%s13686_s5 + $0x40] sm:$0xf] }
 0x109   :  { %v1696_v47 = vadd.f32 %v1695_v41, %v1682_v14  ;;  %v1670_v16 = vadd.f32 %v1669_v8, %v1656_v50  ;;  %v9595_v41 = vld [vmem:[%s13684_s3 + $0x50] sm:$0xff] }
 0x10a   :  { %1996 = vmatpush.bf16.msrb.mxu1 %v9595_v41 }
 0x10e   :  { %v1683_v51 = vpop.f32.mrf.mxu2 }
 0x10f   :  { %v1697_v45 = vpop.f32.mrf.mxu3  ;;  %v1684_v29 = vadd.f32 %v1683_v51, %v1670_v16  ;;  %v9594_v51 = vld [vmem:[%s13684_s3 + $0x48] sm:$0xff]  ;;  %v7480_v16 = vld [vmem:[%s13686_s5 + $0xc0] sm:$0xf] }
 0x110   :  { %1997 = vmatpush.bf16.msrb.mxu1 %v9594_v51  ;;  %v7816_v51 = vld [vmem:[%s13686_s5 + $0x360] sm:$0xf] }
 0x111   :  { %v1698_v52 = vadd.f32 %v1697_v45, %v1684_v29  ;;  %v9593_v45 = vld [vmem:[%s13684_s3 + $0x40] sm:$0xff] }
 0x112   :  { %v7752_v29 = vld [vmem:[%s13686_s5 + $0x2e0] sm:$0xf] }
 0x114   :  { %1998 = vmatpush.bf16.msrb.mxu1 %v9593_v45  ;;  %v9715_v45 = vld [vmem:[%s13686_s5 + $0x36c] sm:$0xf0] }
 0x11e   :  { %v1709_v12 = vpop.f32.mrf.mxu0 }
 0x11f   :  { %v1710_v15 = vadd.f32 %v1709_v12, %v1696_v47  ;;  %v1723_v28 = vpop.f32.mrf.mxu1  ;;  %v7496_v47 = vld [vmem:[%s13686_s5 + $0xe0] sm:$0xf]  ;;  %v9635_v12 = vld [vmem:[%s13686_s5 + $0xec] sm:$0xf0] }
 0x121   :  { %v1724_v17 = vadd.f32 %v1723_v28, %v1710_v15  ;;  %v7497_v15 = vor.u32 %v9635_v12, %v7496_v47  ;;  %v9631_v28 = vld [vmem:[%s13686_s5 + $0xcc] sm:$0xf0]  ;;  %v7672_v47 = vld [vmem:[%s13686_s5 + $0x240] sm:$0xf] }
 0x122   :  { %v9679_v12 = vld [vmem:[%s13686_s5 + $0x24c] sm:$0xf0] }
 0x123   :  { %3034 = vmatpush.bf16.msrb.mxu3 %v7497_v15 }
 0x126   :  { %v1737_v31 = vpop.f32.mrf.mxu2  ;;  %v1711_v54 = vpop.f32.mrf.mxu0 }
 0x127   :  { %v1751_v33 = vpop.f32.mrf.mxu3  ;;  %v1738_v53 = vadd.f32 %v1737_v31, %v1724_v17  ;;  %v1712_v55 = vadd.f32 %v1711_v54, %v1698_v52  ;;  %v1725_v57 = vpop.f32.mrf.mxu1  ;;  %v9699_v17 = vld [vmem:[%s13686_s5 + $0x2ec] sm:$0xf0]  ;;  %v7624_v52 = vld [vmem:[%s13686_s5 + $0x1e0] sm:$0xf] }
 0x128   :  { %v7753_v31 = vor.u32 %v9699_v17, %v7752_v29  ;;  %v9667_v54 = vld [vmem:[%s13686_s5 + $0x1ec] sm:$0xf0]  ;;  %v7817_v17 = vor.u32 %v9715_v45, %v7816_v51  ;;  %v9629_v51 = vld [vmem:[%s13686_s5 + $0xc4] sm:$0xf] }
 0x129   :  { %v1752_v56 = vadd.f32 %v1751_v33, %v1738_v53  ;;  %v1726_v58 = vadd.f32 %v1725_v57, %v1712_v55  ;;  %v7464_v33 = vld [vmem:[%s13686_s5 + $0xa0] sm:$0xf]  ;;  %v7481_v53 = vor.u32 %v9631_v28, %v7480_v16  ;;  %v9627_v57 = vld [vmem:[%s13686_s5 + $0xac] sm:$0xf0] }
 0x12a   :  { %v7736_v55 = vld [vmem:[%s13686_s5 + $0x2c0] sm:$0xf]  ;;  %3062 = vmatpush.bf16.msra.mxu0 %v7753_v31 }
 0x12b   :  { %v1756_v62 = vmax.f32 %v1752_v56, 0.0  ;;  %v9695_v56 = vld [vmem:[%s13686_s5 + $0x2cc] sm:$0xf0]  ;;  %3035 = vmatpush.bf16.msrb.mxu3 %v7481_v53  ;;  %v7673_v53 = vor.u32 %v9679_v12, %v7672_v47  ;;  %v7482_v47 = vld [vmem:[%s13686_s5 + $0xd0] sm:$0xf0] }
 0x12c   :  { %v7737_v59 = vor.u32 %v9695_v56, %v7736_v55  ;;  %v7384_v55 = vld [vmem:[%s13686_s5] sm:$0xf]  ;;  %v9607_v56 = vld [vmem:[%s13686_s5 + $0xc] sm:$0xf0]  ;;  %v9657_v12 = vld [vmem:[%s13686_s5 + $0x1a4] sm:$0xf] }
 0x12d   :  { %v1758_v4 = vpack.c.bf16 %v1756_v62, %v1756_v62 }
 0x12e   :  { %v1739_v60 = vpop.f32.mrf.mxu2  ;;  %3063 = vmatpush.bf16.msra.mxu0 %v7737_v59  ;;  %v9647_v59 = vld [vmem:[%s13686_s5 + $0x14c] sm:$0xf0] }
 0x12f   :  { %v1740_v63 = vadd.f32 %v1739_v60, %v1726_v58  ;;  %v1753_v1 = vpop.f32.mrf.mxu3  ;;  %v1762_v11 = vunpack.c.l.b16 %v1758_v4  ;;  %v7625_v58 = vor.u32 %v9667_v54, %v7624_v52  ;;  %v7880_v60 = vld [vmem:[%s13686_s5 + $0x3e0] sm:$0xf]  ;;  %v9611_v52 = vld [vmem:[%s13686_s5 + $0x2c] sm:$0xf0] }
 0x130   :  { %v7881_v62 = vor.u32 %v9731_v61, %v7880_v60  ;;  %v7864_v4 = vld [vmem:[%s13686_s5 + $0x3c0] sm:$0xf]  ;;  %v9675_v61 = vld [vmem:[%s13686_s5 + $0x22c] sm:$0xf0] }
 0x131   :  { %v1754_v3 = vadd.f32 %v1753_v1, %v1740_v63  ;;  %v7608_v63 = vld [vmem:[%s13686_s5 + $0x1c0] sm:$0xf]  ;;  %3048 = vmatpush.bf16.msra.mxu2 %v7625_v58  ;;  %v7385_v58 = vor.u32 %v9607_v56, %v7384_v55  ;;  %v7466_v55 = vld [vmem:[%s13686_s5 + $0xb0] sm:$0xf0]  ;;  %v9653_v56 = vld [vmem:[%s13686_s5 + $0x184] sm:$0xf] }
 0x132   :  { %v7609_v1 = vor.u32 %v9663_v0, %v7608_v63  ;;  %3076 = vmatpush.bf16.msra.mxu1 %v7881_v62  ;;  %v7656_v60 = vld [vmem:[%s13686_s5 + $0x220] sm:$0xf] }
 0x133   :  { %v1757_v5 = vmax.f32 %v1754_v3, 0.0  ;;  %v9691_v3 = vld [vmem:[%s13686_s5 + $0x2ac] sm:$0xf0]  ;;  %v7657_v63 = vor.u32 %v9675_v61, %v7656_v60  ;;  %v7800_v0 = vld [vmem:[%s13686_s5 + $0x340] sm:$0xf] }
 0x134   :  { %v9689_v60 = vld [vmem:[%s13686_s5 + $0x2a4] sm:$0xf]  ;;  %v7722_v61 = vld [vmem:[%s13686_s5 + $0x2b0] sm:$0xf0] }
 0x135   :  { %v1759_v10 = vpack.c.bf16 %v1757_v5, %v1757_v5  ;;  %v7465_v5 = vor.u32 %v9627_v57, %v7464_v33  ;;  %3049 = vmatpush.bf16.msra.mxu2 %v7609_v1  ;;  %v7400_v33 = vld [vmem:[%s13686_s5 + $0x20] sm:$0xf]  ;;  %v9711_v1 = vld [vmem:[%s13686_s5 + $0x34c] sm:$0xf0] }
 0x136   :  { %v7401_v54 = vor.u32 %v9611_v52, %v7400_v33  ;;  %v7544_v57 = vld [vmem:[%s13686_s5 + $0x140] sm:$0xf]  ;;  %v9747_v52 = vld [vmem:[%s13686_s5 + $0x46c] sm:$0xf0] }
 0x137   :  { %v1763_v18 = vunpack.c.l.b16 %v1759_v10  ;;  %v9727_v10 = vld [vmem:[%s13686_s5 + $0x3cc] sm:$0xf0]  ;;  %3036 = vmatpush.bf16.msrb.mxu3 %v7465_v5  ;;  %v7545_v62 = vor.u32 %v9647_v59, %v7544_v57  ;;  %v7528_v5 = vld [vmem:[%s13686_s5 + $0x120] sm:$0xf]  ;;  %v7578_v57 = vld [vmem:[%s13686_s5 + $0x190] sm:$0xf0] }
 0x138   :  { %v7944_v33 = vld [vmem:[%s13686_s5 + $0x460] sm:$0xf]  ;;  %v7581_v59 = vor.u32 %v9653_v56, %v7578_v57 }
 0x139   :  { %v1764_v24 = vpack.c.b16 %v1763_v18, %v1762_v11  ;;  %v7721_v11 = vor.u32 %v9691_v3, %v7720_v2  ;;  %v7865_v18 = vor.u32 %v9727_v10, %v7864_v4  ;;  %v8008_v2 = vld [vmem:[%s13686_s5 + $0x4e0] sm:$0xf]  ;;  %v7801_v3 = vor.u32 %v9711_v1, %v7800_v0  ;;  %v9763_v4 = vld [vmem:[%s13686_s5 + $0x4ec] sm:$0xf0]  ;;  %v9621_v1 = vld [vmem:[%s13686_s5 + $0x84] sm:$0xf] }
 0x13a   :  { %v9743_v0 = vld [vmem:[%s13686_s5 + $0x44c] sm:$0xf0] }
 0x13b   :  { %v1765_v25 = vrot.slane %v1764_v24, 7  ;;  %v7704_v24 = vld [vmem:[%s13686_s5 + $0x280] sm:$0xf]  ;;  %3077 = vmatpush.bf16.msra.mxu1 %v7865_v18  ;;  %3064 = vmatpush.bf16.msra.mxu0 %v7721_v11  ;;  %v9671_v18 = vld [vmem:[%s13686_s5 + $0x20c] sm:$0xf0] }
 0x13c   :  { %v7640_v11 = vld [vmem:[%s13686_s5 + $0x200] sm:$0xf] }
 0x13d   :  { %v10859_v32 = vsel %vm1766_vm4, 0, %v1765_v25  ;;  %v10862_v34 = vsel %vm1766_vm4, %v1765_v25, 0  ;;  %v9687_v25 = vld [vmem:[%s13686_s5 + $0x28c] sm:$0xf0] }
 0x13e   :  { %v1799_v35 = vrot.slane %v10859_v32, 2  ;;  %v1800_v36 = vrot.slane %v10862_v34, 2  ;;  %v1773_v37 = vshll.u32 %v10859_v32, 16  ;;  %v1771_v38 = vshrl.u32 %v10859_v32, 16 }
 0x13f   :  { %v1777_v39 = vshll.u32 %v10862_v34, 16  ;;  %v1791_v22 = vshrl.u32 %v10862_v34, 16  ;;  %v7705_v41 = vor.u32 %v9687_v25, %v7704_v24  ;;  %v9707_v24 = vld [vmem:[%s13686_s5 + $0x32c] sm:$0xf0]  ;;  %v7992_v25 = vld [vmem:[%s13686_s5 + $0x4c0] sm:$0xf] }
 0x140   :  { %v1801_v9 = vsel %vm175_vm3, %v1799_v35, %v1800_v36  ;;  %v1775_v40 = vrot.slane %v1773_v37, 1  ;;  %v1788_v13 = vrot.slane %v1771_v38, 1  ;;  %v1789_v48 = vrot.slane %v1773_v37, 2 }
 0x141   :  { %7381 = vmatmul.msk.bf16.vlgmr.msrb.gmra.mxu2 %vm1802_vm5, %v1801_v9  ;;  %v1779_v23 = vrot.slane %v1777_v39, 1  ;;  %v1793_v44 = vrot.slane %v1791_v22, 1  ;;  %v1794_v8 = vrot.slane %v1777_v39, 2  ;;  %v7593_v35 = vor.u32 %v9659_v21, %v7592_v19  ;;  %v9655_v9 = vld [vmem:[%s13686_s5 + $0x18c] sm:$0xf0]  ;;  %3065 = vmatpush.bf16.msra.mxu0 %v7705_v41 }
 0x142   :  { %v1776_v42 = vor.u32 %v1775_v40, %v1771_v38  ;;  %v1790_v14 = vor.u32 %v1789_v48, %v1788_v13  ;;  %v7449_v37 = vor.u32 %v9623_v7, %v7448_v6  ;;  %v7432_v38 = vld [vmem:[%s13686_s5 + $0x60] sm:$0xf]  ;;  %v7849_v39 = vor.u32 %v9723_v30, %v7848_v26  ;;  %v9619_v22 = vld [vmem:[%s13686_s5 + $0x6c] sm:$0xf0] }
 0x143   :  { %v1795_v49 = vor.u32 %v1794_v8, %v1793_v44  ;;  %v7688_v13 = vld [vmem:[%s13686_s5 + $0x260] sm:$0xf]  ;;  %v1786_v48 = vrot.slane %v10862_v34, 1  ;;  %3050 = vmatpush.bf16.msra.mxu2 %v7593_v35  ;;  %v7577_v44 = vor.u32 %v9655_v9, %v7576_v20  ;;  %v7433_v8 = vor.u32 %v9619_v22, %v7432_v38  ;;  %v9615_v34 = vld [vmem:[%s13686_s5 + $0x4c] sm:$0xf0] }
 0x144   :  { %v1780_v27 = vsel %vm64_vm0, %v1776_v42, %v1779_v23  ;;  %v7832_v42 = vld [vmem:[%s13686_s5 + $0x380] sm:$0xf]  ;;  %v9719_v23 = vld [vmem:[%s13686_s5 + $0x38c] sm:$0xf0]  ;;  %3037 = vmatpush.bf16.msrb.mxu3 %v7449_v37  ;;  %3078 = vmatpush.bf16.msra.mxu1 %v7849_v39  ;;  %v7417_v29 = vor.u32 %v9615_v34, %v7416_v46  ;;  %v8009_v7 = vor.u32 %v9763_v4, %v8008_v2  ;;  %v7626_v37 = vld [vmem:[%s13686_s5 + $0x1f0] sm:$0xf0] }
 0x145   :  { %1781 = vrot.lane.b32.xlu0 %v1780_v27, %s10143_s9  ;;  %v1796_v50 = vsel %vm134_vm2, %v1790_v14, %v1795_v49  ;;  %v1785_v27 = vrot.slane %v10859_v32, 1  ;;  %v7833_v14 = vor.u32 %v9719_v23, %v7832_v42  ;;  %v7560_v49 = vld [vmem:[%s13686_s5 + $0x160] sm:$0xf]  ;;  %v9643_v6 = vld [vmem:[%s13686_s5 + $0x12c] sm:$0xf0]  ;;  %v7641_v21 = vor.u32 %v9671_v18, %v7640_v11 }
 0x146   :  { %v7529_v10 = vor.u32 %v9643_v6, %v7528_v5  ;;  %v7784_v19 = vld [vmem:[%s13686_s5 + $0x320] sm:$0xf]  ;;  %v9759_v26 = vld [vmem:[%s13686_s5 + $0x4cc] sm:$0xf0]  ;;  %v9697_v46 = vld [vmem:[%s13686_s5 + $0x2e4] sm:$0xf] }
 0x147   :  { %3051 = vmatpush.bf16.msra.mxu2 %v7577_v44  ;;  %v1787_v15 = vsel %vm117_vm1, %v1785_v27, %v1786_v48  ;;  %v7785_v30 = vor.u32 %v9707_v24, %v7784_v19  ;;  %v7993_v35 = vor.u32 %v9759_v26, %v7992_v25  ;;  %v7512_v39 = vld [vmem:[%s13686_s5 + $0x100] sm:$0xf]  ;;  %v9639_v20 = vld [vmem:[%s13686_s5 + $0x10c] sm:$0xf0]  ;;  %v7498_v27 = vld [vmem:[%s13686_s5 + $0xf0] sm:$0xf0] }
 0x148   :  { %3038 = vmatpush.bf16.msrb.mxu3 %v7433_v8  ;;  %3079 = vmatpush.bf16.msra.mxu1 %v7833_v14  ;;  %v7768_v9 = vld [vmem:[%s13686_s5 + $0x300] sm:$0xf]  ;;  %v9703_v22 = vld [vmem:[%s13686_s5 + $0x30c] sm:$0xf0]  ;;  %v9661_v48 = vld [vmem:[%s13686_s5 + $0x1c4] sm:$0xf] }
 0x149   :  { %v7976_v41 = vld [vmem:[%s13686_s5 + $0x4a0] sm:$0xf]  ;;  %v9755_v42 = vld [vmem:[%s13686_s5 + $0x4ac] sm:$0xf0]  ;;  %v7769_v23 = vor.u32 %v9703_v22, %v7768_v9  ;;  %v7610_v8 = vld [vmem:[%s13686_s5 + $0x1d0] sm:$0xf0] }
 0x14a   :  { %v7754_v14 = vld [vmem:[%s13686_s5 + $0x2f0] sm:$0xf0]  ;;  %v7960_v34 = vld [vmem:[%s13686_s5 + $0x480] sm:$0xf]  ;;  %v9649_v4 = vld [vmem:[%s13686_s5 + $0x164] sm:$0xf] }
 0x14b   :  { %v7562_v5 = vld [vmem:[%s13686_s5 + $0x170] sm:$0xf0]  ;;  %v7912_v19 = vld [vmem:[%s13686_s5 + $0x420] sm:$0xf]  ;;  %v9617_v24 = vld [vmem:[%s13686_s5 + $0x64] sm:$0xf] }
 0x14c   :  { %3039 = vmatpush.bf16.msrb.mxu3 %v7417_v29  ;;  %3080 = vmatpush.bf16.msra.mxu1 %v7817_v17  ;;  %v9693_v29 = vld [vmem:[%s13686_s5 + $0x2c4] sm:$0xf]  ;;  %v7738_v17 = vld [vmem:[%s13686_s5 + $0x2d0] sm:$0xf0]  ;;  %v7896_v9 = vld [vmem:[%s13686_s5 + $0x400] sm:$0xf] }
 0x14d   :  { %1797 = vrot.lane.b32.xlu0 %v1796_v50, %s10143_s9  ;;  %v7689_v50 = vor.u32 %v9683_v43, %v7688_v13  ;;  %v7977_v13 = vor.u32 %v9755_v42, %v7976_v41  ;;  %v9633_v43 = vld [vmem:[%s13686_s5 + $0xe4] sm:$0xf]  ;;  %v7706_v11 = vld [vmem:[%s13686_s5 + $0x290] sm:$0xf0] }
 0x14e   :  { %v7501_v44 = vor.u32 %v9633_v43, %v7498_v27  ;;  %v7434_v26 = vld [vmem:[%s13686_s5 + $0x70] sm:$0xf0]  ;;  %v9613_v22 = vld [vmem:[%s13686_s5 + $0x44] sm:$0xf] }
 0x14f   :  { %3066 = vmatpush.bf16.msra.mxu0 %v7689_v50  ;;  %v9751_v50 = vld [vmem:[%s13686_s5 + $0x48c] sm:$0xf0]  ;;  %v7418_v42 = vld [vmem:[%s13686_s5 + $0x50] sm:$0xf0] }
 0x150   :  { %3040 = vmatpush.bf16.msrb.mxu3 %v7401_v54  ;;  %3081 = vmatpush.bf16.msra.mxu1 %v7801_v3  ;;  %v7961_v45 = vor.u32 %v9751_v50, %v7960_v34  ;;  %v7945_v54 = vor.u32 %v9747_v52, %v7944_v33  ;;  %v7450_v3 = vld [vmem:[%s13686_s5 + $0x90] sm:$0xf0]  ;;  %v7421_v43 = vor.u32 %v9613_v22, %v7418_v42  ;;  %v9673_v50 = vld [vmem:[%s13686_s5 + $0x224] sm:$0xf] }
 0x151   :  { %v7453_v6 = vor.u32 %v9621_v1, %v7450_v3  ;;  %v7514_v34 = vld [vmem:[%s13686_s5 + $0x110] sm:$0xf0]  ;;  %v9761_v22 = vld [vmem:[%s13686_s5 + $0x4e4] sm:$0xf] }
 0x153   :  { %3067 = vmatpush.bf16.msra.mxu0 %v7673_v53  ;;  %v9625_v53 = vld [vmem:[%s13686_s5 + $0xa4] sm:$0xf] }
 0x154   :  { %3041 = vmatpush.bf16.msrb.mxu3 %v7385_v58  ;;  %3082 = vmatpush.bf16.msra.mxu1 %v7785_v30  ;;  %v7469_v58 = vor.u32 %v9625_v53, %v7466_v55  ;;  %v9645_v30 = vld [vmem:[%s13686_s5 + $0x144] sm:$0xf] }
 0x157   :  { %3068 = vmatpush.bf16.msra.mxu0 %v7657_v63  ;;  %v7928_v63 = vld [vmem:[%s13686_s5 + $0x440] sm:$0xf] }
 0x158   :  { %3090 = vmatpush.bf16.msra.mxu3 %v8009_v7  ;;  %3083 = vmatpush.bf16.msra.mxu1 %v7769_v23  ;;  %v7929_v2 = vor.u32 %v9743_v0, %v7928_v63  ;;  %v7565_v7 = vor.u32 %v9649_v4, %v7562_v5  ;;  %v9641_v23 = vld [vmem:[%s13686_s5 + $0x124] sm:$0xf] }
 0x159   :  { %v9729_v5 = vld [vmem:[%s13686_s5 + $0x3e4] sm:$0xf] }
 0x15b   :  { %3069 = vmatpush.bf16.msra.mxu0 %v7641_v21  ;;  %v9739_v21 = vld [vmem:[%s13686_s5 + $0x42c] sm:$0xf0] }
 0x15c   :  { %3091 = vmatpush.bf16.msra.mxu3 %v7993_v35  ;;  %v7913_v25 = vor.u32 %v9739_v21, %v7912_v19  ;;  %v7546_v35 = vld [vmem:[%s13686_s5 + $0x150] sm:$0xf0]  ;;  %v7504_v21 = vld [vmem:[%s13686_s5 + $0xe8] sm:$0xf] }
 0x15d   :  { %v7866_v19 = vld [vmem:[%s13686_s5 + $0x3d0] sm:$0xf0] }
 0x160   :  { %3092 = vmatpush.bf16.msra.mxu3 %v7977_v13  ;;  %v7530_v13 = vld [vmem:[%s13686_s5 + $0x130] sm:$0xf0] }
 0x161   :  { %v7533_v27 = vor.u32 %v9641_v23, %v7530_v13  ;;  %v8010_v23 = vld [vmem:[%s13686_s5 + $0x4f0] sm:$0xf0]  ;;  %v7488_v13 = vld [vmem:[%s13686_s5 + $0xc8] sm:$0xf] }
 0x164   :  { %3093 = vmatpush.bf16.msra.mxu3 %v7961_v45 }
 0x168   :  { %3094 = vmatpush.bf16.msra.mxu3 %v7945_v54 }
 0x16c   :  { %3095 = vmatpush.bf16.msra.mxu3 %v7929_v2 }
 0x170   :  { %3096 = vmatpush.bf16.msra.mxu3 %v7913_v25 }
 0x1b7   :  { %v1782_v36 = vpop.permute.xlu0 %1781 }
 0x1b8   :  { %v1804_v40 = vsel %vm1802_vm5, %v10859_v32, %v1782_v36  ;;  %v9651_v32 = vld [vmem:[%s13686_s5 + $0x16c] sm:$0xf0]  ;;  %v9665_v36 = vld [vmem:[%s13686_s5 + $0x1e4] sm:$0xf] }
 0x1b9   :  { %1985 = vmatmul.bf16.vlgmr.msrb.gmra.mxu0 %v1804_v40  ;;  %v7561_v16 = vor.u32 %v9651_v32, %v7560_v49  ;;  %v7629_v38 = vor.u32 %v9665_v36, %v7626_v37  ;;  %v7513_v40 = vor.u32 %v9639_v20, %v7512_v39  ;;  %v7613_v49 = vor.u32 %v9661_v48, %v7610_v8  ;;  %v7690_v39 = vld [vmem:[%s13686_s5 + $0x270] sm:$0xf0]  ;;  %v9677_v48 = vld [vmem:[%s13686_s5 + $0x244] sm:$0xf] }
 0x1ba   :  { %v7757_v32 = vor.u32 %v9697_v46, %v7754_v14  ;;  %v7437_v36 = vor.u32 %v9617_v24, %v7434_v26  ;;  %v7549_v37 = vor.u32 %v9645_v30, %v7546_v35  ;;  %v9609_v46 = vld [vmem:[%s13686_s5 + $0x24] sm:$0xf]  ;;  %v7402_v14 = vld [vmem:[%s13686_s5 + $0x30] sm:$0xf0]  ;;  %v9636_v24 = vld [vmem:[%s13686_s5 + $0xf4] sm:$0xf0] }
 0x1bb   :  { %3052 = vmatpush.bf16.msra.mxu2 %v7561_v16  ;;  %3118 = vmatpush.bf16.msrb.mxu0 %v7629_v38  ;;  %v7594_v16 = vld [vmem:[%s13686_s5 + $0x1b0] sm:$0xf0]  ;;  %v9681_v38 = vld [vmem:[%s13686_s5 + $0x264] sm:$0xf] }
 0x1bc   :  { %v7693_v20 = vor.u32 %v9681_v38, %v7690_v39  ;;  %v7850_v38 = vld [vmem:[%s13686_s5 + $0x3b0] sm:$0xf0] }
 0x1bf   :  { %v1798_v28 = vpop.permute.xlu0 %1797  ;;  %3053 = vmatpush.bf16.msra.mxu2 %v7545_v62  ;;  %3119 = vmatpush.bf16.msrb.mxu0 %v7613_v49  ;;  %v7725_v62 = vor.u32 %v9689_v60, %v7722_v61  ;;  %v9637_v49 = vld [vmem:[%s13686_s5 + $0x104] sm:$0xf] }
 0x1c0   :  { %v1808_v31 = vsel %vm1802_vm5, %v1787_v15, %v1798_v28  ;;  %v7485_v15 = vor.u32 %v9629_v51, %v7482_v47  ;;  %v7597_v28 = vor.u32 %v9657_v12, %v7594_v16  ;;  %v7658_v51 = vld [vmem:[%s13686_s5 + $0x230] sm:$0xf0]  ;;  %v7517_v47 = vor.u32 %v9637_v49, %v7514_v34  ;;  %v10114_v16 = vld [vmem:[%s13685_s4] ss:$0 sm:$0xff]  ;;  %v7632_v49 = vld [vmem:[%s13686_s5 + $0x1e8] sm:$0xf] }
 0x1c1   :  { %1999 = vmatmul.bf16.vlgmr.msrb.gmra.mxu1 %v1808_v31  ;;  %v7741_v31 = vor.u32 %v9693_v29, %v7738_v17  ;;  %v7661_v12 = vor.u32 %v9673_v50, %v7658_v51  ;;  %v9669_v29 = vld [vmem:[%s13686_s5 + $0x204] sm:$0xf] }
 0x1c2   :  { %3132 = vmatpush.bf16.msrb.mxu1 %v7757_v32  ;;  %v7405_v32 = vor.u32 %v9609_v46, %v7402_v14 }
 0x1c3   :  { %3054 = vmatpush.bf16.msra.mxu2 %v7529_v10  ;;  %3120 = vmatpush.bf16.msrb.mxu0 %v7597_v28  ;;  %v9685_v10 = vld [vmem:[%s13686_s5 + $0x284] sm:$0xf]  ;;  %v7386_v28 = vld [vmem:[%s13686_s5 + $0x10] sm:$0xf0] }
 0x1c4   :  { %v7709_v18 = vor.u32 %v9685_v10, %v7706_v11  ;;  %v2014_v53 = vpop.f32.mrf.mxu2  ;;  %v9725_v11 = vld [vmem:[%s13686_s5 + $0x3c4] sm:$0xf]  ;;  %v8945_v10 = vld [vmem:[%s13686_s5 + $0x158] sm:$0xf0] }
 0x1c5   :  { %v7869_v35 = vor.u32 %v9725_v11, %v7866_v19  ;;  %v9709_v19 = vld [vmem:[%s13686_s5 + $0x344] sm:$0xf] }
 0x1c6   :  { %3133 = vmatpush.bf16.msrb.mxu1 %v7741_v31  ;;  %v7642_v31 = vld [vmem:[%s13686_s5 + $0x210] sm:$0xf0] }
 0x1c7   :  { %3055 = vmatpush.bf16.msra.mxu2 %v7513_v40  ;;  %3121 = vmatpush.bf16.msrb.mxu0 %v7581_v59  ;;  %v9735_v40 = vld [vmem:[%s13686_s5 + $0x40c] sm:$0xf0]  ;;  %v7645_v33 = vor.u32 %v9669_v29, %v7642_v31  ;;  %v9757_v29 = vld [vmem:[%s13686_s5 + $0x4c4] sm:$0xf] }
 0x1c8   :  { %v7897_v41 = vor.u32 %v9735_v40, %v7896_v9 }
 0x1ca   :  { %3134 = vmatpush.bf16.msrb.mxu1 %v7725_v62  ;;  %3097 = vmatpush.bf16.msra.mxu3 %v7897_v41 }
 0x1cb   :  { %3104 = vmatpush.bf16.msrb.mxu2 %v7501_v44  ;;  %3122 = vmatpush.bf16.msrb.mxu0 %v7565_v7  ;;  %v7674_v44 = vld [vmem:[%s13686_s5 + $0x250] sm:$0xf0] }
 0x1cc   :  { %v7677_v8 = vor.u32 %v9677_v48, %v7674_v44  ;;  %v2016_v62 = vpop.f32.mrf.mxu2 }
 0x1ce   :  { %3135 = vmatpush.bf16.msrb.mxu1 %v7709_v18 }
 0x1cf   :  { %3105 = vmatpush.bf16.msrb.mxu2 %v7485_v15  ;;  %3123 = vmatpush.bf16.msrb.mxu0 %v7549_v37  ;;  %v9605_v15 = vld [vmem:[%s13686_s5 + $0x4] sm:$0xf] }
 0x1d0   :  { %v7389_v17 = vor.u32 %v9605_v15, %v7386_v28  ;;  %v9721_v37 = vld [vmem:[%s13686_s5 + $0x3a4] sm:$0xf]  ;;  %v7834_v28 = vld [vmem:[%s13686_s5 + $0x390] sm:$0xf0] }
 0x1d1   :  { %v9717_v15 = vld [vmem:[%s13686_s5 + $0x384] sm:$0xf] }
 0x1d2   :  { %3136 = vmatpush.bf16.msrb.mxu1 %v7693_v20 }
 0x1d3   :  { %3106 = vmatpush.bf16.msrb.mxu2 %v7469_v58  ;;  %3124 = vmatpush.bf16.msrb.mxu0 %v7533_v27 }
 0x1d6   :  { %3137 = vmatpush.bf16.msrb.mxu1 %v7677_v8  ;;  %v9632_v8 = vld [vmem:[%s13686_s5 + $0xd4] sm:$0xf0] }
 0x1d7   :  { %3107 = vmatpush.bf16.msrb.mxu2 %v7453_v6  ;;  %3125 = vmatpush.bf16.msrb.mxu0 %v7517_v47  ;;  %v7882_v6 = vld [vmem:[%s13686_s5 + $0x3f0] sm:$0xf0] }
 0x1d8   :  { %v7885_v18 = vor.u32 %v9729_v5, %v7882_v6  ;;  %v7600_v5 = vld [vmem:[%s13686_s5 + $0x1a8] sm:$0xf]  ;;  %v9660_v6 = vld [vmem:[%s13686_s5 + $0x1b4] sm:$0xf0] }
 0x1da   :  { %3138 = vmatpush.bf16.msrb.mxu1 %v7661_v12  ;;  %v8013_v12 = vor.u32 %v9761_v22, %v8010_v23  ;;  %v9705_v22 = vld [vmem:[%s13686_s5 + $0x324] sm:$0xf] }
 0x1db   :  { %3108 = vmatpush.bf16.msrb.mxu2 %v7437_v36  ;;  %v7505_v36 = vor.u32 %v9636_v24, %v7504_v21  ;;  %v7802_v21 = vld [vmem:[%s13686_s5 + $0x350] sm:$0xf0]  ;;  %v9749_v24 = vld [vmem:[%s13686_s5 + $0x484] sm:$0xf] }
 0x1de   :  { %3139 = vmatpush.bf16.msrb.mxu1 %v7645_v33  ;;  %v7994_v33 = vld [vmem:[%s13686_s5 + $0x4d0] sm:$0xf0] }
 0x1df   :  { %3109 = vmatpush.bf16.msrb.mxu2 %v7421_v43 }
 0x1e3   :  { %3110 = vmatpush.bf16.msrb.mxu2 %v7405_v32  ;;  %v9668_v32 = vld [vmem:[%s13686_s5 + $0x1f4] sm:$0xf0] }
 0x1e4   :  { %v7633_v31 = vor.u32 %v9668_v32, %v7632_v49 }
 0x1e7   :  { %3111 = vmatpush.bf16.msrb.mxu2 %v7389_v17 }
 0x236   :  { %v1986_v45 = vpop.f32.mrf.mxu0 }
 0x237   :  { %v1987_v52 = vadd.f32 %v10114_v16, %v1986_v45  ;;  %v7853_v45 = vor.u32 %v9721_v37, %v7850_v38  ;;  %v9620_v37 = vld [vmem:[%s13686_s5 + $0x74] sm:$0xf0]  ;;  %v7584_v38 = vld [vmem:[%s13686_s5 + $0x188] sm:$0xf] }
 0x23e   :  { %v2000_v54 = vpop.f32.mrf.mxu1  ;;  %v1988_v56 = vpop.f32.mrf.mxu0 }
 0x23f   :  { %v2001_v55 = vadd.f32 %v2000_v54, %v1987_v52  ;;  %v1989_v58 = vadd.f32 %v10114_v16, %v1988_v56  ;;  %v7489_v16 = vor.u32 %v9632_v8, %v7488_v13  ;;  %v7472_v52 = vld [vmem:[%s13686_s5 + $0xa8] sm:$0xf]  ;;  %v9664_v56 = vld [vmem:[%s13686_s5 + $0x1d4] sm:$0xf0]  ;;  %v7946_v13 = vld [vmem:[%s13686_s5 + $0x470] sm:$0xf0] }
 0x240   :  { %v9652_v8 = vld [vmem:[%s13686_s5 + $0x174] sm:$0xf0] }
 0x241   :  { %v2015_v57 = vadd.f32 %v2014_v53, %v2001_v55  ;;  %v9628_v53 = vld [vmem:[%s13686_s5 + $0xb4] sm:$0xf0]  ;;  %v7616_v55 = vld [vmem:[%s13686_s5 + $0x1c8] sm:$0xf] }
 0x243   :  { %v2019_v60 = vmax.f32 %v2015_v57, 0.0  ;;  %v7837_v57 = vor.u32 %v9717_v15, %v7834_v28  ;;  %v9648_v15 = vld [vmem:[%s13686_s5 + $0x154] sm:$0xf0]  ;;  %v7760_v28 = vld [vmem:[%s13686_s5 + $0x2e8] sm:$0xf] }
 0x245   :  { %v2021_v0 = vpack.c.bf16 %v2019_v60, %v2019_v60  ;;  %v7473_v60 = vor.u32 %v9628_v53, %v7472_v52  ;;  %v9737_v53 = vld [vmem:[%s13686_s5 + $0x424] sm:$0xf] }
 0x246   :  { %v2002_v59 = vpop.f32.mrf.mxu1 }
 0x247   :  { %v2003_v61 = vadd.f32 %v2002_v59, %v1989_v58  ;;  %v2025_v3 = vunpack.c.l.b16 %v2021_v0  ;;  %v9713_v58 = vld [vmem:[%s13686_s5 + $0x364] sm:$0xf]  ;;  %v7997_v59 = vor.u32 %v9757_v29, %v7994_v33  ;;  %v7617_v0 = vor.u32 %v9664_v56, %v7616_v55  ;;  %v9700_v29 = vld [vmem:[%s13686_s5 + $0x2f4] sm:$0xf0]  ;;  %v7914_v55 = vld [vmem:[%s13686_s5 + $0x430] sm:$0xf0] }
 0x249   :  { %v2017_v63 = vadd.f32 %v2016_v62, %v2003_v61  ;;  %v7818_v61 = vld [vmem:[%s13686_s5 + $0x370] sm:$0xf0]  ;;  %v9753_v62 = vld [vmem:[%s13686_s5 + $0x4a4] sm:$0xf] }
 0x24b   :  { %v2020_v1 = vmax.f32 %v2017_v63, 0.0  ;;  %v7978_v63 = vld [vmem:[%s13686_s5 + $0x4b0] sm:$0xf0] }
 0x24c   :  { %v7981_v11 = vor.u32 %v9753_v62, %v7978_v63  ;;  %v7744_v62 = vld [vmem:[%s13686_s5 + $0x2c8] sm:$0xf]  ;;  %v9696_v63 = vld [vmem:[%s13686_s5 + $0x2d4] sm:$0xf0] }
 0x24d   :  { %v2022_v2 = vpack.c.bf16 %v2020_v1, %v2020_v1 }
 0x24f   :  { %v2026_v4 = vunpack.c.l.b16 %v2022_v2 }
 0x251   :  { %v2027_v7 = vpack.c.b16 %v2026_v4, %v2025_v3  ;;  %v7456_v3 = vld [vmem:[%s13686_s5 + $0x88] sm:$0xf]  ;;  %v9624_v4 = vld [vmem:[%s13686_s5 + $0x94] sm:$0xf0] }
 0x253   :  { %v11310_v25 = vrot.slane %v2027_v7, 7  ;;  %v7821_v7 = vor.u32 %v9713_v58, %v7818_v61  ;;  %v7392_v58 = vld [vmem:[%s13686_s5 + $0x8] sm:$0xf]  ;;  %v9644_v61 = vld [vmem:[%s13686_s5 + $0x134] sm:$0xf0] }
 0x255   :  { %8023 = vmatmul.msk.bf16.vlgmr.msrb.gmra.mxu3 %vm11294_vm6, %v11310_v25  ;;  %v11317_v26 = vsel %vm1766_vm4, 0, %v11310_v25  ;;  %v11321_v30 = vsel %vm1766_vm4, %v11310_v25, 0 }
 0x256   :  { %3146 = vmatpush.bf16.msrb.mxu3 %v7885_v18  ;;  %v2046_v39 = vrot.slane %v11317_v26, 1  ;;  %v2047_v20 = vrot.slane %v11321_v30, 1  ;;  %v2033_v9 = vshrl.u32 %v11317_v26, 16  ;;  %v2035_v40 = vshll.u32 %v11317_v26, 16 }
 0x257   :  { %v2039_v41 = vshll.u32 %v11321_v30, 16  ;;  %v2053_v42 = vshrl.u32 %v11321_v30, 16  ;;  %v2060_v1 = vrot.slane %v11317_v26, 2  ;;  %v2061_v2 = vrot.slane %v11321_v30, 2 }
 0x258   :  { %v11345_v43 = vsel %vm117_vm1, %v2046_v39, %v2047_v20  ;;  %v2037_v27 = vrot.slane %v2035_v40, 1  ;;  %v2050_v48 = vrot.slane %v2033_v9, 1  ;;  %v2051_v44 = vrot.slane %v2035_v40, 2  ;;  %v9656_v39 = vld [vmem:[%s13686_s5 + $0x194] sm:$0xf0] }
 0x259   :  { %3070 = vmatmul.bf16.vlgmr.msra.gmra.mxu0 %v11345_v43  ;;  %v2055_v46 = vrot.slane %v2053_v42, 1  ;;  %v2056_v14 = vrot.slane %v2039_v41, 2  ;;  %v2041_v50 = vrot.slane %v2039_v41, 1  ;;  %v7457_v18 = vor.u32 %v9624_v4, %v7456_v3  ;;  %v7786_v41 = vld [vmem:[%s13686_s5 + $0x330] sm:$0xf0] }
 0x25a   :  { %3147 = vmatpush.bf16.msrb.mxu3 %v7869_v35  ;;  %3174 = vmatpush.bf16.msra.mxu0 %v7505_v36  ;;  %v2038_v34 = vor.u32 %v2037_v27, %v2033_v9  ;;  %v2052_v51 = vor.u32 %v2051_v44, %v2050_v48  ;;  %v11425_v26 = vsel %vm175_vm3, %v2060_v1, %v2061_v2  ;;  %v7962_v35 = vld [vmem:[%s13686_s5 + $0x490] sm:$0xf0]  ;;  %v7440_v36 = vld [vmem:[%s13686_s5 + $0x68] sm:$0xf]  ;;  %v9745_v42 = vld [vmem:[%s13686_s5 + $0x464] sm:$0xf] }
 0x25b   :  { %v2057_v47 = vor.u32 %v2056_v14, %v2055_v46  ;;  %v7601_v30 = vor.u32 %v9660_v6, %v7600_v5  ;;  %v7805_v20 = vor.u32 %v9709_v19, %v7802_v21  ;;  %v7965_v9 = vor.u32 %v9749_v24, %v7962_v35  ;;  %v7424_v27 = vld [vmem:[%s13686_s5 + $0x48] sm:$0xf]  ;;  %v9616_v48 = vld [vmem:[%s13686_s5 + $0x54] sm:$0xf0]  ;;  %v9701_v14 = vld [vmem:[%s13686_s5 + $0x304] sm:$0xf] }
 0x25c   :  { %v11367_v17 = vsel %vm64_vm0, %v2038_v34, %v2041_v50  ;;  %v7441_v40 = vor.u32 %v9620_v37, %v7440_v36  ;;  %v7585_v23 = vor.u32 %v9656_v39, %v7584_v38  ;;  %v7568_v44 = vld [vmem:[%s13686_s5 + $0x168] sm:$0xf]  ;;  %v7789_v46 = vor.u32 %v9705_v22, %v7786_v41  ;;  %v7770_v34 = vld [vmem:[%s13686_s5 + $0x310] sm:$0xf0]  ;;  %v9741_v50 = vld [vmem:[%s13686_s5 + $0x444] sm:$0xf] }
 0x25d   :  { %3056 = vmatmul.bf16.vlgmr.msra.gmra.mxu2 %v11367_v17  ;;  %v11380_v54 = vsel %vm134_vm2, %v2052_v51, %v2057_v47  ;;  %v7949_v49 = vor.u32 %v9745_v42, %v7946_v13  ;;  %v7425_v32 = vor.u32 %v9616_v48, %v7424_v27  ;;  %v7930_v51 = vld [vmem:[%s13686_s5 + $0x450] sm:$0xf0]  ;;  %v7408_v47 = vld [vmem:[%s13686_s5 + $0x28] sm:$0xf]  ;;  %v9764_v1 = vld [vmem:[%s13686_s5 + $0x4f4] sm:$0xf0]  ;;  %v7917_v2 = vor.u32 %v9737_v53, %v7914_v55 }
 0x25e   :  { %3084 = vmatmul.bf16.vlgmr.msra.gmra.mxu1 %v11380_v54  ;;  %3148 = vmatpush.bf16.msrb.mxu3 %v7853_v45  ;;  %v7569_v45 = vor.u32 %v9652_v8, %v7568_v44  ;;  %v7933_v33 = vor.u32 %v9741_v50, %v7930_v51  ;;  %v9733_v4 = vld [vmem:[%s13686_s5 + $0x404] sm:$0xf]  ;;  %v7745_v6 = vor.u32 %v9696_v63, %v7744_v62  ;;  %v7728_v21 = vld [vmem:[%s13686_s5 + $0x2a8] sm:$0xf]  ;;  %v9692_v24 = vld [vmem:[%s13686_s5 + $0x2b4] sm:$0xf0] }
 0x25f   :  { %3160 = vmatpush.bf16.msra.mxu2 %v8013_v12  ;;  %3175 = vmatpush.bf16.msra.mxu0 %v7489_v16  ;;  %v9612_v12 = vld [vmem:[%s13686_s5 + $0x34] sm:$0xf0]  ;;  %v7552_v16 = vld [vmem:[%s13686_s5 + $0x148] sm:$0xf]  ;;  %v9634_v39 = vld [vmem:[%s13686_s5 + $0xec] sm:$0xf] }
 0x260   :  { %3188 = vmatpush.bf16.msra.mxu1 %v7633_v31  ;;  %v7773_v31 = vor.u32 %v9701_v14, %v7770_v34  ;;  %v7409_v52 = vor.u32 %v9612_v12, %v7408_v47  ;;  %v7553_v56 = vor.u32 %v9648_v15, %v7552_v16  ;;  %v9732_v35 = vld [vmem:[%s13686_s5 + $0x3f4] sm:$0xf0]  ;;  %v8000_v36 = vld [vmem:[%s13686_s5 + $0x4c8] sm:$0xf]  ;;  %v7490_v14 = vld [vmem:[%s13686_s5 + $0xd8] sm:$0xf0] }
 0x261   :  { %v9760_v37 = vld [vmem:[%s13686_s5 + $0x4d4] sm:$0xf0]  ;;  %v7712_v42 = vld [vmem:[%s13686_s5 + $0x288] sm:$0xf]  ;;  %v7458_v62 = vld [vmem:[%s13686_s5 + $0x98] sm:$0xf0] }
 0x262   :  { %3149 = vmatpush.bf16.msrb.mxu3 %v7837_v57  ;;  %v7761_v57 = vor.u32 %v9700_v29, %v7760_v28  ;;  %v8001_v41 = vor.u32 %v9760_v37, %v8000_v36  ;;  %v7872_v13 = vld [vmem:[%s13686_s5 + $0x3c8] sm:$0xf]  ;;  %v9728_v48 = vld [vmem:[%s13686_s5 + $0x3d4] sm:$0xf0]  ;;  %v9626_v28 = vld [vmem:[%s13686_s5 + $0xac] sm:$0xf] }
 0x263   :  { %3161 = vmatpush.bf16.msra.mxu2 %v7997_v59  ;;  %3176 = vmatpush.bf16.msra.mxu0 %v7473_v60  ;;  %v9608_v59 = vld [vmem:[%s13686_s5 + $0x14] sm:$0xf0]  ;;  %v7536_v60 = vld [vmem:[%s13686_s5 + $0x128] sm:$0xf]  ;;  %v7474_v29 = vld [vmem:[%s13686_s5 + $0xb8] sm:$0xf0] }
 0x264   :  { %3189 = vmatpush.bf16.msra.mxu1 %v7617_v0  ;;  %v8016_v0 = vld [vmem:[%s13686_s5 + $0x4e8] sm:$0xf]  ;;  %v7393_v3 = vor.u32 %v9608_v59, %v7392_v58  ;;  %v7537_v5 = vor.u32 %v9644_v61, %v7536_v60  ;;  %v9756_v8 = vld [vmem:[%s13686_s5 + $0x4b4] sm:$0xf0]  ;;  %v9622_v61 = vld [vmem:[%s13686_s5 + $0x8c] sm:$0xf] }
 0x265   :  { %3098 = vmatmul.bf16.vlgmr.msra.gmra.mxu3 %v11425_v26  ;;  %v8017_v19 = vor.u32 %v9764_v1, %v8016_v0  ;;  %v7984_v44 = vld [vmem:[%s13686_s5 + $0x4a8] sm:$0xf]  ;;  %v9684_v51 = vld [vmem:[%s13686_s5 + $0x274] sm:$0xf0] }
 0x266   :  { %3150 = vmatpush.bf16.msrb.mxu3 %v7821_v7  ;;  %v7898_v7 = vld [vmem:[%s13686_s5 + $0x410] sm:$0xf0]  ;;  %v7985_v34 = vor.u32 %v9756_v8, %v7984_v44  ;;  %v7696_v50 = vld [vmem:[%s13686_s5 + $0x268] sm:$0xf]  ;;  %v9724_v12 = vld [vmem:[%s13686_s5 + $0x3b4] sm:$0xf0] }
 0x267   :  { %3162 = vmatpush.bf16.msra.mxu2 %v7981_v11  ;;  %3177 = vmatpush.bf16.msra.mxu0 %v7457_v18  ;;  %v7520_v11 = vld [vmem:[%s13686_s5 + $0x108] sm:$0xf]  ;;  %v9640_v18 = vld [vmem:[%s13686_s5 + $0x114] sm:$0xf0]  ;;  %v7901_v38 = vor.u32 %v9733_v4, %v7898_v7 }
 0x268   :  { %3190 = vmatpush.bf16.msra.mxu1 %v7601_v30  ;;  %v7888_v30 = vld [vmem:[%s13686_s5 + $0x3e8] sm:$0xf]  ;;  %v9752_v15 = vld [vmem:[%s13686_s5 + $0x494] sm:$0xf0] }
 0x269   :  { %3126 = vmatmul.bf16.vlgmr.msrb.gmra.mxu0 %v11367_v17  ;;  %v7889_v22 = vor.u32 %v9732_v35, %v7888_v30  ;;  %v7968_v16 = vld [vmem:[%s13686_s5 + $0x488] sm:$0xf]  ;;  %v9680_v55 = vld [vmem:[%s13686_s5 + $0x254] sm:$0xf0] }
 0x26a   :  { %3151 = vmatpush.bf16.msrb.mxu3 %v7805_v20  ;;  %v7506_v20 = vld [vmem:[%s13686_s5 + $0xf8] sm:$0xf0]  ;;  %v7680_v53 = vld [vmem:[%s13686_s5 + $0x248] sm:$0xf]  ;;  %v9720_v58 = vld [vmem:[%s13686_s5 + $0x394] sm:$0xf0] }
 0x26b   :  { %3163 = vmatpush.bf16.msra.mxu2 %v7965_v9  ;;  %3178 = vmatpush.bf16.msra.mxu0 %v7441_v40  ;;  %v7521_v9 = vor.u32 %v9640_v18, %v7520_v11  ;;  %v7729_v40 = vor.u32 %v9692_v24, %v7728_v21  ;;  %v7509_v27 = vor.u32 %v9634_v39, %v7506_v20  ;;  %v7952_v59 = vld [vmem:[%s13686_s5 + $0x468] sm:$0xf]  ;;  %v9748_v60 = vld [vmem:[%s13686_s5 + $0x474] sm:$0xf0]  ;;  %v9618_v18 = vld [vmem:[%s13686_s5 + $0x6c] sm:$0xf] }
 0x26c   :  { %3191 = vmatpush.bf16.msra.mxu1 %v7585_v23  ;;  %v9688_v23 = vld [vmem:[%s13686_s5 + $0x294] sm:$0xf0]  ;;  %v7681_v63 = vor.u32 %v9680_v55, %v7680_v53  ;;  %v7953_v1 = vor.u32 %v9748_v60, %v7952_v59  ;;  %v7824_v4 = vld [vmem:[%s13686_s5 + $0x368] sm:$0xf]  ;;  %v9658_v55 = vld [vmem:[%s13686_s5 + $0x1ac] sm:$0xf] }
 0x26d   :  { %8025 = vmatmul.msk.bf16.vlgmr.msrb.gmra.mxu2 %vm11294_vm6, %v11310_v25  ;;  %v7936_v7 = vld [vmem:[%s13686_s5 + $0x448] sm:$0xf]  ;;  %v9744_v11 = vld [vmem:[%s13686_s5 + $0x454] sm:$0xf0]  ;;  %v9726_v59 = vld [vmem:[%s13686_s5 + $0x3cc] sm:$0xf] }
 0x26e   :  { %3140 = vmatmul.bf16.vlgmr.msrb.gmra.mxu1 %v11345_v43  ;;  %3152 = vmatpush.bf16.msrb.mxu3 %v7789_v46  ;;  %v9630_v46 = vld [vmem:[%s13686_s5 + $0xcc] sm:$0xf]  ;;  %v7648_v24 = vld [vmem:[%s13686_s5 + $0x208] sm:$0xf]  ;;  %v7937_v35 = vor.u32 %v9744_v11, %v7936_v7  ;;  %v9672_v36 = vld [vmem:[%s13686_s5 + $0x214] sm:$0xf0] }
 0x26f   :  { %3164 = vmatpush.bf16.msra.mxu2 %v7949_v49  ;;  %3179 = vmatpush.bf16.msra.mxu0 %v7425_v32  ;;  %v7713_v49 = vor.u32 %v9688_v23, %v7712_v42  ;;  %v7873_v32 = vor.u32 %v9728_v48, %v7872_v13  ;;  %v7493_v47 = vor.u32 %v9630_v46, %v7490_v14  ;;  %v7808_v37 = vld [vmem:[%s13686_s5 + $0x348] sm:$0xf]  ;;  %v7634_v42 = vld [vmem:[%s13686_s5 + $0x1f8] sm:$0xf0]  ;;  %v9708_v44 = vld [vmem:[%s13686_s5 + $0x334] sm:$0xf0] }
 0x270   :  { %3192 = vmatpush.bf16.msra.mxu1 %v7569_v45  ;;  %v7856_v45 = vld [vmem:[%s13686_s5 + $0x3a8] sm:$0xf]  ;;  %v7649_v23 = vor.u32 %v9672_v36, %v7648_v24  ;;  %v7874_v60 = vld [vmem:[%s13686_s5 + $0x3d8] sm:$0xf0] }
 0x271   :  { %v7920_v20 = vld [vmem:[%s13686_s5 + $0x428] sm:$0xf]  ;;  %v7746_v11 = vld [vmem:[%s13686_s5 + $0x2d8] sm:$0xf0] }
 0x272   :  { %3153 = vmatpush.bf16.msrb.mxu3 %v7773_v31  ;;  %v7697_v31 = vor.u32 %v9684_v51, %v7696_v50  ;;  %v7792_v48 = vld [vmem:[%s13686_s5 + $0x328] sm:$0xf]  ;;  %v9662_v50 = vld [vmem:[%s13686_s5 + $0x1cc] sm:$0xf]  ;;  %v7618_v51 = vld [vmem:[%s13686_s5 + $0x1d8] sm:$0xf0] }
 0x273   :  { %3165 = vmatpush.bf16.msra.mxu2 %v7933_v33  ;;  %3180 = vmatpush.bf16.msra.mxu0 %v7409_v52  ;;  %v7857_v33 = vor.u32 %v9724_v12, %v7856_v45  ;;  %v7969_v52 = vor.u32 %v9752_v15, %v7968_v16  ;;  %v7904_v14 = vld [vmem:[%s13686_s5 + $0x408] sm:$0xf]  ;;  %v9730_v45 = vld [vmem:[%s13686_s5 + $0x3ec] sm:$0xf]  ;;  %v7793_v12 = vor.u32 %v9708_v44, %v7792_v48  ;;  %v8002_v24 = vld [vmem:[%s13686_s5 + $0x4d8] sm:$0xf0] }
 0x274   :  { %3193 = vmatpush.bf16.msra.mxu1 %v7553_v56  ;;  %v7840_v56 = vld [vmem:[%s13686_s5 + $0x388] sm:$0xf]  ;;  %v9646_v48 = vld [vmem:[%s13686_s5 + $0x14c] sm:$0xf] }
 0x275   :  { %3154 = vmatmul.bf16.vlgmr.msrb.gmra.mxu3 %v11380_v54  ;;  %v7841_v0 = vor.u32 %v9720_v58, %v7840_v56  ;;  %v7776_v15 = vld [vmem:[%s13686_s5 + $0x308] sm:$0xf]  ;;  %v7602_v56 = vld [vmem:[%s13686_s5 + $0x1b8] sm:$0xf0]  ;;  %v9686_v44 = vld [vmem:[%s13686_s5 + $0x28c] sm:$0xf] }
 0x276   :  { %3202 = vmatpush.bf16.msra.mxu3 %v7761_v57  ;;  %v7477_v57 = vor.u32 %v9626_v28, %v7474_v29  ;;  %v7621_v29 = vor.u32 %v9662_v50, %v7618_v51  ;;  %v7762_v58 = vld [vmem:[%s13686_s5 + $0x2f8] sm:$0xf0] }
 0x277   :  { %3166 = vmatpush.bf16.msra.mxu2 %v7917_v2  ;;  %3181 = vmatpush.bf16.msra.mxu0 %v7393_v3  ;;  %v7664_v2 = vld [vmem:[%s13686_s5 + $0x228] sm:$0xf]  ;;  %v9676_v3 = vld [vmem:[%s13686_s5 + $0x234] sm:$0xf0] }
 0x278   :  { %3194 = vmatpush.bf16.msra.mxu1 %v7537_v5  ;;  %v7461_v5 = vor.u32 %v9622_v61, %v7458_v62  ;;  %v7665_v21 = vor.u32 %v9676_v3, %v7664_v2  ;;  %v9762_v62 = vld [vmem:[%s13686_s5 + $0x4ec] sm:$0xf]  ;;  %v7877_v3 = vor.u32 %v9726_v59, %v7874_v60 }
 0x279   :  { %v9678_v59 = vld [vmem:[%s13686_s5 + $0x24c] sm:$0xf] }
 0x27a   :  { %3203 = vmatpush.bf16.msra.mxu3 %v7745_v6  ;;  %8027 = vmatmul.msk.bf16.vlgmr.msra.gmra.mxu0 %vm11294_vm6, %v11310_v25  ;;  %v9716_v6 = vld [vmem:[%s13686_s5 + $0x374] sm:$0xf0] }
 0x27b   :  { %3230 = vmatpush.bf16.msrb.mxu0 %v8017_v19  ;;  %3167 = vmatpush.bf16.msra.mxu2 %v7901_v38  ;;  %v7442_v19 = vld [vmem:[%s13686_s5 + $0x78] sm:$0xf0]  ;;  %v7825_v30 = vor.u32 %v9716_v6, %v7824_v4  ;;  %v9712_v38 = vld [vmem:[%s13686_s5 + $0x354] sm:$0xf0]  ;;  %v9654_v4 = vld [vmem:[%s13686_s5 + $0x18c] sm:$0xf] }
 0x27c   :  { %3195 = vmatpush.bf16.msra.mxu1 %v7521_v9  ;;  %v7445_v39 = vor.u32 %v9618_v18, %v7442_v19  ;;  %v9740_v9 = vld [vmem:[%s13686_s5 + $0x434] sm:$0xf0]  ;;  %v7809_v13 = vor.u32 %v9712_v38, %v7808_v37  ;;  %v9694_v6 = vld [vmem:[%s13686_s5 + $0x2cc] sm:$0xf]  ;;  %v7858_v19 = vld [vmem:[%s13686_s5 + $0x3b8] sm:$0xf0] }
 0x27d   :  { %v9722_v18 = vld [vmem:[%s13686_s5 + $0x3ac] sm:$0xf]  ;;  %v7570_v38 = vld [vmem:[%s13686_s5 + $0x178] sm:$0xf0] }
 0x27e   :  { %3204 = vmatpush.bf16.msra.mxu3 %v7729_v40  ;;  %3168 = vmatmul.bf16.vlgmr.msra.gmra.mxu2 %v11425_v26  ;;  %v9614_v40 = vld [vmem:[%s13686_s5 + $0x4c] sm:$0xf]  ;;  %v7861_v36 = vor.u32 %v9722_v18, %v7858_v19  ;;  %v7778_v19 = vld [vmem:[%s13686_s5 + $0x318] sm:$0xf0] }
 0x27f   :  { %3216 = vmatpush.bf16.msrb.mxu2 %v7889_v22  ;;  %3231 = vmatpush.bf16.msrb.mxu0 %v8001_v41  ;;  %v7426_v22 = vld [vmem:[%s13686_s5 + $0x58] sm:$0xf0]  ;;  %v9666_v41 = vld [vmem:[%s13686_s5 + $0x1ec] sm:$0xf] }
 0x280   :  { %3244 = vmatpush.bf16.msrb.mxu1 %v7509_v27  ;;  %v7921_v27 = vor.u32 %v9740_v9, %v7920_v20  ;;  %v7429_v8 = vor.u32 %v9614_v40, %v7426_v22  ;;  %v7637_v46 = vor.u32 %v9666_v41, %v7634_v42  ;;  %v9650_v37 = vld [vmem:[%s13686_s5 + $0x16c] sm:$0xf]  ;;  %v7730_v9 = vld [vmem:[%s13686_s5 + $0x2b8] sm:$0xf0] }
 0x281   :  { %3196 = vmatmul.bf16.vlgmr.msra.gmra.mxu1 %v11367_v17  ;;  %v9718_v40 = vld [vmem:[%s13686_s5 + $0x38c] sm:$0xf]  ;;  %v7842_v22 = vld [vmem:[%s13686_s5 + $0x398] sm:$0xf0] }
 0x282   :  { %3205 = vmatpush.bf16.msra.mxu3 %v7713_v49  ;;  %v9736_v49 = vld [vmem:[%s13686_s5 + $0x414] sm:$0xf0]  ;;  %v9754_v41 = vld [vmem:[%s13686_s5 + $0x4ac] sm:$0xf]  ;;  %v7986_v42 = vld [vmem:[%s13686_s5 + $0x4b8] sm:$0xf0] }
 0x283   :  { %3217 = vmatpush.bf16.msrb.mxu2 %v7873_v32  ;;  %3232 = vmatpush.bf16.msrb.mxu0 %v7985_v34  ;;  %v9610_v32 = vld [vmem:[%s13686_s5 + $0x2c] sm:$0xf]  ;;  %v7410_v34 = vld [vmem:[%s13686_s5 + $0x38] sm:$0xf0]  ;;  %v7905_v16 = vor.u32 %v9736_v49, %v7904_v14 }
 0x284   :  { %3245 = vmatpush.bf16.msrb.mxu1 %v7493_v47  ;;  %v7890_v47 = vld [vmem:[%s13686_s5 + $0x3f8] sm:$0xf0]  ;;  %v7413_v28 = vor.u32 %v9610_v32, %v7410_v34  ;;  %v9714_v14 = vld [vmem:[%s13686_s5 + $0x36c] sm:$0xf] }
 0x285   :  { %v7893_v53 = vor.u32 %v9730_v45, %v7890_v47  ;;  %v7826_v49 = vld [vmem:[%s13686_s5 + $0x378] sm:$0xf0]  ;;  %v9750_v32 = vld [vmem:[%s13686_s5 + $0x48c] sm:$0xf] }
 0x286   :  { %3206 = vmatpush.bf16.msra.mxu3 %v7697_v31  ;;  %v9704_v31 = vld [vmem:[%s13686_s5 + $0x314] sm:$0xf0]  ;;  %v7970_v34 = vld [vmem:[%s13686_s5 + $0x498] sm:$0xf0]  ;;  %v7829_v45 = vor.u32 %v9714_v14, %v7826_v49  ;;  %v9642_v47 = vld [vmem:[%s13686_s5 + $0x12c] sm:$0xf] }
 0x287   :  { %3218 = vmatpush.bf16.msrb.mxu2 %v7857_v33  ;;  %3233 = vmatpush.bf16.msrb.mxu0 %v7969_v52  ;;  %v9606_v33 = vld [vmem:[%s13686_s5 + $0xc] sm:$0xf]  ;;  %v7394_v52 = vld [vmem:[%s13686_s5 + $0x18] sm:$0xf0]  ;;  %v7777_v61 = vor.u32 %v9704_v31, %v7776_v15  ;;  %v7973_v15 = vor.u32 %v9750_v32, %v7970_v34  ;;  %v9781_v14 = vld [vmem:[%s13682_s1 + $0x60] sm:$0xff] }
 0x288   :  { %3246 = vmatpush.bf16.msrb.mxu1 %v7477_v57  ;;  %v9698_v57 = vld [vmem:[%s13686_s5 + $0x2ec] sm:$0xf]  ;;  %v7810_v31 = vld [vmem:[%s13686_s5 + $0x358] sm:$0xf0]  ;;  %v9797_v49 = vld [vmem:[%s13682_s1 + $0xe0] sm:$0xff] }
 0x289   :  { %v7765_v2 = vor.u32 %v9698_v57, %v7762_v58  ;;  %v9638_v57 = vld [vmem:[%s13686_s5 + $0x10c] sm:$0xf]  ;;  %v7522_v58 = vld [vmem:[%s13686_s5 + $0x118] sm:$0xf0] }
 0x28a   :  { %3207 = vmatpush.bf16.msra.mxu3 %v7681_v63  ;;  %v8018_v63 = vld [vmem:[%s13686_s5 + $0x4f8] sm:$0xf0]  ;;  %v9702_v18 = vld [vmem:[%s13686_s5 + $0x30c] sm:$0xf] }
 0x28b   :  { %3219 = vmatpush.bf16.msrb.mxu2 %v7841_v0  ;;  %3234 = vmatpush.bf16.msrb.mxu0 %v7953_v1  ;;  %v7397_v0 = vor.u32 %v9606_v33, %v7394_v52  ;;  %v7605_v1 = vor.u32 %v9658_v55, %v7602_v56  ;;  %v8021_v7 = vor.u32 %v9762_v62, %v8018_v63  ;;  %v9746_v33 = vld [vmem:[%s13686_s5 + $0x46c] sm:$0xf]  ;;  %v7954_v52 = vld [vmem:[%s13686_s5 + $0x478] sm:$0xf0] }
 0x28c   :  { %3247 = vmatpush.bf16.msrb.mxu1 %v7461_v5  ;;  %v7586_v5 = vld [vmem:[%s13686_s5 + $0x198] sm:$0xf0]  ;;  %v7957_v60 = vor.u32 %v9746_v33, %v7954_v52  ;;  %v9706_v62 = vld [vmem:[%s13686_s5 + $0x32c] sm:$0xf] }
 0x28d   :  { %v7794_v63 = vld [vmem:[%s13686_s5 + $0x338] sm:$0xf0]  ;;  %v9770_v34 = vld [vmem:[%s13682_s1 + $0x8] sm:$0xff] }
 0x28e   :  { %3208 = vmatpush.bf16.msra.mxu3 %v7665_v21  ;;  %v9758_v21 = vld [vmem:[%s13686_s5 + $0x4cc] sm:$0xf]  ;;  %v9788_v32 = vld [vmem:[%s13682_s1 + $0x98] sm:$0xff] }
 0x28f   :  { %3220 = vmatpush.bf16.msrb.mxu2 %v7825_v30  ;;  %3235 = vmatpush.bf16.msrb.mxu0 %v7937_v35  ;;  %v7589_v30 = vor.u32 %v9654_v4, %v7586_v5  ;;  %v7749_v35 = vor.u32 %v9694_v6, %v7746_v11  ;;  %v8005_v20 = vor.u32 %v9758_v21, %v8002_v24  ;;  %v9776_v5 = vld [vmem:[%s13682_s1 + $0x38] sm:$0xff]  ;;  %v9674_v6 = vld [vmem:[%s13686_s5 + $0x22c] sm:$0xf] }
 0x290   :  { %3248 = vmatpush.bf16.msrb.mxu1 %v7445_v39  ;;  %v9690_v39 = vld [vmem:[%s13686_s5 + $0x2ac] sm:$0xf]  ;;  %v7797_v4 = vor.u32 %v9706_v62, %v7794_v63  ;;  %v7666_v11 = vld [vmem:[%s13686_s5 + $0x238] sm:$0xf0]  ;;  %v8040_v62 = vld [vmem:[%s13681_s0 + $0x40] sm:$0xf0] }
 0x291   :  { %v9738_v21 = vld [vmem:[%s13686_s5 + $0x42c] sm:$0xf]  ;;  %v7922_v24 = vld [vmem:[%s13686_s5 + $0x438] sm:$0xf0]  ;;  %v8046_v63 = vld [vmem:[%s13681_s0 + $0x38] sm:$0xf] }
 0x292   :  { %3209 = vmatpush.bf16.msra.mxu3 %v7649_v23  ;;  %v7573_v23 = vor.u32 %v9650_v37, %v7570_v38  ;;  %v9775_v37 = vld [vmem:[%s13682_s1 + $0x30] sm:$0xff]  ;;  %v9670_v38 = vld [vmem:[%s13686_s5 + $0x20c] sm:$0xf] }
 0x293   :  { %3221 = vmatpush.bf16.msrb.mxu2 %v7809_v13  ;;  %3236 = vmatpush.bf16.msrb.mxu0 %v7921_v27  ;;  %v7733_v13 = vor.u32 %v9690_v39, %v7730_v9  ;;  %v7845_v27 = vor.u32 %v9718_v40, %v7842_v22  ;;  %v7650_v39 = vld [vmem:[%s13686_s5 + $0x218] sm:$0xf0]  ;;  %v9778_v52 = vld [vmem:[%s13682_s1 + $0x48] sm:$0xff] }
 0x294   :  { %3249 = vmatpush.bf16.msrb.mxu1 %v7429_v8  ;;  %v7989_v8 = vor.u32 %v9754_v41, %v7986_v42  ;;  %v7906_v9 = vld [vmem:[%s13686_s5 + $0x418] sm:$0xf0]  ;;  %v7653_v22 = vor.u32 %v9670_v38, %v7650_v39  ;;  %v9814_v39 = vld [vmem:[%s13682_s1 + $0x168] sm:$0xff] }
 0x295   :  { %3210 = vmatmul.bf16.vlgmr.msra.gmra.mxu3 %v11345_v43  ;;  %v9792_v40 = vld [vmem:[%s13682_s1 + $0xb8] sm:$0xff] }
 0x296   :  { %3258 = vmatpush.bf16.msrb.mxu3 %v7637_v46  ;;  %v7714_v46 = vld [vmem:[%s13686_s5 + $0x298] sm:$0xf0] }
 0x297   :  { %3222 = vmatpush.bf16.msrb.mxu2 %v7793_v12  ;;  %3237 = vmatpush.bf16.msrb.mxu0 %v7905_v16  ;;  %v7717_v51 = vor.u32 %v9686_v44, %v7714_v46  ;;  %v7538_v12 = vld [vmem:[%s13686_s5 + $0x138] sm:$0xf0]  ;;  %v9682_v16 = vld [vmem:[%s13686_s5 + $0x26c] sm:$0xf]  ;;  %v9771_v46 = vld [vmem:[%s13682_s1 + $0x10] sm:$0xff] }
 0x298   :  { %3250 = vmatpush.bf16.msrb.mxu1 %v7413_v28  ;;  %v7698_v28 = vld [vmem:[%s13686_s5 + $0x278] sm:$0xf0] }
 0x299   :  { %v7701_v55 = vor.u32 %v9682_v16, %v7698_v28  ;;  %v9784_v42 = vld [vmem:[%s13682_s1 + $0x78] sm:$0xff]  ;;  %v9767_v16 = vld [vmem:[%s13681_s0 + $0x3c] sm:$0xf0] }
 0x29a   :  { %3259 = vmatpush.bf16.msrb.mxu3 %v7621_v29  ;;  %3238 = vmatmul.bf16.vlgmr.msrb.gmra.mxu0 %v11425_v26  ;;  %v9710_v29 = vld [vmem:[%s13686_s5 + $0x34c] sm:$0xf]  ;;  %v9772_v44 = vld [vmem:[%s13682_s1 + $0x18] sm:$0xff] }
 0x29b   :  { %3286 = vmatpush.bf16.msra.mxu0 %v7893_v53  ;;  %3223 = vmatpush.bf16.msrb.mxu2 %v7777_v61  ;;  %v7541_v53 = vor.u32 %v9642_v47, %v7538_v12  ;;  %v7813_v56 = vor.u32 %v9710_v29, %v7810_v31  ;;  %v7682_v61 = vld [vmem:[%s13686_s5 + $0x258] sm:$0xf0]  ;;  %v9769_v47 = vld [vmem:[%s13682_s1] sm:$0xff]  ;;  %v8038_v12 = vld [vmem:[%s13681_s0 + $0x30] sm:$0xf] }
 0x29c   :  { %3251 = vmatpush.bf16.msrb.mxu1 %v7397_v0  ;;  %v9742_v0 = vld [vmem:[%s13686_s5 + $0x44c] sm:$0xf]  ;;  %v9808_v28 = vld [vmem:[%s13682_s1 + $0x138] sm:$0xff]  ;;  %v9795_v29 = vld [vmem:[%s13682_s1 + $0xd0] sm:$0xff]  ;;  %v12016_v33 = vor.u32 %v9767_v16, %v8038_v12 }
 0x29d   :  { %v9786_v31 = vld [vmem:[%s13682_s1 + $0x88] sm:$0xff] }
 0x29e   :  { %3260 = vmatpush.bf16.msrb.mxu3 %v7605_v1  ;;  %3224 = vmatmul.bf16.vlgmr.msrb.gmra.mxu2 %v11380_v54  ;;  %v7938_v1 = vld [vmem:[%s13686_s5 + $0x458] sm:$0xf0] }
 0x29f   :  { %3272 = vmatpush.bf16.msra.mxu2 %v7765_v2  ;;  %3287 = vmatpush.bf16.msra.mxu0 %v7877_v3  ;;  %v7525_v2 = vor.u32 %v9638_v57, %v7522_v58  ;;  %v7685_v3 = vor.u32 %v9678_v59, %v7682_v61  ;;  %v9777_v57 = vld [vmem:[%s13682_s1 + $0x40] sm:$0xff]  ;;  %v9824_v58 = vld [vmem:[%s13682_s1 + $0x1b8] sm:$0xff]  ;;  %v9806_v59 = vld [vmem:[%s13682_s1 + $0x128] sm:$0xff] }
 0x2a0   :  { %3300 = vmatpush.bf16.msra.mxu1 %v8021_v7  ;;  %v7941_v7 = vor.u32 %v9742_v0, %v7938_v1  ;;  %v9765_v61 = vld [vmem:[%s13681_s0 + $0x34] sm:$0xf]  ;;  %v9768_v0 = vld [vmem:[%s13681_s0 + $0x44] sm:$0xf0]  ;;  %v9793_v1 = vld [vmem:[%s13682_s1 + $0xc0] sm:$0xff] }
 0x2a1   :  { %8029 = vmatmul.msk.bf16.vlgmr.msrb.gmra.mxu1 %vm11294_vm6, %v11310_v25  ;;  %v7554_v25 = vld [vmem:[%s13686_s5 + $0x158] sm:$0xf0] }
 0x2a2   :  { %3261 = vmatpush.bf16.msrb.mxu3 %v7589_v30  ;;  %v7557_v50 = vor.u32 %v9646_v48, %v7554_v25  ;;  %v7669_v30 = vor.u32 %v9674_v6, %v7666_v11  ;;  %v9783_v48 = vld [vmem:[%s13682_s1 + $0x70] sm:$0xff]  ;;  %v9790_v25 = vld [vmem:[%s13682_s1 + $0xa8] sm:$0xff]  ;;  %v12070_v6 = vor.u32 %v9765_v61, %v8040_v62  ;;  %v9805_v11 = vld [vmem:[%s13682_s1 + $0x120] sm:$0xff] }
 0x2a3   :  { %3273 = vmatpush.bf16.msra.mxu2 %v7749_v35  ;;  %3288 = vmatpush.bf16.msra.mxu0 %v7861_v36  ;;  %v7781_v35 = vor.u32 %v9702_v18, %v7778_v19  ;;  %v7925_v36 = vor.u32 %v9738_v21, %v7922_v24  ;;  %v9815_v19 = vld [vmem:[%s13682_s1 + $0x170] sm:$0xff] }
 0x2a4   :  { %3301 = vmatpush.bf16.msra.mxu1 %v8005_v20  ;;  %v9734_v20 = vld [vmem:[%s13686_s5 + $0x40c] sm:$0xf]  ;;  %v8034_v21 = vld [vmem:[%s13681_s0 + $0x50] sm:$0x33]  ;;  %v3382_v16 = vshll.u32 %v12070_v6, 16 }
 0x2a5   :  { %v7909_v41 = vor.u32 %v9734_v20, %v7906_v9  ;;  %v9831_v24 = vld [vmem:[%s13682_s1 + $0x1f0] sm:$0xff]  ;;  %v3359_v38 = vunpack.c.l.b16 %v8034_v21  ;;  %v9830_v9 = vld [vmem:[%s13682_s1 + $0x1e8] sm:$0xff] }
 0x2a6   :  { %3262 = vmatpush.bf16.msrb.mxu3 %v7573_v23  ;;  %v9800_v23 = vld [vmem:[%s13682_s1 + $0xf8] sm:$0xff] }
 0x2a7   :  { %3274 = vmatpush.bf16.msra.mxu2 %v7733_v13  ;;  %3289 = vmatpush.bf16.msra.mxu0 %v7845_v27  ;;  %v9791_v13 = vld [vmem:[%s13682_s1 + $0xb0] sm:$0xff]  ;;  %v9773_v27 = vld [vmem:[%s13682_s1 + $0x20] sm:$0xff] }
 0x2a8   :  { %3302 = vmatpush.bf16.msra.mxu1 %v7989_v8  ;;  %v9782_v8 = vld [vmem:[%s13682_s1 + $0x68] sm:$0xff] }
 0x2aa   :  { %3263 = vmatpush.bf16.msrb.mxu3 %v7557_v50  ;;  %v9780_v50 = vld [vmem:[%s13682_s1 + $0x58] sm:$0xff] }
 0x2ab   :  { %3275 = vmatpush.bf16.msra.mxu2 %v7717_v51  ;;  %3290 = vmatpush.bf16.msra.mxu0 %v7829_v45  ;;  %v9796_v51 = vld [vmem:[%s13682_s1 + $0xd8] sm:$0xff]  ;;  %v9787_v45 = vld [vmem:[%s13682_s1 + $0x90] sm:$0xff] }
 0x2ac   :  { %3303 = vmatpush.bf16.msra.mxu1 %v7973_v15  ;;  %v9779_v15 = vld [vmem:[%s13682_s1 + $0x50] sm:$0xff] }
 0x2ae   :  { %3264 = vmatpush.bf16.msrb.mxu3 %v7541_v53  ;;  %v9807_v53 = vld [vmem:[%s13682_s1 + $0x130] sm:$0xff] }
 0x2af   :  { %3276 = vmatpush.bf16.msra.mxu2 %v7701_v55  ;;  %3291 = vmatpush.bf16.msra.mxu0 %v7813_v56  ;;  %v9794_v55 = vld [vmem:[%s13682_s1 + $0xc8] sm:$0xff]  ;;  %v9785_v56 = vld [vmem:[%s13682_s1 + $0x80] sm:$0xff] }
 0x2b0   :  { %3304 = vmatpush.bf16.msra.mxu1 %v7957_v60  ;;  %v9816_v60 = vld [vmem:[%s13682_s1 + $0x178] sm:$0xff] }
 0x2b2   :  { %3265 = vmatpush.bf16.msrb.mxu3 %v7525_v2  ;;  %v9766_v2 = vld [vmem:[%s13681_s0 + $0x3c] sm:$0xf] }
 0x2b3   :  { %3277 = vmatpush.bf16.msra.mxu2 %v7685_v3  ;;  %3292 = vmatpush.bf16.msra.mxu0 %v7797_v4  ;;  %v8048_v3 = vld [vmem:[%s13681_s0 + $0x48] sm:$0xf0]  ;;  %v9832_v4 = vld [vmem:[%s13682_s1 + $0x1f8] sm:$0xff] }
 0x2b4   :  { %3305 = vmatpush.bf16.msra.mxu1 %v7941_v7  ;;  %v12072_v7 = vor.u32 %v9768_v0, %v8046_v63  ;;  %v12077_v18 = vor.u32 %v9766_v2, %v8048_v3  ;;  %v3384_v2 = vrot.slane %v3382_v16, 1 }
 0x2b5   :  { %3266 = vmatmul.bf16.vlgmr.msrb.gmra.mxu3 %v11367_v17  ;;  %v9774_v17 = vld [vmem:[%s13682_s1 + $0x28] sm:$0xff] }
 0x2b6   :  { %4775 = vmatpush.bf16.msra.mxu3 %v9776_v5  ;;  %v9823_v5 = vld [vmem:[%s13682_s1 + $0x1b0] sm:$0xff]  ;;  %v3406_v62 = vshll.u32 %v12077_v18, 16 }
 0x2b7   :  { %3278 = vmatpush.bf16.msra.mxu2 %v7669_v30  ;;  %3293 = vmatpush.bf16.msra.mxu0 %v7781_v35  ;;  %v9822_v30 = vld [vmem:[%s13682_s1 + $0x1a8] sm:$0xff]  ;;  %v12094_v35 = vld [vmem:[%s13687_s6] sm:$0xf] }
 0x2b8   :  { %3306 = vmatpush.bf16.msra.mxu1 %v7925_v36  ;;  %v2226_v20 = vperm.slane %v12094_v35, 0 }
 0x2ba   :  { %4776 = vmatpush.bf16.msra.mxu3 %v9775_v37  ;;  %3294 = vmatmul.bf16.vlgmr.msra.gmra.mxu0 %v11380_v54  ;;  %v9799_v54 = vld [vmem:[%s13682_s1 + $0xf0] sm:$0xff]  ;;  %v9804_v37 = vld [vmem:[%s13682_s1 + $0x118] sm:$0xff] }
 0x2bb   :  { %4803 = vmatpush.bf16.msrb.mxu0 %v9792_v40  ;;  %3279 = vmatpush.bf16.msra.mxu2 %v7653_v22  ;;  %v9821_v40 = vld [vmem:[%s13682_s1 + $0x1a0] sm:$0xff]  ;;  %v9803_v22 = vld [vmem:[%s13682_s1 + $0x110] sm:$0xff] }
 0x2bc   :  { %3307 = vmatpush.bf16.msra.mxu1 %v7909_v41  ;;  %v12115_v41 = vpack.c.b16 %v3359_v38, %v3359_v38  ;;  %v3404_v38 = vshrl.u32 %v12077_v18, 16 }
 0x2be   :  { %4777 = vmatpush.bf16.msra.mxu3 %v9774_v17  ;;  %3280 = vmatmul.bf16.vlgmr.msra.gmra.mxu2 %v11345_v43  ;;  %v9798_v43 = vld [vmem:[%s13682_s1 + $0xe8] sm:$0xff]  ;;  %v3370_v17 = vshll.u32 %v12016_v33, 16 }
 0x2bf   :  { %4789 = vmatpush.bf16.msrb.mxu2 %v9784_v42  ;;  %4804 = vmatpush.bf16.msrb.mxu0 %v9791_v13  ;;  %v9813_v42 = vld [vmem:[%s13682_s1 + $0x160] sm:$0xff] }
 0x2c0   :  { %4817 = vmatpush.bf16.msrb.mxu1 %v9800_v23 }
 0x2c1   :  { %3308 = vmatmul.bf16.vlgmr.msra.gmra.mxu1 %v11425_v26  ;;  %v9789_v26 = vld [vmem:[%s13682_s1 + $0xa0] sm:$0xff] }
 0x2c2   :  { %4778 = vmatpush.bf16.msra.mxu3 %v9773_v27  ;;  %v9829_v27 = vld [vmem:[%s13682_s1 + $0x1e0] sm:$0xff] }
 0x2c3   :  { %4790 = vmatpush.bf16.msrb.mxu2 %v9783_v48  ;;  %4805 = vmatpush.bf16.msrb.mxu0 %v9790_v25  ;;  %v9820_v48 = vld [vmem:[%s13682_s1 + $0x198] sm:$0xff] }
 0x2c4   :  { %4818 = vmatpush.bf16.msrb.mxu1 %v9799_v54  ;;  %v8035_v54 = vld [vmem:[%s13681_s0 + $0x58] sm:$0x33] }
 0x2c6   :  { %4779 = vmatpush.bf16.msra.mxu3 %v9772_v44 }
 0x2c7   :  { %4791 = vmatpush.bf16.msrb.mxu2 %v9782_v8  ;;  %4806 = vmatpush.bf16.msrb.mxu0 %v9789_v26  ;;  %v3360_v8 = vunpack.c.h.b16 %v8034_v21  ;;  %v9802_v26 = vld [vmem:[%s13682_s1 + $0x108] sm:$0xff] }
 0x2c8   :  { %4819 = vmatpush.bf16.msrb.mxu1 %v9798_v43  ;;  %v9810_v21 = vld [vmem:[%s13682_s1 + $0x148] sm:$0xff] }
 0x2ca   :  { %4780 = vmatpush.bf16.msra.mxu3 %v9771_v46  ;;  %v3368_v46 = vshrl.u32 %v12016_v33, 16 }
 0x2cb   :  { %4792 = vmatpush.bf16.msrb.mxu2 %v9781_v14  ;;  %4807 = vmatpush.bf16.msrb.mxu0 %v9788_v32  ;;  %v3372_v14 = vrot.slane %v3370_v17, 1  ;;  %v9812_v32 = vld [vmem:[%s13682_s1 + $0x158] sm:$0xff] }
 0x2cc   :  { %4820 = vmatpush.bf16.msrb.mxu1 %v9797_v49  ;;  %v3375_v49 = vshll.u32 %v12115_v41, 16 }
 0x2ce   :  { %4781 = vmatpush.bf16.msra.mxu3 %v9770_v34  ;;  %v3361_v34 = vunpack.c.l.b16 %v8035_v54 }
 0x2cf   :  { %4793 = vmatpush.bf16.msrb.mxu2 %v9780_v50  ;;  %4808 = vmatpush.bf16.msrb.mxu0 %v9787_v45  ;;  %v9819_v45 = vld [vmem:[%s13682_s1 + $0x190] sm:$0xff] }
 0x2d0   :  { %4821 = vmatpush.bf16.msrb.mxu1 %v9796_v51  ;;  %v9828_v51 = vld [vmem:[%s13682_s1 + $0x1d8] sm:$0xff] }
 0x2d2   :  { %4782 = vmatpush.bf16.msra.mxu3 %v9769_v47  ;;  %v3362_v47 = vunpack.c.h.b16 %v8035_v54 }
 0x2d3   :  { %4794 = vmatpush.bf16.msrb.mxu2 %v9779_v15  ;;  %4809 = vmatpush.bf16.msrb.mxu0 %v9786_v31  ;;  %v9801_v15 = vld [vmem:[%s13682_s1 + $0x100] sm:$0xff]  ;;  %v12154_v31 = vpack.c.b16 %v3360_v8, %v3360_v8 }
 0x2d4   :  { %4822 = vmatpush.bf16.msrb.mxu1 %v9795_v29  ;;  %v3377_v29 = vrot.slane %v3375_v49, 1  ;;  %v12171_v61 = vpack.c.b16 %v3362_v47, %v3362_v47  ;;  %v9855_v47 = vld [vmem:[%s13682_s1 + $0x2b0] sm:$0xff] }
 0x2d5   :  { %4783 = vmatmul.bf16.vlgmr.msra.gmra.mxu3 %v12016_v33 }
 0x2d6   :  { %4831 = vmatpush.bf16.msrb.mxu3 %v9808_v28  ;;  %v3071_v23 = vpop.f32.mrf.mxu0  ;;  %v3373_v28 = vor.u32 %v3372_v14, %v3368_v46 }
 0x2d7   :  { %4795 = vmatpush.bf16.msrb.mxu2 %v9778_v52  ;;  %4810 = vmatpush.bf16.msrb.mxu0 %v9785_v56  ;;  %v9811_v52 = vld [vmem:[%s13682_s1 + $0x150] sm:$0xff]  ;;  %v3394_v56 = vshll.u32 %v12072_v7, 16 }
 0x2d8   :  { %4823 = vmatpush.bf16.msrb.mxu1 %v9794_v55  ;;  %v3043_v36 = vpop.f32.mrf.mxu3  ;;  %v12162_v55 = vpack.c.b16 %v3361_v34, %v3361_v34 }
 0x2d9   :  { %v3044_v13 = vadd.f32 %v3043_v36, %v2226_v20  ;;  %v3396_v36 = vrot.slane %v3394_v56, 1 }
 0x2da   :  { %4832 = vmatpush.bf16.msrb.mxu3 %v9807_v53  ;;  %4811 = vmatmul.bf16.vlgmr.msrb.gmra.mxu0 %v12072_v7  ;;  %v9840_v53 = vld [vmem:[%s13682_s1 + $0x238] sm:$0xff] }
 0x2db   :  { %4859 = vmatpush.bf16.msra.mxu0 %v9824_v58  ;;  %4796 = vmatpush.bf16.msrb.mxu2 %v9777_v57  ;;  %v3085_v12 = vpop.f32.mrf.mxu1  ;;  %v9827_v58 = vld [vmem:[%s13682_s1 + $0x1d0] sm:$0xff] }
 0x2dc   :  { %4824 = vmatpush.bf16.msrb.mxu1 %v9793_v1  ;;  %v3380_v1 = vshrl.u32 %v12070_v6, 16 }
 0x2de   :  { %4833 = vmatpush.bf16.msrb.mxu3 %v9806_v59  ;;  %4797 = vmatmul.bf16.vlgmr.msrb.gmra.mxu2 %v12070_v6  ;;  %v3385_v54 = vor.u32 %v3384_v2, %v3380_v1 }
 0x2df   :  { %4845 = vmatpush.bf16.msra.mxu2 %v9816_v60  ;;  %4860 = vmatpush.bf16.msra.mxu0 %v9823_v5  ;;  %v9818_v60 = vld [vmem:[%s13682_s1 + $0x188] sm:$0xff]  ;;  %v3378_v5 = vsel %vm64_vm0, %v3373_v28, %v3377_v29  ;;  %v9837_v29 = vld [vmem:[%s13682_s1 + $0x220] sm:$0xff] }
 0x2e0   :  { %4873 = vmatpush.bf16.msra.mxu1 %v9832_v4  ;;  %v3045_v25 = vpop.f32.mrf.mxu3  ;;  %v3057_v44 = vpop.f32.mrf.mxu2 }
 0x2e1   :  { %4825 = vmatmul.bf16.vlgmr.msrb.gmra.mxu1 %v12077_v18  ;;  %v3058_v43 = vadd.f32 %v3057_v44, %v3044_v13  ;;  %v3046_v57 = vadd.f32 %v3045_v25, %v2226_v20 }
 0x2e2   :  { %4834 = vmatpush.bf16.msrb.mxu3 %v9805_v11  ;;  %v3387_v11 = vshll.u32 %v12154_v31, 16 }
 0x2e3   :  { %4846 = vmatpush.bf16.msra.mxu2 %v9815_v19  ;;  %4861 = vmatpush.bf16.msra.mxu0 %v9822_v30  ;;  %v3072_v50 = vadd.f32 %v3071_v23, %v3058_v43  ;;  %v3073_v19 = vpop.f32.mrf.mxu0  ;;  %v3392_v30 = vshrl.u32 %v12072_v7, 16  ;;  %v9856_v23 = vld [vmem:[%s13682_s1 + $0x2b8] sm:$0xff]  ;;  %v3087_v13 = vpop.f32.mrf.mxu1 }
 0x2e4   :  { %4874 = vmatpush.bf16.msra.mxu1 %v9831_v24  ;;  %v9839_v24 = vld [vmem:[%s13682_s1 + $0x230] sm:$0xff]  ;;  %v3389_v25 = vrot.slane %v3387_v11, 1  ;;  %v9848_v43 = vld [vmem:[%s13682_s1 + $0x278] sm:$0xff] }
 0x2e5   :  { %v3086_v59 = vadd.f32 %v3085_v12, %v3072_v50  ;;  %v3397_v44 = vor.u32 %v3396_v36, %v3392_v30 }
 0x2e6   :  { %4835 = vmatpush.bf16.msrb.mxu3 %v9804_v37  ;;  %v3399_v37 = vshll.u32 %v12162_v55, 16  ;;  %v3390_v28 = vsel %vm64_vm0, %v3385_v54, %v3389_v25  ;;  %v9860_v54 = vld [vmem:[%s13682_s1 + $0x2d8] sm:$0xff]  ;;  %v9851_v25 = vld [vmem:[%s13682_s1 + $0x290] sm:$0xff] }
 0x2e7   :  { %4847 = vmatpush.bf16.msra.mxu2 %v9814_v39  ;;  %4862 = vmatpush.bf16.msra.mxu0 %v9821_v40  ;;  %v9817_v40 = vld [vmem:[%s13682_s1 + $0x180] sm:$0xff] }
 0x2e8   :  { %4875 = vmatpush.bf16.msra.mxu1 %v9830_v9  ;;  %v3059_v63 = vpop.f32.mrf.mxu2  ;;  %v3099_v0 = vpop.f32.mrf.mxu3  ;;  %v9826_v9 = vld [vmem:[%s13682_s1 + $0x1c8] sm:$0xff]  ;;  %v3401_v8 = vrot.slane %v3399_v37, 1 }
 0x2e9   :  { %v3060_v3 = vadd.f32 %v3059_v63, %v3046_v57  ;;  %v3100_v4 = vadd.f32 %v3099_v0, %v3086_v59  ;;  %v9847_v57 = vld [vmem:[%s13682_s1 + $0x270] sm:$0xff]  ;;  %v9836_v0 = vld [vmem:[%s13682_s1 + $0x218] sm:$0xff] }
 0x2ea   :  { %4836 = vmatpush.bf16.msrb.mxu3 %v9803_v22  ;;  %v3408_v22 = vrot.slane %v3406_v62, 1  ;;  %v9863_v59 = vld [vmem:[%s13682_s1 + $0x2f0] sm:$0xff] }
 0x2eb   :  { %4848 = vmatpush.bf16.msra.mxu2 %v9813_v42  ;;  %4863 = vmatpush.bf16.msra.mxu0 %v9820_v48  ;;  %v3074_v39 = vadd.f32 %v3073_v19, %v3060_v3  ;;  %v3314_v20 = vmax.f32 %v3100_v4, 0.0  ;;  %v3411_v42 = vshll.u32 %v12171_v61, 16  ;;  %v9838_v48 = vld [vmem:[%s13682_s1 + $0x228] sm:$0xff]  ;;  %v3127_v2 = vpop.f32.mrf.mxu0  ;;  %v9853_v19 = vld [vmem:[%s13682_s1 + $0x2a0] sm:$0xff]  ;;  %v3141_v36 = vpop.f32.mrf.mxu1 }
 0x2ec   :  { %4876 = vmatpush.bf16.msra.mxu1 %v9829_v27  ;;  %v9809_v27 = vld [vmem:[%s13682_s1 + $0x140] sm:$0xff]  ;;  %v9846_v3 = vld [vmem:[%s13682_s1 + $0x268] sm:$0xff] }
 0x2ed   :  { %3322 = vst [vmem:[#allocation2] sm:$0xff] %v3314_v20  ;;  %v3088_v14 = vadd.f32 %v3087_v13, %v3074_v39  ;;  %v3413_v34 = vrot.slane %v3411_v42, 1  ;;  %v9845_v20 = vld [vmem:[%s13682_s1 + $0x260] sm:$0xff]  ;;  %v9834_v13 = vld [vmem:[%s13682_s1 + $0x208] sm:$0xff] }
 0x2ee   :  { %4837 = vmatpush.bf16.msrb.mxu3 %v9802_v26  ;;  %v9825_v26 = vld [vmem:[%s13682_s1 + $0x1c0] sm:$0xff] }
 0x2ef   :  { %4849 = vmatpush.bf16.msra.mxu2 %v9812_v32  ;;  %4864 = vmatpush.bf16.msra.mxu0 %v9819_v45  ;;  %v3409_v32 = vor.u32 %v3408_v22, %v3404_v38  ;;  %v9864_v45 = vld [vmem:[%s13682_s1 + $0x2f8] sm:$0xff] }
 0x2f0   :  { %4877 = vmatpush.bf16.msra.mxu1 %v9828_v51  ;;  %v3101_v50 = vpop.f32.mrf.mxu3  ;;  %v3113_v51 = vpop.f32.mrf.mxu2 }
 0x2f1   :  { %v3102_v12 = vadd.f32 %v3101_v50, %v3088_v14  ;;  %v9833_v14 = vld [vmem:[%s13682_s1 + $0x200] sm:$0xff]  ;;  %v9843_v50 = vld [vmem:[%s13682_s1 + $0x250] sm:$0xff] }
 0x2f2   :  { %4838 = vmatpush.bf16.msrb.mxu3 %v9801_v15  ;;  %v2227_v15 = vperm.slane %v12094_v35, 1 }
 0x2f3   :  { %4850 = vmatpush.bf16.msra.mxu2 %v9811_v52  ;;  %4865 = vmatpush.bf16.msra.mxu0 %v9818_v60  ;;  %v3402_v52 = vsel %vm64_vm0, %v3397_v44, %v3401_v8  ;;  %v9854_v60 = vld [vmem:[%s13682_s1 + $0x2a8] sm:$0xff]  ;;  %v3129_v44 = vpop.f32.mrf.mxu0 }
 0x2f4   :  { %4878 = vmatpush.bf16.msra.mxu1 %v9827_v58  ;;  %v3414_v58 = vsel %vm64_vm0, %v3409_v32, %v3413_v34  ;;  %v3114_v63 = vadd.f32 %v3113_v51, %v2227_v15  ;;  %v3419_v32 = vrot.slane %v12016_v33, 1  ;;  %v3420_v34 = vrot.slane %v12115_v41, 1  ;;  %v9872_v51 = vld [vmem:[%s13682_s1 + $0x338] sm:$0xff] }
 0x2f5   :  { %4839 = vmatmul.bf16.vlgmr.msrb.gmra.mxu3 %v3378_v5  ;;  %v9862_v5 = vld [vmem:[%s13682_s1 + $0x2e8] sm:$0xff] }
 0x2f6   :  { %4887 = vmatpush.bf16.msra.mxu3 %v9840_v53  ;;  %v3318_v53 = vmax.f32 %v3102_v12, 0.0  ;;  %v9850_v12 = vld [vmem:[%s13682_s1 + $0x288] sm:$0xff] }
 0x2f7   :  { %4851 = vmatpush.bf16.msra.mxu2 %v9810_v21  ;;  %4866 = vmatpush.bf16.msra.mxu0 %v9817_v40  ;;  %v3128_v21 = vadd.f32 %v3127_v2, %v3114_v63  ;;  %v9852_v40 = vld [vmem:[%s13682_s1 + $0x298] sm:$0xff] }
 0x2f8   :  { %4879 = vmatpush.bf16.msra.mxu1 %v9826_v9  ;;  %3326 = vst [vmem:[#allocation2 + $0x20] sm:$0xff] %v3318_v53  ;;  %v3115_v4 = vpop.f32.mrf.mxu2  ;;  %v3155_v39 = vpop.f32.mrf.mxu3  ;;  %v9861_v9 = vld [vmem:[%s13682_s1 + $0x2e0] sm:$0xff]  ;;  %v9842_v53 = vld [vmem:[%s13682_s1 + $0x248] sm:$0xff] }
 0x2f9   :  { %v3116_v22 = vadd.f32 %v3115_v4, %v2227_v15  ;;  %v3143_v15 = vpop.f32.mrf.mxu1  ;;  %v9870_v4 = vld [vmem:[%s13682_s1 + $0x328] sm:$0xff] }
 0x2fa   :  { %4888 = vmatpush.bf16.msra.mxu3 %v9839_v24  ;;  %4867 = vmatmul.bf16.vlgmr.msra.gmra.mxu0 %v3402_v52  ;;  %v9835_v24 = vld [vmem:[%s13682_s1 + $0x210] sm:$0xff]  ;;  %v3421_v52 = vsel %vm117_vm1, %v3419_v32, %v3420_v34  ;;  %v9878_v32 = vld [vmem:[%s13682_s1 + $0x368] sm:$0xff] }
 0x2fb   :  { %4915 = vmatpush.bf16.msrb.mxu0 %v9856_v23  ;;  %4852 = vmatpush.bf16.msra.mxu2 %v9809_v27  ;;  %v3142_v23 = vadd.f32 %v3141_v36, %v3128_v21  ;;  %v9844_v27 = vld [vmem:[%s13682_s1 + $0x258] sm:$0xff]  ;;  %v3425_v21 = vrot.slane %v12072_v7, 1  ;;  %v9894_v34 = vld [vmem:[%s13682_s1 + $0x3e8] sm:$0xff] }
 0x2fc   :  { %4880 = vmatpush.bf16.msra.mxu1 %v9825_v26 }
 0x2fe   :  { %4889 = vmatpush.bf16.msra.mxu3 %v9838_v48  ;;  %4853 = vmatmul.bf16.vlgmr.msra.gmra.mxu2 %v3390_v28  ;;  %v3156_v48 = vadd.f32 %v3155_v39, %v3142_v23  ;;  %v9880_v39 = vld [vmem:[%s13682_s1 + $0x378] sm:$0xff] }
 0x2ff   :  { %4901 = vmatpush.bf16.msrb.mxu2 %v9848_v43  ;;  %4916 = vmatpush.bf16.msrb.mxu0 %v9855_v47  ;;  %v3130_v43 = vadd.f32 %v3129_v44, %v3116_v22  ;;  %v9859_v47 = vld [vmem:[%s13682_s1 + $0x2d0] sm:$0xff]  ;;  %v3183_v22 = vpop.f32.mrf.mxu0  ;;  %v9896_v23 = vld [vmem:[%s13682_s1 + $0x3f8] sm:$0xff] }
 0x300   :  { %4929 = vmatpush.bf16.msrb.mxu1 %v9864_v45  ;;  %v3157_v28 = vpop.f32.mrf.mxu3 }
 0x301   :  { %4881 = vmatmul.bf16.vlgmr.msra.gmra.mxu1 %v3414_v58  ;;  %v3169_v8 = vpop.f32.mrf.mxu2 }
 0x302   :  { %4890 = vmatpush.bf16.msra.mxu3 %v9837_v29  ;;  %v3170_v26 = vadd.f32 %v3169_v8, %v3156_v48  ;;  %v3144_v29 = vadd.f32 %v3143_v15, %v3130_v43  ;;  %v9869_v48 = vld [vmem:[%s13682_s1 + $0x320] sm:$0xff]  ;;  %v9895_v8 = vld [vmem:[%s13682_s1 + $0x3f0] sm:$0xff]  ;;  %v9886_v43 = vld [vmem:[%s13682_s1 + $0x3a8] sm:$0xff] }
 0x303   :  { %4902 = vmatpush.bf16.msrb.mxu2 %v9847_v57  ;;  %4917 = vmatpush.bf16.msrb.mxu0 %v9854_v60  ;;  %v9871_v57 = vld [vmem:[%s13682_s1 + $0x330] sm:$0xff]  ;;  %v9849_v60 = vld [vmem:[%s13682_s1 + $0x280] sm:$0xff] }
 0x304   :  { %4930 = vmatpush.bf16.msrb.mxu1 %v9863_v59  ;;  %v3315_v45 = vmax.f32 %v3170_v26, 0.0  ;;  %v3158_v58 = vadd.f32 %v3157_v28, %v3144_v29  ;;  %v9858_v59 = vld [vmem:[%s13682_s1 + $0x2c8] sm:$0xff]  ;;  %v9868_v26 = vld [vmem:[%s13682_s1 + $0x318] sm:$0xff]  ;;  %v9877_v15 = vld [vmem:[%s13682_s1 + $0x360] sm:$0xff]  ;;  %v3435_v28 = vrot.slane %v3368_v46, 1 }
 0x305   :  { %v9866_v46 = vld [vmem:[%s13682_s1 + $0x308] sm:$0xff] }
 0x306   :  { %4891 = vmatpush.bf16.msra.mxu3 %v9836_v0  ;;  %3323 = vst [vmem:[#allocation2 + $0x8] sm:$0xff] %v3315_v45  ;;  %v9888_v0 = vld [vmem:[%s13682_s1 + $0x3b8] sm:$0xff]  ;;  %v3438_v45 = vshrl.u32 %v12115_v41, 16 }
 0x307   :  { %4903 = vmatpush.bf16.msrb.mxu2 %v9846_v3  ;;  %4918 = vmatpush.bf16.msrb.mxu0 %v9853_v19  ;;  %v9841_v3 = vld [vmem:[%s13682_s1 + $0x240] sm:$0xff]  ;;  %v3423_v19 = vrot.slane %v12154_v31, 1 }
 0x308   :  { %4931 = vmatpush.bf16.msrb.mxu1 %v9862_v5  ;;  %v3422_v5 = vrot.slane %v12070_v6, 1 }
 0x309   :  { %v3171_v63 = vpop.f32.mrf.mxu2 }
 0x30a   :  { %4892 = vmatpush.bf16.msra.mxu3 %v9835_v24  ;;  %v3172_v2 = vadd.f32 %v3171_v63, %v3158_v58  ;;  %v3426_v24 = vrot.slane %v12162_v55, 1 }
 0x30b   :  { %4904 = vmatpush.bf16.msrb.mxu2 %v9845_v20  ;;  %4919 = vmatpush.bf16.msrb.mxu0 %v9852_v40  ;;  %v9857_v20 = vld [vmem:[%s13682_s1 + $0x2c0] sm:$0xff]  ;;  %v3429_v40 = vrot.slane %v12171_v61, 1 }
 0x30c   :  { %4932 = vmatpush.bf16.msrb.mxu1 %v9861_v9  ;;  %v3319_v36 = vmax.f32 %v3172_v2, 0.0  ;;  %v3428_v9 = vrot.slane %v12077_v18, 1 }
 0x30e   :  { %4893 = vmatpush.bf16.msra.mxu3 %v9834_v13  ;;  %v9887_v13 = vld [vmem:[%s13682_s1 + $0x3b0] sm:$0xff]  ;;  %3327 = vst [vmem:[#allocation2 + $0x28] sm:$0xff] %v3319_v36  ;;  %v3430_v44 = vsel %vm117_vm1, %v3428_v9, %v3429_v40  ;;  %v3447_v36 = vshrl.u32 %v12154_v31, 16  ;;  %v9904_v40 = vld [vmem:[%s13682_s1 + $0x438] sm:$0xff] }
 0x30f   :  { %4905 = vmatpush.bf16.msrb.mxu2 %v9844_v27  ;;  %4920 = vmatpush.bf16.msrb.mxu0 %v9851_v25  ;;  %v3424_v27 = vsel %vm117_vm1, %v3422_v5, %v3423_v19  ;;  %v9879_v25 = vld [vmem:[%s13682_s1 + $0x370] sm:$0xff] }
 0x310   :  { %4933 = vmatpush.bf16.msrb.mxu1 %v9860_v54  ;;  %v3427_v54 = vsel %vm117_vm1, %v3425_v21, %v3426_v24  ;;  %v9865_v24 = vld [vmem:[%s13682_s1 + $0x300] sm:$0xff]  ;;  %v9875_v9 = vld [vmem:[%s13682_s1 + $0x350] sm:$0xff] }
 0x312   :  { %4894 = vmatpush.bf16.msra.mxu3 %v9833_v14  ;;  %v3197_v14 = vpop.f32.mrf.mxu1 }
 0x313   :  { %4906 = vmatpush.bf16.msrb.mxu2 %v9843_v50  ;;  %4921 = vmatpush.bf16.msrb.mxu0 %v9850_v12  ;;  %v9885_v50 = vld [vmem:[%s13682_s1 + $0x3a0] sm:$0xff]  ;;  %v9867_v12 = vld [vmem:[%s13682_s1 + $0x310] sm:$0xff] }
 0x314   :  { %4934 = vmatpush.bf16.msrb.mxu1 %v9859_v47  ;;  %v3185_v47 = vpop.f32.mrf.mxu0 }
 0x315   :  { %4895 = vmatmul.bf16.vlgmr.msra.gmra.mxu3 %v3421_v52  ;;  %v9893_v52 = vld [vmem:[%s13682_s1 + $0x3e0] sm:$0xff] }
 0x316   :  { %4943 = vmatpush.bf16.msrb.mxu3 %v9872_v51  ;;  %v2228_v51 = vperm.slane %v12094_v35, 2 }
 0x317   :  { %4907 = vmatpush.bf16.msrb.mxu2 %v9842_v53  ;;  %4922 = vmatpush.bf16.msrb.mxu0 %v9849_v60  ;;  %v9884_v53 = vld [vmem:[%s13682_s1 + $0x398] sm:$0xff]  ;;  %v3440_v60 = vrot.slane %v3438_v45, 1  ;;  %v9881_v45 = vld [vmem:[%s13682_s1 + $0x380] sm:$0xff] }
 0x318   :  { %4935 = vmatpush.bf16.msrb.mxu1 %v9858_v59  ;;  %v3211_v29 = vpop.f32.mrf.mxu3  ;;  %v3184_v58 = vadd.f32 %v3183_v22, %v2228_v51  ;;  %v3436_v59 = vrot.slane %v3370_v17, 2  ;;  %v9883_v17 = vld [vmem:[%s13682_s1 + $0x390] sm:$0xff]  ;;  %v3456_v22 = vshrl.u32 %v12162_v55, 16 }
 0x31a   :  { %4944 = vmatpush.bf16.msrb.mxu3 %v9871_v57  ;;  %4923 = vmatmul.bf16.vlgmr.msrb.gmra.mxu0 %v3427_v54  ;;  %v3441_v57 = vrot.slane %v3375_v49, 2  ;;  %v3198_v63 = vadd.f32 %v3197_v14, %v3184_v58  ;;  %v9892_v49 = vld [vmem:[%s13682_s1 + $0x3d8] sm:$0xff]  ;;  %v3199_v2 = vpop.f32.mrf.mxu1  ;;  %v3450_v14 = vrot.slane %v3387_v11, 2  ;;  %v3459_v11 = vrot.slane %v3399_v37, 2 }
 0x31b   :  { %4971 = vmatpush.bf16.msra.mxu0 %v9888_v0  ;;  %4908 = vmatpush.bf16.msrb.mxu2 %v9841_v3  ;;  %v9876_v0 = vld [vmem:[%s13682_s1 + $0x358] sm:$0xff]  ;;  %v3468_v37 = vrot.slane %v3411_v42, 2 }
 0x31c   :  { %4936 = vmatpush.bf16.msrb.mxu1 %v9857_v20  ;;  %v3212_v3 = vadd.f32 %v3211_v29, %v3198_v63  ;;  %v3442_v5 = vor.u32 %v3441_v57, %v3440_v60  ;;  %v3239_v19 = vpop.f32.mrf.mxu0  ;;  %v9912_v60 = vld [vmem:[%s13682_s1 + $0x478] sm:$0xff] }
 0x31e   :  { %4945 = vmatpush.bf16.msrb.mxu3 %v9870_v4  ;;  %4909 = vmatmul.bf16.vlgmr.msrb.gmra.mxu2 %v3424_v27  ;;  %v3437_v4 = vor.u32 %v3436_v59, %v3435_v28  ;;  %v3465_v27 = vshrl.u32 %v12171_v61, 16  ;;  %v9920_v28 = vld [vmem:[%s13682_s1 + $0x4b8] sm:$0xff] }
 0x31f   :  { %4957 = vmatpush.bf16.msra.mxu2 %v9880_v39  ;;  %4972 = vmatpush.bf16.msra.mxu0 %v9887_v13  ;;  %v3186_v39 = vadd.f32 %v3185_v47, %v2228_v51  ;;  %v9882_v13 = vld [vmem:[%s13682_s1 + $0x388] sm:$0xff]  ;;  %v3458_v51 = vrot.slane %v3456_v22, 1  ;;  %v3462_v47 = vrot.slane %v3404_v38, 1 }
 0x320   :  { %4985 = vmatpush.bf16.msra.mxu1 %v9896_v23  ;;  %v9891_v23 = vld [vmem:[%s13682_s1 + $0x3d0] sm:$0xff]  ;;  %v9902_v38 = vld [vmem:[%s13682_s1 + $0x428] sm:$0xff] }
 0x321   :  { %4937 = vmatmul.bf16.vlgmr.msrb.gmra.mxu1 %v3430_v44  ;;  %v3225_v21 = vpop.f32.mrf.mxu2  ;;  %v3444_v44 = vrot.slane %v3380_v1, 1  ;;  %v9903_v1 = vld [vmem:[%s13682_s1 + $0x430] sm:$0xff]  ;;  %v3460_v58 = vor.u32 %v3459_v11, %v3458_v51  ;;  %v9926_v22 = vld [vmem:[%s13682_s1 + $0x4e8] sm:$0xff] }
 0x322   :  { %4946 = vmatpush.bf16.msrb.mxu3 %v9869_v48  ;;  %v3226_v20 = vadd.f32 %v3225_v21, %v3212_v3  ;;  %v3200_v48 = vadd.f32 %v3199_v2, %v3186_v39  ;;  %v9919_v2 = vld [vmem:[%s13682_s1 + $0x4b0] sm:$0xff]  ;;  %v3253_v21 = vpop.f32.mrf.mxu1 }
 0x323   :  { %4958 = vmatpush.bf16.msra.mxu2 %v9879_v25  ;;  %4973 = vmatpush.bf16.msra.mxu0 %v9886_v43  ;;  %v3443_v25 = vsel %vm134_vm2, %v3437_v4, %v3442_v5  ;;  %v3445_v43 = vrot.slane %v3382_v16, 2  ;;  %v3454_v16 = vrot.slane %v3394_v56, 2  ;;  %v3463_v56 = vrot.slane %v3406_v62, 2  ;;  %v9873_v62 = vld [vmem:[%s13682_s1 + $0x340] sm:$0xff]  ;;  %v9927_v39 = vld [vmem:[%s13682_s1 + $0x4f0] sm:$0xff] }
 0x324   :  { %4986 = vmatpush.bf16.msra.mxu1 %v9895_v8  ;;  %v3240_v54 = vadd.f32 %v3239_v19, %v3226_v20  ;;  %v3213_v8 = vpop.f32.mrf.mxu3  ;;  %v3241_v59 = vpop.f32.mrf.mxu0  ;;  %v9901_v5 = vld [vmem:[%s13682_s1 + $0x420] sm:$0xff]  ;;  %v9918_v20 = vld [vmem:[%s13682_s1 + $0x4a8] sm:$0xff] }
 0x325   :  { %v3464_v63 = vor.u32 %v3463_v56, %v3462_v47  ;;  %v9923_v47 = vld [vmem:[%s13682_s1 + $0x4d0] sm:$0xff] }
 0x326   :  { %4947 = vmatpush.bf16.msrb.mxu3 %v9868_v26  ;;  %v3449_v26 = vrot.slane %v3447_v36, 1 }
 0x327   :  { %4959 = vmatpush.bf16.msra.mxu2 %v9878_v32  ;;  %4974 = vmatpush.bf16.msra.mxu0 %v9885_v50  ;;  %v3453_v32 = vrot.slane %v3392_v30, 1  ;;  %v9874_v50 = vld [vmem:[%s13682_s1 + $0x348] sm:$0xff] }
 0x328   :  { %4987 = vmatpush.bf16.msra.mxu1 %v9894_v34  ;;  %v3316_v34 = vmax.f32 %v3240_v54, 0.0  ;;  %v9890_v30 = vld [vmem:[%s13682_s1 + $0x3c8] sm:$0xff]  ;;  %v9925_v54 = vld [vmem:[%s13682_s1 + $0x4e0] sm:$0xff] }
 0x329   :  { %v3227_v29 = vpop.f32.mrf.mxu2  ;;  %v3455_v42 = vor.u32 %v3454_v16, %v3453_v32  ;;  %v9915_v32 = vld [vmem:[%s13682_s1 + $0x490] sm:$0xff]  ;;  %v3476_v16 = vrot.slane %v12115_v41, 2 }
 0x32a   :  { %4948 = vmatpush.bf16.msrb.mxu3 %v9867_v12  ;;  %v3467_v12 = vrot.slane %v3465_v27, 1  ;;  %3324 = vst [vmem:[#allocation2 + $0x10] sm:$0xff] %v3316_v34  ;;  %v9909_v27 = vld [vmem:[%s13682_s1 + $0x460] sm:$0xff] }
 0x32b   :  { %4960 = vmatpush.bf16.msra.mxu2 %v9877_v15  ;;  %4975 = vmatpush.bf16.msra.mxu0 %v9884_v53  ;;  %v3214_v15 = vadd.f32 %v3213_v8, %v3200_v48  ;;  %v3451_v53 = vor.u32 %v3450_v14, %v3449_v26  ;;  %v3461_v19 = vsel %vm134_vm2, %v3455_v42, %v3460_v58  ;;  %v2229_v48 = vperm.slane %v12094_v35, 3  ;;  %v9908_v35 = vld [vmem:[%s13682_s1 + $0x458] sm:$0xff] }
 0x32c   :  { %4988 = vmatpush.bf16.msra.mxu1 %v9893_v52  ;;  %v3446_v52 = vor.u32 %v3445_v43, %v3444_v44  ;;  %v3255_v44 = vpop.f32.mrf.mxu1  ;;  %v9898_v43 = vld [vmem:[%s13682_s1 + $0x408] sm:$0xff]  ;;  %v9924_v14 = vld [vmem:[%s13682_s1 + $0x4d8] sm:$0xff] }
 0x32d   :  { %v3228_v57 = vadd.f32 %v3227_v29, %v3214_v15  ;;  %v3254_v26 = vadd.f32 %v3253_v21, %v2229_v48  ;;  %v9906_v15 = vld [vmem:[%s13682_s1 + $0x448] sm:$0xff] }
 0x32e   :  { %4949 = vmatpush.bf16.msrb.mxu3 %v9866_v46  ;;  %v9889_v46 = vld [vmem:[%s13682_s1 + $0x3c0] sm:$0xff]  ;;  %v3452_v4 = vsel %vm134_vm2, %v3446_v52, %v3451_v53  ;;  %v9922_v52 = vld [vmem:[%s13682_s1 + $0x4c8] sm:$0xff] }
 0x32f   :  { %4961 = vmatpush.bf16.msra.mxu2 %v9876_v0  ;;  %4976 = vmatpush.bf16.msra.mxu0 %v9883_v17  ;;  %v3469_v0 = vor.u32 %v3468_v37, %v3467_v12  ;;  %v9928_v17 = vld [vmem:[%s13682_s1 + $0x4f8] sm:$0xff]  ;;  %v9913_v53 = vld [vmem:[%s13682_s1 + $0x480] sm:$0xff] }
 0x330   :  { %4989 = vmatpush.bf16.msra.mxu1 %v9892_v49  ;;  %v3242_v49 = vadd.f32 %v3241_v59, %v3228_v57  ;;  %v3481_v57 = vrot.slane %v12072_v7, 2  ;;  %v9905_v59 = vld [vmem:[%s13682_s1 + $0x440] sm:$0xff] }
 0x331   :  { %v3470_v36 = vsel %vm134_vm2, %v3464_v63, %v3469_v0  ;;  %v9921_v7 = vld [vmem:[%s13682_s1 + $0x4c0] sm:$0xff]  ;;  %v3484_v0 = vrot.slane %v12077_v18, 2 }
 0x332   :  { %4950 = vmatpush.bf16.msrb.mxu3 %v9865_v24  ;;  %v3320_v3 = vmax.f32 %v3242_v49, 0.0  ;;  %v9911_v24 = vld [vmem:[%s13682_s1 + $0x470] sm:$0xff]  ;;  %v3485_v49 = vrot.slane %v12171_v61, 2 }
 0x333   :  { %4962 = vmatpush.bf16.msra.mxu2 %v9875_v9  ;;  %4977 = vmatpush.bf16.msra.mxu0 %v9882_v13  ;;  %v9900_v9 = vld [vmem:[%s13682_s1 + $0x418] sm:$0xff]  ;;  %v9899_v13 = vld [vmem:[%s13682_s1 + $0x410] sm:$0xff] }
 0x334   :  { %4990 = vmatpush.bf16.msra.mxu1 %v9891_v23  ;;  %3328 = vst [vmem:[#allocation2 + $0x30] sm:$0xff] %v3320_v3  ;;  %v9917_v23 = vld [vmem:[%s13682_s1 + $0x4a0] sm:$0xff] }
 0x335   :  { %4951 = vmatmul.bf16.vlgmr.msrb.gmra.mxu3 %v3443_v25  ;;  %v9916_v25 = vld [vmem:[%s13682_s1 + $0x498] sm:$0xff] }
 0x336   :  { %4999 = vmatpush.bf16.msra.mxu3 %v9904_v40  ;;  %v9910_v40 = vld [vmem:[%s13682_s1 + $0x468] sm:$0xff] }
 0x337   :  { %4963 = vmatpush.bf16.msra.mxu2 %v9874_v50  ;;  %4978 = vmatpush.bf16.msra.mxu0 %v9881_v45  ;;  %v9897_v50 = vld [vmem:[%s13682_s1 + $0x400] sm:$0xff]  ;;  %v3295_v51 = vpop.f32.mrf.mxu0 }
 0x338   :  { %4991 = vmatpush.bf16.msra.mxu1 %v9890_v30  ;;  %v3267_v8 = vpop.f32.mrf.mxu3  ;;  %v9907_v30 = vld [vmem:[%s13682_s1 + $0x450] sm:$0xff] }
 0x339   :  { %v3268_v34 = vadd.f32 %v3267_v8, %v3254_v26 }
 0x33a   :  { %5000 = vmatpush.bf16.msra.mxu3 %v9903_v1  ;;  %4979 = vmatmul.bf16.vlgmr.msra.gmra.mxu0 %v3461_v19  ;;  %v3475_v1 = vrot.slane %v12016_v33, 2  ;;  %v9914_v33 = vld [vmem:[%s13682_s1 + $0x488] sm:$0xff] }
 0x33b   :  { %5027 = vmatpush.bf16.msrb.mxu0 %v9920_v28  ;;  %4964 = vmatpush.bf16.msra.mxu2 %v9873_v62  ;;  %v3256_v28 = vadd.f32 %v3255_v44, %v2229_v48  ;;  %v3482_v62 = vrot.slane %v12162_v55, 2 }
 0x33c   :  { %4992 = vmatpush.bf16.msra.mxu1 %v9889_v46  ;;  %v3477_v12 = vsel %vm175_vm3, %v3475_v1, %v3476_v16  ;;  %v3479_v46 = vrot.slane %v12154_v31, 2 }
 0x33d   :  { %v3483_v55 = vsel %vm175_vm3, %v3481_v57, %v3482_v62  ;;  %v9948_v57 = vld [vmem:[%s13684_s3 + $0x98] sm:$0xff] }
 0x33e   :  { %5001 = vmatpush.bf16.msra.mxu3 %v9902_v38  ;;  %4965 = vmatmul.bf16.vlgmr.msra.gmra.mxu2 %v3452_v4  ;;  %v3309_v56 = vpop.f32.mrf.mxu1  ;;  %v3486_v4 = vsel %vm175_vm3, %v3484_v0, %v3485_v49  ;;  %v9946_v49 = vld [vmem:[%s13684_s3 + $0x88] sm:$0xff] }
 0x33f   :  { %5013 = vmatpush.bf16.msrb.mxu2 %v9912_v60  ;;  %5028 = vmatpush.bf16.msrb.mxu0 %v9919_v2  ;;  %v3478_v60 = vrot.slane %v12070_v6, 2 }
 0x340   :  { %5041 = vmatpush.bf16.msrb.mxu1 %v9928_v17  ;;  %v3269_v37 = vpop.f32.mrf.mxu3  ;;  %v3297_v17 = vpop.f32.mrf.mxu0 }
 0x341   :  { %4993 = vmatmul.bf16.vlgmr.msra.gmra.mxu1 %v3470_v36  ;;  %v3281_v11 = vpop.f32.mrf.mxu2  ;;  %v3270_v38 = vadd.f32 %v3269_v37, %v3256_v28  ;;  %v3480_v6 = vsel %vm175_vm3, %v3478_v60, %v3479_v46  ;;  %v9947_v46 = vld [vmem:[%s13684_s3 + $0x90] sm:$0xff] }
 0x342   :  { %5002 = vmatpush.bf16.msra.mxu3 %v9901_v5  ;;  %v3282_v45 = vadd.f32 %v3281_v11, %v3268_v34 }
 0x343   :  { %5014 = vmatpush.bf16.msrb.mxu2 %v9911_v24  ;;  %5029 = vmatpush.bf16.msrb.mxu0 %v9918_v20 }
 0x344   :  { %5042 = vmatpush.bf16.msrb.mxu1 %v9927_v39  ;;  %v3296_v41 = vadd.f32 %v3295_v51, %v3282_v45 }
 0x346   :  { %5003 = vmatpush.bf16.msra.mxu3 %v9900_v9  ;;  %v3310_v29 = vadd.f32 %v3309_v56, %v3296_v41  ;;  %v3311_v3 = vpop.f32.mrf.mxu1 }
 0x347   :  { %5015 = vmatpush.bf16.msrb.mxu2 %v9910_v40  ;;  %5030 = vmatpush.bf16.msrb.mxu0 %v9917_v23  ;;  %v10115_v40 = vld [vmem:[%s13683_s2] ss:$0 sm:$0xff]  ;;  %s10145_s2 = smov 512  }
 0x348   :  { %5043 = vmatpush.bf16.msrb.mxu1 %v9926_v22  ;;  %v3317_v42 = vmax.f32 %v3310_v29, 0.0 }
 0x349   :  { %v3283_v58 = vpop.f32.mrf.mxu2 }
 0x34a   :  { %5004 = vmatpush.bf16.msra.mxu3 %v9899_v13  ;;  %3325 = vst [vmem:[#allocation2 + $0x18] sm:$0xff] %v3317_v42  ;;  %v3284_v63 = vadd.f32 %v3283_v58, %v3270_v38 }
 0x34b   :  { %5016 = vmatpush.bf16.msrb.mxu2 %v9909_v27  ;;  %5031 = vmatpush.bf16.msrb.mxu0 %v9916_v25 }
 0x34c   :  { %5044 = vmatpush.bf16.msrb.mxu1 %v9925_v54  ;;  %v3298_v2 = vadd.f32 %v3297_v17, %v3284_v63 }
 0x34e   :  { %5005 = vmatpush.bf16.msra.mxu3 %v9898_v43  ;;  %v3312_v31 = vadd.f32 %v3311_v3, %v3298_v2 }
 0x34f   :  { %5017 = vmatpush.bf16.msrb.mxu2 %v9908_v35  ;;  %5032 = vmatpush.bf16.msrb.mxu0 %v9915_v32 }
 0x350   :  { %5045 = vmatpush.bf16.msrb.mxu1 %v9924_v14  ;;  %v3321_v5 = vmax.f32 %v3312_v31, 0.0  ;;  %v9945_v31 = vld [vmem:[%s13684_s3 + $0x80] sm:$0xff] }
 0x352   :  { %5006 = vmatpush.bf16.msra.mxu3 %v9897_v50  ;;  %3329 = vst [vmem:[#allocation2 + $0x38] sm:$0xff] %v3321_v5 }
 0x353   :  { %5018 = vmatpush.bf16.msrb.mxu2 %v9907_v30  ;;  %5033 = vmatpush.bf16.msrb.mxu0 %v9914_v33 }
 0x354   :  { %5046 = vmatpush.bf16.msrb.mxu1 %v9923_v47 }
 0x355   :  { %5007 = vmatmul.bf16.vlgmr.msra.gmra.mxu3 %v3477_v12 }
 0x357   :  { %5019 = vmatpush.bf16.msrb.mxu2 %v9906_v15  ;;  %5034 = vmatpush.bf16.msrb.mxu0 %v9913_v53  ;;  %v4812_v18 = vpop.f32.mrf.mxu0 }
 0x358   :  { %5047 = vmatpush.bf16.msrb.mxu1 %v9922_v52  ;;  %v4784_v19 = vpop.f32.mrf.mxu3 }
 0x359   :  { %v4785_v22 = vadd.f32 %v10115_v40, %v4784_v19 }
 0x35a   :  { %5035 = vmatmul.bf16.vlgmr.msrb.gmra.mxu0 %v3483_v55 }
 0x35b   :  { %5020 = vmatpush.bf16.msrb.mxu2 %v9905_v59  ;;  %5305 = vmatpush.bf16.msra.mxu0 %v9948_v57 }
 0x35c   :  { %5048 = vmatpush.bf16.msrb.mxu1 %v9921_v7 }
 0x35e   :  { %5021 = vmatmul.bf16.vlgmr.msrb.gmra.mxu2 %v3480_v6  ;;  %v4826_v24 = vpop.f32.mrf.mxu1 }
 0x35f   :  { %5049 = vmatmul.bf16.vlgmr.msrb.gmra.mxu1 %v3486_v4  ;;  %v4814_v39 = vpop.f32.mrf.mxu0  ;;  %5306 = vmatpush.bf16.msra.mxu0 %v9947_v46 }
 0x360   :  { %v4786_v61 = vpop.f32.mrf.mxu3 }
 0x361   :  { %v4798_v21 = vpop.f32.mrf.mxu2  ;;  %v4787_v44 = vadd.f32 %v10115_v40, %v4786_v61 }
 0x362   :  { %v4799_v48 = vadd.f32 %v4798_v21, %v4785_v22 }
 0x363   :  { %5307 = vmatpush.bf16.msra.mxu0 %v9946_v49  ;;  %v9930_v49 = vld [vmem:[%s13684_s3 + $0x8] sm:$0xff] }
 0x364   :  { %v4813_v25 = vadd.f32 %v4812_v18, %v4799_v48 }
 0x366   :  { %v4828_v20 = vpop.f32.mrf.mxu1  ;;  %v4827_v35 = vadd.f32 %v4826_v24, %v4813_v25 }
 0x367   :  { %5308 = vmatpush.bf16.msra.mxu0 %v9945_v31  ;;  %v9929_v31 = vld [vmem:[%s13684_s3] sm:$0xff] }
 0x369   :  { %v4800_v36 = vpop.f32.mrf.mxu2 }
 0x36a   :  { %v4801_v32 = vadd.f32 %v4800_v36, %v4787_v44 }
 0x36c   :  { %v4815_v50 = vadd.f32 %v4814_v39, %v4801_v32  ;;  %v9935_v32 = vld [vmem:[%s13684_s3 + $0x30] sm:$0xff] }
 0x36e   :  { %v4829_v30 = vadd.f32 %v4828_v20, %v4815_v50  ;;  %v9943_v50 = vld [vmem:[%s13684_s3 + $0x70] sm:$0xff] }
 0x377   :  { %v4868_v13 = vpop.f32.mrf.mxu0 }
 0x378   :  { %v4840_v9 = vpop.f32.mrf.mxu3 }
 0x379   :  { %v4841_v34 = vadd.f32 %v4840_v9, %v4827_v35  ;;  %v9944_v35 = vld [vmem:[%s13684_s3 + $0x78] sm:$0xff] }
 0x37a   :  { %5287 = vmatpush.bf16.msra.mxu2 %v9944_v35  ;;  %v9271_v35 = vld [vmem:[%s13686_s5 + $0x3e0] sm:$0xf] }
 0x37e   :  { %v4882_v27 = vpop.f32.mrf.mxu1  ;;  %5288 = vmatpush.bf16.msra.mxu2 %v9943_v50 }
 0x37f   :  { %v4870_v43 = vpop.f32.mrf.mxu0 }
 0x380   :  { %v4842_v54 = vpop.f32.mrf.mxu3 }
 0x381   :  { %v4854_v23 = vpop.f32.mrf.mxu2  ;;  %v4843_v33 = vadd.f32 %v4842_v54, %v4829_v30  ;;  %v9942_v30 = vld [vmem:[%s13684_s3 + $0x68] sm:$0xff] }
 0x382   :  { %v4855_v51 = vadd.f32 %v4854_v23, %v4841_v34  ;;  %5289 = vmatpush.bf16.msra.mxu2 %v9942_v30  ;;  %v8839_v30 = vld [vmem:[%s13686_s5 + $0x80] sm:$0xf] }
 0x384   :  { %v4869_v47 = vadd.f32 %v4868_v13, %v4855_v51 }
 0x386   :  { %v4884_v26 = vpop.f32.mrf.mxu1  ;;  %v4883_v56 = vadd.f32 %v4882_v27, %v4869_v47 }
 0x389   :  { %v4856_v8 = vpop.f32.mrf.mxu2 }
 0x38a   :  { %v4857_v41 = vadd.f32 %v4856_v8, %v4843_v33  ;;  %v9936_v8 = vld [vmem:[%s13684_s3 + $0x38] sm:$0xff] }
 0x38b   :  { %5273 = vmatpush.bf16.msrb.mxu3 %v9936_v8 }
 0x38c   :  { %v4871_v52 = vadd.f32 %v4870_v43, %v4857_v41  ;;  %v9941_v41 = vld [vmem:[%s13684_s3 + $0x60] sm:$0xff] }
 0x38d   :  { %5290 = vmatpush.bf16.msra.mxu2 %v9941_v41  ;;  %v8983_v41 = vld [vmem:[%s13686_s5 + $0x1a0] sm:$0xf] }
 0x38e   :  { %v4885_v62 = vadd.f32 %v4884_v26, %v4871_v52 }
 0x38f   :  { %5274 = vmatpush.bf16.msrb.mxu3 %v9935_v32  ;;  %v8999_v32 = vld [vmem:[%s13686_s5 + $0x1c0] sm:$0xf] }
 0x397   :  { %v4924_v16 = vpop.f32.mrf.mxu0 }
 0x398   :  { %v4896_v14 = vpop.f32.mrf.mxu3 }
 0x399   :  { %v4897_v15 = vadd.f32 %v4896_v14, %v4883_v56  ;;  %v9933_v56 = vld [vmem:[%s13684_s3 + $0x20] sm:$0xff] }
 0x39e   :  { %v4938_v11 = vpop.f32.mrf.mxu1 }
 0x39f   :  { %v4926_v37 = vpop.f32.mrf.mxu0 }
 0x3a0   :  { %v4898_v45 = vpop.f32.mrf.mxu3 }
 0x3a1   :  { %v4910_v1 = vpop.f32.mrf.mxu2  ;;  %v4899_v59 = vadd.f32 %v4898_v45, %v4885_v62 }
 0x3a2   :  { %v4911_v53 = vadd.f32 %v4910_v1, %v4897_v15  ;;  %v9932_v15 = vld [vmem:[%s13684_s3 + $0x18] sm:$0xff] }
 0x3a4   :  { %v4925_v38 = vadd.f32 %v4924_v16, %v4911_v53 }
 0x3a6   :  { %v4940_v28 = vpop.f32.mrf.mxu1  ;;  %v4939_v63 = vadd.f32 %v4938_v11, %v4925_v38  ;;  %v9934_v11 = vld [vmem:[%s13684_s3 + $0x28] sm:$0xff] }
 0x3a7   :  { %5275 = vmatpush.bf16.msrb.mxu3 %v9934_v11 }
 0x3a9   :  { %v4912_v12 = vpop.f32.mrf.mxu2 }
 0x3aa   :  { %v4913_v7 = vadd.f32 %v4912_v12, %v4899_v59 }
 0x3ab   :  { %5276 = vmatpush.bf16.msrb.mxu3 %v9933_v56 }
 0x3ac   :  { %v4927_v17 = vadd.f32 %v4926_v37, %v4913_v7 }
 0x3ae   :  { %v4941_v4 = vadd.f32 %v4940_v28, %v4927_v17  ;;  %v9940_v28 = vld [vmem:[%s13684_s3 + $0x58] sm:$0xff] }
 0x3af   :  { %5277 = vmatpush.bf16.msrb.mxu3 %v9932_v15  ;;  %5291 = vmatpush.bf16.msra.mxu2 %v9940_v28  ;;  %v10031_v15 = vld [vmem:[%s13686_s5 + $0x28c] sm:$0xf0]  ;;  %v9239_v28 = vld [vmem:[%s13686_s5 + $0x3a0] sm:$0xf] }
 0x3b7   :  { %v4980_v58 = vpop.f32.mrf.mxu0 }
 0x3b8   :  { %v4952_v29 = vpop.f32.mrf.mxu3 }
 0x3b9   :  { %v4953_v0 = vadd.f32 %v4952_v29, %v4939_v63  ;;  %v9939_v63 = vld [vmem:[%s13684_s3 + $0x50] sm:$0xff] }
 0x3ba   :  { %5292 = vmatpush.bf16.msra.mxu2 %v9939_v63  ;;  %v9079_v63 = vld [vmem:[%s13686_s5 + $0x260] sm:$0xf] }
 0x3be   :  { %v4994_v60 = vpop.f32.mrf.mxu1 }
 0x3bf   :  { %v4982_v6 = vpop.f32.mrf.mxu0 }
 0x3c0   :  { %v4954_v55 = vpop.f32.mrf.mxu3 }
 0x3c1   :  { %v4966_v42 = vpop.f32.mrf.mxu2  ;;  %v4955_v18 = vadd.f32 %v4954_v55, %v4941_v4 }
 0x3c2   :  { %v4967_v2 = vadd.f32 %v4966_v42, %v4953_v0 }
 0x3c4   :  { %v4981_v5 = vadd.f32 %v4980_v58, %v4967_v2  ;;  %v9931_v58 = vld [vmem:[%s13684_s3 + $0x10] sm:$0xff] }
 0x3c5   :  { %5278 = vmatpush.bf16.msrb.mxu3 %v9931_v58  ;;  %v9999_v58 = vld [vmem:[%s13686_s5 + $0x18c] sm:$0xf0] }
 0x3c6   :  { %v4996_v19 = vpop.f32.mrf.mxu1  ;;  %v4995_v24 = vadd.f32 %v4994_v60, %v4981_v5 }
 0x3c9   :  { %v4968_v3 = vpop.f32.mrf.mxu2  ;;  %5279 = vmatpush.bf16.msrb.mxu3 %v9930_v49 }
 0x3ca   :  { %v4969_v61 = vadd.f32 %v4968_v3, %v4955_v18  ;;  %v9937_v18 = vld [vmem:[%s13684_s3 + $0x40] sm:$0xff] }
 0x3cc   :  { %v4983_v9 = vadd.f32 %v4982_v6, %v4969_v61  ;;  %v9979_v61 = vld [vmem:[%s13686_s5 + $0xec] sm:$0xf0] }
 0x3cd   :  { %5280 = vmatpush.bf16.msrb.mxu3 %v9929_v31  ;;  %v9959_v31 = vld [vmem:[%s13686_s5 + $0x4c] sm:$0xf0] }
 0x3ce   :  { %v4997_v27 = vadd.f32 %v4996_v19, %v4983_v9  ;;  %v9143_v9 = vld [vmem:[%s13686_s5 + $0x2e0] sm:$0xf] }
 0x3d7   :  { %v5036_v39 = vpop.f32.mrf.mxu0 }
 0x3d8   :  { %v5008_v21 = vpop.f32.mrf.mxu3 }
 0x3d9   :  { %v5009_v36 = vadd.f32 %v5008_v21, %v4995_v24  ;;  %v9938_v21 = vld [vmem:[%s13684_s3 + $0x48] sm:$0xff]  ;;  %v8887_v24 = vld [vmem:[%s13686_s5 + $0xe0] sm:$0xf] }
 0x3da   :  { %5293 = vmatpush.bf16.msra.mxu2 %v9938_v21 }
 0x3dc   :  { %v5050_v22 = vpop.f32.mrf.mxu1 }
 0x3de   :  { %5294 = vmatpush.bf16.msra.mxu2 %v9937_v18  ;;  %v10023_v18 = vld [vmem:[%s13686_s5 + $0x24c] sm:$0xf0] }
 0x3df   :  { %v5038_v43 = vpop.f32.mrf.mxu0 }
 0x3e0   :  { %v5010_v13 = vpop.f32.mrf.mxu3 }
 0x3e1   :  { %v5022_v20 = vpop.f32.mrf.mxu2  ;;  %v5011_v48 = vadd.f32 %v5010_v13, %v4997_v27  ;;  %v9015_v13 = vld [vmem:[%s13686_s5 + $0x1e0] sm:$0xf] }
 0x3e2   :  { %v5023_v40 = vadd.f32 %v5022_v20, %v5009_v36  ;;  %v8871_v36 = vld [vmem:[%s13686_s5 + $0xc0] sm:$0xf]  ;;  %v9975_v20 = vld [vmem:[%s13686_s5 + $0xcc] sm:$0xf0] }
 0x3e3   :  { %v8872_v27 = vor.u32 %v9975_v20, %v8871_v36 }
 0x3e4   :  { %v5037_v23 = vadd.f32 %v5036_v39, %v5023_v40  ;;  %v5052_v34 = vpop.f32.mrf.mxu1  ;;  %v8888_v39 = vor.u32 %v9979_v61, %v8887_v24  ;;  %v10043_v40 = vld [vmem:[%s13686_s5 + $0x2ec] sm:$0xf0]  ;;  %v9207_v24 = vld [vmem:[%s13686_s5 + $0x360] sm:$0xf] }
 0x3e5   :  { %v10059_v61 = vld [vmem:[%s13686_s5 + $0x36c] sm:$0xf0] }
 0x3e6   :  { %v5051_v54 = vadd.f32 %v5050_v22, %v5037_v23  ;;  %v9144_v22 = vor.u32 %v10043_v40, %v9143_v9  ;;  %v8855_v23 = vld [vmem:[%s13686_s5 + $0xa0] sm:$0xf]  ;;  %6330 = vmatpush.bf16.msra.mxu1 %v8888_v39  ;;  %v9955_v40 = vld [vmem:[%s13686_s5 + $0x2c] sm:$0xf0] }
 0x3e7   :  { %v8791_v9 = vld [vmem:[%s13686_s5 + $0x20] sm:$0xf] }
 0x3e8   :  { %v5055_v26 = vmax.f32 %v5051_v54, 0.0  ;;  %v9127_v54 = vld [vmem:[%s13686_s5 + $0x2c0] sm:$0xf]  ;;  %6358 = vmatpush.bf16.msrb.mxu0 %v9144_v22 }
 0x3e9   :  { %v5024_v25 = vpop.f32.mrf.mxu2 }
 0x3ea   :  { %v5025_v44 = vadd.f32 %v5024_v25, %v5011_v48  ;;  %v5057_v16 = vpack.c.bf16 %v5055_v26, %v5055_v26  ;;  %v10011_v48 = vld [vmem:[%s13686_s5 + $0x1ec] sm:$0xf0]  ;;  %6331 = vmatpush.bf16.msra.mxu1 %v8872_v27 }
 0x3eb   :  { %v10039_v25 = vld [vmem:[%s13686_s5 + $0x2cc] sm:$0xf0]  ;;  %v9016_v8 = vor.u32 %v10011_v48, %v9015_v13  ;;  %v8792_v48 = vor.u32 %v9955_v40, %v8791_v9  ;;  %v10001_v9 = vld [vmem:[%s13686_s5 + $0x1a4] sm:$0xf]  ;;  %v8985_v40 = vld [vmem:[%s13686_s5 + $0x1b0] sm:$0xf0] }
 0x3ec   :  { %v5039_v14 = vadd.f32 %v5038_v43, %v5025_v44  ;;  %v5061_v47 = vunpack.c.l.b16 %v5057_v16  ;;  %v9971_v44 = vld [vmem:[%s13686_s5 + $0xac] sm:$0xf0]  ;;  %v9128_v43 = vor.u32 %v10039_v25, %v9127_v54 }
 0x3ed   :  { %v10075_v26 = vld [vmem:[%s13686_s5 + $0x3ec] sm:$0xf0]  ;;  %6344 = vmatpush.bf16.msra.mxu3 %v9016_v8  ;;  %v8856_v11 = vor.u32 %v9971_v44, %v8855_v23  ;;  %v9208_v23 = vor.u32 %v10059_v61, %v9207_v24  ;;  %v8775_v8 = vld [vmem:[%s13686_s5] sm:$0xf] }
 0x3ee   :  { %v5053_v1 = vadd.f32 %v5052_v34, %v5039_v14  ;;  %v9272_v14 = vor.u32 %v10075_v26, %v9271_v35  ;;  %v10007_v34 = vld [vmem:[%s13686_s5 + $0x1cc] sm:$0xf0]  ;;  %6359 = vmatpush.bf16.msrb.mxu0 %v9128_v43  ;;  %v9047_v26 = vld [vmem:[%s13686_s5 + $0x220] sm:$0xf] }
 0x3ef   :  { %v9000_v50 = vor.u32 %v10007_v34, %v8999_v32  ;;  %v10035_v16 = vld [vmem:[%s13686_s5 + $0x2ac] sm:$0xf0]  ;;  %6332 = vmatpush.bf16.msra.mxu1 %v8856_v11  ;;  %v9351_v24 = vld [vmem:[%s13686_s5 + $0x480] sm:$0xf] }
 0x3f0   :  { %v5056_v51 = vmax.f32 %v5053_v1, 0.0  ;;  %v9111_v1 = vld [vmem:[%s13686_s5 + $0x2a0] sm:$0xf]  ;;  %6372 = vmatpush.bf16.msrb.mxu2 %v9272_v14  ;;  %v9991_v35 = vld [vmem:[%s13686_s5 + $0x14c] sm:$0xf0] }
 0x3f1   :  { %6345 = vmatpush.bf16.msra.mxu3 %v9000_v50  ;;  %v10019_v14 = vld [vmem:[%s13686_s5 + $0x22c] sm:$0xf0]  ;;  %v9191_v50 = vld [vmem:[%s13686_s5 + $0x340] sm:$0xf] }
 0x3f2   :  { %v5058_v45 = vpack.c.bf16 %v5056_v51, %v5056_v51  ;;  %v9255_v51 = vld [vmem:[%s13686_s5 + $0x3c0] sm:$0xf]  ;;  %v9048_v34 = vor.u32 %v10019_v14, %v9047_v26  ;;  %v10107_v11 = vld [vmem:[%s13686_s5 + $0x4ec] sm:$0xf0]  ;;  %v10033_v14 = vld [vmem:[%s13686_s5 + $0x2a4] sm:$0xf] }
 0x3f3   :  { %v10095_v61 = vld [vmem:[%s13686_s5 + $0x48c] sm:$0xf0] }
 0x3f4   :  { %v5062_v33 = vunpack.c.l.b16 %v5058_v45  ;;  %v9967_v45 = vld [vmem:[%s13686_s5 + $0x8c] sm:$0xf0] }
 0x3f6   :  { %v5063_v12 = vpack.c.b16 %v5062_v33, %v5061_v47  ;;  %v10071_v47 = vld [vmem:[%s13686_s5 + $0x3cc] sm:$0xf0]  ;;  %v9112_v33 = vor.u32 %v10035_v16, %v9111_v1  ;;  %v9399_v16 = vld [vmem:[%s13686_s5 + $0x4e0] sm:$0xf] }
 0x3f7   :  { %v9256_v56 = vor.u32 %v10071_v47, %v9255_v51  ;;  %v10055_v1 = vld [vmem:[%s13686_s5 + $0x34c] sm:$0xf0]  ;;  %v9400_v47 = vor.u32 %v10107_v11, %v9399_v16  ;;  %v9965_v16 = vld [vmem:[%s13686_s5 + $0x84] sm:$0xf]  ;;  %v8841_v11 = vld [vmem:[%s13686_s5 + $0x90] sm:$0xf0] }
 0x3f8   :  { %v5064_v37 = vrot.slane %v5063_v12, 7  ;;  %v10003_v12 = vld [vmem:[%s13686_s5 + $0x1ac] sm:$0xf0]  ;;  %6360 = vmatpush.bf16.msrb.mxu0 %v9112_v33  ;;  %v9192_v51 = vor.u32 %v10055_v1, %v9191_v50  ;;  %v9319_v50 = vld [vmem:[%s13686_s5 + $0x440] sm:$0xf] }
 0x3f9   :  { %6373 = vmatpush.bf16.msrb.mxu2 %v9256_v56  ;;  %v9031_v56 = vld [vmem:[%s13686_s5 + $0x200] sm:$0xf]  ;;  %v10087_v1 = vld [vmem:[%s13686_s5 + $0x44c] sm:$0xf0] }
 0x3fa   :  { %v12607_v29 = vsel %vm1766_vm4, 0, %v5064_v37  ;;  %v12610_v52 = vsel %vm1766_vm4, %v5064_v37, 0  ;;  %v9095_v37 = vld [vmem:[%s13686_s5 + $0x280] sm:$0xf] }
 0x3fb   :  { %v5096_v53 = vrot.slane %v12607_v29, 2  ;;  %v5097_v57 = vrot.slane %v12610_v52, 2  ;;  %v5070_v62 = vshll.u32 %v12607_v29, 16  ;;  %v5068_v38 = vshrl.u32 %v12607_v29, 16 }
 0x3fc   :  { %v5074_v42 = vshll.u32 %v12610_v52, 16  ;;  %v5088_v46 = vshrl.u32 %v12610_v52, 16  ;;  %v5082_v13 = vrot.slane %v12607_v29, 1  ;;  %v5083_v27 = vrot.slane %v12610_v52, 1  ;;  %v8935_v52 = vld [vmem:[%s13686_s5 + $0x140] sm:$0xf] }
 0x3fd   :  { %v5098_v59 = vsel %vm175_vm3, %v5096_v53, %v5097_v57  ;;  %v5072_v60 = vrot.slane %v5070_v62, 1  ;;  %v5085_v0 = vrot.slane %v5068_v38, 1  ;;  %v5086_v2 = vrot.slane %v5070_v62, 2  ;;  %v10067_v53 = vld [vmem:[%s13686_s5 + $0x3ac] sm:$0xf0] }
 0x3fe   :  { %8772 = vmatmul.msk.bf16.vlgmr.msra.gmra.mxu0 %vm1802_vm5, %v5098_v59  ;;  %v5076_v55 = vrot.slane %v5074_v42, 1  ;;  %v5090_v3 = vrot.slane %v5088_v46, 1  ;;  %v5091_v6 = vrot.slane %v5074_v42, 2  ;;  %v8984_v57 = vor.u32 %v10003_v12, %v8983_v41  ;;  %v8967_v42 = vld [vmem:[%s13686_s5 + $0x180] sm:$0xf] }
 0x3ff   :  { %v5073_v7 = vor.u32 %v5072_v60, %v5068_v38  ;;  %v5087_v4 = vor.u32 %v5086_v2, %v5085_v0  ;;  %v8840_v62 = vor.u32 %v9967_v45, %v8839_v30  ;;  %v9240_v38 = vor.u32 %v10067_v53, %v9239_v28  ;;  %v8823_v59 = vld [vmem:[%s13686_s5 + $0x60] sm:$0xf]  ;;  %v9963_v60 = vld [vmem:[%s13686_s5 + $0x6c] sm:$0xf0] }
 0x400   :  { %v5092_v5 = vor.u32 %v5091_v6, %v5090_v3  ;;  %v9096_v46 = vor.u32 %v10031_v15, %v9095_v37  ;;  %v10063_v0 = vld [vmem:[%s13686_s5 + $0x38c] sm:$0xf0]  ;;  %6346 = vmatpush.bf16.msra.mxu3 %v8984_v57  ;;  %v8968_v49 = vor.u32 %v9999_v58, %v8967_v42  ;;  %v8951_v2 = vld [vmem:[%s13686_s5 + $0x160] sm:$0xf]  ;;  %v5084_v54 = vsel %vm117_vm1, %v5082_v13, %v5083_v27  ;;  %v9017_v42 = vld [vmem:[%s13686_s5 + $0x1f0] sm:$0xf0] }
 0x401   :  { %v5077_v17 = vsel %vm64_vm0, %v5073_v7, %v5076_v55  ;;  %v10027_v7 = vld [vmem:[%s13686_s5 + $0x26c] sm:$0xf0]  ;;  %v9223_v55 = vld [vmem:[%s13686_s5 + $0x380] sm:$0xf]  ;;  %6333 = vmatpush.bf16.msra.mxu1 %v8840_v62  ;;  %6374 = vmatpush.bf16.msrb.mxu2 %v9240_v38  ;;  %v8936_v32 = vor.u32 %v9991_v35, %v8935_v52  ;;  %v10009_v38 = vld [vmem:[%s13686_s5 + $0x1e4] sm:$0xf] }
 0x402   :  { %5078 = vrot.lane.b32.xlu1 %v5077_v17, %s10143_s9  ;;  %v5093_v19 = vsel %vm134_vm2, %v5087_v4, %v5092_v5  ;;  %v8824_v17 = vor.u32 %v9963_v60, %v8823_v59  ;;  %v9995_v3 = vld [vmem:[%s13686_s5 + $0x16c] sm:$0xf0]  ;;  %6361 = vmatpush.bf16.msrb.mxu0 %v9096_v46  ;;  %v8807_v6 = vld [vmem:[%s13686_s5 + $0x40] sm:$0xf]  ;;  %v9080_v4 = vor.u32 %v10027_v7, %v9079_v63  ;;  %v10037_v13 = vld [vmem:[%s13686_s5 + $0x2c4] sm:$0xf] }
 0x403   :  { %v9224_v5 = vor.u32 %v10063_v0, %v9223_v55  ;;  %v8952_v39 = vor.u32 %v9995_v3, %v8951_v2  ;;  %v8808_v20 = vor.u32 %v9959_v31, %v8807_v6  ;;  %v8919_v30 = vld [vmem:[%s13686_s5 + $0x120] sm:$0xf]  ;;  %v9987_v45 = vld [vmem:[%s13686_s5 + $0x12c] sm:$0xf0]  ;;  %v9020_v58 = vor.u32 %v10009_v38, %v9017_v42  ;;  %v9977_v2 = vld [vmem:[%s13686_s5 + $0xe4] sm:$0xf] }
 0x404   :  { %6347 = vmatpush.bf16.msra.mxu3 %v8968_v49  ;;  %v8920_v33 = vor.u32 %v9987_v45, %v8919_v30  ;;  %v10015_v41 = vld [vmem:[%s13686_s5 + $0x20c] sm:$0xf0]  ;;  %v9175_v12 = vld [vmem:[%s13686_s5 + $0x320] sm:$0xf]  ;;  %v8889_v3 = vld [vmem:[%s13686_s5 + $0xf0] sm:$0xf0] }
 0x405   :  { %6334 = vmatpush.bf16.msra.mxu1 %v8824_v17  ;;  %6375 = vmatpush.bf16.msrb.mxu2 %v9224_v5  ;;  %v9032_v37 = vor.u32 %v10015_v41, %v9031_v56  ;;  %v10051_v15 = vld [vmem:[%s13686_s5 + $0x32c] sm:$0xf0]  ;;  %v9383_v28 = vld [vmem:[%s13686_s5 + $0x4c0] sm:$0xf]  ;;  %v10005_v6 = vld [vmem:[%s13686_s5 + $0x1c4] sm:$0xf]  ;;  %v8892_v31 = vor.u32 %v9977_v2, %v8889_v3 }
 0x406   :  { %6362 = vmatpush.bf16.msrb.mxu0 %v9080_v4  ;;  %v10103_v53 = vld [vmem:[%s13686_s5 + $0x4cc] sm:$0xf0]  ;;  %v9176_v57 = vor.u32 %v10051_v15, %v9175_v12  ;;  %v8903_v59 = vld [vmem:[%s13686_s5 + $0x100] sm:$0xf]  ;;  %v9001_v4 = vld [vmem:[%s13686_s5 + $0x1d0] sm:$0xf0] }
 0x407   :  { %v9384_v62 = vor.u32 %v10103_v53, %v9383_v28  ;;  %v9983_v60 = vld [vmem:[%s13686_s5 + $0x10c] sm:$0xf0]  ;;  %v9159_v46 = vld [vmem:[%s13686_s5 + $0x300] sm:$0xf]  ;;  %v10041_v5 = vld [vmem:[%s13686_s5 + $0x2e4] sm:$0xf] }
 0x408   :  { %6348 = vmatpush.bf16.msra.mxu3 %v8952_v39  ;;  %v8904_v63 = vor.u32 %v9983_v60, %v8903_v59  ;;  %v10047_v7 = vld [vmem:[%s13686_s5 + $0x30c] sm:$0xf0]  ;;  %v9367_v55 = vld [vmem:[%s13686_s5 + $0x4a0] sm:$0xf]  ;;  %v9352_v39 = vor.u32 %v10095_v61, %v9351_v24  ;;  %v9129_v27 = vld [vmem:[%s13686_s5 + $0x2d0] sm:$0xf0] }
 0x409   :  { %6335 = vmatpush.bf16.msra.mxu1 %v8808_v20  ;;  %6376 = vmatpush.bf16.msrb.mxu2 %v9208_v23  ;;  %v10099_v0 = vld [vmem:[%s13686_s5 + $0x4ac] sm:$0xf0]  ;;  %v9160_v49 = vor.u32 %v10047_v7, %v9159_v46  ;;  %v8873_v20 = vld [vmem:[%s13686_s5 + $0xd0] sm:$0xf0]  ;;  %v8988_v23 = vor.u32 %v10001_v9, %v8985_v40  ;;  %v9997_v52 = vld [vmem:[%s13686_s5 + $0x184] sm:$0xf] }
 0x40a   :  { %5094 = vrot.lane.b32.xlu1 %v5093_v19, %s10143_s9  ;;  %v9063_v19 = vld [vmem:[%s13686_s5 + $0x240] sm:$0xf]  ;;  %v9368_v17 = vor.u32 %v10099_v0, %v9367_v55  ;;  %v9993_v30 = vld [vmem:[%s13686_s5 + $0x164] sm:$0xf]  ;;  %v8953_v45 = vld [vmem:[%s13686_s5 + $0x170] sm:$0xf0] }
 0x40b   :  { %v9064_v22 = vor.u32 %v10023_v18, %v9063_v19  ;;  %v9145_v19 = vld [vmem:[%s13686_s5 + $0x2f0] sm:$0xf0]  ;;  %v10029_v56 = vld [vmem:[%s13686_s5 + $0x284] sm:$0xf]  ;;  %v10083_v15 = vld [vmem:[%s13686_s5 + $0x42c] sm:$0xf0] }
 0x40c   :  { %6349 = vmatpush.bf16.msra.mxu3 %v8936_v32  ;;  %v9148_v18 = vor.u32 %v10041_v5, %v9145_v19  ;;  %v9113_v32 = vld [vmem:[%s13686_s5 + $0x2b0] sm:$0xf0]  ;;  %v9961_v28 = vld [vmem:[%s13686_s5 + $0x64] sm:$0xf]  ;;  %v10079_v7 = vld [vmem:[%s13686_s5 + $0x40c] sm:$0xf0] }
 0x40d   :  { %6363 = vmatpush.bf16.msrb.mxu0 %v9064_v22  ;;  %6336 = vmatpush.bf16.msra.mxu1 %v8792_v48  ;;  %v9132_v48 = vor.u32 %v10037_v13, %v9129_v27  ;;  %v9097_v41 = vld [vmem:[%s13686_s5 + $0x290] sm:$0xf0]  ;;  %v10025_v59 = vld [vmem:[%s13686_s5 + $0x264] sm:$0xf] }
 0x40e   :  { %6377 = vmatpush.bf16.msrb.mxu2 %v9192_v51  ;;  %v9320_v51 = vor.u32 %v10087_v1, %v9319_v50  ;;  %v9100_v12 = vor.u32 %v10029_v56, %v9097_v41  ;;  %v8937_v38 = vld [vmem:[%s13686_s5 + $0x150] sm:$0xf0]  ;;  %v9957_v55 = vld [vmem:[%s13686_s5 + $0x44] sm:$0xf] }
 0x40f   :  { %v9081_v60 = vld [vmem:[%s13686_s5 + $0x270] sm:$0xf0]  ;;  %v9953_v19 = vld [vmem:[%s13686_s5 + $0x24] sm:$0xf] }
 0x410   :  { %6350 = vmatpush.bf16.msra.mxu3 %v8920_v33  ;;  %v8956_v33 = vor.u32 %v9993_v30, %v8953_v45  ;;  %v9084_v46 = vor.u32 %v10025_v59, %v9081_v60  ;;  %v8921_v2 = vld [vmem:[%s13686_s5 + $0x130] sm:$0xf0]  ;;  %v10013_v27 = vld [vmem:[%s13686_s5 + $0x204] sm:$0xf] }
 0x411   :  { %6364 = vmatpush.bf16.msrb.mxu0 %v9048_v34  ;;  %v9116_v34 = vor.u32 %v10033_v14, %v9113_v32  ;;  %v8905_v61 = vld [vmem:[%s13686_s5 + $0x110] sm:$0xf0]  ;;  %v10069_v41 = vld [vmem:[%s13686_s5 + $0x3c4] sm:$0xf] }
 0x412   :  { %6378 = vmatpush.bf16.msrb.mxu2 %v9176_v57  ;;  %v8825_v57 = vld [vmem:[%s13686_s5 + $0x70] sm:$0xf0] }
 0x413   :  { %v8828_v42 = vor.u32 %v9961_v28, %v8825_v57  ;;  %v8777_v13 = vld [vmem:[%s13686_s5 + $0x10] sm:$0xf0]  ;;  %v9980_v28 = vld [vmem:[%s13686_s5 + $0xf4] sm:$0xf0] }
 0x414   :  { %6351 = vmatpush.bf16.msra.mxu3 %v8904_v63  ;;  %v9287_v63 = vld [vmem:[%s13686_s5 + $0x400] sm:$0xf]  ;;  %v9241_v59 = vld [vmem:[%s13686_s5 + $0x3b0] sm:$0xf0] }
 0x415   :  { %6365 = vmatpush.bf16.msrb.mxu0 %v9032_v37  ;;  %v9303_v37 = vld [vmem:[%s13686_s5 + $0x420] sm:$0xf]  ;;  %v9288_v0 = vor.u32 %v10079_v7, %v9287_v63 }
 0x416   :  { %6379 = vmatpush.bf16.msrb.mxu2 %v9160_v49  ;;  %v9304_v53 = vor.u32 %v10083_v15, %v9303_v37  ;;  %v8809_v49 = vld [vmem:[%s13686_s5 + $0x50] sm:$0xf0]  ;;  %v8895_v15 = vld [vmem:[%s13686_s5 + $0xe8] sm:$0xf] }
 0x417   :  { %v8812_v3 = vor.u32 %v9957_v55, %v8809_v49  ;;  %v9257_v37 = vld [vmem:[%s13686_s5 + $0x3d0] sm:$0xf0]  ;;  %v10105_v55 = vld [vmem:[%s13686_s5 + $0x4e4] sm:$0xf] }
 0x419   :  { %6414 = vmatpush.bf16.msra.mxu0 %v9020_v58 }
 0x474   :  { %v5079_v21 = vpop.permute.xlu1 %5078 }
 0x475   :  { %v5100_v36 = vsel %vm1802_vm5, %v12607_v29, %v5079_v21  ;;  %v9951_v29 = vld [vmem:[%s13686_s5 + $0xc] sm:$0xf0]  ;;  %v9004_v21 = vor.u32 %v10005_v6, %v9001_v4  ;;  %v9065_v4 = vld [vmem:[%s13686_s5 + $0x250] sm:$0xf0] }
 0x476   :  { %5281 = vmatmul.bf16.vlgmr.msrb.gmra.mxu3 %v5100_v36  ;;  %v8776_v43 = vor.u32 %v9951_v29, %v8775_v8  ;;  %v9973_v36 = vld [vmem:[%s13686_s5 + $0xc4] sm:$0xf]  ;;  %v8857_v29 = vld [vmem:[%s13686_s5 + $0xb0] sm:$0xf0] }
 0x477   :  { %6400 = vmatpush.bf16.msrb.mxu3 %v8892_v31  ;;  %6415 = vmatpush.bf16.msra.mxu0 %v9004_v21  ;;  %v8876_v22 = vor.u32 %v9973_v36, %v8873_v20  ;;  %v10021_v31 = vld [vmem:[%s13686_s5 + $0x244] sm:$0xf]  ;;  %v8793_v21 = vld [vmem:[%s13686_s5 + $0x30] sm:$0xf0] }
 0x478   :  { %6337 = vmatpush.bf16.msra.mxu1 %v8776_v43  ;;  %v8969_v43 = vld [vmem:[%s13686_s5 + $0x190] sm:$0xf0]  ;;  %v9068_v5 = vor.u32 %v10021_v31, %v9065_v4  ;;  %v8796_v24 = vor.u32 %v9953_v19, %v8793_v21  ;;  %v10017_v36 = vld [vmem:[%s13686_s5 + $0x224] sm:$0xf] }
 0x479   :  { %v8972_v26 = vor.u32 %v9997_v52, %v8969_v43 }
 0x47b   :  { %6401 = vmatpush.bf16.msrb.mxu3 %v8876_v22  ;;  %6416 = vmatpush.bf16.msra.mxu0 %v8988_v23  ;;  %v10116_v22 = vld [vmem:[%s13685_s4] ss:$0 sm:$0xff]  ;;  %v9949_v23 = vld [vmem:[%s13686_s5 + $0x4] sm:$0xf] }
 0x47c   :  { %v5095_v25 = vpop.permute.xlu1 %5094  ;;  %6386 = vmatpush.bf16.msrb.mxu1 %v9400_v47  ;;  %v8844_v47 = vor.u32 %v9965_v16, %v8841_v11 }
 0x47d   :  { %v5104_v44 = vsel %vm1802_vm5, %v5084_v54, %v5095_v25  ;;  %v9335_v54 = vld [vmem:[%s13686_s5 + $0x460] sm:$0xf]  ;;  %v10091_v25 = vld [vmem:[%s13686_s5 + $0x46c] sm:$0xf0] }
 0x47e   :  { %5295 = vmatmul.bf16.vlgmr.msra.gmra.mxu2 %v5104_v44  ;;  %v9969_v44 = vld [vmem:[%s13686_s5 + $0xa4] sm:$0xf]  ;;  %v9336_v8 = vor.u32 %v10091_v25, %v9335_v54  ;;  %v9033_v54 = vld [vmem:[%s13686_s5 + $0x210] sm:$0xf0] }
 0x47f   :  { %6428 = vmatpush.bf16.msra.mxu2 %v9148_v18  ;;  %v8860_v35 = vor.u32 %v9969_v44, %v8857_v29  ;;  %6417 = vmatpush.bf16.msra.mxu0 %v8972_v26  ;;  %v9981_v18 = vld [vmem:[%s13686_s5 + $0x104] sm:$0xf]  ;;  %v9036_v25 = vor.u32 %v10013_v27, %v9033_v54 }
 0x480   :  { %6387 = vmatpush.bf16.msrb.mxu1 %v9384_v62  ;;  %v9989_v62 = vld [vmem:[%s13686_s5 + $0x144] sm:$0xf]  ;;  %v8908_v9 = vor.u32 %v9981_v18, %v8905_v61  ;;  %v9023_v18 = vld [vmem:[%s13686_s5 + $0x1e8] sm:$0xf] }
 0x481   :  { %6402 = vmatpush.bf16.msrb.mxu3 %v8860_v35  ;;  %v8940_v58 = vor.u32 %v9989_v62, %v8937_v38  ;;  %v9260_v38 = vor.u32 %v10069_v41, %v9257_v37  ;;  %v10101_v27 = vld [vmem:[%s13686_s5 + $0x4c4] sm:$0xf] }
 0x482   :  { %v10053_v37 = vld [vmem:[%s13686_s5 + $0x344] sm:$0xf] }
 0x483   :  { %6429 = vmatpush.bf16.msra.mxu2 %v9132_v48  ;;  %6418 = vmatpush.bf16.msra.mxu0 %v8956_v33  ;;  %v8780_v48 = vor.u32 %v9949_v23, %v8777_v13  ;;  %v9273_v33 = vld [vmem:[%s13686_s5 + $0x3f0] sm:$0xf0]  ;;  %v10061_v23 = vld [vmem:[%s13686_s5 + $0x384] sm:$0xf] }
 0x484   :  { %6388 = vmatpush.bf16.msrb.mxu1 %v9368_v17  ;;  %v9985_v17 = vld [vmem:[%s13686_s5 + $0x124] sm:$0xf]  ;;  %v9225_v13 = vld [vmem:[%s13686_s5 + $0x390] sm:$0xf0] }
 0x485   :  { %6403 = vmatpush.bf16.msrb.mxu3 %v8844_v47  ;;  %v8924_v6 = vor.u32 %v9985_v17, %v8921_v2  ;;  %v10073_v47 = vld [vmem:[%s13686_s5 + $0x3e4] sm:$0xf]  ;;  %v9401_v17 = vld [vmem:[%s13686_s5 + $0x4f0] sm:$0xf0]  ;;  %v8879_v2 = vld [vmem:[%s13686_s5 + $0xc8] sm:$0xf] }
 0x487   :  { %6430 = vmatpush.bf16.msra.mxu2 %v9116_v34  ;;  %6419 = vmatpush.bf16.msra.mxu0 %v8940_v58  ;;  %v10065_v58 = vld [vmem:[%s13686_s5 + $0x3a4] sm:$0xf] }
 0x488   :  { %6389 = vmatpush.bf16.msrb.mxu1 %v9352_v39  ;;  %v9049_v39 = vld [vmem:[%s13686_s5 + $0x230] sm:$0xf0] }
 0x489   :  { %6404 = vmatpush.bf16.msrb.mxu3 %v8828_v42  ;;  %v9052_v40 = vor.u32 %v10017_v36, %v9049_v39  ;;  %v8896_v42 = vor.u32 %v9980_v28, %v8895_v15  ;;  %v9193_v15 = vld [vmem:[%s13686_s5 + $0x350] sm:$0xf0]  ;;  %v10093_v28 = vld [vmem:[%s13686_s5 + $0x484] sm:$0xf] }
 0x48b   :  { %6431 = vmatpush.bf16.msra.mxu2 %v9100_v12  ;;  %6420 = vmatpush.bf16.msra.mxu0 %v8924_v6  ;;  %v9276_v12 = vor.u32 %v10073_v47, %v9273_v33  ;;  %v8991_v47 = vld [vmem:[%s13686_s5 + $0x1a8] sm:$0xf]  ;;  %v10004_v33 = vld [vmem:[%s13686_s5 + $0x1b4] sm:$0xf0] }
 0x48c   :  { %6390 = vmatpush.bf16.msrb.mxu1 %v9336_v8  ;;  %v5310_v8 = vpop.f32.mrf.mxu0 }
 0x48d   :  { %6405 = vmatpush.bf16.msrb.mxu3 %v8812_v3 }
 0x48f   :  { %6432 = vmatpush.bf16.msra.mxu2 %v9084_v46  ;;  %6421 = vmatpush.bf16.msra.mxu0 %v8908_v9 }
 0x490   :  { %6391 = vmatpush.bf16.msrb.mxu1 %v9320_v51 }
 0x491   :  { %6406 = vmatpush.bf16.msrb.mxu3 %v8796_v24  ;;  %v10012_v24 = vld [vmem:[%s13686_s5 + $0x1f4] sm:$0xf0] }
 0x492   :  { %v9024_v54 = vor.u32 %v10012_v24, %v9023_v18 }
 0x493   :  { %6433 = vmatpush.bf16.msra.mxu2 %v9068_v5  ;;  %v9976_v5 = vld [vmem:[%s13686_s5 + $0xd4] sm:$0xf0] }
 0x494   :  { %6392 = vmatpush.bf16.msrb.mxu1 %v9304_v53  ;;  %v5312_v50 = vpop.f32.mrf.mxu0 }
 0x495   :  { %6407 = vmatpush.bf16.msrb.mxu3 %v8780_v48 }
 0x497   :  { %6434 = vmatpush.bf16.msra.mxu2 %v9052_v40  ;;  %v9404_v40 = vor.u32 %v10105_v55, %v9401_v17  ;;  %v10049_v55 = vld [vmem:[%s13686_s5 + $0x324] sm:$0xf] }
 0x498   :  { %6393 = vmatpush.bf16.msrb.mxu1 %v9288_v0 }
 0x49b   :  { %6435 = vmatpush.bf16.msra.mxu2 %v9036_v25  ;;  %v9385_v25 = vld [vmem:[%s13686_s5 + $0x4d0] sm:$0xf0] }
 0x4f9   :  { %v5282_v20 = vpop.f32.mrf.mxu3 }
 0x4fa   :  { %v5283_v44 = vadd.f32 %v10116_v22, %v5282_v20  ;;  %v9244_v20 = vor.u32 %v10065_v58, %v9241_v59  ;;  %v9964_v58 = vld [vmem:[%s13686_s5 + $0x74] sm:$0xf0]  ;;  %v8975_v59 = vld [vmem:[%s13686_s5 + $0x188] sm:$0xf] }
 0x501   :  { %v5296_v29 = vpop.f32.mrf.mxu2  ;;  %v5284_v43 = vpop.f32.mrf.mxu3 }
 0x502   :  { %v5297_v52 = vadd.f32 %v5296_v29, %v5283_v44  ;;  %v5285_v26 = vadd.f32 %v10116_v22, %v5284_v43  ;;  %v8880_v22 = vor.u32 %v9976_v5, %v8879_v2  ;;  %v8863_v44 = vld [vmem:[%s13686_s5 + $0xa8] sm:$0xf]  ;;  %v10008_v43 = vld [vmem:[%s13686_s5 + $0x1d4] sm:$0xf0]  ;;  %v9337_v2 = vld [vmem:[%s13686_s5 + $0x470] sm:$0xf0] }
 0x503   :  { %v9996_v5 = vld [vmem:[%s13686_s5 + $0x174] sm:$0xf0] }
 0x504   :  { %v5311_v35 = vadd.f32 %v5310_v8, %v5297_v52  ;;  %v9972_v8 = vld [vmem:[%s13686_s5 + $0xb4] sm:$0xf0]  ;;  %v9007_v52 = vld [vmem:[%s13686_s5 + $0x1c8] sm:$0xf] }
 0x506   :  { %v5315_v32 = vmax.f32 %v5311_v35, 0.0  ;;  %v9228_v35 = vor.u32 %v10061_v23, %v9225_v13  ;;  %v9992_v23 = vld [vmem:[%s13686_s5 + $0x154] sm:$0xf0]  ;;  %v9151_v13 = vld [vmem:[%s13686_s5 + $0x2e8] sm:$0xf] }
 0x508   :  { %v5317_v16 = vpack.c.bf16 %v5315_v32, %v5315_v32  ;;  %v8864_v32 = vor.u32 %v9972_v8, %v8863_v44  ;;  %v10081_v8 = vld [vmem:[%s13686_s5 + $0x424] sm:$0xf] }
 0x509   :  { %v5298_v14 = vpop.f32.mrf.mxu2 }
 0x50a   :  { %v5299_v34 = vadd.f32 %v5298_v14, %v5285_v26  ;;  %v5321_v30 = vunpack.c.l.b16 %v5317_v16  ;;  %v10057_v26 = vld [vmem:[%s13686_s5 + $0x364] sm:$0xf]  ;;  %v9388_v14 = vor.u32 %v10101_v27, %v9385_v25  ;;  %v9008_v16 = vor.u32 %v10008_v43, %v9007_v52  ;;  %v10044_v27 = vld [vmem:[%s13686_s5 + $0x2f4] sm:$0xf0]  ;;  %v9305_v52 = vld [vmem:[%s13686_s5 + $0x430] sm:$0xf0] }
 0x50c   :  { %v5313_v1 = vadd.f32 %v5312_v50, %v5299_v34  ;;  %v9209_v34 = vld [vmem:[%s13686_s5 + $0x370] sm:$0xf0]  ;;  %v10097_v50 = vld [vmem:[%s13686_s5 + $0x4a4] sm:$0xf] }
 0x50e   :  { %v5316_v51 = vmax.f32 %v5313_v1, 0.0  ;;  %v9369_v1 = vld [vmem:[%s13686_s5 + $0x4b0] sm:$0xf0] }
 0x50f   :  { %v9372_v41 = vor.u32 %v10097_v50, %v9369_v1  ;;  %v9135_v50 = vld [vmem:[%s13686_s5 + $0x2c8] sm:$0xf]  ;;  %v10040_v1 = vld [vmem:[%s13686_s5 + $0x2d4] sm:$0xf0] }
 0x510   :  { %v5318_v11 = vpack.c.bf16 %v5316_v51, %v5316_v51 }
 0x512   :  { %v5322_v45 = vunpack.c.l.b16 %v5318_v11 }
 0x514   :  { %v5323_v56 = vpack.c.b16 %v5322_v45, %v5321_v30  ;;  %v8847_v30 = vld [vmem:[%s13686_s5 + $0x88] sm:$0xf]  ;;  %v9968_v45 = vld [vmem:[%s13686_s5 + $0x94] sm:$0xf0] }
 0x516   :  { %v13053_v53 = vrot.slane %v5323_v56, 7  ;;  %v9212_v56 = vor.u32 %v10057_v26, %v9209_v34  ;;  %v8783_v26 = vld [vmem:[%s13686_s5 + $0x8] sm:$0xf]  ;;  %v9988_v34 = vld [vmem:[%s13686_s5 + $0x134] sm:$0xf0] }
 0x518   :  { %9414 = vmatmul.msk.bf16.vlgmr.msra.gmra.mxu1 %vm11294_vm6, %v13053_v53  ;;  %v13060_v57 = vsel %vm1766_vm4, 0, %v13053_v53  ;;  %v13064_v62 = vsel %vm1766_vm4, %v13053_v53, 0 }
 0x519   :  { %6442 = vmatpush.bf16.msra.mxu1 %v9276_v12  ;;  %v5342_v60 = vrot.slane %v13060_v57, 1  ;;  %v5343_v46 = vrot.slane %v13064_v62, 1  ;;  %v5329_v63 = vshrl.u32 %v13060_v57, 16  ;;  %v5331_v7 = vshll.u32 %v13060_v57, 16 }
 0x51a   :  { %v5335_v0 = vshll.u32 %v13064_v62, 16  ;;  %v5349_v49 = vshrl.u32 %v13064_v62, 16  ;;  %v5356_v51 = vrot.slane %v13060_v57, 2  ;;  %v5357_v11 = vrot.slane %v13064_v62, 2 }
 0x51b   :  { %v13088_v3 = vsel %vm117_vm1, %v5342_v60, %v5343_v46  ;;  %v5333_v6 = vrot.slane %v5331_v7, 1  ;;  %v5346_v31 = vrot.slane %v5329_v63, 1  ;;  %v5347_v4 = vrot.slane %v5331_v7, 2  ;;  %v10000_v60 = vld [vmem:[%s13686_s5 + $0x194] sm:$0xf0] }
 0x51c   :  { %6366 = vmatmul.bf16.vlgmr.msrb.gmra.mxu0 %v13088_v3  ;;  %v5351_v19 = vrot.slane %v5349_v49, 1  ;;  %v5352_v21 = vrot.slane %v5335_v0, 2  ;;  %v5337_v36 = vrot.slane %v5335_v0, 1  ;;  %v8848_v12 = vor.u32 %v9968_v45, %v8847_v30  ;;  %v9177_v0 = vld [vmem:[%s13686_s5 + $0x330] sm:$0xf0] }
 0x51d   :  { %6443 = vmatpush.bf16.msra.mxu1 %v9260_v38  ;;  %6470 = vmatpush.bf16.msrb.mxu0 %v8896_v42  ;;  %v5334_v61 = vor.u32 %v5333_v6, %v5329_v63  ;;  %v5348_v39 = vor.u32 %v5347_v4, %v5346_v31  ;;  %v13168_v57 = vsel %vm175_vm3, %v5356_v51, %v5357_v11  ;;  %v9353_v38 = vld [vmem:[%s13686_s5 + $0x490] sm:$0xf0]  ;;  %v8831_v42 = vld [vmem:[%s13686_s5 + $0x68] sm:$0xf]  ;;  %v10089_v49 = vld [vmem:[%s13686_s5 + $0x464] sm:$0xf] }
 0x51e   :  { %v5353_v9 = vor.u32 %v5352_v21, %v5351_v19  ;;  %v8992_v62 = vor.u32 %v10004_v33, %v8991_v47  ;;  %v9196_v46 = vor.u32 %v10053_v37, %v9193_v15  ;;  %v9356_v63 = vor.u32 %v10093_v28, %v9353_v38  ;;  %v8815_v6 = vld [vmem:[%s13686_s5 + $0x48] sm:$0xf]  ;;  %v9960_v31 = vld [vmem:[%s13686_s5 + $0x54] sm:$0xf0]  ;;  %v10045_v21 = vld [vmem:[%s13686_s5 + $0x304] sm:$0xf] }
 0x51f   :  { %v13110_v48 = vsel %vm64_vm0, %v5334_v61, %v5337_v36  ;;  %v8832_v7 = vor.u32 %v9964_v58, %v8831_v42  ;;  %v8976_v17 = vor.u32 %v10000_v60, %v8975_v59  ;;  %v8959_v4 = vld [vmem:[%s13686_s5 + $0x168] sm:$0xf]  ;;  %v9180_v19 = vor.u32 %v10049_v55, %v9177_v0  ;;  %v9161_v61 = vld [vmem:[%s13686_s5 + $0x310] sm:$0xf0]  ;;  %v10085_v36 = vld [vmem:[%s13686_s5 + $0x444] sm:$0xf] }
 0x520   :  { %6352 = vmatmul.bf16.vlgmr.msra.gmra.mxu3 %v13110_v48  ;;  %v13123_v29 = vsel %vm134_vm2, %v5348_v39, %v5353_v9  ;;  %v9340_v18 = vor.u32 %v10089_v49, %v9337_v2  ;;  %v8816_v24 = vor.u32 %v9960_v31, %v8815_v6  ;;  %v9321_v39 = vld [vmem:[%s13686_s5 + $0x450] sm:$0xf0]  ;;  %v8799_v9 = vld [vmem:[%s13686_s5 + $0x28] sm:$0xf]  ;;  %v10108_v51 = vld [vmem:[%s13686_s5 + $0x4f4] sm:$0xf0]  ;;  %v9308_v11 = vor.u32 %v10081_v8, %v9305_v52 }
 0x521   :  { %6380 = vmatmul.bf16.vlgmr.msrb.gmra.mxu2 %v13123_v29  ;;  %6444 = vmatpush.bf16.msra.mxu1 %v9244_v20  ;;  %v8960_v20 = vor.u32 %v9996_v5, %v8959_v4  ;;  %v9324_v25 = vor.u32 %v10085_v36, %v9321_v39  ;;  %v10077_v45 = vld [vmem:[%s13686_s5 + $0x404] sm:$0xf]  ;;  %v9136_v33 = vor.u32 %v10040_v1, %v9135_v50  ;;  %v9119_v15 = vld [vmem:[%s13686_s5 + $0x2a8] sm:$0xf]  ;;  %v10036_v28 = vld [vmem:[%s13686_s5 + $0x2b4] sm:$0xf0] }
 0x522   :  { %6456 = vmatpush.bf16.msra.mxu3 %v9404_v40  ;;  %6471 = vmatpush.bf16.msrb.mxu0 %v8880_v22  ;;  %v9956_v40 = vld [vmem:[%s13686_s5 + $0x34] sm:$0xf0]  ;;  %v8943_v22 = vld [vmem:[%s13686_s5 + $0x148] sm:$0xf]  ;;  %v9978_v60 = vld [vmem:[%s13686_s5 + $0xec] sm:$0xf] }
 0x523   :  { %6484 = vmatpush.bf16.msrb.mxu2 %v9024_v54  ;;  %v9164_v54 = vor.u32 %v10045_v21, %v9161_v61  ;;  %v8800_v44 = vor.u32 %v9956_v40, %v8799_v9  ;;  %v8944_v43 = vor.u32 %v9992_v23, %v8943_v22  ;;  %v10076_v38 = vld [vmem:[%s13686_s5 + $0x3f4] sm:$0xf0]  ;;  %v9391_v42 = vld [vmem:[%s13686_s5 + $0x4c8] sm:$0xf]  ;;  %v8881_v21 = vld [vmem:[%s13686_s5 + $0xd8] sm:$0xf0] }
 0x524   :  { %v10104_v58 = vld [vmem:[%s13686_s5 + $0x4d4] sm:$0xf0]  ;;  %v9103_v49 = vld [vmem:[%s13686_s5 + $0x288] sm:$0xf]  ;;  %v8849_v50 = vld [vmem:[%s13686_s5 + $0x98] sm:$0xf0] }
 0x525   :  { %6445 = vmatpush.bf16.msra.mxu1 %v9228_v35  ;;  %v9152_v35 = vor.u32 %v10044_v27, %v9151_v13  ;;  %v9392_v0 = vor.u32 %v10104_v58, %v9391_v42  ;;  %v9263_v2 = vld [vmem:[%s13686_s5 + $0x3c8] sm:$0xf]  ;;  %v10072_v31 = vld [vmem:[%s13686_s5 + $0x3d4] sm:$0xf0]  ;;  %v9970_v13 = vld [vmem:[%s13686_s5 + $0xac] sm:$0xf] }
 0x526   :  { %6457 = vmatpush.bf16.msra.mxu3 %v9388_v14  ;;  %6472 = vmatpush.bf16.msrb.mxu0 %v8864_v32  ;;  %v9952_v14 = vld [vmem:[%s13686_s5 + $0x14] sm:$0xf0]  ;;  %v8927_v32 = vld [vmem:[%s13686_s5 + $0x128] sm:$0xf]  ;;  %v8865_v27 = vld [vmem:[%s13686_s5 + $0xb8] sm:$0xf0] }
 0x527   :  { %6485 = vmatpush.bf16.msrb.mxu2 %v9008_v16  ;;  %v9407_v16 = vld [vmem:[%s13686_s5 + $0x4e8] sm:$0xf]  ;;  %v8784_v30 = vor.u32 %v9952_v14, %v8783_v26  ;;  %v8928_v47 = vor.u32 %v9988_v34, %v8927_v32  ;;  %v10100_v5 = vld [vmem:[%s13686_s5 + $0x4b4] sm:$0xf0]  ;;  %v9966_v34 = vld [vmem:[%s13686_s5 + $0x8c] sm:$0xf] }
 0x528   :  { %6394 = vmatmul.bf16.vlgmr.msrb.gmra.mxu1 %v13168_v57  ;;  %v9408_v37 = vor.u32 %v10108_v51, %v9407_v16  ;;  %v9375_v4 = vld [vmem:[%s13686_s5 + $0x4a8] sm:$0xf]  ;;  %v10028_v39 = vld [vmem:[%s13686_s5 + $0x274] sm:$0xf0] }
 0x529   :  { %6446 = vmatpush.bf16.msra.mxu1 %v9212_v56  ;;  %v9289_v56 = vld [vmem:[%s13686_s5 + $0x410] sm:$0xf0]  ;;  %v9376_v61 = vor.u32 %v10100_v5, %v9375_v4  ;;  %v9087_v36 = vld [vmem:[%s13686_s5 + $0x268] sm:$0xf]  ;;  %v10068_v40 = vld [vmem:[%s13686_s5 + $0x3b4] sm:$0xf0] }
 0x52a   :  { %6458 = vmatpush.bf16.msra.mxu3 %v9372_v41  ;;  %6473 = vmatpush.bf16.msrb.mxu0 %v8848_v12  ;;  %v8911_v41 = vld [vmem:[%s13686_s5 + $0x108] sm:$0xf]  ;;  %v9984_v12 = vld [vmem:[%s13686_s5 + $0x114] sm:$0xf0]  ;;  %v9292_v59 = vor.u32 %v10077_v45, %v9289_v56 }
 0x52b   :  { %6486 = vmatpush.bf16.msrb.mxu2 %v8992_v62  ;;  %v9279_v62 = vld [vmem:[%s13686_s5 + $0x3e8] sm:$0xf]  ;;  %v10096_v23 = vld [vmem:[%s13686_s5 + $0x494] sm:$0xf0] }
 0x52c   :  { %6422 = vmatmul.bf16.vlgmr.msra.gmra.mxu0 %v13110_v48  ;;  %v9280_v55 = vor.u32 %v10076_v38, %v9279_v62  ;;  %v9359_v22 = vld [vmem:[%s13686_s5 + $0x488] sm:$0xf]  ;;  %v10024_v52 = vld [vmem:[%s13686_s5 + $0x254] sm:$0xf0] }
 0x52d   :  { %6447 = vmatpush.bf16.msra.mxu1 %v9196_v46  ;;  %v8897_v46 = vld [vmem:[%s13686_s5 + $0xf8] sm:$0xf0]  ;;  %v9071_v8 = vld [vmem:[%s13686_s5 + $0x248] sm:$0xf]  ;;  %v10064_v26 = vld [vmem:[%s13686_s5 + $0x394] sm:$0xf0] }
 0x52e   :  { %6459 = vmatpush.bf16.msra.mxu3 %v9356_v63  ;;  %6474 = vmatpush.bf16.msrb.mxu0 %v8832_v7  ;;  %v8912_v63 = vor.u32 %v9984_v12, %v8911_v41  ;;  %v9120_v7 = vor.u32 %v10036_v28, %v9119_v15  ;;  %v8900_v6 = vor.u32 %v9978_v60, %v8897_v46  ;;  %v9343_v14 = vld [vmem:[%s13686_s5 + $0x468] sm:$0xf]  ;;  %v10092_v32 = vld [vmem:[%s13686_s5 + $0x474] sm:$0xf0]  ;;  %v9962_v12 = vld [vmem:[%s13686_s5 + $0x6c] sm:$0xf] }
 0x52f   :  { %6487 = vmatpush.bf16.msrb.mxu2 %v8976_v17  ;;  %v10032_v17 = vld [vmem:[%s13686_s5 + $0x294] sm:$0xf0]  ;;  %v9072_v1 = vor.u32 %v10024_v52, %v9071_v8  ;;  %v9344_v51 = vor.u32 %v10092_v32, %v9343_v14  ;;  %v9215_v45 = vld [vmem:[%s13686_s5 + $0x368] sm:$0xf]  ;;  %v10002_v52 = vld [vmem:[%s13686_s5 + $0x1ac] sm:$0xf] }
 0x530   :  { %9416 = vmatmul.msk.bf16.vlgmr.msrb.gmra.mxu3 %vm11294_vm6, %v13053_v53  ;;  %v9327_v56 = vld [vmem:[%s13686_s5 + $0x448] sm:$0xf]  ;;  %v10088_v41 = vld [vmem:[%s13686_s5 + $0x454] sm:$0xf0]  ;;  %v10070_v14 = vld [vmem:[%s13686_s5 + $0x3cc] sm:$0xf] }
 0x531   :  { %6436 = vmatmul.bf16.vlgmr.msra.gmra.mxu2 %v13088_v3  ;;  %6448 = vmatpush.bf16.msra.mxu1 %v9180_v19  ;;  %v9974_v19 = vld [vmem:[%s13686_s5 + $0xcc] sm:$0xf]  ;;  %v9039_v28 = vld [vmem:[%s13686_s5 + $0x208] sm:$0xf]  ;;  %v9328_v38 = vor.u32 %v10088_v41, %v9327_v56  ;;  %v10016_v42 = vld [vmem:[%s13686_s5 + $0x214] sm:$0xf0] }
 0x532   :  { %6460 = vmatpush.bf16.msra.mxu3 %v9340_v18  ;;  %6475 = vmatpush.bf16.msrb.mxu0 %v8816_v24  ;;  %v9104_v18 = vor.u32 %v10032_v17, %v9103_v49  ;;  %v9264_v24 = vor.u32 %v10072_v31, %v9263_v2  ;;  %v8884_v9 = vor.u32 %v9974_v19, %v8881_v21  ;;  %v9199_v58 = vld [vmem:[%s13686_s5 + $0x348] sm:$0xf]  ;;  %v9025_v49 = vld [vmem:[%s13686_s5 + $0x1f8] sm:$0xf0]  ;;  %v10052_v4 = vld [vmem:[%s13686_s5 + $0x334] sm:$0xf0] }
 0x533   :  { %6488 = vmatpush.bf16.msrb.mxu2 %v8960_v20  ;;  %v9247_v20 = vld [vmem:[%s13686_s5 + $0x3a8] sm:$0xf]  ;;  %v9040_v17 = vor.u32 %v10016_v42, %v9039_v28  ;;  %v9265_v32 = vld [vmem:[%s13686_s5 + $0x3d8] sm:$0xf0] }
 0x534   :  { %v9311_v46 = vld [vmem:[%s13686_s5 + $0x428] sm:$0xf]  ;;  %v9137_v41 = vld [vmem:[%s13686_s5 + $0x2d8] sm:$0xf0] }
 0x535   :  { %6449 = vmatpush.bf16.msra.mxu1 %v9164_v54  ;;  %v9088_v54 = vor.u32 %v10028_v39, %v9087_v36  ;;  %v9183_v31 = vld [vmem:[%s13686_s5 + $0x328] sm:$0xf]  ;;  %v10006_v36 = vld [vmem:[%s13686_s5 + $0x1cc] sm:$0xf]  ;;  %v9009_v39 = vld [vmem:[%s13686_s5 + $0x1d8] sm:$0xf0] }
 0x536   :  { %6461 = vmatpush.bf16.msra.mxu3 %v9324_v25  ;;  %6476 = vmatpush.bf16.msrb.mxu0 %v8800_v44  ;;  %v9248_v25 = vor.u32 %v10068_v40, %v9247_v20  ;;  %v9360_v44 = vor.u32 %v10096_v23, %v9359_v22  ;;  %v9295_v21 = vld [vmem:[%s13686_s5 + $0x408] sm:$0xf]  ;;  %v10074_v20 = vld [vmem:[%s13686_s5 + $0x3ec] sm:$0xf]  ;;  %v9184_v40 = vor.u32 %v10052_v4, %v9183_v31  ;;  %v9393_v28 = vld [vmem:[%s13686_s5 + $0x4d8] sm:$0xf0] }
 0x537   :  { %6489 = vmatpush.bf16.msrb.mxu2 %v8944_v43  ;;  %v9231_v43 = vld [vmem:[%s13686_s5 + $0x388] sm:$0xf]  ;;  %v9990_v31 = vld [vmem:[%s13686_s5 + $0x14c] sm:$0xf] }
 0x538   :  { %6450 = vmatmul.bf16.vlgmr.msra.gmra.mxu1 %v13123_v29  ;;  %v9232_v16 = vor.u32 %v10064_v26, %v9231_v43  ;;  %v9167_v23 = vld [vmem:[%s13686_s5 + $0x308] sm:$0xf]  ;;  %v8993_v43 = vld [vmem:[%s13686_s5 + $0x1b8] sm:$0xf0] }
 0x539   :  { %6498 = vmatpush.bf16.msrb.mxu1 %v9152_v35  ;;  %v8868_v35 = vor.u32 %v9970_v13, %v8865_v27  ;;  %v9012_v27 = vor.u32 %v10006_v36, %v9009_v39  ;;  %v9153_v26 = vld [vmem:[%s13686_s5 + $0x2f8] sm:$0xf0] }
 0x53a   :  { %6462 = vmatpush.bf16.msra.mxu3 %v9308_v11  ;;  %6477 = vmatpush.bf16.msrb.mxu0 %v8784_v30  ;;  %v9055_v11 = vld [vmem:[%s13686_s5 + $0x228] sm:$0xf]  ;;  %v10020_v30 = vld [vmem:[%s13686_s5 + $0x234] sm:$0xf0] }
 0x53b   :  { %6490 = vmatpush.bf16.msrb.mxu2 %v8928_v47  ;;  %v8852_v47 = vor.u32 %v9966_v34, %v8849_v50  ;;  %v9056_v15 = vor.u32 %v10020_v30, %v9055_v11  ;;  %v10106_v50 = vld [vmem:[%s13686_s5 + $0x4ec] sm:$0xf]  ;;  %v9268_v30 = vor.u32 %v10070_v14, %v9265_v32  ;;  %v9073_v32 = vld [vmem:[%s13686_s5 + $0x258] sm:$0xf0] }
 0x53d   :  { %6499 = vmatpush.bf16.msrb.mxu1 %v9136_v33  ;;  %9418 = vmatmul.msk.bf16.vlgmr.msrb.gmra.mxu0 %vm11294_vm6, %v13053_v53  ;;  %v10060_v33 = vld [vmem:[%s13686_s5 + $0x374] sm:$0xf0] }
 0x53e   :  { %6526 = vmatpush.bf16.msra.mxu0 %v9408_v37  ;;  %6463 = vmatpush.bf16.msra.mxu3 %v9292_v59  ;;  %v8833_v37 = vld [vmem:[%s13686_s5 + $0x78] sm:$0xf0]  ;;  %v9216_v62 = vor.u32 %v10060_v33, %v9215_v45  ;;  %v10056_v59 = vld [vmem:[%s13686_s5 + $0x354] sm:$0xf0]  ;;  %v9998_v45 = vld [vmem:[%s13686_s5 + $0x18c] sm:$0xf] }
 0x53f   :  { %6491 = vmatpush.bf16.msrb.mxu2 %v8912_v63  ;;  %v8836_v60 = vor.u32 %v9962_v12, %v8833_v37  ;;  %v10084_v63 = vld [vmem:[%s13686_s5 + $0x434] sm:$0xf0]  ;;  %v9200_v2 = vor.u32 %v10056_v59, %v9199_v58  ;;  %v10038_v33 = vld [vmem:[%s13686_s5 + $0x2cc] sm:$0xf]  ;;  %v9249_v37 = vld [vmem:[%s13686_s5 + $0x3b8] sm:$0xf0] }
 0x540   :  { %v10066_v12 = vld [vmem:[%s13686_s5 + $0x3ac] sm:$0xf]  ;;  %v8961_v59 = vld [vmem:[%s13686_s5 + $0x178] sm:$0xf0] }
 0x541   :  { %6500 = vmatpush.bf16.msrb.mxu1 %v9120_v7  ;;  %6464 = vmatmul.bf16.vlgmr.msra.gmra.mxu3 %v13168_v57  ;;  %v9958_v7 = vld [vmem:[%s13686_s5 + $0x4c] sm:$0xf]  ;;  %v9252_v42 = vor.u32 %v10066_v12, %v9249_v37  ;;  %v9313_v37 = vld [vmem:[%s13686_s5 + $0x438] sm:$0xf0] }
 0x542   :  { %6512 = vmatpush.bf16.msrb.mxu3 %v9280_v55  ;;  %6527 = vmatpush.bf16.msra.mxu0 %v9392_v0  ;;  %v8817_v55 = vld [vmem:[%s13686_s5 + $0x58] sm:$0xf0]  ;;  %v10010_v0 = vld [vmem:[%s13686_s5 + $0x1ec] sm:$0xf] }
 0x543   :  { %6540 = vmatpush.bf16.msra.mxu2 %v8900_v6  ;;  %v9312_v6 = vor.u32 %v10084_v63, %v9311_v46  ;;  %v8820_v5 = vor.u32 %v9958_v7, %v8817_v55  ;;  %v9028_v19 = vor.u32 %v10010_v0, %v9025_v49  ;;  %v9994_v58 = vld [vmem:[%s13686_s5 + $0x16c] sm:$0xf]  ;;  %v9121_v63 = vld [vmem:[%s13686_s5 + $0x2b8] sm:$0xf0] }
 0x544   :  { %6492 = vmatmul.bf16.vlgmr.msrb.gmra.mxu2 %v13110_v48  ;;  %v10062_v7 = vld [vmem:[%s13686_s5 + $0x38c] sm:$0xf]  ;;  %v9233_v55 = vld [vmem:[%s13686_s5 + $0x398] sm:$0xf0] }
 0x545   :  { %6501 = vmatpush.bf16.msrb.mxu1 %v9104_v18  ;;  %v10080_v18 = vld [vmem:[%s13686_s5 + $0x414] sm:$0xf0]  ;;  %v10098_v0 = vld [vmem:[%s13686_s5 + $0x4ac] sm:$0xf]  ;;  %v9377_v49 = vld [vmem:[%s13686_s5 + $0x4b8] sm:$0xf0] }
 0x546   :  { %6513 = vmatpush.bf16.msrb.mxu3 %v9264_v24  ;;  %6528 = vmatpush.bf16.msra.mxu0 %v9376_v61  ;;  %v9954_v24 = vld [vmem:[%s13686_s5 + $0x2c] sm:$0xf]  ;;  %v8801_v61 = vld [vmem:[%s13686_s5 + $0x38] sm:$0xf0]  ;;  %v9296_v22 = vor.u32 %v10080_v18, %v9295_v21  ;;  %v9380_v4 = vor.u32 %v10098_v0, %v9377_v49 }
 0x547   :  { %6541 = vmatpush.bf16.msra.mxu2 %v8884_v9  ;;  %v9281_v9 = vld [vmem:[%s13686_s5 + $0x3f8] sm:$0xf0]  ;;  %v8804_v13 = vor.u32 %v9954_v24, %v8801_v61  ;;  %v10094_v18 = vld [vmem:[%s13686_s5 + $0x48c] sm:$0xf]  ;;  %v8948_v61 = vor.u32 %v9990_v31, %v8945_v10 }
 0x548   :  { %v9284_v8 = vor.u32 %v10074_v20, %v9281_v9  ;;  %v9217_v21 = vld [vmem:[%s13686_s5 + $0x378] sm:$0xf0]  ;;  %v9986_v20 = vld [vmem:[%s13686_s5 + $0x12c] sm:$0xf] }
 0x549   :  { %6502 = vmatpush.bf16.msrb.mxu1 %v9088_v54  ;;  %v10048_v54 = vld [vmem:[%s13686_s5 + $0x314] sm:$0xf0]  ;;  %v9361_v24 = vld [vmem:[%s13686_s5 + $0x498] sm:$0xf0]  ;;  %v10082_v12 = vld [vmem:[%s13686_s5 + $0x42c] sm:$0xf] }
 0x54a   :  { %6514 = vmatpush.bf16.msrb.mxu3 %v9248_v25  ;;  %6529 = vmatpush.bf16.msra.mxu0 %v9360_v44  ;;  %v9950_v25 = vld [vmem:[%s13686_s5 + $0xc] sm:$0xf]  ;;  %v8785_v44 = vld [vmem:[%s13686_s5 + $0x18] sm:$0xf0]  ;;  %v9168_v34 = vor.u32 %v10048_v54, %v9167_v23 }
 0x54b   :  { %6542 = vmatpush.bf16.msra.mxu2 %v8868_v35  ;;  %v10042_v35 = vld [vmem:[%s13686_s5 + $0x2ec] sm:$0xf]  ;;  %v8929_v9 = vld [vmem:[%s13686_s5 + $0x138] sm:$0xf0] }
 0x54c   :  { %v9156_v11 = vor.u32 %v10042_v35, %v9153_v26  ;;  %v9089_v23 = vld [vmem:[%s13686_s5 + $0x278] sm:$0xf0]  ;;  %v10090_v54 = vld [vmem:[%s13686_s5 + $0x46c] sm:$0xf] }
 0x54d   :  { %6503 = vmatpush.bf16.msrb.mxu1 %v9072_v1  ;;  %v9409_v1 = vld [vmem:[%s13686_s5 + $0x4f8] sm:$0xf0]  ;;  %v10022_v26 = vld [vmem:[%s13686_s5 + $0x24c] sm:$0xf] }
 0x54e   :  { %6515 = vmatpush.bf16.msrb.mxu3 %v9232_v16  ;;  %6530 = vmatpush.bf16.msra.mxu0 %v9344_v51  ;;  %v8788_v16 = vor.u32 %v9950_v25, %v8785_v44  ;;  %v8996_v51 = vor.u32 %v10002_v52, %v8993_v43  ;;  %v9412_v56 = vor.u32 %v10106_v50, %v9409_v1  ;;  %v9345_v25 = vld [vmem:[%s13686_s5 + $0x478] sm:$0xf0]  ;;  %v9982_v43 = vld [vmem:[%s13686_s5 + $0x10c] sm:$0xf] }
 0x54f   :  { %6543 = vmatpush.bf16.msra.mxu2 %v8852_v47  ;;  %v8977_v47 = vld [vmem:[%s13686_s5 + $0x198] sm:$0xf0]  ;;  %v8932_v44 = vor.u32 %v9986_v20, %v8929_v9  ;;  %v9348_v14 = vor.u32 %v10090_v54, %v9345_v25  ;;  %v10086_v1 = vld [vmem:[%s13686_s5 + $0x44c] sm:$0xf] }
 0x550   :  { %v8913_v35 = vld [vmem:[%s13686_s5 + $0x118] sm:$0xf0] }
 0x551   :  { %6504 = vmatpush.bf16.msrb.mxu1 %v9056_v15  ;;  %v10102_v15 = vld [vmem:[%s13686_s5 + $0x4cc] sm:$0xf]  ;;  %v9185_v50 = vld [vmem:[%s13686_s5 + $0x338] sm:$0xf0] }
 0x552   :  { %6516 = vmatpush.bf16.msrb.mxu3 %v9216_v62  ;;  %6531 = vmatpush.bf16.msra.mxu0 %v9328_v38  ;;  %v8980_v62 = vor.u32 %v9998_v45, %v8977_v47  ;;  %v9140_v38 = vor.u32 %v10038_v33, %v9137_v41  ;;  %v9396_v46 = vor.u32 %v10102_v15, %v9393_v28  ;;  %v10018_v45 = vld [vmem:[%s13686_s5 + $0x22c] sm:$0xf]  ;;  %v9057_v33 = vld [vmem:[%s13686_s5 + $0x238] sm:$0xf0] }
 0x553   :  { %6544 = vmatpush.bf16.msra.mxu2 %v8836_v60  ;;  %v10034_v60 = vld [vmem:[%s13686_s5 + $0x2ac] sm:$0xf]  ;;  %v9169_v41 = vld [vmem:[%s13686_s5 + $0x318] sm:$0xf0]  ;;  %v9060_v15 = vor.u32 %v10018_v45, %v9057_v33 }
 0x555   :  { %6505 = vmatpush.bf16.msrb.mxu1 %v9040_v17  ;;  %v8964_v17 = vor.u32 %v9994_v58, %v8961_v59  ;;  %v10078_v58 = vld [vmem:[%s13686_s5 + $0x40c] sm:$0xf]  ;;  %v9297_v59 = vld [vmem:[%s13686_s5 + $0x418] sm:$0xf0] }
 0x556   :  { %6517 = vmatpush.bf16.msrb.mxu3 %v9200_v2  ;;  %6532 = vmatpush.bf16.msra.mxu0 %v9312_v6  ;;  %v9124_v2 = vor.u32 %v10034_v60, %v9121_v63  ;;  %v9236_v6 = vor.u32 %v10062_v7, %v9233_v55  ;;  %v13672_v63 = vld [vmem:[%s13687_s6] sm:$0xf] }
 0x557   :  { %6545 = vmatpush.bf16.msra.mxu2 %v8820_v5  ;;  %v9105_v5 = vld [vmem:[%s13686_s5 + $0x298] sm:$0xf0]  ;;  %v5522_v55 = vperm.slane %v13672_v63, 0  ;;  %v5524_v45 = vperm.slane %v13672_v63, 2 }
 0x558   :  { %6506 = vmatmul.bf16.vlgmr.msrb.gmra.mxu1 %v13088_v3 }
 0x559   :  { %6554 = vmatpush.bf16.msra.mxu1 %v9028_v19  ;;  %v10058_v19 = vld [vmem:[%s13686_s5 + $0x36c] sm:$0xf] }
 0x55a   :  { %6518 = vmatpush.bf16.msrb.mxu3 %v9184_v40  ;;  %6533 = vmatpush.bf16.msra.mxu0 %v9296_v22  ;;  %v9220_v39 = vor.u32 %v10058_v19, %v9217_v21  ;;  %v10026_v40 = vld [vmem:[%s13686_s5 + $0x26c] sm:$0xf]  ;;  %v9364_v22 = vor.u32 %v10094_v18, %v9361_v24 }
 0x55b   :  { %6546 = vmatpush.bf16.msra.mxu2 %v8804_v13  ;;  %v10054_v13 = vld [vmem:[%s13686_s5 + $0x34c] sm:$0xf] }
 0x55d   :  { %6555 = vmatpush.bf16.msra.mxu1 %v9012_v27  ;;  %6534 = vmatmul.bf16.vlgmr.msra.gmra.mxu0 %v13168_v57  ;;  %v9201_v27 = vld [vmem:[%s13686_s5 + $0x358] sm:$0xf0] }
 0x55e   :  { %6582 = vmatpush.bf16.msrb.mxu0 %v9284_v8  ;;  %6519 = vmatpush.bf16.msrb.mxu3 %v9168_v34  ;;  %v9092_v8 = vor.u32 %v10026_v40, %v9089_v23  ;;  %v9204_v52 = vor.u32 %v10054_v13, %v9201_v27  ;;  %v10050_v34 = vld [vmem:[%s13686_s5 + $0x32c] sm:$0xf] }
 0x55f   :  { %6547 = vmatpush.bf16.msra.mxu2 %v8788_v16  ;;  %v9329_v16 = vld [vmem:[%s13686_s5 + $0x458] sm:$0xf0] }
 0x560   :  { %v9332_v47 = vor.u32 %v10086_v1, %v9329_v16 }
 0x561   :  { %6556 = vmatpush.bf16.msra.mxu1 %v8996_v51  ;;  %6520 = vmatmul.bf16.vlgmr.msrb.gmra.mxu3 %v13123_v29  ;;  %v8916_v51 = vor.u32 %v9982_v43, %v8913_v35 }
 0x562   :  { %6568 = vmatpush.bf16.msra.mxu3 %v9156_v11  ;;  %6583 = vmatpush.bf16.msrb.mxu0 %v9268_v30  ;;  %v9076_v11 = vor.u32 %v10022_v26, %v9073_v32  ;;  %v9188_v30 = vor.u32 %v10050_v34, %v9185_v50 }
 0x563   :  { %6596 = vmatpush.bf16.msrb.mxu2 %v9412_v56  ;;  %v10046_v56 = vld [vmem:[%s13686_s5 + $0x30c] sm:$0xf] }
 0x564   :  { %9420 = vmatmul.msk.bf16.vlgmr.msra.gmra.mxu2 %vm11294_vm6, %v13053_v53  ;;  %v10030_v53 = vld [vmem:[%s13686_s5 + $0x28c] sm:$0xf]  ;;  %v9172_v28 = vor.u32 %v10046_v56, %v9169_v41 }
 0x565   :  { %6557 = vmatpush.bf16.msra.mxu1 %v8980_v62  ;;  %v9108_v36 = vor.u32 %v10030_v53, %v9105_v5  ;;  %v9316_v62 = vor.u32 %v10082_v12, %v9313_v37 }
 0x566   :  { %6569 = vmatpush.bf16.msra.mxu3 %v9140_v38  ;;  %6584 = vmatpush.bf16.msrb.mxu0 %v9252_v42  ;;  %v10014_v38 = vld [vmem:[%s13686_s5 + $0x20c] sm:$0xf]  ;;  %v9041_v42 = vld [vmem:[%s13686_s5 + $0x218] sm:$0xf0]  ;;  %s10144_s5 = smov [#allocation2]  }
 0x567   :  { %6597 = vmatpush.bf16.msrb.mxu2 %v9396_v46  ;;  %v9044_v60 = vor.u32 %v10014_v38, %v9041_v42  ;;  %v9300_v46 = vor.u32 %v10078_v58, %v9297_v59  ;;  %s6631_s6 = sshll.u32 %s10144_s5, 4  ;;  %s6632_s6 = int_to_ptr.vmem [resolvable:$true] %s6631_s6 }
 0x569   :  { %6558 = vmatpush.bf16.msra.mxu1 %v8964_v17 }
 0x56a   :  { %6570 = vmatpush.bf16.msra.mxu3 %v9124_v2  ;;  %6585 = vmatpush.bf16.msrb.mxu0 %v9236_v6 }
 0x56b   :  { %6598 = vmatpush.bf16.msrb.mxu2 %v9380_v4 }
 0x56d   :  { %6559 = vmatpush.bf16.msra.mxu1 %v8948_v61 }
 0x56e   :  { %6571 = vmatpush.bf16.msra.mxu3 %v9108_v36  ;;  %6586 = vmatpush.bf16.msrb.mxu0 %v9220_v39  ;;  %v5523_v39 = vperm.slane %v13672_v63, 1 }
 0x56f   :  { %6599 = vmatpush.bf16.msrb.mxu2 %v9364_v22 }
 0x571   :  { %6560 = vmatpush.bf16.msra.mxu1 %v8932_v44 }
 0x572   :  { %6572 = vmatpush.bf16.msra.mxu3 %v9092_v8  ;;  %6587 = vmatpush.bf16.msrb.mxu0 %v9204_v52 }
 0x573   :  { %6600 = vmatpush.bf16.msrb.mxu2 %v9348_v14 }
 0x575   :  { %6561 = vmatpush.bf16.msra.mxu1 %v8916_v51 }
 0x576   :  { %6573 = vmatpush.bf16.msra.mxu3 %v9076_v11  ;;  %6588 = vmatpush.bf16.msrb.mxu0 %v9188_v30 }
 0x577   :  { %6601 = vmatpush.bf16.msrb.mxu2 %v9332_v47 }
 0x578   :  { %6562 = vmatmul.bf16.vlgmr.msra.gmra.mxu1 %v13110_v48 }
 0x57a   :  { %6574 = vmatpush.bf16.msra.mxu3 %v9060_v15  ;;  %6589 = vmatpush.bf16.msrb.mxu0 %v9172_v28 }
 0x57b   :  { %6602 = vmatpush.bf16.msrb.mxu2 %v9316_v62 }
 0x57d   :  { %6590 = vmatmul.bf16.vlgmr.msrb.gmra.mxu0 %v13123_v29 }
 0x57e   :  { %6575 = vmatpush.bf16.msra.mxu3 %v9044_v60 }
 0x57f   :  { %6603 = vmatpush.bf16.msrb.mxu2 %v9300_v46 }
 0x581   :  { %6576 = vmatmul.bf16.vlgmr.msra.gmra.mxu3 %v13088_v3 }
 0x582   :  { %6604 = vmatmul.bf16.vlgmr.msrb.gmra.mxu2 %v13168_v57 }
 0x595   :  { %v6339_v48 = vpop.f32.mrf.mxu1 }
 0x596   :  { %v6340_v0 = vadd.f32 %v6339_v48, %v5522_v55 }
 0x599   :  { %v6367_v49 = vpop.f32.mrf.mxu0 }
 0x59d   :  { %v6341_v7 = vpop.f32.mrf.mxu1 }
 0x59e   :  { %v6342_v3 = vadd.f32 %v6341_v7, %v5522_v55 }
 0x5a1   :  { %v6369_v19 = vpop.f32.mrf.mxu0 }
 0x5a3   :  { %v6353_v17 = vpop.f32.mrf.mxu3 }
 0x5a4   :  { %v6354_v2 = vadd.f32 %v6353_v17, %v6340_v0  ;;  %v6381_v29 = vpop.f32.mrf.mxu2 }
 0x5a5   :  { %v6395_v31 = vpop.f32.mrf.mxu1 }
 0x5a6   :  { %v6368_v6 = vadd.f32 %v6367_v49, %v6354_v2 }
 0x5a8   :  { %v6382_v10 = vadd.f32 %v6381_v29, %v6368_v6  ;;  %v5525_v29 = vperm.slane %v13672_v63, 3 }
 0x5a9   :  { %v6423_v22 = vpop.f32.mrf.mxu0 }
 0x5aa   :  { %v6396_v53 = vadd.f32 %v6395_v31, %v6382_v10 }
 0x5ab   :  { %v6355_v57 = vpop.f32.mrf.mxu3 }
 0x5ac   :  { %v6610_v4 = vmax.f32 %v6396_v53, 0.0  ;;  %v6356_v5 = vadd.f32 %v6355_v57, %v6342_v3  ;;  %v6383_v18 = vpop.f32.mrf.mxu2 }
 0x5ad   :  { %v6397_v61 = vpop.f32.mrf.mxu1 }
 0x5ae   :  { %6619 = vst [vmem:[#allocation2 + $0x40] sm:$0xff] %v6610_v4  ;;  %v6370_v21 = vadd.f32 %v6369_v19, %v6356_v5 }
 0x5b0   :  { %v6384_v24 = vadd.f32 %v6383_v18, %v6370_v21 }
 0x5b1   :  { %v6425_v8 = vpop.f32.mrf.mxu0 }
 0x5b2   :  { %v6398_v36 = vadd.f32 %v6397_v61, %v6384_v24 }
 0x5b3   :  { %v6409_v20 = vpop.f32.mrf.mxu3 }
 0x5b4   :  { %v6614_v9 = vmax.f32 %v6398_v36, 0.0  ;;  %v6410_v40 = vadd.f32 %v6409_v20, %v5523_v39  ;;  %v6437_v27 = vpop.f32.mrf.mxu2 }
 0x5b5   :  { %v6451_v44 = vpop.f32.mrf.mxu1 }
 0x5b6   :  { %6623 = vst [vmem:[#allocation2 + $0x60] sm:$0xff] %v6614_v9  ;;  %v6424_v23 = vadd.f32 %v6423_v22, %v6410_v40 }
 0x5b8   :  { %v6438_v54 = vadd.f32 %v6437_v27, %v6424_v23 }
 0x5ba   :  { %v6452_v52 = vadd.f32 %v6451_v44, %v6438_v54  ;;  %v6479_v30 = vpop.f32.mrf.mxu0 }
 0x5bb   :  { %v6411_v13 = vpop.f32.mrf.mxu3  ;;  %v6480_v41 = vadd.f32 %v6479_v30, %v5524_v45 }
 0x5bc   :  { %v6412_v25 = vadd.f32 %v6411_v13, %v5523_v39  ;;  %v6439_v14 = vpop.f32.mrf.mxu2 }
 0x5bd   :  { %v6453_v50 = vpop.f32.mrf.mxu1 }
 0x5be   :  { %v6426_v43 = vadd.f32 %v6425_v8, %v6412_v25 }
 0x5c0   :  { %v6440_v32 = vadd.f32 %v6439_v14, %v6426_v43 }
 0x5c2   :  { %v6454_v1 = vadd.f32 %v6453_v50, %v6440_v32  ;;  %v6481_v47 = vpop.f32.mrf.mxu0 }
 0x5c3   :  { %v6482_v42 = vadd.f32 %v6481_v47, %v5524_v45 }
 0x5c4   :  { %v6465_v35 = vpop.f32.mrf.mxu3 }
 0x5c5   :  { %v6466_v26 = vadd.f32 %v6465_v35, %v6452_v52 }
 0x5c7   :  { %v6611_v34 = vmax.f32 %v6466_v26, 0.0  ;;  %v6493_v33 = vpop.f32.mrf.mxu2 }
 0x5c8   :  { %v6494_v12 = vadd.f32 %v6493_v33, %v6480_v41 }
 0x5c9   :  { %6620 = vst [vmem:[#allocation2 + $0x48] sm:$0xff] %v6611_v34 }
 0x5cc   :  { %v6467_v16 = vpop.f32.mrf.mxu3 }
 0x5cd   :  { %v6468_v51 = vadd.f32 %v6467_v16, %v6454_v1 }
 0x5cf   :  { %v6615_v11 = vmax.f32 %v6468_v51, 0.0  ;;  %v6495_v38 = vpop.f32.mrf.mxu2 }
 0x5d0   :  { %v6496_v60 = vadd.f32 %v6495_v38, %v6482_v42 }
 0x5d1   :  { %6624 = vst [vmem:[#allocation2 + $0x68] sm:$0xff] %v6615_v11 }
 0x5d5   :  { %v6507_v56 = vpop.f32.mrf.mxu1 }
 0x5d6   :  { %v6508_v37 = vadd.f32 %v6507_v56, %v6494_v12 }
 0x5da   :  { %v6535_v15 = vpop.f32.mrf.mxu0 }
 0x5dd   :  { %v6509_v59 = vpop.f32.mrf.mxu1 }
 0x5de   :  { %v6510_v48 = vadd.f32 %v6509_v59, %v6496_v60 }
 0x5e2   :  { %v6537_v0 = vpop.f32.mrf.mxu0 }
 0x5e4   :  { %v6521_v28 = vpop.f32.mrf.mxu3 }
 0x5e5   :  { %v6522_v62 = vadd.f32 %v6521_v28, %v6508_v37 }
 0x5e7   :  { %v6536_v58 = vadd.f32 %v6535_v15, %v6522_v62  ;;  %v6549_v2 = vpop.f32.mrf.mxu2 }
 0x5e8   :  { %v6550_v10 = vadd.f32 %v6549_v2, %v5525_v29 }
 0x5e9   :  { %v6612_v46 = vmax.f32 %v6536_v58, 0.0 }
 0x5eb   :  { %6621 = vst [vmem:[#allocation2 + $0x50] sm:$0xff] %v6612_v46 }
 0x5ec   :  { %v6523_v7 = vpop.f32.mrf.mxu3 }
 0x5ed   :  { %v6524_v55 = vadd.f32 %v6523_v7, %v6510_v48 }
 0x5ef   :  { %v6538_v49 = vadd.f32 %v6537_v0, %v6524_v55  ;;  %v6551_v6 = vpop.f32.mrf.mxu2 }
 0x5f0   :  { %v6552_v18 = vadd.f32 %v6551_v6, %v5525_v29 }
 0x5f1   :  { %v6616_v17 = vmax.f32 %v6538_v49, 0.0 }
 0x5f3   :  { %6625 = vst [vmem:[#allocation2 + $0x70] sm:$0xff] %v6616_v17 }
 0x5f5   :  { %v6563_v31 = vpop.f32.mrf.mxu1 }
 0x5f6   :  { %v6564_v3 = vadd.f32 %v6563_v31, %v6550_v10 }
 0x5fa   :  { %v6591_v53 = vpop.f32.mrf.mxu0 }
 0x5fd   :  { %v6565_v21 = vpop.f32.mrf.mxu1 }
 0x5fe   :  { %v6566_v61 = vadd.f32 %v6565_v21, %v6552_v18 }
 0x602   :  { %v6593_v9 = vpop.f32.mrf.mxu0 }
 0x604   :  { %v6577_v57 = vpop.f32.mrf.mxu3 }
 0x605   :  { %v6578_v4 = vadd.f32 %v6577_v57, %v6564_v3  ;;  %v6605_v5 = vpop.f32.mrf.mxu2 }
 0x607   :  { %v6592_v19 = vadd.f32 %v6591_v53, %v6578_v4 }
 0x609   :  { %v6606_v24 = vadd.f32 %v6605_v5, %v6592_v19 }
 0x60b   :  { %v6613_v36 = vmax.f32 %v6606_v24, 0.0 }
 0x60c   :  { %v6579_v39 = vpop.f32.mrf.mxu3 }
 0x60d   :  { %6622 = vst [vmem:[#allocation2 + $0x58] sm:$0xff] %v6613_v36  ;;  %v6580_v20 = vadd.f32 %v6579_v39, %v6566_v61  ;;  %v6607_v63 = vpop.f32.mrf.mxu2 }
 0x60f   :  { %v6594_v40 = vadd.f32 %v6593_v9, %v6580_v20 }
 0x611   :  { %v6608_v22 = vadd.f32 %v6607_v63, %v6594_v40 }
 0x613   :  { %v6617_v23 = vmax.f32 %v6608_v22, 0.0 }
 0x615   :  { %6626 = vst [vmem:[#allocation2 + $0x78] sm:$0xff] %v6617_v23 }
 0x616   :  { %6639 = dma.vmem_to_hbm [thread:$0]  %s6632_s6, 2048, %s6634_s22, [#allocation3], %s10145_s2, %s10145_s2, %s10146_s23  }
 0x617   :  { %10141 = dma.done.wait [#allocation3], 2048  }
 0x618   :  { %10142 = vsyncadd [#allocation3], 4294965248 }
 0x619   :  { %6644 = vsyncpa [#allocation3], 1 }

</bundles_post_ra>
